<compile_context>
chip_gen: v5e
topology: v5e:2x2
jax: 0.10.0
libtpu: 0.0.40
codegen_flags: <defaults>
</compile_context>

<pallas_src>
import numpy as np

import jax
import jax.numpy as jnp
from jax import lax
from jax.experimental import pallas as pl
from jax.experimental.pallas import tpu as pltpu

CLAMP = 2.0  # sigmoid-clamped exponent constant for the affine coupling
CP = 8       # channel padding to the 8-sublane vreg height


def _make_inn_kernel(H, W, HW_pad, num_blocks, imgs_per_step):
    # Tap offsets (dh, dw) for the 3x3 kernel; t = (dh + 1) * 3 + (dw + 1).
    taps = [(dh, dw) for dh in (-1, 0, 1) for dw in (-1, 0, 1)]

    def kernel(wphi_ref, wre_ref, bphi_ref, bre_ref, m_ref,
               x1_ref, x2_ref, o1_ref, o2_ref):

        def build_patches(x):
            # x: (CP, HW_pad) with rows >= C zero.  9 lane-rolled, tap-masked
            # copies stacked on sublanes at 8-aligned offsets -> (9*CP, HW_pad);
            # the concat is pure vreg placement (no cross-sublane packing).
            pieces = []
            for t, (dh, dw) in enumerate(taps):
                d = dh * W + dw
                if d == 0:
                    pieces.append(x)          # center tap: always valid
                    continue
                # out[:, p] = x[:, (p + d) % HW_pad]; wrapped / out-of-image
                # lanes are zeroed by the tap mask (loaded per-use from VMEM).
                p = pltpu.roll(x, (-d) % HW_pad, 1)
                pieces.append(p * m_ref[t])
            return jnp.concatenate(pieces, axis=0)

        def contract(w, patches):
            # Tiny matmul on the otherwise-idle MXU; HIGHEST keeps f32 accuracy.
            return jnp.dot(w, patches,
                           preferred_element_type=jnp.float32,
                           precision=lax.Precision.HIGHEST)

        for img in range(imgs_per_step):
            y1 = x1_ref[img].astype(jnp.float32)   # (CP, HW_pad) image branch
            y2 = x2_ref[img].astype(jnp.float32)   # (CP, HW_pad) template branch

            for blk in range(num_blocks):
                # x1 <- x1 + phi(x2)
                y1 = y1 + contract(wphi_ref[blk], build_patches(y2)) + bphi_ref[blk]
                # rho and eta share y1's patches via one fused (2*CP, 9*CP) slab.
                st = contract(wre_ref[blk], build_patches(y1)) + bre_ref[blk]
                s, t_eta = st[:CP], st[CP:]
                # exp(CLAMP*(2*sigmoid(s)-1)) == exp(CLAMP*tanh(s/2))  (EUP only)
                y2 = y2 * jnp.exp(CLAMP * jnp.tanh(0.5 * s)) + t_eta

            o1_ref[img] = y1.astype(o1_ref.dtype)
            o2_ref[img] = y2.astype(o2_ref.dtype)

    return kernel


def _tap_masks(H, W, HW_pad):
    """9 zero-padding validity masks of a 3x3 SAME conv, pre-broadcast to
    (9, CP, HW_pad).  Padded lanes (>= H*W) are marked invalid."""
    hh, ww = np.meshgrid(np.arange(H), np.arange(W), indexing="ij")
    hh = hh.reshape(-1)
    ww = ww.reshape(-1)
    rows = []
    for dh in (-1, 0, 1):
        for dw in (-1, 0, 1):
            m = ((hh + dh >= 0) & (hh + dh < H) &
                 (ww + dw >= 0) & (ww + dw < W)).astype(np.float32)
            rows.append(np.pad(m, (0, HW_pad - H * W)))
    masks = np.stack(rows)                                      # (9, HW_pad)
    return np.ascontiguousarray(
        np.broadcast_to(masks[:, None, :], (9, CP, HW_pad)))


def init_params(key, in_channels=3, num_blocks=8):
    """Deterministic synthetic parameters.

    Each of `num_blocks` coupling blocks has 3 subnets (phi, rho, eta), each a
    Conv2d(C, C, kernel_size=3, padding=1) with bias.
    Weight layout: (((block*3 + subnet)*9 + kh*3 + kw), ci, co).
    """
    C = in_channels
    kw_key, kb_key = jax.random.split(key)
    w = 0.05 * jax.random.normal(
        kw_key, (num_blocks * 3 * 9, C, C), dtype=jnp.float32)
    b = 0.05 * jax.random.normal(
        kb_key, (num_blocks, 3, C), dtype=jnp.float32)
    return {"w": w, "b": b}


def stegano_forward(params, image, template=None, images_per_step=None):
    """Forward pass: returns (stego_image, stego_template_remains), NCHW."""
    if template is None:
        template = jnp.zeros_like(image)
    N, C, H, W = image.shape
    assert C <= CP, "channel count must fit one sublane group"
    HW = H * W
    HW_pad = ((HW + 127) // 128) * 128
    nb = params["b"].shape[0]

    # Pack 2 images per grid step only when that keeps the parallel grid even
    # (v7x has 2 TensorCores); otherwise one image per step.
    if images_per_step is None:
        images_per_step = 2 if (N % 4 == 0) else 1
    assert N % images_per_step == 0
    Nb = images_per_step

    # NCHW -> (N, CP, HW_pad): channels padded to 8 sublanes, flattened spatial
    # padded to a multiple of 128 lanes (aligned DMAs, unmasked stores).
    def prep(x):
        x = x.reshape(N, C, HW).astype(jnp.float32)
        return jnp.pad(x, ((0, 0), (0, CP - C), (0, HW_pad - HW)))

    x1 = prep(image)
    x2 = prep(template)

    # im2col weight slabs: one (CP, 9*CP) matrix per (block, subnet), columns
    # indexed by tap*CP + ci, rows by co (zero-padded beyond C).  rho and eta
    # are concatenated into a single (2*CP, 9*CP) slab so y1's patches are
    # contracted once per block.  All parameters stay VMEM-resident (~55 KB).
    w6 = params["w"].reshape(nb, 3, 9, C, C)                    # (blk,sub,tap,ci,co)
    w_t = jnp.transpose(w6, (0, 1, 4, 2, 3))                    # (blk,sub,co,tap,ci)
    w_t = jnp.pad(w_t, ((0, 0), (0, 0), (0, CP - C), (0, 0), (0, CP - C)))
    w_t = w_t.reshape(nb, 3, CP, 9 * CP)
    w_phi = w_t[:, 0]                                           # (nb, CP, 9*CP)
    w_re = jnp.concatenate([w_t[:, 1], w_t[:, 2]], axis=1)      # (nb, 2*CP, 9*CP)

    b_pad = jnp.pad(params["b"], ((0, 0), (0, 0), (0, CP - C)))  # (nb, 3, CP)
    b_phi = b_pad[:, 0, :, None]                                 # (nb, CP, 1)
    b_re = jnp.concatenate([b_pad[:, 1], b_pad[:, 2]], axis=1)[:, :, None]

    masks = jnp.asarray(_tap_masks(H, W, HW_pad))                # (9, CP, HW_pad)

    kernel = _make_inn_kernel(H, W, HW_pad, nb, Nb)

    const = lambda n: (0, 0, 0)
    batch = lambda n: (n, 0, 0)
    grid_spec = pltpu.PrefetchScalarGridSpec(
        num_scalar_prefetch=0,
        grid=(N // Nb,),
        in_specs=[
            pl.BlockSpec((nb, CP, 9 * CP), const),        # phi weight slabs
            pl.BlockSpec((nb, 2 * CP, 9 * CP), const),    # fused rho+eta slabs
            pl.BlockSpec((nb, CP, 1), const),             # phi biases
            pl.BlockSpec((nb, 2 * CP, 1), const),         # rho+eta biases
            pl.BlockSpec((9, CP, HW_pad), const),         # tap-validity masks
            pl.BlockSpec((Nb, CP, HW_pad), batch),        # image
            pl.BlockSpec((Nb, CP, HW_pad), batch),        # template
        ],
        out_specs=[
            pl.BlockSpec((Nb, CP, HW_pad), batch),        # stego image
            pl.BlockSpec((Nb, CP, HW_pad), batch),        # template remains
        ],
    )

    y1, y2 = pl.pallas_call(
        kernel,
        out_shape=(jax.ShapeDtypeStruct((N, CP, HW_pad), jnp.float32),
                   jax.ShapeDtypeStruct((N, CP, HW_pad), jnp.float32)),
        grid_spec=grid_spec,
        compiler_params=pltpu.CompilerParams(
            dimension_semantics=("parallel",)),
    )(w_phi, w_re, b_phi, b_re, masks, x1, x2)

    y1 = y1[:, :C, :HW].reshape(N, C, H, W)
    y2 = y2[:, :C, :HW].reshape(N, C, H, W)
    return y1, y2


class SteganoNetwork:
    """Mirror of the PyTorch module's public surface (forward only)."""

    def __init__(self, in_channels=3, num_blocks=8, key=jax.random.PRNGKey(0)):
        self.params = init_params(key, in_channels, num_blocks)

    def forward(self, image, template=None, extract_mode=False):
        if extract_mode:
            raise NotImplementedError("Use extract_template for INNs.")
        return stegano_forward(self.params, image, template)

    __call__ = forward

    def extract_template(self, stego_image, stego_template_remains):
        # TODO(synk): inverse (reverse) pass of the INN not required by forward().
        raise NotImplementedError

    def reverse(self, stego_image, stego_template_remains):
        # TODO(synk): inverse (reverse) pass of the INN not required by forward().
        raise NotImplementedError


def _reference_forward(params, image, template):
    """Pure-JAX reference (lax.conv, HIGHEST precision) for correctness checks."""
    x1 = jnp.transpose(image, (0, 2, 3, 1))
    x2 = jnp.transpose(template, (0, 2, 3, 1))
    nb, _, C = params["b"].shape
    w = params["w"].reshape(nb, 3, 3, 3, C, C)  # (blk, subnet, kh, kw, ci, co)
    b = params["b"]

    def conv(x, blk, k):
        out = lax.conv_general_dilated(
            x, w[blk, k], window_strides=(1, 1), padding="SAME",
            dimension_numbers=("NHWC", "HWIO", "NHWC"),
            precision=lax.Precision.HIGHEST)
        return out + b[blk, k]

    for blk in range(nb):
        x1 = x1 + conv(x2, blk, 0)
        s = conv(x1, blk, 1)
        t = conv(x1, blk, 2)
        x2 = x2 * jnp.exp(CLAMP * (jax.nn.sigmoid(s) * 2.0 - 1.0)) + t
    return (jnp.transpose(x1, (0, 3, 1, 2)), jnp.transpose(x2, (0, 3, 1, 2)))


if __name__ == "__main__":
    key = jax.random.PRNGKey(0)
    k_param, k_img, k_tpl = jax.random.split(key, 3)

    N, C, H, W = 2, 3, 16, 16
    num_blocks = 8

    net = SteganoNetwork(in_channels=C, num_blocks=num_blocks, key=k_param)
    image = jax.random.normal(k_img, (N, C, H, W), dtype=jnp.float32)
    template = jax.random.normal(k_tpl, (N, C, H, W), dtype=jnp.float32)

    stego, remains = net(image, template)
    jax.block_until_ready((stego, remains))

    ref_stego, ref_remains = _reference_forward(net.params, image, template)
    np.testing.assert_allclose(np.asarray(stego), np.asarray(ref_stego),
                               rtol=1e-3, atol=1e-3)
    np.testing.assert_allclose(np.asarray(remains), np.asarray(ref_remains),
                               rtol=1e-3, atol=1e-3)

    print("KERNEL_OK")
</pallas_src>

<mosaic_0001>
module attributes {stable_mosaic.version = 11 : i64} {
  func.func @kernel(%arg0: i32, %arg1: memref<8x8x72xf32, #tpu.memory_space<vmem>>, %arg2: memref<8x16x72xf32, #tpu.memory_space<vmem>>, %arg3: memref<8x8x1xf32, #tpu.memory_space<vmem>>, %arg4: memref<8x16x1xf32, #tpu.memory_space<vmem>>, %arg5: memref<9x8x256xf32, #tpu.memory_space<vmem>>, %arg6: memref<1x8x256xf32, #tpu.memory_space<vmem>>, %arg7: memref<1x8x256xf32, #tpu.memory_space<vmem>>, %arg8: memref<1x8x256xf32, #tpu.memory_space<vmem>>, %arg9: memref<1x8x256xf32, #tpu.memory_space<vmem>>) attributes {dimension_semantics = [#tpu.dimension_semantics<parallel>], iteration_bounds = array<i64: 2>, scalar_prefetch = 0 : i64, scratch_operands = 0 : i64, tpu.core_type = #tpu.core_type<tc>, window_params = [{pipeline_mode = #tpu.pipeline_mode<synchronous>, transform_indices = @transform_0, window_bounds = array<i64: 8, 8, 72>}, {pipeline_mode = #tpu.pipeline_mode<synchronous>, transform_indices = @transform_1, window_bounds = array<i64: 8, 16, 72>}, {pipeline_mode = #tpu.pipeline_mode<synchronous>, transform_indices = @transform_2, window_bounds = array<i64: 8, 8, 1>}, {pipeline_mode = #tpu.pipeline_mode<synchronous>, transform_indices = @transform_3, window_bounds = array<i64: 8, 16, 1>}, {pipeline_mode = #tpu.pipeline_mode<synchronous>, transform_indices = @transform_4, window_bounds = array<i64: 9, 8, 256>}, {transform_indices = @transform_5, window_bounds = array<i64: 1, 8, 256>}, {transform_indices = @transform_6, window_bounds = array<i64: 1, 8, 256>}, {transform_indices = @transform_7, window_bounds = array<i64: 1, 8, 256>}, {transform_indices = @transform_8, window_bounds = array<i64: 1, 8, 256>}]} {
    %c0 = arith.constant 0 : index
    %c0_0 = arith.constant 0 : index
    %c0_1 = arith.constant 0 : index
    %0 = vector.load %arg6[%c0, %c0_0, %c0_1] : memref<1x8x256xf32, #tpu.memory_space<vmem>>, vector<1x8x256xf32>
    %1 = vector.shape_cast %0 : vector<1x8x256xf32> to vector<8x256xf32>
    %c0_2 = arith.constant 0 : index
    %c0_3 = arith.constant 0 : index
    %c0_4 = arith.constant 0 : index
    %2 = vector.load %arg7[%c0_2, %c0_3, %c0_4] : memref<1x8x256xf32, #tpu.memory_space<vmem>>, vector<1x8x256xf32>
    %3 = vector.shape_cast %2 : vector<1x8x256xf32> to vector<8x256xf32>
    %c0_5 = arith.constant 0 : index
    %c0_6 = arith.constant 0 : index
    %c0_7 = arith.constant 0 : index
    %4 = vector.load %arg1[%c0_5, %c0_6, %c0_7] : memref<8x8x72xf32, #tpu.memory_space<vmem>>, vector<1x8x72xf32>
    %5 = vector.shape_cast %4 : vector<1x8x72xf32> to vector<8x72xf32>
    %c17_i32 = arith.constant 17 : i32
    %6 = tpu.dynamic_rotate %3 by %c17_i32 dim 1 : vector<8x256xf32>, i32 -> vector<8x256xf32>
    %c0_8 = arith.constant 0 : index
    %c0_9 = arith.constant 0 : index
    %c0_10 = arith.constant 0 : index
    %7 = vector.load %arg5[%c0_8, %c0_9, %c0_10] : memref<9x8x256xf32, #tpu.memory_space<vmem>>, vector<1x8x256xf32>
    %8 = vector.shape_cast %7 : vector<1x8x256xf32> to vector<8x256xf32>
    %9 = arith.mulf %6, %8 : vector<8x256xf32>
    %c16_i32 = arith.constant 16 : i32
    %10 = tpu.dynamic_rotate %3 by %c16_i32 dim 1 : vector<8x256xf32>, i32 -> vector<8x256xf32>
    %c1 = arith.constant 1 : index
    %c0_11 = arith.constant 0 : index
    %c0_12 = arith.constant 0 : index
    %11 = vector.load %arg5[%c1, %c0_11, %c0_12] : memref<9x8x256xf32, #tpu.memory_space<vmem>>, vector<1x8x256xf32>
    %12 = vector.shape_cast %11 : vector<1x8x256xf32> to vector<8x256xf32>
    %13 = arith.mulf %10, %12 : vector<8x256xf32>
    %c15_i32 = arith.constant 15 : i32
    %14 = tpu.dynamic_rotate %3 by %c15_i32 dim 1 : vector<8x256xf32>, i32 -> vector<8x256xf32>
    %c2 = arith.constant 2 : index
    %c0_13 = arith.constant 0 : index
    %c0_14 = arith.constant 0 : index
    %15 = vector.load %arg5[%c2, %c0_13, %c0_14] : memref<9x8x256xf32, #tpu.memory_space<vmem>>, vector<1x8x256xf32>
    %16 = vector.shape_cast %15 : vector<1x8x256xf32> to vector<8x256xf32>
    %17 = arith.mulf %14, %16 : vector<8x256xf32>
    %c1_i32 = arith.constant 1 : i32
    %18 = tpu.dynamic_rotate %3 by %c1_i32 dim 1 : vector<8x256xf32>, i32 -> vector<8x256xf32>
    %c3 = arith.constant 3 : index
    %c0_15 = arith.constant 0 : index
    %c0_16 = arith.constant 0 : index
    %19 = vector.load %arg5[%c3, %c0_15, %c0_16] : memref<9x8x256xf32, #tpu.memory_space<vmem>>, vector<1x8x256xf32>
    %20 = vector.shape_cast %19 : vector<1x8x256xf32> to vector<8x256xf32>
    %21 = arith.mulf %18, %20 : vector<8x256xf32>
    %c255_i32 = arith.constant 255 : i32
    %22 = tpu.dynamic_rotate %3 by %c255_i32 dim 1 : vector<8x256xf32>, i32 -> vector<8x256xf32>
    %c5 = arith.constant 5 : index
    %c0_17 = arith.constant 0 : index
    %c0_18 = arith.constant 0 : index
    %23 = vector.load %arg5[%c5, %c0_17, %c0_18] : memref<9x8x256xf32, #tpu.memory_space<vmem>>, vector<1x8x256xf32>
    %24 = vector.shape_cast %23 : vector<1x8x256xf32> to vector<8x256xf32>
    %25 = arith.mulf %22, %24 : vector<8x256xf32>
    %c241_i32 = arith.constant 241 : i32
    %26 = tpu.dynamic_rotate %3 by %c241_i32 dim 1 : vector<8x256xf32>, i32 -> vector<8x256xf32>
    %c6 = arith.constant 6 : index
    %c0_19 = arith.constant 0 : index
    %c0_20 = arith.constant 0 : index
    %27 = vector.load %arg5[%c6, %c0_19, %c0_20] : memref<9x8x256xf32, #tpu.memory_space<vmem>>, vector<1x8x256xf32>
    %28 = vector.shape_cast %27 : vector<1x8x256xf32> to vector<8x256xf32>
    %29 = arith.mulf %26, %28 : vector<8x256xf32>
    %c240_i32 = arith.constant 240 : i32
    %30 = tpu.dynamic_rotate %3 by %c240_i32 dim 1 : vector<8x256xf32>, i32 -> vector<8x256xf32>
    %c7 = arith.constant 7 : index
    %c0_21 = arith.constant 0 : index
    %c0_22 = arith.constant 0 : index
    %31 = vector.load %arg5[%c7, %c0_21, %c0_22] : memref<9x8x256xf32, #tpu.memory_space<vmem>>, vector<1x8x256xf32>
    %32 = vector.shape_cast %31 : vector<1x8x256xf32> to vector<8x256xf32>
    %33 = arith.mulf %30, %32 : vector<8x256xf32>
    %c239_i32 = arith.constant 239 : i32
    %34 = tpu.dynamic_rotate %3 by %c239_i32 dim 1 : vector<8x256xf32>, i32 -> vector<8x256xf32>
    %c8 = arith.constant 8 : index
    %c0_23 = arith.constant 0 : index
    %c0_24 = arith.constant 0 : index
    %35 = vector.load %arg5[%c8, %c0_23, %c0_24] : memref<9x8x256xf32, #tpu.memory_space<vmem>>, vector<1x8x256xf32>
    %36 = vector.shape_cast %35 : vector<1x8x256xf32> to vector<8x256xf32>
    %37 = arith.mulf %34, %36 : vector<8x256xf32>
    %38 = tpu.concatenate %9, %13, %17, %21, %3, %25, %29, %33, %37 in 0 : vector<8x256xf32>, vector<8x256xf32>, vector<8x256xf32>, vector<8x256xf32>, vector<8x256xf32>, vector<8x256xf32>, vector<8x256xf32>, vector<8x256xf32>, vector<8x256xf32> -> vector<72x256xf32>
    %cst = arith.constant dense<0.000000e+00> : vector<8x256xf32>
    %39 = tpu.matmul %5, %38, %cst {dimension_numbers = #tpu.dot_dimension_numbers<[1], [0], [0], [1], [0, 0, 1, 1], [], []>, precision = #tpu.contract_precision<fp32>} : vector<8x72xf32>, vector<72x256xf32>, vector<8x256xf32> -> vector<8x256xf32>
    %40 = arith.addf %1, %39 : vector<8x256xf32>
    %c0_25 = arith.constant 0 : index
    %c0_26 = arith.constant 0 : index
    %c0_27 = arith.constant 0 : index
    %41 = vector.load %arg3[%c0_25, %c0_26, %c0_27] : memref<8x8x1xf32, #tpu.memory_space<vmem>>, vector<1x8x1xf32>
    %42 = vector.shape_cast %41 : vector<1x8x1xf32> to vector<8x1xf32>
    %43 = vector.broadcast %42 : vector<8x1xf32> to vector<8x256xf32>
    %44 = arith.addf %40, %43 : vector<8x256xf32>
    %c0_28 = arith.constant 0 : index
    %c0_29 = arith.constant 0 : index
    %c0_30 = arith.constant 0 : index
    %45 = vector.load %arg2[%c0_28, %c0_29, %c0_30] : memref<8x16x72xf32, #tpu.memory_space<vmem>>, vector<1x16x72xf32>
    %46 = vector.shape_cast %45 : vector<1x16x72xf32> to vector<16x72xf32>
    %c17_i32_31 = arith.constant 17 : i32
    %47 = tpu.dynamic_rotate %44 by %c17_i32_31 dim 1 : vector<8x256xf32>, i32 -> vector<8x256xf32>
    %c0_32 = arith.constant 0 : index
    %c0_33 = arith.constant 0 : index
    %c0_34 = arith.constant 0 : index
    %48 = vector.load %arg5[%c0_32, %c0_33, %c0_34] : memref<9x8x256xf32, #tpu.memory_space<vmem>>, vector<1x8x256xf32>
    %49 = vector.shape_cast %48 : vector<1x8x256xf32> to vector<8x256xf32>
    %50 = arith.mulf %47, %49 : vector<8x256xf32>
    %c16_i32_35 = arith.constant 16 : i32
    %51 = tpu.dynamic_rotate %44 by %c16_i32_35 dim 1 : vector<8x256xf32>, i32 -> vector<8x256xf32>
    %c1_36 = arith.constant 1 : index
    %c0_37 = arith.constant 0 : index
    %c0_38 = arith.constant 0 : index
    %52 = vector.load %arg5[%c1_36, %c0_37, %c0_38] : memref<9x8x256xf32, #tpu.memory_space<vmem>>, vector<1x8x256xf32>
    %53 = vector.shape_cast %52 : vector<1x8x256xf32> to vector<8x256xf32>
    %54 = arith.mulf %51, %53 : vector<8x256xf32>
    %c15_i32_39 = arith.constant 15 : i32
    %55 = tpu.dynamic_rotate %44 by %c15_i32_39 dim 1 : vector<8x256xf32>, i32 -> vector<8x256xf32>
    %c2_40 = arith.constant 2 : index
    %c0_41 = arith.constant 0 : index
    %c0_42 = arith.constant 0 : index
    %56 = vector.load %arg5[%c2_40, %c0_41, %c0_42] : memref<9x8x256xf32, #tpu.memory_space<vmem>>, vector<1x8x256xf32>
    %57 = vector.shape_cast %56 : vector<1x8x256xf32> to vector<8x256xf32>
    %58 = arith.mulf %55, %57 : vector<8x256xf32>
    %c1_i32_43 = arith.constant 1 : i32
    %59 = tpu.dynamic_rotate %44 by %c1_i32_43 dim 1 : vector<8x256xf32>, i32 -> vector<8x256xf32>
    %c3_44 = arith.constant 3 : index
    %c0_45 = arith.constant 0 : index
    %c0_46 = arith.constant 0 : index
    %60 = vector.load %arg5[%c3_44, %c0_45, %c0_46] : memref<9x8x256xf32, #tpu.memory_space<vmem>>, vector<1x8x256xf32>
    %61 = vector.shape_cast %60 : vector<1x8x256xf32> to vector<8x256xf32>
    %62 = arith.mulf %59, %61 : vector<8x256xf32>
    %c255_i32_47 = arith.constant 255 : i32
    %63 = tpu.dynamic_rotate %44 by %c255_i32_47 dim 1 : vector<8x256xf32>, i32 -> vector<8x256xf32>
    %c5_48 = arith.constant 5 : index
    %c0_49 = arith.constant 0 : index
    %c0_50 = arith.constant 0 : index
    %64 = vector.load %arg5[%c5_48, %c0_49, %c0_50] : memref<9x8x256xf32, #tpu.memory_space<vmem>>, vector<1x8x256xf32>
    %65 = vector.shape_cast %64 : vector<1x8x256xf32> to vector<8x256xf32>
    %66 = arith.mulf %63, %65 : vector<8x256xf32>
    %c241_i32_51 = arith.constant 241 : i32
    %67 = tpu.dynamic_rotate %44 by %c241_i32_51 dim 1 : vector<8x256xf32>, i32 -> vector<8x256xf32>
    %c6_52 = arith.constant 6 : index
    %c0_53 = arith.constant 0 : index
    %c0_54 = arith.constant 0 : index
    %68 = vector.load %arg5[%c6_52, %c0_53, %c0_54] : memref<9x8x256xf32, #tpu.memory_space<vmem>>, vector<1x8x256xf32>
    %69 = vector.shape_cast %68 : vector<1x8x256xf32> to vector<8x256xf32>
    %70 = arith.mulf %67, %69 : vector<8x256xf32>
    %c240_i32_55 = arith.constant 240 : i32
    %71 = tpu.dynamic_rotate %44 by %c240_i32_55 dim 1 : vector<8x256xf32>, i32 -> vector<8x256xf32>
    %c7_56 = arith.constant 7 : index
    %c0_57 = arith.constant 0 : index
    %c0_58 = arith.constant 0 : index
    %72 = vector.load %arg5[%c7_56, %c0_57, %c0_58] : memref<9x8x256xf32, #tpu.memory_space<vmem>>, vector<1x8x256xf32>
    %73 = vector.shape_cast %72 : vector<1x8x256xf32> to vector<8x256xf32>
    %74 = arith.mulf %71, %73 : vector<8x256xf32>
    %c239_i32_59 = arith.constant 239 : i32
    %75 = tpu.dynamic_rotate %44 by %c239_i32_59 dim 1 : vector<8x256xf32>, i32 -> vector<8x256xf32>
    %c8_60 = arith.constant 8 : index
    %c0_61 = arith.constant 0 : index
    %c0_62 = arith.constant 0 : index
    %76 = vector.load %arg5[%c8_60, %c0_61, %c0_62] : memref<9x8x256xf32, #tpu.memory_space<vmem>>, vector<1x8x256xf32>
    %77 = vector.shape_cast %76 : vector<1x8x256xf32> to vector<8x256xf32>
    %78 = arith.mulf %75, %77 : vector<8x256xf32>
    %79 = tpu.concatenate %50, %54, %58, %62, %44, %66, %70, %74, %78 in 0 : vector<8x256xf32>, vector<8x256xf32>, vector<8x256xf32>, vector<8x256xf32>, vector<8x256xf32>, vector<8x256xf32>, vector<8x256xf32>, vector<8x256xf32>, vector<8x256xf32> -> vector<72x256xf32>
    %cst_63 = arith.constant dense<0.000000e+00> : vector<16x256xf32>
    %80 = tpu.matmul %46, %79, %cst_63 {dimension_numbers = #tpu.dot_dimension_numbers<[1], [0], [0], [1], [0, 0, 1, 1], [], []>, precision = #tpu.contract_precision<fp32>} : vector<16x72xf32>, vector<72x256xf32>, vector<16x256xf32> -> vector<16x256xf32>
    %c0_64 = arith.constant 0 : index
    %c0_65 = arith.constant 0 : index
    %c0_66 = arith.constant 0 : index
    %81 = vector.load %arg4[%c0_64, %c0_65, %c0_66] : memref<8x16x1xf32, #tpu.memory_space<vmem>>, vector<1x16x1xf32>
    %82 = vector.shape_cast %81 : vector<1x16x1xf32> to vector<16x1xf32>
    %83 = vector.broadcast %82 : vector<16x1xf32> to vector<16x256xf32>
    %84 = arith.addf %80, %83 : vector<16x256xf32>
    %85 = vector.extract_strided_slice %84 {offsets = [0, 0], sizes = [8, 256], strides = [1, 1]} : vector<16x256xf32> to vector<8x256xf32>
    %86 = vector.extract_strided_slice %84 {offsets = [8, 0], sizes = [8, 256], strides = [1, 1]} : vector<16x256xf32> to vector<8x256xf32>
    %cst_67 = arith.constant 5.000000e-01 : f32
    %87 = vector.broadcast %cst_67 : f32 to vector<8x256xf32>
    %88 = arith.mulf %87, %85 : vector<8x256xf32>
    %89 = math.tanh %88 : vector<8x256xf32>
    %cst_68 = arith.constant 2.000000e+00 : f32
    %90 = vector.broadcast %cst_68 : f32 to vector<8x256xf32>
    %91 = arith.mulf %90, %89 : vector<8x256xf32>
    %92 = math.exp %91 : vector<8x256xf32>
    %93 = arith.mulf %3, %92 : vector<8x256xf32>
    %94 = arith.addf %93, %86 : vector<8x256xf32>
    %c1_69 = arith.constant 1 : index
    %c0_70 = arith.constant 0 : index
    %c0_71 = arith.constant 0 : index
    %95 = vector.load %arg1[%c1_69, %c0_70, %c0_71] : memref<8x8x72xf32, #tpu.memory_space<vmem>>, vector<1x8x72xf32>
    %96 = vector.shape_cast %95 : vector<1x8x72xf32> to vector<8x72xf32>
    %c17_i32_72 = arith.constant 17 : i32
    %97 = tpu.dynamic_rotate %94 by %c17_i32_72 dim 1 : vector<8x256xf32>, i32 -> vector<8x256xf32>
    %c0_73 = arith.constant 0 : index
    %c0_74 = arith.constant 0 : index
    %c0_75 = arith.constant 0 : index
    %98 = vector.load %arg5[%c0_73, %c0_74, %c0_75] : memref<9x8x256xf32, #tpu.memory_space<vmem>>, vector<1x8x256xf32>
    %99 = vector.shape_cast %98 : vector<1x8x256xf32> to vector<8x256xf32>
    %100 = arith.mulf %97, %99 : vector<8x256xf32>
    %c16_i32_76 = arith.constant 16 : i32
    %101 = tpu.dynamic_rotate %94 by %c16_i32_76 dim 1 : vector<8x256xf32>, i32 -> vector<8x256xf32>
    %c1_77 = arith.constant 1 : index
    %c0_78 = arith.constant 0 : index
    %c0_79 = arith.constant 0 : index
    %102 = vector.load %arg5[%c1_77, %c0_78, %c0_79] : memref<9x8x256xf32, #tpu.memory_space<vmem>>, vector<1x8x256xf32>
    %103 = vector.shape_cast %102 : vector<1x8x256xf32> to vector<8x256xf32>
    %104 = arith.mulf %101, %103 : vector<8x256xf32>
    %c15_i32_80 = arith.constant 15 : i32
    %105 = tpu.dynamic_rotate %94 by %c15_i32_80 dim 1 : vector<8x256xf32>, i32 -> vector<8x256xf32>
    %c2_81 = arith.constant 2 : index
    %c0_82 = arith.constant 0 : index
    %c0_83 = arith.constant 0 : index
    %106 = vector.load %arg5[%c2_81, %c0_82, %c0_83] : memref<9x8x256xf32, #tpu.memory_space<vmem>>, vector<1x8x256xf32>
    %107 = vector.shape_cast %106 : vector<1x8x256xf32> to vector<8x256xf32>
    %108 = arith.mulf %105, %107 : vector<8x256xf32>
    %c1_i32_84 = arith.constant 1 : i32
    %109 = tpu.dynamic_rotate %94 by %c1_i32_84 dim 1 : vector<8x256xf32>, i32 -> vector<8x256xf32>
    %c3_85 = arith.constant 3 : index
    %c0_86 = arith.constant 0 : index
    %c0_87 = arith.constant 0 : index
    %110 = vector.load %arg5[%c3_85, %c0_86, %c0_87] : memref<9x8x256xf32, #tpu.memory_space<vmem>>, vector<1x8x256xf32>
    %111 = vector.shape_cast %110 : vector<1x8x256xf32> to vector<8x256xf32>
    %112 = arith.mulf %109, %111 : vector<8x256xf32>
    %c255_i32_88 = arith.constant 255 : i32
    %113 = tpu.dynamic_rotate %94 by %c255_i32_88 dim 1 : vector<8x256xf32>, i32 -> vector<8x256xf32>
    %c5_89 = arith.constant 5 : index
    %c0_90 = arith.constant 0 : index
    %c0_91 = arith.constant 0 : index
    %114 = vector.load %arg5[%c5_89, %c0_90, %c0_91] : memref<9x8x256xf32, #tpu.memory_space<vmem>>, vector<1x8x256xf32>
    %115 = vector.shape_cast %114 : vector<1x8x256xf32> to vector<8x256xf32>
    %116 = arith.mulf %113, %115 : vector<8x256xf32>
    %c241_i32_92 = arith.constant 241 : i32
    %117 = tpu.dynamic_rotate %94 by %c241_i32_92 dim 1 : vector<8x256xf32>, i32 -> vector<8x256xf32>
    %c6_93 = arith.constant 6 : index
    %c0_94 = arith.constant 0 : index
    %c0_95 = arith.constant 0 : index
    %118 = vector.load %arg5[%c6_93, %c0_94, %c0_95] : memref<9x8x256xf32, #tpu.memory_space<vmem>>, vector<1x8x256xf32>
    %119 = vector.shape_cast %118 : vector<1x8x256xf32> to vector<8x256xf32>
    %120 = arith.mulf %117, %119 : vector<8x256xf32>
    %c240_i32_96 = arith.constant 240 : i32
    %121 = tpu.dynamic_rotate %94 by %c240_i32_96 dim 1 : vector<8x256xf32>, i32 -> vector<8x256xf32>
    %c7_97 = arith.constant 7 : index
    %c0_98 = arith.constant 0 : index
    %c0_99 = arith.constant 0 : index
    %122 = vector.load %arg5[%c7_97, %c0_98, %c0_99] : memref<9x8x256xf32, #tpu.memory_space<vmem>>, vector<1x8x256xf32>
    %123 = vector.shape_cast %122 : vector<1x8x256xf32> to vector<8x256xf32>
    %124 = arith.mulf %121, %123 : vector<8x256xf32>
    %c239_i32_100 = arith.constant 239 : i32
    %125 = tpu.dynamic_rotate %94 by %c239_i32_100 dim 1 : vector<8x256xf32>, i32 -> vector<8x256xf32>
    %c8_101 = arith.constant 8 : index
    %c0_102 = arith.constant 0 : index
    %c0_103 = arith.constant 0 : index
    %126 = vector.load %arg5[%c8_101, %c0_102, %c0_103] : memref<9x8x256xf32, #tpu.memory_space<vmem>>, vector<1x8x256xf32>
    %127 = vector.shape_cast %126 : vector<1x8x256xf32> to vector<8x256xf32>
    %128 = arith.mulf %125, %127 : vector<8x256xf32>
    %129 = tpu.concatenate %100, %104, %108, %112, %94, %116, %120, %124, %128 in 0 : vector<8x256xf32>, vector<8x256xf32>, vector<8x256xf32>, vector<8x256xf32>, vector<8x256xf32>, vector<8x256xf32>, vector<8x256xf32>, vector<8x256xf32>, vector<8x256xf32> -> vector<72x256xf32>
    %cst_104 = arith.constant dense<0.000000e+00> : vector<8x256xf32>
    %130 = tpu.matmul %96, %129, %cst_104 {dimension_numbers = #tpu.dot_dimension_numbers<[1], [0], [0], [1], [0, 0, 1, 1], [], []>, precision = #tpu.contract_precision<fp32>} : vector<8x72xf32>, vector<72x256xf32>, vector<8x256xf32> -> vector<8x256xf32>
    %131 = arith.addf %44, %130 : vector<8x256xf32>
    %c1_105 = arith.constant 1 : index
    %c0_106 = arith.constant 0 : index
    %c0_107 = arith.constant 0 : index
    %132 = vector.load %arg3[%c1_105, %c0_106, %c0_107] : memref<8x8x1xf32, #tpu.memory_space<vmem>>, vector<1x8x1xf32>
    %133 = vector.shape_cast %132 : vector<1x8x1xf32> to vector<8x1xf32>
    %134 = vector.broadcast %133 : vector<8x1xf32> to vector<8x256xf32>
    %135 = arith.addf %131, %134 : vector<8x256xf32>
    %c1_108 = arith.constant 1 : index
    %c0_109 = arith.constant 0 : index
    %c0_110 = arith.constant 0 : index
    %136 = vector.load %arg2[%c1_108, %c0_109, %c0_110] : memref<8x16x72xf32, #tpu.memory_space<vmem>>, vector<1x16x72xf32>
    %137 = vector.shape_cast %136 : vector<1x16x72xf32> to vector<16x72xf32>
    %c17_i32_111 = arith.constant 17 : i32
    %138 = tpu.dynamic_rotate %135 by %c17_i32_111 dim 1 : vector<8x256xf32>, i32 -> vector<8x256xf32>
    %c0_112 = arith.constant 0 : index
    %c0_113 = arith.constant 0 : index
    %c0_114 = arith.constant 0 : index
    %139 = vector.load %arg5[%c0_112, %c0_113, %c0_114] : memref<9x8x256xf32, #tpu.memory_space<vmem>>, vector<1x8x256xf32>
    %140 = vector.shape_cast %139 : vector<1x8x256xf32> to vector<8x256xf32>
    %141 = arith.mulf %138, %140 : vector<8x256xf32>
    %c16_i32_115 = arith.constant 16 : i32
    %142 = tpu.dynamic_rotate %135 by %c16_i32_115 dim 1 : vector<8x256xf32>, i32 -> vector<8x256xf32>
    %c1_116 = arith.constant 1 : index
    %c0_117 = arith.constant 0 : index
    %c0_118 = arith.constant 0 : index
    %143 = vector.load %arg5[%c1_116, %c0_117, %c0_118] : memref<9x8x256xf32, #tpu.memory_space<vmem>>, vector<1x8x256xf32>
    %144 = vector.shape_cast %143 : vector<1x8x256xf32> to vector<8x256xf32>
    %145 = arith.mulf %142, %144 : vector<8x256xf32>
    %c15_i32_119 = arith.constant 15 : i32
    %146 = tpu.dynamic_rotate %135 by %c15_i32_119 dim 1 : vector<8x256xf32>, i32 -> vector<8x256xf32>
    %c2_120 = arith.constant 2 : index
    %c0_121 = arith.constant 0 : index
    %c0_122 = arith.constant 0 : index
    %147 = vector.load %arg5[%c2_120, %c0_121, %c0_122] : memref<9x8x256xf32, #tpu.memory_space<vmem>>, vector<1x8x256xf32>
    %148 = vector.shape_cast %147 : vector<1x8x256xf32> to vector<8x256xf32>
    %149 = arith.mulf %146, %148 : vector<8x256xf32>
    %c1_i32_123 = arith.constant 1 : i32
    %150 = tpu.dynamic_rotate %135 by %c1_i32_123 dim 1 : vector<8x256xf32>, i32 -> vector<8x256xf32>
    %c3_124 = arith.constant 3 : index
    %c0_125 = arith.constant 0 : index
    %c0_126 = arith.constant 0 : index
    %151 = vector.load %arg5[%c3_124, %c0_125, %c0_126] : memref<9x8x256xf32, #tpu.memory_space<vmem>>, vector<1x8x256xf32>
    %152 = vector.shape_cast %151 : vector<1x8x256xf32> to vector<8x256xf32>
    %153 = arith.mulf %150, %152 : vector<8x256xf32>
    %c255_i32_127 = arith.constant 255 : i32
    %154 = tpu.dynamic_rotate %135 by %c255_i32_127 dim 1 : vector<8x256xf32>, i32 -> vector<8x256xf32>
    %c5_128 = arith.constant 5 : index
    %c0_129 = arith.constant 0 : index
    %c0_130 = arith.constant 0 : index
    %155 = vector.load %arg5[%c5_128, %c0_129, %c0_130] : memref<9x8x256xf32, #tpu.memory_space<vmem>>, vector<1x8x256xf32>
    %156 = vector.shape_cast %155 : vector<1x8x256xf32> to vector<8x256xf32>
    %157 = arith.mulf %154, %156 : vector<8x256xf32>
    %c241_i32_131 = arith.constant 241 : i32
    %158 = tpu.dynamic_rotate %135 by %c241_i32_131 dim 1 : vector<8x256xf32>, i32 -> vector<8x256xf32>
    %c6_132 = arith.constant 6 : index
    %c0_133 = arith.constant 0 : index
    %c0_134 = arith.constant 0 : index
    %159 = vector.load %arg5[%c6_132, %c0_133, %c0_134] : memref<9x8x256xf32, #tpu.memory_space<vmem>>, vector<1x8x256xf32>
    %160 = vector.shape_cast %159 : vector<1x8x256xf32> to vector<8x256xf32>
    %161 = arith.mulf %158, %160 : vector<8x256xf32>
    %c240_i32_135 = arith.constant 240 : i32
    %162 = tpu.dynamic_rotate %135 by %c240_i32_135 dim 1 : vector<8x256xf32>, i32 -> vector<8x256xf32>
    %c7_136 = arith.constant 7 : index
    %c0_137 = arith.constant 0 : index
    %c0_138 = arith.constant 0 : index
    %163 = vector.load %arg5[%c7_136, %c0_137, %c0_138] : memref<9x8x256xf32, #tpu.memory_space<vmem>>, vector<1x8x256xf32>
    %164 = vector.shape_cast %163 : vector<1x8x256xf32> to vector<8x256xf32>
    %165 = arith.mulf %162, %164 : vector<8x256xf32>
    %c239_i32_139 = arith.constant 239 : i32
    %166 = tpu.dynamic_rotate %135 by %c239_i32_139 dim 1 : vector<8x256xf32>, i32 -> vector<8x256xf32>
    %c8_140 = arith.constant 8 : index
    %c0_141 = arith.constant 0 : index
    %c0_142 = arith.constant 0 : index
    %167 = vector.load %arg5[%c8_140, %c0_141, %c0_142] : memref<9x8x256xf32, #tpu.memory_space<vmem>>, vector<1x8x256xf32>
    %168 = vector.shape_cast %167 : vector<1x8x256xf32> to vector<8x256xf32>
    %169 = arith.mulf %166, %168 : vector<8x256xf32>
    %170 = tpu.concatenate %141, %145, %149, %153, %135, %157, %161, %165, %169 in 0 : vector<8x256xf32>, vector<8x256xf32>, vector<8x256xf32>, vector<8x256xf32>, vector<8x256xf32>, vector<8x256xf32>, vector<8x256xf32>, vector<8x256xf32>, vector<8x256xf32> -> vector<72x256xf32>
    %cst_143 = arith.constant dense<0.000000e+00> : vector<16x256xf32>
    %171 = tpu.matmul %137, %170, %cst_143 {dimension_numbers = #tpu.dot_dimension_numbers<[1], [0], [0], [1], [0, 0, 1, 1], [], []>, precision = #tpu.contract_precision<fp32>} : vector<16x72xf32>, vector<72x256xf32>, vector<16x256xf32> -> vector<16x256xf32>
    %c1_144 = arith.constant 1 : index
    %c0_145 = arith.constant 0 : index
    %c0_146 = arith.constant 0 : index
    %172 = vector.load %arg4[%c1_144, %c0_145, %c0_146] : memref<8x16x1xf32, #tpu.memory_space<vmem>>, vector<1x16x1xf32>
    %173 = vector.shape_cast %172 : vector<1x16x1xf32> to vector<16x1xf32>
    %174 = vector.broadcast %173 : vector<16x1xf32> to vector<16x256xf32>
    %175 = arith.addf %171, %174 : vector<16x256xf32>
    %176 = vector.extract_strided_slice %175 {offsets = [0, 0], sizes = [8, 256], strides = [1, 1]} : vector<16x256xf32> to vector<8x256xf32>
    %177 = vector.extract_strided_slice %175 {offsets = [8, 0], sizes = [8, 256], strides = [1, 1]} : vector<16x256xf32> to vector<8x256xf32>
    %cst_147 = arith.constant 5.000000e-01 : f32
    %178 = vector.broadcast %cst_147 : f32 to vector<8x256xf32>
    %179 = arith.mulf %178, %176 : vector<8x256xf32>
    %180 = math.tanh %179 : vector<8x256xf32>
    %cst_148 = arith.constant 2.000000e+00 : f32
    %181 = vector.broadcast %cst_148 : f32 to vector<8x256xf32>
    %182 = arith.mulf %181, %180 : vector<8x256xf32>
    %183 = math.exp %182 : vector<8x256xf32>
    %184 = arith.mulf %94, %183 : vector<8x256xf32>
    %185 = arith.addf %184, %177 : vector<8x256xf32>
    %c2_149 = arith.constant 2 : index
    %c0_150 = arith.constant 0 : index
    %c0_151 = arith.constant 0 : index
    %186 = vector.load %arg1[%c2_149, %c0_150, %c0_151] : memref<8x8x72xf32, #tpu.memory_space<vmem>>, vector<1x8x72xf32>
    %187 = vector.shape_cast %186 : vector<1x8x72xf32> to vector<8x72xf32>
    %c17_i32_152 = arith.constant 17 : i32
    %188 = tpu.dynamic_rotate %185 by %c17_i32_152 dim 1 : vector<8x256xf32>, i32 -> vector<8x256xf32>
    %c0_153 = arith.constant 0 : index
    %c0_154 = arith.constant 0 : index
    %c0_155 = arith.constant 0 : index
    %189 = vector.load %arg5[%c0_153, %c0_154, %c0_155] : memref<9x8x256xf32, #tpu.memory_space<vmem>>, vector<1x8x256xf32>
    %190 = vector.shape_cast %189 : vector<1x8x256xf32> to vector<8x256xf32>
    %191 = arith.mulf %188, %190 : vector<8x256xf32>
    %c16_i32_156 = arith.constant 16 : i32
    %192 = tpu.dynamic_rotate %185 by %c16_i32_156 dim 1 : vector<8x256xf32>, i32 -> vector<8x256xf32>
    %c1_157 = arith.constant 1 : index
    %c0_158 = arith.constant 0 : index
    %c0_159 = arith.constant 0 : index
    %193 = vector.load %arg5[%c1_157, %c0_158, %c0_159] : memref<9x8x256xf32, #tpu.memory_space<vmem>>, vector<1x8x256xf32>
    %194 = vector.shape_cast %193 : vector<1x8x256xf32> to vector<8x256xf32>
    %195 = arith.mulf %192, %194 : vector<8x256xf32>
    %c15_i32_160 = arith.constant 15 : i32
    %196 = tpu.dynamic_rotate %185 by %c15_i32_160 dim 1 : vector<8x256xf32>, i32 -> vector<8x256xf32>
    %c2_161 = arith.constant 2 : index
    %c0_162 = arith.constant 0 : index
    %c0_163 = arith.constant 0 : index
    %197 = vector.load %arg5[%c2_161, %c0_162, %c0_163] : memref<9x8x256xf32, #tpu.memory_space<vmem>>, vector<1x8x256xf32>
    %198 = vector.shape_cast %197 : vector<1x8x256xf32> to vector<8x256xf32>
    %199 = arith.mulf %196, %198 : vector<8x256xf32>
    %c1_i32_164 = arith.constant 1 : i32
    %200 = tpu.dynamic_rotate %185 by %c1_i32_164 dim 1 : vector<8x256xf32>, i32 -> vector<8x256xf32>
    %c3_165 = arith.constant 3 : index
    %c0_166 = arith.constant 0 : index
    %c0_167 = arith.constant 0 : index
    %201 = vector.load %arg5[%c3_165, %c0_166, %c0_167] : memref<9x8x256xf32, #tpu.memory_space<vmem>>, vector<1x8x256xf32>
    %202 = vector.shape_cast %201 : vector<1x8x256xf32> to vector<8x256xf32>
    %203 = arith.mulf %200, %202 : vector<8x256xf32>
    %c255_i32_168 = arith.constant 255 : i32
    %204 = tpu.dynamic_rotate %185 by %c255_i32_168 dim 1 : vector<8x256xf32>, i32 -> vector<8x256xf32>
    %c5_169 = arith.constant 5 : index
    %c0_170 = arith.constant 0 : index
    %c0_171 = arith.constant 0 : index
    %205 = vector.load %arg5[%c5_169, %c0_170, %c0_171] : memref<9x8x256xf32, #tpu.memory_space<vmem>>, vector<1x8x256xf32>
    %206 = vector.shape_cast %205 : vector<1x8x256xf32> to vector<8x256xf32>
    %207 = arith.mulf %204, %206 : vector<8x256xf32>
    %c241_i32_172 = arith.constant 241 : i32
    %208 = tpu.dynamic_rotate %185 by %c241_i32_172 dim 1 : vector<8x256xf32>, i32 -> vector<8x256xf32>
    %c6_173 = arith.constant 6 : index
    %c0_174 = arith.constant 0 : index
    %c0_175 = arith.constant 0 : index
    %209 = vector.load %arg5[%c6_173, %c0_174, %c0_175] : memref<9x8x256xf32, #tpu.memory_space<vmem>>, vector<1x8x256xf32>
    %210 = vector.shape_cast %209 : vector<1x8x256xf32> to vector<8x256xf32>
    %211 = arith.mulf %208, %210 : vector<8x256xf32>
    %c240_i32_176 = arith.constant 240 : i32
    %212 = tpu.dynamic_rotate %185 by %c240_i32_176 dim 1 : vector<8x256xf32>, i32 -> vector<8x256xf32>
    %c7_177 = arith.constant 7 : index
    %c0_178 = arith.constant 0 : index
    %c0_179 = arith.constant 0 : index
    %213 = vector.load %arg5[%c7_177, %c0_178, %c0_179] : memref<9x8x256xf32, #tpu.memory_space<vmem>>, vector<1x8x256xf32>
    %214 = vector.shape_cast %213 : vector<1x8x256xf32> to vector<8x256xf32>
    %215 = arith.mulf %212, %214 : vector<8x256xf32>
    %c239_i32_180 = arith.constant 239 : i32
    %216 = tpu.dynamic_rotate %185 by %c239_i32_180 dim 1 : vector<8x256xf32>, i32 -> vector<8x256xf32>
    %c8_181 = arith.constant 8 : index
    %c0_182 = arith.constant 0 : index
    %c0_183 = arith.constant 0 : index
    %217 = vector.load %arg5[%c8_181, %c0_182, %c0_183] : memref<9x8x256xf32, #tpu.memory_space<vmem>>, vector<1x8x256xf32>
    %218 = vector.shape_cast %217 : vector<1x8x256xf32> to vector<8x256xf32>
    %219 = arith.mulf %216, %218 : vector<8x256xf32>
    %220 = tpu.concatenate %191, %195, %199, %203, %185, %207, %211, %215, %219 in 0 : vector<8x256xf32>, vector<8x256xf32>, vector<8x256xf32>, vector<8x256xf32>, vector<8x256xf32>, vector<8x256xf32>, vector<8x256xf32>, vector<8x256xf32>, vector<8x256xf32> -> vector<72x256xf32>
    %cst_184 = arith.constant dense<0.000000e+00> : vector<8x256xf32>
    %221 = tpu.matmul %187, %220, %cst_184 {dimension_numbers = #tpu.dot_dimension_numbers<[1], [0], [0], [1], [0, 0, 1, 1], [], []>, precision = #tpu.contract_precision<fp32>} : vector<8x72xf32>, vector<72x256xf32>, vector<8x256xf32> -> vector<8x256xf32>
    %222 = arith.addf %135, %221 : vector<8x256xf32>
    %c2_185 = arith.constant 2 : index
    %c0_186 = arith.constant 0 : index
    %c0_187 = arith.constant 0 : index
    %223 = vector.load %arg3[%c2_185, %c0_186, %c0_187] : memref<8x8x1xf32, #tpu.memory_space<vmem>>, vector<1x8x1xf32>
    %224 = vector.shape_cast %223 : vector<1x8x1xf32> to vector<8x1xf32>
    %225 = vector.broadcast %224 : vector<8x1xf32> to vector<8x256xf32>
    %226 = arith.addf %222, %225 : vector<8x256xf32>
    %c2_188 = arith.constant 2 : index
    %c0_189 = arith.constant 0 : index
    %c0_190 = arith.constant 0 : index
    %227 = vector.load %arg2[%c2_188, %c0_189, %c0_190] : memref<8x16x72xf32, #tpu.memory_space<vmem>>, vector<1x16x72xf32>
    %228 = vector.shape_cast %227 : vector<1x16x72xf32> to vector<16x72xf32>
    %c17_i32_191 = arith.constant 17 : i32
    %229 = tpu.dynamic_rotate %226 by %c17_i32_191 dim 1 : vector<8x256xf32>, i32 -> vector<8x256xf32>
    %c0_192 = arith.constant 0 : index
    %c0_193 = arith.constant 0 : index
    %c0_194 = arith.constant 0 : index
    %230 = vector.load %arg5[%c0_192, %c0_193, %c0_194] : memref<9x8x256xf32, #tpu.memory_space<vmem>>, vector<1x8x256xf32>
    %231 = vector.shape_cast %230 : vector<1x8x256xf32> to vector<8x256xf32>
    %232 = arith.mulf %229, %231 : vector<8x256xf32>
    %c16_i32_195 = arith.constant 16 : i32
    %233 = tpu.dynamic_rotate %226 by %c16_i32_195 dim 1 : vector<8x256xf32>, i32 -> vector<8x256xf32>
    %c1_196 = arith.constant 1 : index
    %c0_197 = arith.constant 0 : index
    %c0_198 = arith.constant 0 : index
    %234 = vector.load %arg5[%c1_196, %c0_197, %c0_198] : memref<9x8x256xf32, #tpu.memory_space<vmem>>, vector<1x8x256xf32>
    %235 = vector.shape_cast %234 : vector<1x8x256xf32> to vector<8x256xf32>
    %236 = arith.mulf %233, %235 : vector<8x256xf32>
    %c15_i32_199 = arith.constant 15 : i32
    %237 = tpu.dynamic_rotate %226 by %c15_i32_199 dim 1 : vector<8x256xf32>, i32 -> vector<8x256xf32>
    %c2_200 = arith.constant 2 : index
    %c0_201 = arith.constant 0 : index
    %c0_202 = arith.constant 0 : index
    %238 = vector.load %arg5[%c2_200, %c0_201, %c0_202] : memref<9x8x256xf32, #tpu.memory_space<vmem>>, vector<1x8x256xf32>
    %239 = vector.shape_cast %238 : vector<1x8x256xf32> to vector<8x256xf32>
    %240 = arith.mulf %237, %239 : vector<8x256xf32>
    %c1_i32_203 = arith.constant 1 : i32
    %241 = tpu.dynamic_rotate %226 by %c1_i32_203 dim 1 : vector<8x256xf32>, i32 -> vector<8x256xf32>
    %c3_204 = arith.constant 3 : index
    %c0_205 = arith.constant 0 : index
    %c0_206 = arith.constant 0 : index
    %242 = vector.load %arg5[%c3_204, %c0_205, %c0_206] : memref<9x8x256xf32, #tpu.memory_space<vmem>>, vector<1x8x256xf32>
    %243 = vector.shape_cast %242 : vector<1x8x256xf32> to vector<8x256xf32>
    %244 = arith.mulf %241, %243 : vector<8x256xf32>
    %c255_i32_207 = arith.constant 255 : i32
    %245 = tpu.dynamic_rotate %226 by %c255_i32_207 dim 1 : vector<8x256xf32>, i32 -> vector<8x256xf32>
    %c5_208 = arith.constant 5 : index
    %c0_209 = arith.constant 0 : index
    %c0_210 = arith.constant 0 : index
    %246 = vector.load %arg5[%c5_208, %c0_209, %c0_210] : memref<9x8x256xf32, #tpu.memory_space<vmem>>, vector<1x8x256xf32>
    %247 = vector.shape_cast %246 : vector<1x8x256xf32> to vector<8x256xf32>
    %248 = arith.mulf %245, %247 : vector<8x256xf32>
    %c241_i32_211 = arith.constant 241 : i32
    %249 = tpu.dynamic_rotate %226 by %c241_i32_211 dim 1 : vector<8x256xf32>, i32 -> vector<8x256xf32>
    %c6_212 = arith.constant 6 : index
    %c0_213 = arith.constant 0 : index
    %c0_214 = arith.constant 0 : index
    %250 = vector.load %arg5[%c6_212, %c0_213, %c0_214] : memref<9x8x256xf32, #tpu.memory_space<vmem>>, vector<1x8x256xf32>
    %251 = vector.shape_cast %250 : vector<1x8x256xf32> to vector<8x256xf32>
    %252 = arith.mulf %249, %251 : vector<8x256xf32>
    %c240_i32_215 = arith.constant 240 : i32
    %253 = tpu.dynamic_rotate %226 by %c240_i32_215 dim 1 : vector<8x256xf32>, i32 -> vector<8x256xf32>
    %c7_216 = arith.constant 7 : index
    %c0_217 = arith.constant 0 : index
    %c0_218 = arith.constant 0 : index
    %254 = vector.load %arg5[%c7_216, %c0_217, %c0_218] : memref<9x8x256xf32, #tpu.memory_space<vmem>>, vector<1x8x256xf32>
    %255 = vector.shape_cast %254 : vector<1x8x256xf32> to vector<8x256xf32>
    %256 = arith.mulf %253, %255 : vector<8x256xf32>
    %c239_i32_219 = arith.constant 239 : i32
    %257 = tpu.dynamic_rotate %226 by %c239_i32_219 dim 1 : vector<8x256xf32>, i32 -> vector<8x256xf32>
    %c8_220 = arith.constant 8 : index
    %c0_221 = arith.constant 0 : index
    %c0_222 = arith.constant 0 : index
    %258 = vector.load %arg5[%c8_220, %c0_221, %c0_222] : memref<9x8x256xf32, #tpu.memory_space<vmem>>, vector<1x8x256xf32>
    %259 = vector.shape_cast %258 : vector<1x8x256xf32> to vector<8x256xf32>
    %260 = arith.mulf %257, %259 : vector<8x256xf32>
    %261 = tpu.concatenate %232, %236, %240, %244, %226, %248, %252, %256, %260 in 0 : vector<8x256xf32>, vector<8x256xf32>, vector<8x256xf32>, vector<8x256xf32>, vector<8x256xf32>, vector<8x256xf32>, vector<8x256xf32>, vector<8x256xf32>, vector<8x256xf32> -> vector<72x256xf32>
    %cst_223 = arith.constant dense<0.000000e+00> : vector<16x256xf32>
    %262 = tpu.matmul %228, %261, %cst_223 {dimension_numbers = #tpu.dot_dimension_numbers<[1], [0], [0], [1], [0, 0, 1, 1], [], []>, precision = #tpu.contract_precision<fp32>} : vector<16x72xf32>, vector<72x256xf32>, vector<16x256xf32> -> vector<16x256xf32>
    %c2_224 = arith.constant 2 : index
    %c0_225 = arith.constant 0 : index
    %c0_226 = arith.constant 0 : index
    %263 = vector.load %arg4[%c2_224, %c0_225, %c0_226] : memref<8x16x1xf32, #tpu.memory_space<vmem>>, vector<1x16x1xf32>
    %264 = vector.shape_cast %263 : vector<1x16x1xf32> to vector<16x1xf32>
    %265 = vector.broadcast %264 : vector<16x1xf32> to vector<16x256xf32>
    %266 = arith.addf %262, %265 : vector<16x256xf32>
    %267 = vector.extract_strided_slice %266 {offsets = [0, 0], sizes = [8, 256], strides = [1, 1]} : vector<16x256xf32> to vector<8x256xf32>
    %268 = vector.extract_strided_slice %266 {offsets = [8, 0], sizes = [8, 256], strides = [1, 1]} : vector<16x256xf32> to vector<8x256xf32>
    %cst_227 = arith.constant 5.000000e-01 : f32
    %269 = vector.broadcast %cst_227 : f32 to vector<8x256xf32>
    %270 = arith.mulf %269, %267 : vector<8x256xf32>
    %271 = math.tanh %270 : vector<8x256xf32>
    %cst_228 = arith.constant 2.000000e+00 : f32
    %272 = vector.broadcast %cst_228 : f32 to vector<8x256xf32>
    %273 = arith.mulf %272, %271 : vector<8x256xf32>
    %274 = math.exp %273 : vector<8x256xf32>
    %275 = arith.mulf %185, %274 : vector<8x256xf32>
    %276 = arith.addf %275, %268 : vector<8x256xf32>
    %c3_229 = arith.constant 3 : index
    %c0_230 = arith.constant 0 : index
    %c0_231 = arith.constant 0 : index
    %277 = vector.load %arg1[%c3_229, %c0_230, %c0_231] : memref<8x8x72xf32, #tpu.memory_space<vmem>>, vector<1x8x72xf32>
    %278 = vector.shape_cast %277 : vector<1x8x72xf32> to vector<8x72xf32>
    %c17_i32_232 = arith.constant 17 : i32
    %279 = tpu.dynamic_rotate %276 by %c17_i32_232 dim 1 : vector<8x256xf32>, i32 -> vector<8x256xf32>
    %c0_233 = arith.constant 0 : index
    %c0_234 = arith.constant 0 : index
    %c0_235 = arith.constant 0 : index
    %280 = vector.load %arg5[%c0_233, %c0_234, %c0_235] : memref<9x8x256xf32, #tpu.memory_space<vmem>>, vector<1x8x256xf32>
    %281 = vector.shape_cast %280 : vector<1x8x256xf32> to vector<8x256xf32>
    %282 = arith.mulf %279, %281 : vector<8x256xf32>
    %c16_i32_236 = arith.constant 16 : i32
    %283 = tpu.dynamic_rotate %276 by %c16_i32_236 dim 1 : vector<8x256xf32>, i32 -> vector<8x256xf32>
    %c1_237 = arith.constant 1 : index
    %c0_238 = arith.constant 0 : index
    %c0_239 = arith.constant 0 : index
    %284 = vector.load %arg5[%c1_237, %c0_238, %c0_239] : memref<9x8x256xf32, #tpu.memory_space<vmem>>, vector<1x8x256xf32>
    %285 = vector.shape_cast %284 : vector<1x8x256xf32> to vector<8x256xf32>
    %286 = arith.mulf %283, %285 : vector<8x256xf32>
    %c15_i32_240 = arith.constant 15 : i32
    %287 = tpu.dynamic_rotate %276 by %c15_i32_240 dim 1 : vector<8x256xf32>, i32 -> vector<8x256xf32>
    %c2_241 = arith.constant 2 : index
    %c0_242 = arith.constant 0 : index
    %c0_243 = arith.constant 0 : index
    %288 = vector.load %arg5[%c2_241, %c0_242, %c0_243] : memref<9x8x256xf32, #tpu.memory_space<vmem>>, vector<1x8x256xf32>
    %289 = vector.shape_cast %288 : vector<1x8x256xf32> to vector<8x256xf32>
    %290 = arith.mulf %287, %289 : vector<8x256xf32>
    %c1_i32_244 = arith.constant 1 : i32
    %291 = tpu.dynamic_rotate %276 by %c1_i32_244 dim 1 : vector<8x256xf32>, i32 -> vector<8x256xf32>
    %c3_245 = arith.constant 3 : index
    %c0_246 = arith.constant 0 : index
    %c0_247 = arith.constant 0 : index
    %292 = vector.load %arg5[%c3_245, %c0_246, %c0_247] : memref<9x8x256xf32, #tpu.memory_space<vmem>>, vector<1x8x256xf32>
    %293 = vector.shape_cast %292 : vector<1x8x256xf32> to vector<8x256xf32>
    %294 = arith.mulf %291, %293 : vector<8x256xf32>
    %c255_i32_248 = arith.constant 255 : i32
    %295 = tpu.dynamic_rotate %276 by %c255_i32_248 dim 1 : vector<8x256xf32>, i32 -> vector<8x256xf32>
    %c5_249 = arith.constant 5 : index
    %c0_250 = arith.constant 0 : index
    %c0_251 = arith.constant 0 : index
    %296 = vector.load %arg5[%c5_249, %c0_250, %c0_251] : memref<9x8x256xf32, #tpu.memory_space<vmem>>, vector<1x8x256xf32>
    %297 = vector.shape_cast %296 : vector<1x8x256xf32> to vector<8x256xf32>
    %298 = arith.mulf %295, %297 : vector<8x256xf32>
    %c241_i32_252 = arith.constant 241 : i32
    %299 = tpu.dynamic_rotate %276 by %c241_i32_252 dim 1 : vector<8x256xf32>, i32 -> vector<8x256xf32>
    %c6_253 = arith.constant 6 : index
    %c0_254 = arith.constant 0 : index
    %c0_255 = arith.constant 0 : index
    %300 = vector.load %arg5[%c6_253, %c0_254, %c0_255] : memref<9x8x256xf32, #tpu.memory_space<vmem>>, vector<1x8x256xf32>
    %301 = vector.shape_cast %300 : vector<1x8x256xf32> to vector<8x256xf32>
    %302 = arith.mulf %299, %301 : vector<8x256xf32>
    %c240_i32_256 = arith.constant 240 : i32
    %303 = tpu.dynamic_rotate %276 by %c240_i32_256 dim 1 : vector<8x256xf32>, i32 -> vector<8x256xf32>
    %c7_257 = arith.constant 7 : index
    %c0_258 = arith.constant 0 : index
    %c0_259 = arith.constant 0 : index
    %304 = vector.load %arg5[%c7_257, %c0_258, %c0_259] : memref<9x8x256xf32, #tpu.memory_space<vmem>>, vector<1x8x256xf32>
    %305 = vector.shape_cast %304 : vector<1x8x256xf32> to vector<8x256xf32>
    %306 = arith.mulf %303, %305 : vector<8x256xf32>
    %c239_i32_260 = arith.constant 239 : i32
    %307 = tpu.dynamic_rotate %276 by %c239_i32_260 dim 1 : vector<8x256xf32>, i32 -> vector<8x256xf32>
    %c8_261 = arith.constant 8 : index
    %c0_262 = arith.constant 0 : index
    %c0_263 = arith.constant 0 : index
    %308 = vector.load %arg5[%c8_261, %c0_262, %c0_263] : memref<9x8x256xf32, #tpu.memory_space<vmem>>, vector<1x8x256xf32>
    %309 = vector.shape_cast %308 : vector<1x8x256xf32> to vector<8x256xf32>
    %310 = arith.mulf %307, %309 : vector<8x256xf32>
    %311 = tpu.concatenate %282, %286, %290, %294, %276, %298, %302, %306, %310 in 0 : vector<8x256xf32>, vector<8x256xf32>, vector<8x256xf32>, vector<8x256xf32>, vector<8x256xf32>, vector<8x256xf32>, vector<8x256xf32>, vector<8x256xf32>, vector<8x256xf32> -> vector<72x256xf32>
    %cst_264 = arith.constant dense<0.000000e+00> : vector<8x256xf32>
    %312 = tpu.matmul %278, %311, %cst_264 {dimension_numbers = #tpu.dot_dimension_numbers<[1], [0], [0], [1], [0, 0, 1, 1], [], []>, precision = #tpu.contract_precision<fp32>} : vector<8x72xf32>, vector<72x256xf32>, vector<8x256xf32> -> vector<8x256xf32>
    %313 = arith.addf %226, %312 : vector<8x256xf32>
    %c3_265 = arith.constant 3 : index
    %c0_266 = arith.constant 0 : index
    %c0_267 = arith.constant 0 : index
    %314 = vector.load %arg3[%c3_265, %c0_266, %c0_267] : memref<8x8x1xf32, #tpu.memory_space<vmem>>, vector<1x8x1xf32>
    %315 = vector.shape_cast %314 : vector<1x8x1xf32> to vector<8x1xf32>
    %316 = vector.broadcast %315 : vector<8x1xf32> to vector<8x256xf32>
    %317 = arith.addf %313, %316 : vector<8x256xf32>
    %c3_268 = arith.constant 3 : index
    %c0_269 = arith.constant 0 : index
    %c0_270 = arith.constant 0 : index
    %318 = vector.load %arg2[%c3_268, %c0_269, %c0_270] : memref<8x16x72xf32, #tpu.memory_space<vmem>>, vector<1x16x72xf32>
    %319 = vector.shape_cast %318 : vector<1x16x72xf32> to vector<16x72xf32>
    %c17_i32_271 = arith.constant 17 : i32
    %320 = tpu.dynamic_rotate %317 by %c17_i32_271 dim 1 : vector<8x256xf32>, i32 -> vector<8x256xf32>
    %c0_272 = arith.constant 0 : index
    %c0_273 = arith.constant 0 : index
    %c0_274 = arith.constant 0 : index
    %321 = vector.load %arg5[%c0_272, %c0_273, %c0_274] : memref<9x8x256xf32, #tpu.memory_space<vmem>>, vector<1x8x256xf32>
    %322 = vector.shape_cast %321 : vector<1x8x256xf32> to vector<8x256xf32>
    %323 = arith.mulf %320, %322 : vector<8x256xf32>
    %c16_i32_275 = arith.constant 16 : i32
    %324 = tpu.dynamic_rotate %317 by %c16_i32_275 dim 1 : vector<8x256xf32>, i32 -> vector<8x256xf32>
    %c1_276 = arith.constant 1 : index
    %c0_277 = arith.constant 0 : index
    %c0_278 = arith.constant 0 : index
    %325 = vector.load %arg5[%c1_276, %c0_277, %c0_278] : memref<9x8x256xf32, #tpu.memory_space<vmem>>, vector<1x8x256xf32>
    %326 = vector.shape_cast %325 : vector<1x8x256xf32> to vector<8x256xf32>
    %327 = arith.mulf %324, %326 : vector<8x256xf32>
    %c15_i32_279 = arith.constant 15 : i32
    %328 = tpu.dynamic_rotate %317 by %c15_i32_279 dim 1 : vector<8x256xf32>, i32 -> vector<8x256xf32>
    %c2_280 = arith.constant 2 : index
    %c0_281 = arith.constant 0 : index
    %c0_282 = arith.constant 0 : index
    %329 = vector.load %arg5[%c2_280, %c0_281, %c0_282] : memref<9x8x256xf32, #tpu.memory_space<vmem>>, vector<1x8x256xf32>
    %330 = vector.shape_cast %329 : vector<1x8x256xf32> to vector<8x256xf32>
    %331 = arith.mulf %328, %330 : vector<8x256xf32>
    %c1_i32_283 = arith.constant 1 : i32
    %332 = tpu.dynamic_rotate %317 by %c1_i32_283 dim 1 : vector<8x256xf32>, i32 -> vector<8x256xf32>
    %c3_284 = arith.constant 3 : index
    %c0_285 = arith.constant 0 : index
    %c0_286 = arith.constant 0 : index
    %333 = vector.load %arg5[%c3_284, %c0_285, %c0_286] : memref<9x8x256xf32, #tpu.memory_space<vmem>>, vector<1x8x256xf32>
    %334 = vector.shape_cast %333 : vector<1x8x256xf32> to vector<8x256xf32>
    %335 = arith.mulf %332, %334 : vector<8x256xf32>
    %c255_i32_287 = arith.constant 255 : i32
    %336 = tpu.dynamic_rotate %317 by %c255_i32_287 dim 1 : vector<8x256xf32>, i32 -> vector<8x256xf32>
    %c5_288 = arith.constant 5 : index
    %c0_289 = arith.constant 0 : index
    %c0_290 = arith.constant 0 : index
    %337 = vector.load %arg5[%c5_288, %c0_289, %c0_290] : memref<9x8x256xf32, #tpu.memory_space<vmem>>, vector<1x8x256xf32>
    %338 = vector.shape_cast %337 : vector<1x8x256xf32> to vector<8x256xf32>
    %339 = arith.mulf %336, %338 : vector<8x256xf32>
    %c241_i32_291 = arith.constant 241 : i32
    %340 = tpu.dynamic_rotate %317 by %c241_i32_291 dim 1 : vector<8x256xf32>, i32 -> vector<8x256xf32>
    %c6_292 = arith.constant 6 : index
    %c0_293 = arith.constant 0 : index
    %c0_294 = arith.constant 0 : index
    %341 = vector.load %arg5[%c6_292, %c0_293, %c0_294] : memref<9x8x256xf32, #tpu.memory_space<vmem>>, vector<1x8x256xf32>
    %342 = vector.shape_cast %341 : vector<1x8x256xf32> to vector<8x256xf32>
    %343 = arith.mulf %340, %342 : vector<8x256xf32>
    %c240_i32_295 = arith.constant 240 : i32
    %344 = tpu.dynamic_rotate %317 by %c240_i32_295 dim 1 : vector<8x256xf32>, i32 -> vector<8x256xf32>
    %c7_296 = arith.constant 7 : index
    %c0_297 = arith.constant 0 : index
    %c0_298 = arith.constant 0 : index
    %345 = vector.load %arg5[%c7_296, %c0_297, %c0_298] : memref<9x8x256xf32, #tpu.memory_space<vmem>>, vector<1x8x256xf32>
    %346 = vector.shape_cast %345 : vector<1x8x256xf32> to vector<8x256xf32>
    %347 = arith.mulf %344, %346 : vector<8x256xf32>
    %c239_i32_299 = arith.constant 239 : i32
    %348 = tpu.dynamic_rotate %317 by %c239_i32_299 dim 1 : vector<8x256xf32>, i32 -> vector<8x256xf32>
    %c8_300 = arith.constant 8 : index
    %c0_301 = arith.constant 0 : index
    %c0_302 = arith.constant 0 : index
    %349 = vector.load %arg5[%c8_300, %c0_301, %c0_302] : memref<9x8x256xf32, #tpu.memory_space<vmem>>, vector<1x8x256xf32>
    %350 = vector.shape_cast %349 : vector<1x8x256xf32> to vector<8x256xf32>
    %351 = arith.mulf %348, %350 : vector<8x256xf32>
    %352 = tpu.concatenate %323, %327, %331, %335, %317, %339, %343, %347, %351 in 0 : vector<8x256xf32>, vector<8x256xf32>, vector<8x256xf32>, vector<8x256xf32>, vector<8x256xf32>, vector<8x256xf32>, vector<8x256xf32>, vector<8x256xf32>, vector<8x256xf32> -> vector<72x256xf32>
    %cst_303 = arith.constant dense<0.000000e+00> : vector<16x256xf32>
    %353 = tpu.matmul %319, %352, %cst_303 {dimension_numbers = #tpu.dot_dimension_numbers<[1], [0], [0], [1], [0, 0, 1, 1], [], []>, precision = #tpu.contract_precision<fp32>} : vector<16x72xf32>, vector<72x256xf32>, vector<16x256xf32> -> vector<16x256xf32>
    %c3_304 = arith.constant 3 : index
    %c0_305 = arith.constant 0 : index
    %c0_306 = arith.constant 0 : index
    %354 = vector.load %arg4[%c3_304, %c0_305, %c0_306] : memref<8x16x1xf32, #tpu.memory_space<vmem>>, vector<1x16x1xf32>
    %355 = vector.shape_cast %354 : vector<1x16x1xf32> to vector<16x1xf32>
    %356 = vector.broadcast %355 : vector<16x1xf32> to vector<16x256xf32>
    %357 = arith.addf %353, %356 : vector<16x256xf32>
    %358 = vector.extract_strided_slice %357 {offsets = [0, 0], sizes = [8, 256], strides = [1, 1]} : vector<16x256xf32> to vector<8x256xf32>
    %359 = vector.extract_strided_slice %357 {offsets = [8, 0], sizes = [8, 256], strides = [1, 1]} : vector<16x256xf32> to vector<8x256xf32>
    %cst_307 = arith.constant 5.000000e-01 : f32
    %360 = vector.broadcast %cst_307 : f32 to vector<8x256xf32>
    %361 = arith.mulf %360, %358 : vector<8x256xf32>
    %362 = math.tanh %361 : vector<8x256xf32>
    %cst_308 = arith.constant 2.000000e+00 : f32
    %363 = vector.broadcast %cst_308 : f32 to vector<8x256xf32>
    %364 = arith.mulf %363, %362 : vector<8x256xf32>
    %365 = math.exp %364 : vector<8x256xf32>
    %366 = arith.mulf %276, %365 : vector<8x256xf32>
    %367 = arith.addf %366, %359 : vector<8x256xf32>
    %c4 = arith.constant 4 : index
    %c0_309 = arith.constant 0 : index
    %c0_310 = arith.constant 0 : index
    %368 = vector.load %arg1[%c4, %c0_309, %c0_310] : memref<8x8x72xf32, #tpu.memory_space<vmem>>, vector<1x8x72xf32>
    %369 = vector.shape_cast %368 : vector<1x8x72xf32> to vector<8x72xf32>
    %c17_i32_311 = arith.constant 17 : i32
    %370 = tpu.dynamic_rotate %367 by %c17_i32_311 dim 1 : vector<8x256xf32>, i32 -> vector<8x256xf32>
    %c0_312 = arith.constant 0 : index
    %c0_313 = arith.constant 0 : index
    %c0_314 = arith.constant 0 : index
    %371 = vector.load %arg5[%c0_312, %c0_313, %c0_314] : memref<9x8x256xf32, #tpu.memory_space<vmem>>, vector<1x8x256xf32>
    %372 = vector.shape_cast %371 : vector<1x8x256xf32> to vector<8x256xf32>
    %373 = arith.mulf %370, %372 : vector<8x256xf32>
    %c16_i32_315 = arith.constant 16 : i32
    %374 = tpu.dynamic_rotate %367 by %c16_i32_315 dim 1 : vector<8x256xf32>, i32 -> vector<8x256xf32>
    %c1_316 = arith.constant 1 : index
    %c0_317 = arith.constant 0 : index
    %c0_318 = arith.constant 0 : index
    %375 = vector.load %arg5[%c1_316, %c0_317, %c0_318] : memref<9x8x256xf32, #tpu.memory_space<vmem>>, vector<1x8x256xf32>
    %376 = vector.shape_cast %375 : vector<1x8x256xf32> to vector<8x256xf32>
    %377 = arith.mulf %374, %376 : vector<8x256xf32>
    %c15_i32_319 = arith.constant 15 : i32
    %378 = tpu.dynamic_rotate %367 by %c15_i32_319 dim 1 : vector<8x256xf32>, i32 -> vector<8x256xf32>
    %c2_320 = arith.constant 2 : index
    %c0_321 = arith.constant 0 : index
    %c0_322 = arith.constant 0 : index
    %379 = vector.load %arg5[%c2_320, %c0_321, %c0_322] : memref<9x8x256xf32, #tpu.memory_space<vmem>>, vector<1x8x256xf32>
    %380 = vector.shape_cast %379 : vector<1x8x256xf32> to vector<8x256xf32>
    %381 = arith.mulf %378, %380 : vector<8x256xf32>
    %c1_i32_323 = arith.constant 1 : i32
    %382 = tpu.dynamic_rotate %367 by %c1_i32_323 dim 1 : vector<8x256xf32>, i32 -> vector<8x256xf32>
    %c3_324 = arith.constant 3 : index
    %c0_325 = arith.constant 0 : index
    %c0_326 = arith.constant 0 : index
    %383 = vector.load %arg5[%c3_324, %c0_325, %c0_326] : memref<9x8x256xf32, #tpu.memory_space<vmem>>, vector<1x8x256xf32>
    %384 = vector.shape_cast %383 : vector<1x8x256xf32> to vector<8x256xf32>
    %385 = arith.mulf %382, %384 : vector<8x256xf32>
    %c255_i32_327 = arith.constant 255 : i32
    %386 = tpu.dynamic_rotate %367 by %c255_i32_327 dim 1 : vector<8x256xf32>, i32 -> vector<8x256xf32>
    %c5_328 = arith.constant 5 : index
    %c0_329 = arith.constant 0 : index
    %c0_330 = arith.constant 0 : index
    %387 = vector.load %arg5[%c5_328, %c0_329, %c0_330] : memref<9x8x256xf32, #tpu.memory_space<vmem>>, vector<1x8x256xf32>
    %388 = vector.shape_cast %387 : vector<1x8x256xf32> to vector<8x256xf32>
    %389 = arith.mulf %386, %388 : vector<8x256xf32>
    %c241_i32_331 = arith.constant 241 : i32
    %390 = tpu.dynamic_rotate %367 by %c241_i32_331 dim 1 : vector<8x256xf32>, i32 -> vector<8x256xf32>
    %c6_332 = arith.constant 6 : index
    %c0_333 = arith.constant 0 : index
    %c0_334 = arith.constant 0 : index
    %391 = vector.load %arg5[%c6_332, %c0_333, %c0_334] : memref<9x8x256xf32, #tpu.memory_space<vmem>>, vector<1x8x256xf32>
    %392 = vector.shape_cast %391 : vector<1x8x256xf32> to vector<8x256xf32>
    %393 = arith.mulf %390, %392 : vector<8x256xf32>
    %c240_i32_335 = arith.constant 240 : i32
    %394 = tpu.dynamic_rotate %367 by %c240_i32_335 dim 1 : vector<8x256xf32>, i32 -> vector<8x256xf32>
    %c7_336 = arith.constant 7 : index
    %c0_337 = arith.constant 0 : index
    %c0_338 = arith.constant 0 : index
    %395 = vector.load %arg5[%c7_336, %c0_337, %c0_338] : memref<9x8x256xf32, #tpu.memory_space<vmem>>, vector<1x8x256xf32>
    %396 = vector.shape_cast %395 : vector<1x8x256xf32> to vector<8x256xf32>
    %397 = arith.mulf %394, %396 : vector<8x256xf32>
    %c239_i32_339 = arith.constant 239 : i32
    %398 = tpu.dynamic_rotate %367 by %c239_i32_339 dim 1 : vector<8x256xf32>, i32 -> vector<8x256xf32>
    %c8_340 = arith.constant 8 : index
    %c0_341 = arith.constant 0 : index
    %c0_342 = arith.constant 0 : index
    %399 = vector.load %arg5[%c8_340, %c0_341, %c0_342] : memref<9x8x256xf32, #tpu.memory_space<vmem>>, vector<1x8x256xf32>
    %400 = vector.shape_cast %399 : vector<1x8x256xf32> to vector<8x256xf32>
    %401 = arith.mulf %398, %400 : vector<8x256xf32>
    %402 = tpu.concatenate %373, %377, %381, %385, %367, %389, %393, %397, %401 in 0 : vector<8x256xf32>, vector<8x256xf32>, vector<8x256xf32>, vector<8x256xf32>, vector<8x256xf32>, vector<8x256xf32>, vector<8x256xf32>, vector<8x256xf32>, vector<8x256xf32> -> vector<72x256xf32>
    %cst_343 = arith.constant dense<0.000000e+00> : vector<8x256xf32>
    %403 = tpu.matmul %369, %402, %cst_343 {dimension_numbers = #tpu.dot_dimension_numbers<[1], [0], [0], [1], [0, 0, 1, 1], [], []>, precision = #tpu.contract_precision<fp32>} : vector<8x72xf32>, vector<72x256xf32>, vector<8x256xf32> -> vector<8x256xf32>
    %404 = arith.addf %317, %403 : vector<8x256xf32>
    %c4_344 = arith.constant 4 : index
    %c0_345 = arith.constant 0 : index
    %c0_346 = arith.constant 0 : index
    %405 = vector.load %arg3[%c4_344, %c0_345, %c0_346] : memref<8x8x1xf32, #tpu.memory_space<vmem>>, vector<1x8x1xf32>
    %406 = vector.shape_cast %405 : vector<1x8x1xf32> to vector<8x1xf32>
    %407 = vector.broadcast %406 : vector<8x1xf32> to vector<8x256xf32>
    %408 = arith.addf %404, %407 : vector<8x256xf32>
    %c4_347 = arith.constant 4 : index
    %c0_348 = arith.constant 0 : index
    %c0_349 = arith.constant 0 : index
    %409 = vector.load %arg2[%c4_347, %c0_348, %c0_349] : memref<8x16x72xf32, #tpu.memory_space<vmem>>, vector<1x16x72xf32>
    %410 = vector.shape_cast %409 : vector<1x16x72xf32> to vector<16x72xf32>
    %c17_i32_350 = arith.constant 17 : i32
    %411 = tpu.dynamic_rotate %408 by %c17_i32_350 dim 1 : vector<8x256xf32>, i32 -> vector<8x256xf32>
    %c0_351 = arith.constant 0 : index
    %c0_352 = arith.constant 0 : index
    %c0_353 = arith.constant 0 : index
    %412 = vector.load %arg5[%c0_351, %c0_352, %c0_353] : memref<9x8x256xf32, #tpu.memory_space<vmem>>, vector<1x8x256xf32>
    %413 = vector.shape_cast %412 : vector<1x8x256xf32> to vector<8x256xf32>
    %414 = arith.mulf %411, %413 : vector<8x256xf32>
    %c16_i32_354 = arith.constant 16 : i32
    %415 = tpu.dynamic_rotate %408 by %c16_i32_354 dim 1 : vector<8x256xf32>, i32 -> vector<8x256xf32>
    %c1_355 = arith.constant 1 : index
    %c0_356 = arith.constant 0 : index
    %c0_357 = arith.constant 0 : index
    %416 = vector.load %arg5[%c1_355, %c0_356, %c0_357] : memref<9x8x256xf32, #tpu.memory_space<vmem>>, vector<1x8x256xf32>
    %417 = vector.shape_cast %416 : vector<1x8x256xf32> to vector<8x256xf32>
    %418 = arith.mulf %415, %417 : vector<8x256xf32>
    %c15_i32_358 = arith.constant 15 : i32
    %419 = tpu.dynamic_rotate %408 by %c15_i32_358 dim 1 : vector<8x256xf32>, i32 -> vector<8x256xf32>
    %c2_359 = arith.constant 2 : index
    %c0_360 = arith.constant 0 : index
    %c0_361 = arith.constant 0 : index
    %420 = vector.load %arg5[%c2_359, %c0_360, %c0_361] : memref<9x8x256xf32, #tpu.memory_space<vmem>>, vector<1x8x256xf32>
    %421 = vector.shape_cast %420 : vector<1x8x256xf32> to vector<8x256xf32>
    %422 = arith.mulf %419, %421 : vector<8x256xf32>
    %c1_i32_362 = arith.constant 1 : i32
    %423 = tpu.dynamic_rotate %408 by %c1_i32_362 dim 1 : vector<8x256xf32>, i32 -> vector<8x256xf32>
    %c3_363 = arith.constant 3 : index
    %c0_364 = arith.constant 0 : index
    %c0_365 = arith.constant 0 : index
    %424 = vector.load %arg5[%c3_363, %c0_364, %c0_365] : memref<9x8x256xf32, #tpu.memory_space<vmem>>, vector<1x8x256xf32>
    %425 = vector.shape_cast %424 : vector<1x8x256xf32> to vector<8x256xf32>
    %426 = arith.mulf %423, %425 : vector<8x256xf32>
    %c255_i32_366 = arith.constant 255 : i32
    %427 = tpu.dynamic_rotate %408 by %c255_i32_366 dim 1 : vector<8x256xf32>, i32 -> vector<8x256xf32>
    %c5_367 = arith.constant 5 : index
    %c0_368 = arith.constant 0 : index
    %c0_369 = arith.constant 0 : index
    %428 = vector.load %arg5[%c5_367, %c0_368, %c0_369] : memref<9x8x256xf32, #tpu.memory_space<vmem>>, vector<1x8x256xf32>
    %429 = vector.shape_cast %428 : vector<1x8x256xf32> to vector<8x256xf32>
    %430 = arith.mulf %427, %429 : vector<8x256xf32>
    %c241_i32_370 = arith.constant 241 : i32
    %431 = tpu.dynamic_rotate %408 by %c241_i32_370 dim 1 : vector<8x256xf32>, i32 -> vector<8x256xf32>
    %c6_371 = arith.constant 6 : index
    %c0_372 = arith.constant 0 : index
    %c0_373 = arith.constant 0 : index
    %432 = vector.load %arg5[%c6_371, %c0_372, %c0_373] : memref<9x8x256xf32, #tpu.memory_space<vmem>>, vector<1x8x256xf32>
    %433 = vector.shape_cast %432 : vector<1x8x256xf32> to vector<8x256xf32>
    %434 = arith.mulf %431, %433 : vector<8x256xf32>
    %c240_i32_374 = arith.constant 240 : i32
    %435 = tpu.dynamic_rotate %408 by %c240_i32_374 dim 1 : vector<8x256xf32>, i32 -> vector<8x256xf32>
    %c7_375 = arith.constant 7 : index
    %c0_376 = arith.constant 0 : index
    %c0_377 = arith.constant 0 : index
    %436 = vector.load %arg5[%c7_375, %c0_376, %c0_377] : memref<9x8x256xf32, #tpu.memory_space<vmem>>, vector<1x8x256xf32>
    %437 = vector.shape_cast %436 : vector<1x8x256xf32> to vector<8x256xf32>
    %438 = arith.mulf %435, %437 : vector<8x256xf32>
    %c239_i32_378 = arith.constant 239 : i32
    %439 = tpu.dynamic_rotate %408 by %c239_i32_378 dim 1 : vector<8x256xf32>, i32 -> vector<8x256xf32>
    %c8_379 = arith.constant 8 : index
    %c0_380 = arith.constant 0 : index
    %c0_381 = arith.constant 0 : index
    %440 = vector.load %arg5[%c8_379, %c0_380, %c0_381] : memref<9x8x256xf32, #tpu.memory_space<vmem>>, vector<1x8x256xf32>
    %441 = vector.shape_cast %440 : vector<1x8x256xf32> to vector<8x256xf32>
    %442 = arith.mulf %439, %441 : vector<8x256xf32>
    %443 = tpu.concatenate %414, %418, %422, %426, %408, %430, %434, %438, %442 in 0 : vector<8x256xf32>, vector<8x256xf32>, vector<8x256xf32>, vector<8x256xf32>, vector<8x256xf32>, vector<8x256xf32>, vector<8x256xf32>, vector<8x256xf32>, vector<8x256xf32> -> vector<72x256xf32>
    %cst_382 = arith.constant dense<0.000000e+00> : vector<16x256xf32>
    %444 = tpu.matmul %410, %443, %cst_382 {dimension_numbers = #tpu.dot_dimension_numbers<[1], [0], [0], [1], [0, 0, 1, 1], [], []>, precision = #tpu.contract_precision<fp32>} : vector<16x72xf32>, vector<72x256xf32>, vector<16x256xf32> -> vector<16x256xf32>
    %c4_383 = arith.constant 4 : index
    %c0_384 = arith.constant 0 : index
    %c0_385 = arith.constant 0 : index
    %445 = vector.load %arg4[%c4_383, %c0_384, %c0_385] : memref<8x16x1xf32, #tpu.memory_space<vmem>>, vector<1x16x1xf32>
    %446 = vector.shape_cast %445 : vector<1x16x1xf32> to vector<16x1xf32>
    %447 = vector.broadcast %446 : vector<16x1xf32> to vector<16x256xf32>
    %448 = arith.addf %444, %447 : vector<16x256xf32>
    %449 = vector.extract_strided_slice %448 {offsets = [0, 0], sizes = [8, 256], strides = [1, 1]} : vector<16x256xf32> to vector<8x256xf32>
    %450 = vector.extract_strided_slice %448 {offsets = [8, 0], sizes = [8, 256], strides = [1, 1]} : vector<16x256xf32> to vector<8x256xf32>
    %cst_386 = arith.constant 5.000000e-01 : f32
    %451 = vector.broadcast %cst_386 : f32 to vector<8x256xf32>
    %452 = arith.mulf %451, %449 : vector<8x256xf32>
    %453 = math.tanh %452 : vector<8x256xf32>
    %cst_387 = arith.constant 2.000000e+00 : f32
    %454 = vector.broadcast %cst_387 : f32 to vector<8x256xf32>
    %455 = arith.mulf %454, %453 : vector<8x256xf32>
    %456 = math.exp %455 : vector<8x256xf32>
    %457 = arith.mulf %367, %456 : vector<8x256xf32>
    %458 = arith.addf %457, %450 : vector<8x256xf32>
    %c5_388 = arith.constant 5 : index
    %c0_389 = arith.constant 0 : index
    %c0_390 = arith.constant 0 : index
    %459 = vector.load %arg1[%c5_388, %c0_389, %c0_390] : memref<8x8x72xf32, #tpu.memory_space<vmem>>, vector<1x8x72xf32>
    %460 = vector.shape_cast %459 : vector<1x8x72xf32> to vector<8x72xf32>
    %c17_i32_391 = arith.constant 17 : i32
    %461 = tpu.dynamic_rotate %458 by %c17_i32_391 dim 1 : vector<8x256xf32>, i32 -> vector<8x256xf32>
    %c0_392 = arith.constant 0 : index
    %c0_393 = arith.constant 0 : index
    %c0_394 = arith.constant 0 : index
    %462 = vector.load %arg5[%c0_392, %c0_393, %c0_394] : memref<9x8x256xf32, #tpu.memory_space<vmem>>, vector<1x8x256xf32>
    %463 = vector.shape_cast %462 : vector<1x8x256xf32> to vector<8x256xf32>
    %464 = arith.mulf %461, %463 : vector<8x256xf32>
    %c16_i32_395 = arith.constant 16 : i32
    %465 = tpu.dynamic_rotate %458 by %c16_i32_395 dim 1 : vector<8x256xf32>, i32 -> vector<8x256xf32>
    %c1_396 = arith.constant 1 : index
    %c0_397 = arith.constant 0 : index
    %c0_398 = arith.constant 0 : index
    %466 = vector.load %arg5[%c1_396, %c0_397, %c0_398] : memref<9x8x256xf32, #tpu.memory_space<vmem>>, vector<1x8x256xf32>
    %467 = vector.shape_cast %466 : vector<1x8x256xf32> to vector<8x256xf32>
    %468 = arith.mulf %465, %467 : vector<8x256xf32>
    %c15_i32_399 = arith.constant 15 : i32
    %469 = tpu.dynamic_rotate %458 by %c15_i32_399 dim 1 : vector<8x256xf32>, i32 -> vector<8x256xf32>
    %c2_400 = arith.constant 2 : index
    %c0_401 = arith.constant 0 : index
    %c0_402 = arith.constant 0 : index
    %470 = vector.load %arg5[%c2_400, %c0_401, %c0_402] : memref<9x8x256xf32, #tpu.memory_space<vmem>>, vector<1x8x256xf32>
    %471 = vector.shape_cast %470 : vector<1x8x256xf32> to vector<8x256xf32>
    %472 = arith.mulf %469, %471 : vector<8x256xf32>
    %c1_i32_403 = arith.constant 1 : i32
    %473 = tpu.dynamic_rotate %458 by %c1_i32_403 dim 1 : vector<8x256xf32>, i32 -> vector<8x256xf32>
    %c3_404 = arith.constant 3 : index
    %c0_405 = arith.constant 0 : index
    %c0_406 = arith.constant 0 : index
    %474 = vector.load %arg5[%c3_404, %c0_405, %c0_406] : memref<9x8x256xf32, #tpu.memory_space<vmem>>, vector<1x8x256xf32>
    %475 = vector.shape_cast %474 : vector<1x8x256xf32> to vector<8x256xf32>
    %476 = arith.mulf %473, %475 : vector<8x256xf32>
    %c255_i32_407 = arith.constant 255 : i32
    %477 = tpu.dynamic_rotate %458 by %c255_i32_407 dim 1 : vector<8x256xf32>, i32 -> vector<8x256xf32>
    %c5_408 = arith.constant 5 : index
    %c0_409 = arith.constant 0 : index
    %c0_410 = arith.constant 0 : index
    %478 = vector.load %arg5[%c5_408, %c0_409, %c0_410] : memref<9x8x256xf32, #tpu.memory_space<vmem>>, vector<1x8x256xf32>
    %479 = vector.shape_cast %478 : vector<1x8x256xf32> to vector<8x256xf32>
    %480 = arith.mulf %477, %479 : vector<8x256xf32>
    %c241_i32_411 = arith.constant 241 : i32
    %481 = tpu.dynamic_rotate %458 by %c241_i32_411 dim 1 : vector<8x256xf32>, i32 -> vector<8x256xf32>
    %c6_412 = arith.constant 6 : index
    %c0_413 = arith.constant 0 : index
    %c0_414 = arith.constant 0 : index
    %482 = vector.load %arg5[%c6_412, %c0_413, %c0_414] : memref<9x8x256xf32, #tpu.memory_space<vmem>>, vector<1x8x256xf32>
    %483 = vector.shape_cast %482 : vector<1x8x256xf32> to vector<8x256xf32>
    %484 = arith.mulf %481, %483 : vector<8x256xf32>
    %c240_i32_415 = arith.constant 240 : i32
    %485 = tpu.dynamic_rotate %458 by %c240_i32_415 dim 1 : vector<8x256xf32>, i32 -> vector<8x256xf32>
    %c7_416 = arith.constant 7 : index
    %c0_417 = arith.constant 0 : index
    %c0_418 = arith.constant 0 : index
    %486 = vector.load %arg5[%c7_416, %c0_417, %c0_418] : memref<9x8x256xf32, #tpu.memory_space<vmem>>, vector<1x8x256xf32>
    %487 = vector.shape_cast %486 : vector<1x8x256xf32> to vector<8x256xf32>
    %488 = arith.mulf %485, %487 : vector<8x256xf32>
    %c239_i32_419 = arith.constant 239 : i32
    %489 = tpu.dynamic_rotate %458 by %c239_i32_419 dim 1 : vector<8x256xf32>, i32 -> vector<8x256xf32>
    %c8_420 = arith.constant 8 : index
    %c0_421 = arith.constant 0 : index
    %c0_422 = arith.constant 0 : index
    %490 = vector.load %arg5[%c8_420, %c0_421, %c0_422] : memref<9x8x256xf32, #tpu.memory_space<vmem>>, vector<1x8x256xf32>
    %491 = vector.shape_cast %490 : vector<1x8x256xf32> to vector<8x256xf32>
    %492 = arith.mulf %489, %491 : vector<8x256xf32>
    %493 = tpu.concatenate %464, %468, %472, %476, %458, %480, %484, %488, %492 in 0 : vector<8x256xf32>, vector<8x256xf32>, vector<8x256xf32>, vector<8x256xf32>, vector<8x256xf32>, vector<8x256xf32>, vector<8x256xf32>, vector<8x256xf32>, vector<8x256xf32> -> vector<72x256xf32>
    %cst_423 = arith.constant dense<0.000000e+00> : vector<8x256xf32>
    %494 = tpu.matmul %460, %493, %cst_423 {dimension_numbers = #tpu.dot_dimension_numbers<[1], [0], [0], [1], [0, 0, 1, 1], [], []>, precision = #tpu.contract_precision<fp32>} : vector<8x72xf32>, vector<72x256xf32>, vector<8x256xf32> -> vector<8x256xf32>
    %495 = arith.addf %408, %494 : vector<8x256xf32>
    %c5_424 = arith.constant 5 : index
    %c0_425 = arith.constant 0 : index
    %c0_426 = arith.constant 0 : index
    %496 = vector.load %arg3[%c5_424, %c0_425, %c0_426] : memref<8x8x1xf32, #tpu.memory_space<vmem>>, vector<1x8x1xf32>
    %497 = vector.shape_cast %496 : vector<1x8x1xf32> to vector<8x1xf32>
    %498 = vector.broadcast %497 : vector<8x1xf32> to vector<8x256xf32>
    %499 = arith.addf %495, %498 : vector<8x256xf32>
    %c5_427 = arith.constant 5 : index
    %c0_428 = arith.constant 0 : index
    %c0_429 = arith.constant 0 : index
    %500 = vector.load %arg2[%c5_427, %c0_428, %c0_429] : memref<8x16x72xf32, #tpu.memory_space<vmem>>, vector<1x16x72xf32>
    %501 = vector.shape_cast %500 : vector<1x16x72xf32> to vector<16x72xf32>
    %c17_i32_430 = arith.constant 17 : i32
    %502 = tpu.dynamic_rotate %499 by %c17_i32_430 dim 1 : vector<8x256xf32>, i32 -> vector<8x256xf32>
    %c0_431 = arith.constant 0 : index
    %c0_432 = arith.constant 0 : index
    %c0_433 = arith.constant 0 : index
    %503 = vector.load %arg5[%c0_431, %c0_432, %c0_433] : memref<9x8x256xf32, #tpu.memory_space<vmem>>, vector<1x8x256xf32>
    %504 = vector.shape_cast %503 : vector<1x8x256xf32> to vector<8x256xf32>
    %505 = arith.mulf %502, %504 : vector<8x256xf32>
    %c16_i32_434 = arith.constant 16 : i32
    %506 = tpu.dynamic_rotate %499 by %c16_i32_434 dim 1 : vector<8x256xf32>, i32 -> vector<8x256xf32>
    %c1_435 = arith.constant 1 : index
    %c0_436 = arith.constant 0 : index
    %c0_437 = arith.constant 0 : index
    %507 = vector.load %arg5[%c1_435, %c0_436, %c0_437] : memref<9x8x256xf32, #tpu.memory_space<vmem>>, vector<1x8x256xf32>
    %508 = vector.shape_cast %507 : vector<1x8x256xf32> to vector<8x256xf32>
    %509 = arith.mulf %506, %508 : vector<8x256xf32>
    %c15_i32_438 = arith.constant 15 : i32
    %510 = tpu.dynamic_rotate %499 by %c15_i32_438 dim 1 : vector<8x256xf32>, i32 -> vector<8x256xf32>
    %c2_439 = arith.constant 2 : index
    %c0_440 = arith.constant 0 : index
    %c0_441 = arith.constant 0 : index
    %511 = vector.load %arg5[%c2_439, %c0_440, %c0_441] : memref<9x8x256xf32, #tpu.memory_space<vmem>>, vector<1x8x256xf32>
    %512 = vector.shape_cast %511 : vector<1x8x256xf32> to vector<8x256xf32>
    %513 = arith.mulf %510, %512 : vector<8x256xf32>
    %c1_i32_442 = arith.constant 1 : i32
    %514 = tpu.dynamic_rotate %499 by %c1_i32_442 dim 1 : vector<8x256xf32>, i32 -> vector<8x256xf32>
    %c3_443 = arith.constant 3 : index
    %c0_444 = arith.constant 0 : index
    %c0_445 = arith.constant 0 : index
    %515 = vector.load %arg5[%c3_443, %c0_444, %c0_445] : memref<9x8x256xf32, #tpu.memory_space<vmem>>, vector<1x8x256xf32>
    %516 = vector.shape_cast %515 : vector<1x8x256xf32> to vector<8x256xf32>
    %517 = arith.mulf %514, %516 : vector<8x256xf32>
    %c255_i32_446 = arith.constant 255 : i32
    %518 = tpu.dynamic_rotate %499 by %c255_i32_446 dim 1 : vector<8x256xf32>, i32 -> vector<8x256xf32>
    %c5_447 = arith.constant 5 : index
    %c0_448 = arith.constant 0 : index
    %c0_449 = arith.constant 0 : index
    %519 = vector.load %arg5[%c5_447, %c0_448, %c0_449] : memref<9x8x256xf32, #tpu.memory_space<vmem>>, vector<1x8x256xf32>
    %520 = vector.shape_cast %519 : vector<1x8x256xf32> to vector<8x256xf32>
    %521 = arith.mulf %518, %520 : vector<8x256xf32>
    %c241_i32_450 = arith.constant 241 : i32
    %522 = tpu.dynamic_rotate %499 by %c241_i32_450 dim 1 : vector<8x256xf32>, i32 -> vector<8x256xf32>
    %c6_451 = arith.constant 6 : index
    %c0_452 = arith.constant 0 : index
    %c0_453 = arith.constant 0 : index
    %523 = vector.load %arg5[%c6_451, %c0_452, %c0_453] : memref<9x8x256xf32, #tpu.memory_space<vmem>>, vector<1x8x256xf32>
    %524 = vector.shape_cast %523 : vector<1x8x256xf32> to vector<8x256xf32>
    %525 = arith.mulf %522, %524 : vector<8x256xf32>
    %c240_i32_454 = arith.constant 240 : i32
    %526 = tpu.dynamic_rotate %499 by %c240_i32_454 dim 1 : vector<8x256xf32>, i32 -> vector<8x256xf32>
    %c7_455 = arith.constant 7 : index
    %c0_456 = arith.constant 0 : index
    %c0_457 = arith.constant 0 : index
    %527 = vector.load %arg5[%c7_455, %c0_456, %c0_457] : memref<9x8x256xf32, #tpu.memory_space<vmem>>, vector<1x8x256xf32>
    %528 = vector.shape_cast %527 : vector<1x8x256xf32> to vector<8x256xf32>
    %529 = arith.mulf %526, %528 : vector<8x256xf32>
    %c239_i32_458 = arith.constant 239 : i32
    %530 = tpu.dynamic_rotate %499 by %c239_i32_458 dim 1 : vector<8x256xf32>, i32 -> vector<8x256xf32>
    %c8_459 = arith.constant 8 : index
    %c0_460 = arith.constant 0 : index
    %c0_461 = arith.constant 0 : index
    %531 = vector.load %arg5[%c8_459, %c0_460, %c0_461] : memref<9x8x256xf32, #tpu.memory_space<vmem>>, vector<1x8x256xf32>
    %532 = vector.shape_cast %531 : vector<1x8x256xf32> to vector<8x256xf32>
    %533 = arith.mulf %530, %532 : vector<8x256xf32>
    %534 = tpu.concatenate %505, %509, %513, %517, %499, %521, %525, %529, %533 in 0 : vector<8x256xf32>, vector<8x256xf32>, vector<8x256xf32>, vector<8x256xf32>, vector<8x256xf32>, vector<8x256xf32>, vector<8x256xf32>, vector<8x256xf32>, vector<8x256xf32> -> vector<72x256xf32>
    %cst_462 = arith.constant dense<0.000000e+00> : vector<16x256xf32>
    %535 = tpu.matmul %501, %534, %cst_462 {dimension_numbers = #tpu.dot_dimension_numbers<[1], [0], [0], [1], [0, 0, 1, 1], [], []>, precision = #tpu.contract_precision<fp32>} : vector<16x72xf32>, vector<72x256xf32>, vector<16x256xf32> -> vector<16x256xf32>
    %c5_463 = arith.constant 5 : index
    %c0_464 = arith.constant 0 : index
    %c0_465 = arith.constant 0 : index
    %536 = vector.load %arg4[%c5_463, %c0_464, %c0_465] : memref<8x16x1xf32, #tpu.memory_space<vmem>>, vector<1x16x1xf32>
    %537 = vector.shape_cast %536 : vector<1x16x1xf32> to vector<16x1xf32>
    %538 = vector.broadcast %537 : vector<16x1xf32> to vector<16x256xf32>
    %539 = arith.addf %535, %538 : vector<16x256xf32>
    %540 = vector.extract_strided_slice %539 {offsets = [0, 0], sizes = [8, 256], strides = [1, 1]} : vector<16x256xf32> to vector<8x256xf32>
    %541 = vector.extract_strided_slice %539 {offsets = [8, 0], sizes = [8, 256], strides = [1, 1]} : vector<16x256xf32> to vector<8x256xf32>
    %cst_466 = arith.constant 5.000000e-01 : f32
    %542 = vector.broadcast %cst_466 : f32 to vector<8x256xf32>
    %543 = arith.mulf %542, %540 : vector<8x256xf32>
    %544 = math.tanh %543 : vector<8x256xf32>
    %cst_467 = arith.constant 2.000000e+00 : f32
    %545 = vector.broadcast %cst_467 : f32 to vector<8x256xf32>
    %546 = arith.mulf %545, %544 : vector<8x256xf32>
    %547 = math.exp %546 : vector<8x256xf32>
    %548 = arith.mulf %458, %547 : vector<8x256xf32>
    %549 = arith.addf %548, %541 : vector<8x256xf32>
    %c6_468 = arith.constant 6 : index
    %c0_469 = arith.constant 0 : index
    %c0_470 = arith.constant 0 : index
    %550 = vector.load %arg1[%c6_468, %c0_469, %c0_470] : memref<8x8x72xf32, #tpu.memory_space<vmem>>, vector<1x8x72xf32>
    %551 = vector.shape_cast %550 : vector<1x8x72xf32> to vector<8x72xf32>
    %c17_i32_471 = arith.constant 17 : i32
    %552 = tpu.dynamic_rotate %549 by %c17_i32_471 dim 1 : vector<8x256xf32>, i32 -> vector<8x256xf32>
    %c0_472 = arith.constant 0 : index
    %c0_473 = arith.constant 0 : index
    %c0_474 = arith.constant 0 : index
    %553 = vector.load %arg5[%c0_472, %c0_473, %c0_474] : memref<9x8x256xf32, #tpu.memory_space<vmem>>, vector<1x8x256xf32>
    %554 = vector.shape_cast %553 : vector<1x8x256xf32> to vector<8x256xf32>
    %555 = arith.mulf %552, %554 : vector<8x256xf32>
    %c16_i32_475 = arith.constant 16 : i32
    %556 = tpu.dynamic_rotate %549 by %c16_i32_475 dim 1 : vector<8x256xf32>, i32 -> vector<8x256xf32>
    %c1_476 = arith.constant 1 : index
    %c0_477 = arith.constant 0 : index
    %c0_478 = arith.constant 0 : index
    %557 = vector.load %arg5[%c1_476, %c0_477, %c0_478] : memref<9x8x256xf32, #tpu.memory_space<vmem>>, vector<1x8x256xf32>
    %558 = vector.shape_cast %557 : vector<1x8x256xf32> to vector<8x256xf32>
    %559 = arith.mulf %556, %558 : vector<8x256xf32>
    %c15_i32_479 = arith.constant 15 : i32
    %560 = tpu.dynamic_rotate %549 by %c15_i32_479 dim 1 : vector<8x256xf32>, i32 -> vector<8x256xf32>
    %c2_480 = arith.constant 2 : index
    %c0_481 = arith.constant 0 : index
    %c0_482 = arith.constant 0 : index
    %561 = vector.load %arg5[%c2_480, %c0_481, %c0_482] : memref<9x8x256xf32, #tpu.memory_space<vmem>>, vector<1x8x256xf32>
    %562 = vector.shape_cast %561 : vector<1x8x256xf32> to vector<8x256xf32>
    %563 = arith.mulf %560, %562 : vector<8x256xf32>
    %c1_i32_483 = arith.constant 1 : i32
    %564 = tpu.dynamic_rotate %549 by %c1_i32_483 dim 1 : vector<8x256xf32>, i32 -> vector<8x256xf32>
    %c3_484 = arith.constant 3 : index
    %c0_485 = arith.constant 0 : index
    %c0_486 = arith.constant 0 : index
    %565 = vector.load %arg5[%c3_484, %c0_485, %c0_486] : memref<9x8x256xf32, #tpu.memory_space<vmem>>, vector<1x8x256xf32>
    %566 = vector.shape_cast %565 : vector<1x8x256xf32> to vector<8x256xf32>
    %567 = arith.mulf %564, %566 : vector<8x256xf32>
    %c255_i32_487 = arith.constant 255 : i32
    %568 = tpu.dynamic_rotate %549 by %c255_i32_487 dim 1 : vector<8x256xf32>, i32 -> vector<8x256xf32>
    %c5_488 = arith.constant 5 : index
    %c0_489 = arith.constant 0 : index
    %c0_490 = arith.constant 0 : index
    %569 = vector.load %arg5[%c5_488, %c0_489, %c0_490] : memref<9x8x256xf32, #tpu.memory_space<vmem>>, vector<1x8x256xf32>
    %570 = vector.shape_cast %569 : vector<1x8x256xf32> to vector<8x256xf32>
    %571 = arith.mulf %568, %570 : vector<8x256xf32>
    %c241_i32_491 = arith.constant 241 : i32
    %572 = tpu.dynamic_rotate %549 by %c241_i32_491 dim 1 : vector<8x256xf32>, i32 -> vector<8x256xf32>
    %c6_492 = arith.constant 6 : index
    %c0_493 = arith.constant 0 : index
    %c0_494 = arith.constant 0 : index
    %573 = vector.load %arg5[%c6_492, %c0_493, %c0_494] : memref<9x8x256xf32, #tpu.memory_space<vmem>>, vector<1x8x256xf32>
    %574 = vector.shape_cast %573 : vector<1x8x256xf32> to vector<8x256xf32>
    %575 = arith.mulf %572, %574 : vector<8x256xf32>
    %c240_i32_495 = arith.constant 240 : i32
    %576 = tpu.dynamic_rotate %549 by %c240_i32_495 dim 1 : vector<8x256xf32>, i32 -> vector<8x256xf32>
    %c7_496 = arith.constant 7 : index
    %c0_497 = arith.constant 0 : index
    %c0_498 = arith.constant 0 : index
    %577 = vector.load %arg5[%c7_496, %c0_497, %c0_498] : memref<9x8x256xf32, #tpu.memory_space<vmem>>, vector<1x8x256xf32>
    %578 = vector.shape_cast %577 : vector<1x8x256xf32> to vector<8x256xf32>
    %579 = arith.mulf %576, %578 : vector<8x256xf32>
    %c239_i32_499 = arith.constant 239 : i32
    %580 = tpu.dynamic_rotate %549 by %c239_i32_499 dim 1 : vector<8x256xf32>, i32 -> vector<8x256xf32>
    %c8_500 = arith.constant 8 : index
    %c0_501 = arith.constant 0 : index
    %c0_502 = arith.constant 0 : index
    %581 = vector.load %arg5[%c8_500, %c0_501, %c0_502] : memref<9x8x256xf32, #tpu.memory_space<vmem>>, vector<1x8x256xf32>
    %582 = vector.shape_cast %581 : vector<1x8x256xf32> to vector<8x256xf32>
    %583 = arith.mulf %580, %582 : vector<8x256xf32>
    %584 = tpu.concatenate %555, %559, %563, %567, %549, %571, %575, %579, %583 in 0 : vector<8x256xf32>, vector<8x256xf32>, vector<8x256xf32>, vector<8x256xf32>, vector<8x256xf32>, vector<8x256xf32>, vector<8x256xf32>, vector<8x256xf32>, vector<8x256xf32> -> vector<72x256xf32>
    %cst_503 = arith.constant dense<0.000000e+00> : vector<8x256xf32>
    %585 = tpu.matmul %551, %584, %cst_503 {dimension_numbers = #tpu.dot_dimension_numbers<[1], [0], [0], [1], [0, 0, 1, 1], [], []>, precision = #tpu.contract_precision<fp32>} : vector<8x72xf32>, vector<72x256xf32>, vector<8x256xf32> -> vector<8x256xf32>
    %586 = arith.addf %499, %585 : vector<8x256xf32>
    %c6_504 = arith.constant 6 : index
    %c0_505 = arith.constant 0 : index
    %c0_506 = arith.constant 0 : index
    %587 = vector.load %arg3[%c6_504, %c0_505, %c0_506] : memref<8x8x1xf32, #tpu.memory_space<vmem>>, vector<1x8x1xf32>
    %588 = vector.shape_cast %587 : vector<1x8x1xf32> to vector<8x1xf32>
    %589 = vector.broadcast %588 : vector<8x1xf32> to vector<8x256xf32>
    %590 = arith.addf %586, %589 : vector<8x256xf32>
    %c6_507 = arith.constant 6 : index
    %c0_508 = arith.constant 0 : index
    %c0_509 = arith.constant 0 : index
    %591 = vector.load %arg2[%c6_507, %c0_508, %c0_509] : memref<8x16x72xf32, #tpu.memory_space<vmem>>, vector<1x16x72xf32>
    %592 = vector.shape_cast %591 : vector<1x16x72xf32> to vector<16x72xf32>
    %c17_i32_510 = arith.constant 17 : i32
    %593 = tpu.dynamic_rotate %590 by %c17_i32_510 dim 1 : vector<8x256xf32>, i32 -> vector<8x256xf32>
    %c0_511 = arith.constant 0 : index
    %c0_512 = arith.constant 0 : index
    %c0_513 = arith.constant 0 : index
    %594 = vector.load %arg5[%c0_511, %c0_512, %c0_513] : memref<9x8x256xf32, #tpu.memory_space<vmem>>, vector<1x8x256xf32>
    %595 = vector.shape_cast %594 : vector<1x8x256xf32> to vector<8x256xf32>
    %596 = arith.mulf %593, %595 : vector<8x256xf32>
    %c16_i32_514 = arith.constant 16 : i32
    %597 = tpu.dynamic_rotate %590 by %c16_i32_514 dim 1 : vector<8x256xf32>, i32 -> vector<8x256xf32>
    %c1_515 = arith.constant 1 : index
    %c0_516 = arith.constant 0 : index
    %c0_517 = arith.constant 0 : index
    %598 = vector.load %arg5[%c1_515, %c0_516, %c0_517] : memref<9x8x256xf32, #tpu.memory_space<vmem>>, vector<1x8x256xf32>
    %599 = vector.shape_cast %598 : vector<1x8x256xf32> to vector<8x256xf32>
    %600 = arith.mulf %597, %599 : vector<8x256xf32>
    %c15_i32_518 = arith.constant 15 : i32
    %601 = tpu.dynamic_rotate %590 by %c15_i32_518 dim 1 : vector<8x256xf32>, i32 -> vector<8x256xf32>
    %c2_519 = arith.constant 2 : index
    %c0_520 = arith.constant 0 : index
    %c0_521 = arith.constant 0 : index
    %602 = vector.load %arg5[%c2_519, %c0_520, %c0_521] : memref<9x8x256xf32, #tpu.memory_space<vmem>>, vector<1x8x256xf32>
    %603 = vector.shape_cast %602 : vector<1x8x256xf32> to vector<8x256xf32>
    %604 = arith.mulf %601, %603 : vector<8x256xf32>
    %c1_i32_522 = arith.constant 1 : i32
    %605 = tpu.dynamic_rotate %590 by %c1_i32_522 dim 1 : vector<8x256xf32>, i32 -> vector<8x256xf32>
    %c3_523 = arith.constant 3 : index
    %c0_524 = arith.constant 0 : index
    %c0_525 = arith.constant 0 : index
    %606 = vector.load %arg5[%c3_523, %c0_524, %c0_525] : memref<9x8x256xf32, #tpu.memory_space<vmem>>, vector<1x8x256xf32>
    %607 = vector.shape_cast %606 : vector<1x8x256xf32> to vector<8x256xf32>
    %608 = arith.mulf %605, %607 : vector<8x256xf32>
    %c255_i32_526 = arith.constant 255 : i32
    %609 = tpu.dynamic_rotate %590 by %c255_i32_526 dim 1 : vector<8x256xf32>, i32 -> vector<8x256xf32>
    %c5_527 = arith.constant 5 : index
    %c0_528 = arith.constant 0 : index
    %c0_529 = arith.constant 0 : index
    %610 = vector.load %arg5[%c5_527, %c0_528, %c0_529] : memref<9x8x256xf32, #tpu.memory_space<vmem>>, vector<1x8x256xf32>
    %611 = vector.shape_cast %610 : vector<1x8x256xf32> to vector<8x256xf32>
    %612 = arith.mulf %609, %611 : vector<8x256xf32>
    %c241_i32_530 = arith.constant 241 : i32
    %613 = tpu.dynamic_rotate %590 by %c241_i32_530 dim 1 : vector<8x256xf32>, i32 -> vector<8x256xf32>
    %c6_531 = arith.constant 6 : index
    %c0_532 = arith.constant 0 : index
    %c0_533 = arith.constant 0 : index
    %614 = vector.load %arg5[%c6_531, %c0_532, %c0_533] : memref<9x8x256xf32, #tpu.memory_space<vmem>>, vector<1x8x256xf32>
    %615 = vector.shape_cast %614 : vector<1x8x256xf32> to vector<8x256xf32>
    %616 = arith.mulf %613, %615 : vector<8x256xf32>
    %c240_i32_534 = arith.constant 240 : i32
    %617 = tpu.dynamic_rotate %590 by %c240_i32_534 dim 1 : vector<8x256xf32>, i32 -> vector<8x256xf32>
    %c7_535 = arith.constant 7 : index
    %c0_536 = arith.constant 0 : index
    %c0_537 = arith.constant 0 : index
    %618 = vector.load %arg5[%c7_535, %c0_536, %c0_537] : memref<9x8x256xf32, #tpu.memory_space<vmem>>, vector<1x8x256xf32>
    %619 = vector.shape_cast %618 : vector<1x8x256xf32> to vector<8x256xf32>
    %620 = arith.mulf %617, %619 : vector<8x256xf32>
    %c239_i32_538 = arith.constant 239 : i32
    %621 = tpu.dynamic_rotate %590 by %c239_i32_538 dim 1 : vector<8x256xf32>, i32 -> vector<8x256xf32>
    %c8_539 = arith.constant 8 : index
    %c0_540 = arith.constant 0 : index
    %c0_541 = arith.constant 0 : index
    %622 = vector.load %arg5[%c8_539, %c0_540, %c0_541] : memref<9x8x256xf32, #tpu.memory_space<vmem>>, vector<1x8x256xf32>
    %623 = vector.shape_cast %622 : vector<1x8x256xf32> to vector<8x256xf32>
    %624 = arith.mulf %621, %623 : vector<8x256xf32>
    %625 = tpu.concatenate %596, %600, %604, %608, %590, %612, %616, %620, %624 in 0 : vector<8x256xf32>, vector<8x256xf32>, vector<8x256xf32>, vector<8x256xf32>, vector<8x256xf32>, vector<8x256xf32>, vector<8x256xf32>, vector<8x256xf32>, vector<8x256xf32> -> vector<72x256xf32>
    %cst_542 = arith.constant dense<0.000000e+00> : vector<16x256xf32>
    %626 = tpu.matmul %592, %625, %cst_542 {dimension_numbers = #tpu.dot_dimension_numbers<[1], [0], [0], [1], [0, 0, 1, 1], [], []>, precision = #tpu.contract_precision<fp32>} : vector<16x72xf32>, vector<72x256xf32>, vector<16x256xf32> -> vector<16x256xf32>
    %c6_543 = arith.constant 6 : index
    %c0_544 = arith.constant 0 : index
    %c0_545 = arith.constant 0 : index
    %627 = vector.load %arg4[%c6_543, %c0_544, %c0_545] : memref<8x16x1xf32, #tpu.memory_space<vmem>>, vector<1x16x1xf32>
    %628 = vector.shape_cast %627 : vector<1x16x1xf32> to vector<16x1xf32>
    %629 = vector.broadcast %628 : vector<16x1xf32> to vector<16x256xf32>
    %630 = arith.addf %626, %629 : vector<16x256xf32>
    %631 = vector.extract_strided_slice %630 {offsets = [0, 0], sizes = [8, 256], strides = [1, 1]} : vector<16x256xf32> to vector<8x256xf32>
    %632 = vector.extract_strided_slice %630 {offsets = [8, 0], sizes = [8, 256], strides = [1, 1]} : vector<16x256xf32> to vector<8x256xf32>
    %cst_546 = arith.constant 5.000000e-01 : f32
    %633 = vector.broadcast %cst_546 : f32 to vector<8x256xf32>
    %634 = arith.mulf %633, %631 : vector<8x256xf32>
    %635 = math.tanh %634 : vector<8x256xf32>
    %cst_547 = arith.constant 2.000000e+00 : f32
    %636 = vector.broadcast %cst_547 : f32 to vector<8x256xf32>
    %637 = arith.mulf %636, %635 : vector<8x256xf32>
    %638 = math.exp %637 : vector<8x256xf32>
    %639 = arith.mulf %549, %638 : vector<8x256xf32>
    %640 = arith.addf %639, %632 : vector<8x256xf32>
    %c7_548 = arith.constant 7 : index
    %c0_549 = arith.constant 0 : index
    %c0_550 = arith.constant 0 : index
    %641 = vector.load %arg1[%c7_548, %c0_549, %c0_550] : memref<8x8x72xf32, #tpu.memory_space<vmem>>, vector<1x8x72xf32>
    %642 = vector.shape_cast %641 : vector<1x8x72xf32> to vector<8x72xf32>
    %c17_i32_551 = arith.constant 17 : i32
    %643 = tpu.dynamic_rotate %640 by %c17_i32_551 dim 1 : vector<8x256xf32>, i32 -> vector<8x256xf32>
    %c0_552 = arith.constant 0 : index
    %c0_553 = arith.constant 0 : index
    %c0_554 = arith.constant 0 : index
    %644 = vector.load %arg5[%c0_552, %c0_553, %c0_554] : memref<9x8x256xf32, #tpu.memory_space<vmem>>, vector<1x8x256xf32>
    %645 = vector.shape_cast %644 : vector<1x8x256xf32> to vector<8x256xf32>
    %646 = arith.mulf %643, %645 : vector<8x256xf32>
    %c16_i32_555 = arith.constant 16 : i32
    %647 = tpu.dynamic_rotate %640 by %c16_i32_555 dim 1 : vector<8x256xf32>, i32 -> vector<8x256xf32>
    %c1_556 = arith.constant 1 : index
    %c0_557 = arith.constant 0 : index
    %c0_558 = arith.constant 0 : index
    %648 = vector.load %arg5[%c1_556, %c0_557, %c0_558] : memref<9x8x256xf32, #tpu.memory_space<vmem>>, vector<1x8x256xf32>
    %649 = vector.shape_cast %648 : vector<1x8x256xf32> to vector<8x256xf32>
    %650 = arith.mulf %647, %649 : vector<8x256xf32>
    %c15_i32_559 = arith.constant 15 : i32
    %651 = tpu.dynamic_rotate %640 by %c15_i32_559 dim 1 : vector<8x256xf32>, i32 -> vector<8x256xf32>
    %c2_560 = arith.constant 2 : index
    %c0_561 = arith.constant 0 : index
    %c0_562 = arith.constant 0 : index
    %652 = vector.load %arg5[%c2_560, %c0_561, %c0_562] : memref<9x8x256xf32, #tpu.memory_space<vmem>>, vector<1x8x256xf32>
    %653 = vector.shape_cast %652 : vector<1x8x256xf32> to vector<8x256xf32>
    %654 = arith.mulf %651, %653 : vector<8x256xf32>
    %c1_i32_563 = arith.constant 1 : i32
    %655 = tpu.dynamic_rotate %640 by %c1_i32_563 dim 1 : vector<8x256xf32>, i32 -> vector<8x256xf32>
    %c3_564 = arith.constant 3 : index
    %c0_565 = arith.constant 0 : index
    %c0_566 = arith.constant 0 : index
    %656 = vector.load %arg5[%c3_564, %c0_565, %c0_566] : memref<9x8x256xf32, #tpu.memory_space<vmem>>, vector<1x8x256xf32>
    %657 = vector.shape_cast %656 : vector<1x8x256xf32> to vector<8x256xf32>
    %658 = arith.mulf %655, %657 : vector<8x256xf32>
    %c255_i32_567 = arith.constant 255 : i32
    %659 = tpu.dynamic_rotate %640 by %c255_i32_567 dim 1 : vector<8x256xf32>, i32 -> vector<8x256xf32>
    %c5_568 = arith.constant 5 : index
    %c0_569 = arith.constant 0 : index
    %c0_570 = arith.constant 0 : index
    %660 = vector.load %arg5[%c5_568, %c0_569, %c0_570] : memref<9x8x256xf32, #tpu.memory_space<vmem>>, vector<1x8x256xf32>
    %661 = vector.shape_cast %660 : vector<1x8x256xf32> to vector<8x256xf32>
    %662 = arith.mulf %659, %661 : vector<8x256xf32>
    %c241_i32_571 = arith.constant 241 : i32
    %663 = tpu.dynamic_rotate %640 by %c241_i32_571 dim 1 : vector<8x256xf32>, i32 -> vector<8x256xf32>
    %c6_572 = arith.constant 6 : index
    %c0_573 = arith.constant 0 : index
    %c0_574 = arith.constant 0 : index
    %664 = vector.load %arg5[%c6_572, %c0_573, %c0_574] : memref<9x8x256xf32, #tpu.memory_space<vmem>>, vector<1x8x256xf32>
    %665 = vector.shape_cast %664 : vector<1x8x256xf32> to vector<8x256xf32>
    %666 = arith.mulf %663, %665 : vector<8x256xf32>
    %c240_i32_575 = arith.constant 240 : i32
    %667 = tpu.dynamic_rotate %640 by %c240_i32_575 dim 1 : vector<8x256xf32>, i32 -> vector<8x256xf32>
    %c7_576 = arith.constant 7 : index
    %c0_577 = arith.constant 0 : index
    %c0_578 = arith.constant 0 : index
    %668 = vector.load %arg5[%c7_576, %c0_577, %c0_578] : memref<9x8x256xf32, #tpu.memory_space<vmem>>, vector<1x8x256xf32>
    %669 = vector.shape_cast %668 : vector<1x8x256xf32> to vector<8x256xf32>
    %670 = arith.mulf %667, %669 : vector<8x256xf32>
    %c239_i32_579 = arith.constant 239 : i32
    %671 = tpu.dynamic_rotate %640 by %c239_i32_579 dim 1 : vector<8x256xf32>, i32 -> vector<8x256xf32>
    %c8_580 = arith.constant 8 : index
    %c0_581 = arith.constant 0 : index
    %c0_582 = arith.constant 0 : index
    %672 = vector.load %arg5[%c8_580, %c0_581, %c0_582] : memref<9x8x256xf32, #tpu.memory_space<vmem>>, vector<1x8x256xf32>
    %673 = vector.shape_cast %672 : vector<1x8x256xf32> to vector<8x256xf32>
    %674 = arith.mulf %671, %673 : vector<8x256xf32>
    %675 = tpu.concatenate %646, %650, %654, %658, %640, %662, %666, %670, %674 in 0 : vector<8x256xf32>, vector<8x256xf32>, vector<8x256xf32>, vector<8x256xf32>, vector<8x256xf32>, vector<8x256xf32>, vector<8x256xf32>, vector<8x256xf32>, vector<8x256xf32> -> vector<72x256xf32>
    %cst_583 = arith.constant dense<0.000000e+00> : vector<8x256xf32>
    %676 = tpu.matmul %642, %675, %cst_583 {dimension_numbers = #tpu.dot_dimension_numbers<[1], [0], [0], [1], [0, 0, 1, 1], [], []>, precision = #tpu.contract_precision<fp32>} : vector<8x72xf32>, vector<72x256xf32>, vector<8x256xf32> -> vector<8x256xf32>
    %677 = arith.addf %590, %676 : vector<8x256xf32>
    %c7_584 = arith.constant 7 : index
    %c0_585 = arith.constant 0 : index
    %c0_586 = arith.constant 0 : index
    %678 = vector.load %arg3[%c7_584, %c0_585, %c0_586] : memref<8x8x1xf32, #tpu.memory_space<vmem>>, vector<1x8x1xf32>
    %679 = vector.shape_cast %678 : vector<1x8x1xf32> to vector<8x1xf32>
    %680 = vector.broadcast %679 : vector<8x1xf32> to vector<8x256xf32>
    %681 = arith.addf %677, %680 : vector<8x256xf32>
    %c7_587 = arith.constant 7 : index
    %c0_588 = arith.constant 0 : index
    %c0_589 = arith.constant 0 : index
    %682 = vector.load %arg2[%c7_587, %c0_588, %c0_589] : memref<8x16x72xf32, #tpu.memory_space<vmem>>, vector<1x16x72xf32>
    %683 = vector.shape_cast %682 : vector<1x16x72xf32> to vector<16x72xf32>
    %c17_i32_590 = arith.constant 17 : i32
    %684 = tpu.dynamic_rotate %681 by %c17_i32_590 dim 1 : vector<8x256xf32>, i32 -> vector<8x256xf32>
    %c0_591 = arith.constant 0 : index
    %c0_592 = arith.constant 0 : index
    %c0_593 = arith.constant 0 : index
    %685 = vector.load %arg5[%c0_591, %c0_592, %c0_593] : memref<9x8x256xf32, #tpu.memory_space<vmem>>, vector<1x8x256xf32>
    %686 = vector.shape_cast %685 : vector<1x8x256xf32> to vector<8x256xf32>
    %687 = arith.mulf %684, %686 : vector<8x256xf32>
    %c16_i32_594 = arith.constant 16 : i32
    %688 = tpu.dynamic_rotate %681 by %c16_i32_594 dim 1 : vector<8x256xf32>, i32 -> vector<8x256xf32>
    %c1_595 = arith.constant 1 : index
    %c0_596 = arith.constant 0 : index
    %c0_597 = arith.constant 0 : index
    %689 = vector.load %arg5[%c1_595, %c0_596, %c0_597] : memref<9x8x256xf32, #tpu.memory_space<vmem>>, vector<1x8x256xf32>
    %690 = vector.shape_cast %689 : vector<1x8x256xf32> to vector<8x256xf32>
    %691 = arith.mulf %688, %690 : vector<8x256xf32>
    %c15_i32_598 = arith.constant 15 : i32
    %692 = tpu.dynamic_rotate %681 by %c15_i32_598 dim 1 : vector<8x256xf32>, i32 -> vector<8x256xf32>
    %c2_599 = arith.constant 2 : index
    %c0_600 = arith.constant 0 : index
    %c0_601 = arith.constant 0 : index
    %693 = vector.load %arg5[%c2_599, %c0_600, %c0_601] : memref<9x8x256xf32, #tpu.memory_space<vmem>>, vector<1x8x256xf32>
    %694 = vector.shape_cast %693 : vector<1x8x256xf32> to vector<8x256xf32>
    %695 = arith.mulf %692, %694 : vector<8x256xf32>
    %c1_i32_602 = arith.constant 1 : i32
    %696 = tpu.dynamic_rotate %681 by %c1_i32_602 dim 1 : vector<8x256xf32>, i32 -> vector<8x256xf32>
    %c3_603 = arith.constant 3 : index
    %c0_604 = arith.constant 0 : index
    %c0_605 = arith.constant 0 : index
    %697 = vector.load %arg5[%c3_603, %c0_604, %c0_605] : memref<9x8x256xf32, #tpu.memory_space<vmem>>, vector<1x8x256xf32>
    %698 = vector.shape_cast %697 : vector<1x8x256xf32> to vector<8x256xf32>
    %699 = arith.mulf %696, %698 : vector<8x256xf32>
    %c255_i32_606 = arith.constant 255 : i32
    %700 = tpu.dynamic_rotate %681 by %c255_i32_606 dim 1 : vector<8x256xf32>, i32 -> vector<8x256xf32>
    %c5_607 = arith.constant 5 : index
    %c0_608 = arith.constant 0 : index
    %c0_609 = arith.constant 0 : index
    %701 = vector.load %arg5[%c5_607, %c0_608, %c0_609] : memref<9x8x256xf32, #tpu.memory_space<vmem>>, vector<1x8x256xf32>
    %702 = vector.shape_cast %701 : vector<1x8x256xf32> to vector<8x256xf32>
    %703 = arith.mulf %700, %702 : vector<8x256xf32>
    %c241_i32_610 = arith.constant 241 : i32
    %704 = tpu.dynamic_rotate %681 by %c241_i32_610 dim 1 : vector<8x256xf32>, i32 -> vector<8x256xf32>
    %c6_611 = arith.constant 6 : index
    %c0_612 = arith.constant 0 : index
    %c0_613 = arith.constant 0 : index
    %705 = vector.load %arg5[%c6_611, %c0_612, %c0_613] : memref<9x8x256xf32, #tpu.memory_space<vmem>>, vector<1x8x256xf32>
    %706 = vector.shape_cast %705 : vector<1x8x256xf32> to vector<8x256xf32>
    %707 = arith.mulf %704, %706 : vector<8x256xf32>
    %c240_i32_614 = arith.constant 240 : i32
    %708 = tpu.dynamic_rotate %681 by %c240_i32_614 dim 1 : vector<8x256xf32>, i32 -> vector<8x256xf32>
    %c7_615 = arith.constant 7 : index
    %c0_616 = arith.constant 0 : index
    %c0_617 = arith.constant 0 : index
    %709 = vector.load %arg5[%c7_615, %c0_616, %c0_617] : memref<9x8x256xf32, #tpu.memory_space<vmem>>, vector<1x8x256xf32>
    %710 = vector.shape_cast %709 : vector<1x8x256xf32> to vector<8x256xf32>
    %711 = arith.mulf %708, %710 : vector<8x256xf32>
    %c239_i32_618 = arith.constant 239 : i32
    %712 = tpu.dynamic_rotate %681 by %c239_i32_618 dim 1 : vector<8x256xf32>, i32 -> vector<8x256xf32>
    %c8_619 = arith.constant 8 : index
    %c0_620 = arith.constant 0 : index
    %c0_621 = arith.constant 0 : index
    %713 = vector.load %arg5[%c8_619, %c0_620, %c0_621] : memref<9x8x256xf32, #tpu.memory_space<vmem>>, vector<1x8x256xf32>
    %714 = vector.shape_cast %713 : vector<1x8x256xf32> to vector<8x256xf32>
    %715 = arith.mulf %712, %714 : vector<8x256xf32>
    %716 = tpu.concatenate %687, %691, %695, %699, %681, %703, %707, %711, %715 in 0 : vector<8x256xf32>, vector<8x256xf32>, vector<8x256xf32>, vector<8x256xf32>, vector<8x256xf32>, vector<8x256xf32>, vector<8x256xf32>, vector<8x256xf32>, vector<8x256xf32> -> vector<72x256xf32>
    %cst_622 = arith.constant dense<0.000000e+00> : vector<16x256xf32>
    %717 = tpu.matmul %683, %716, %cst_622 {dimension_numbers = #tpu.dot_dimension_numbers<[1], [0], [0], [1], [0, 0, 1, 1], [], []>, precision = #tpu.contract_precision<fp32>} : vector<16x72xf32>, vector<72x256xf32>, vector<16x256xf32> -> vector<16x256xf32>
    %c7_623 = arith.constant 7 : index
    %c0_624 = arith.constant 0 : index
    %c0_625 = arith.constant 0 : index
    %718 = vector.load %arg4[%c7_623, %c0_624, %c0_625] : memref<8x16x1xf32, #tpu.memory_space<vmem>>, vector<1x16x1xf32>
    %719 = vector.shape_cast %718 : vector<1x16x1xf32> to vector<16x1xf32>
    %720 = vector.broadcast %719 : vector<16x1xf32> to vector<16x256xf32>
    %721 = arith.addf %717, %720 : vector<16x256xf32>
    %722 = vector.extract_strided_slice %721 {offsets = [0, 0], sizes = [8, 256], strides = [1, 1]} : vector<16x256xf32> to vector<8x256xf32>
    %723 = vector.extract_strided_slice %721 {offsets = [8, 0], sizes = [8, 256], strides = [1, 1]} : vector<16x256xf32> to vector<8x256xf32>
    %cst_626 = arith.constant 5.000000e-01 : f32
    %724 = vector.broadcast %cst_626 : f32 to vector<8x256xf32>
    %725 = arith.mulf %724, %722 : vector<8x256xf32>
    %726 = math.tanh %725 : vector<8x256xf32>
    %cst_627 = arith.constant 2.000000e+00 : f32
    %727 = vector.broadcast %cst_627 : f32 to vector<8x256xf32>
    %728 = arith.mulf %727, %726 : vector<8x256xf32>
    %729 = math.exp %728 : vector<8x256xf32>
    %730 = arith.mulf %640, %729 : vector<8x256xf32>
    %731 = arith.addf %730, %723 : vector<8x256xf32>
    %c0_628 = arith.constant 0 : index
    %c0_629 = arith.constant 0 : index
    %c0_630 = arith.constant 0 : index
    %732 = vector.load %arg8[%c0_628, %c0_629, %c0_630] : memref<1x8x256xf32, #tpu.memory_space<vmem>>, vector<1x8x256xf32>
    %733 = vector.shape_cast %732 : vector<1x8x256xf32> to vector<8x256xf32>
    %734 = vector.shape_cast %681 : vector<8x256xf32> to vector<1x8x256xf32>
    tpu.vector_store %arg8[%c0_628, %c0_629, %c0_630], %734 {strides = array<i32>} : memref<1x8x256xf32, #tpu.memory_space<vmem>>, vector<1x8x256xf32>,
    %c0_631 = arith.constant 0 : index
    %c0_632 = arith.constant 0 : index
    %c0_633 = arith.constant 0 : index
    %735 = vector.load %arg9[%c0_631, %c0_632, %c0_633] : memref<1x8x256xf32, #tpu.memory_space<vmem>>, vector<1x8x256xf32>
    %736 = vector.shape_cast %735 : vector<1x8x256xf32> to vector<8x256xf32>
    %737 = vector.shape_cast %731 : vector<8x256xf32> to vector<1x8x256xf32>
    tpu.vector_store %arg9[%c0_631, %c0_632, %c0_633], %737 {strides = array<i32>} : memref<1x8x256xf32, #tpu.memory_space<vmem>>, vector<1x8x256xf32>,
    return
  }
  func.func @transform_0(%arg0: i32) -> (i32, i32, i32) {
    %c0_i32 = arith.constant 0 : i32
    %c0_i32_0 = arith.constant 0 : i32
    %c0_i32_1 = arith.constant 0 : i32
    %c0_i32_2 = arith.constant 0 : i32
    return %c0_i32, %c0_i32_0, %c0_i32_1 : i32, i32, i32
  }
  func.func @transform_1(%arg0: i32) -> (i32, i32, i32) {
    %c0_i32 = arith.constant 0 : i32
    %c0_i32_0 = arith.constant 0 : i32
    %c0_i32_1 = arith.constant 0 : i32
    %c0_i32_2 = arith.constant 0 : i32
    return %c0_i32, %c0_i32_0, %c0_i32_1 : i32, i32, i32
  }
  func.func @transform_2(%arg0: i32) -> (i32, i32, i32) {
    %c0_i32 = arith.constant 0 : i32
    %c0_i32_0 = arith.constant 0 : i32
    %c0_i32_1 = arith.constant 0 : i32
    %c0_i32_2 = arith.constant 0 : i32
    return %c0_i32, %c0_i32_0, %c0_i32_1 : i32, i32, i32
  }
  func.func @transform_3(%arg0: i32) -> (i32, i32, i32) {
    %c0_i32 = arith.constant 0 : i32
    %c0_i32_0 = arith.constant 0 : i32
    %c0_i32_1 = arith.constant 0 : i32
    %c0_i32_2 = arith.constant 0 : i32
    return %c0_i32, %c0_i32_0, %c0_i32_1 : i32, i32, i32
  }
  func.func @transform_4(%arg0: i32) -> (i32, i32, i32) {
    %c0_i32 = arith.constant 0 : i32
    %c0_i32_0 = arith.constant 0 : i32
    %c0_i32_1 = arith.constant 0 : i32
    %c0_i32_2 = arith.constant 0 : i32
    return %c0_i32, %c0_i32_0, %c0_i32_1 : i32, i32, i32
  }
  func.func @transform_5(%arg0: i32) -> (i32, i32, i32) {
    %c0_i32 = arith.constant 0 : i32
    %c0_i32_0 = arith.constant 0 : i32
    %c0_i32_1 = arith.constant 0 : i32
    return %arg0, %c0_i32, %c0_i32_0 : i32, i32, i32
  }
  func.func @transform_6(%arg0: i32) -> (i32, i32, i32) {
    %c0_i32 = arith.constant 0 : i32
    %c0_i32_0 = arith.constant 0 : i32
    %c0_i32_1 = arith.constant 0 : i32
    return %arg0, %c0_i32, %c0_i32_0 : i32, i32, i32
  }
  func.func @transform_7(%arg0: i32) -> (i32, i32, i32) {
    %c0_i32 = arith.constant 0 : i32
    %c0_i32_0 = arith.constant 0 : i32
    %c0_i32_1 = arith.constant 0 : i32
    return %arg0, %c0_i32, %c0_i32_0 : i32, i32, i32
  }
  func.func @transform_8(%arg0: i32) -> (i32, i32, i32) {
    %c0_i32 = arith.constant 0 : i32
    %c0_i32_0 = arith.constant 0 : i32
    %c0_i32_1 = arith.constant 0 : i32
    return %arg0, %c0_i32, %c0_i32_0 : i32, i32, i32
  }
}

</mosaic_0001>

<bundles_post_ra>
// kernel: tpu_custom_call.1
= control target key start
LH: loop header
LB: loop body
LE: loop exit
PB: predicated region body
PF: predicated region fallthrough
CT: control target
= control target key end

     0   :  { %s18612_s0 = inlined_call_operand.hbm [shape: f32[8,8,72], index: 0, kind: input, shape index: {}]   ;;  %s18613_s1 = inlined_call_operand.hbm [shape: f32[8,16,72], index: 1, kind: input, shape index: {}]   ;;  %s18614_s2 = inlined_call_operand.vmem [shape: f32[8,8,1], index: 2, kind: input, shape index: {}]   ;;  %s18615_s3 = inlined_call_operand.vmem [shape: f32[8,16,1], index: 3, kind: input, shape index: {}]   ;;  %s18616_s4 = inlined_call_operand.vmem [shape: f32[9,8,256], index: 4, kind: input, shape index: {}]   ;;  %s18617_s5 = inlined_call_operand.vmem [shape: f32[2,8,256], index: 5, kind: input, shape index: {}]   ;;  %s18618_s6 = inlined_call_operand.hbm [shape: f32[2,8,256], index: 6, kind: input, shape index: {}]   ;;  %s18619_s7 = inlined_call_operand.hbm [shape: f32[2,8,256], index: 7, kind: output, shape index: {0}]   ;;  %s18620_s8 = inlined_call_operand.hbm [shape: f32[2,8,256], index: 8, kind: output, shape index: {1}]  }
   0x1   :  { %18787 = sst [smem:[#allocation26_spill]] %s18612_s0 }
   0x2   :  { %18788 = sst [smem:[#allocation27_spill]] %s18613_s1 }
   0x3   :  { %18789 = sst [smem:[#allocation28_spill]] %s18614_s2 }
   0x4   :  { %14 = vsyncpa [#allocation3], 0 }
   0x5   :  { %15 = vsyncpa [#allocation6], 0 }
   0x6   :  { %16 = vsyncpa [#allocation4], 0 }
   0x7   :  { %18 = vsyncpa [#allocation4 + $0x1], 0 }
   0x8   :  { %19 = vsyncpa [#allocation10], 0 }
   0x9   :  { %21 = vsyncpa [#allocation10 + $0x1], 0  ;;  %s11114_s27 = smov 0   ;;  %s11116_s28 = smov 0  }
   0xa   :  { %s11118_s29 = smov 0   ;;  %s11120_s30 = smov 0  }
   0xb LB: > { %s18790_s0 = sld [smem:[#allocation26_spill]]  ;;  %s11138_s12 = sadd.s32 4294967295, %s11054_s30   ;;  %s11054_s30 = sphi %s11120_s30, %s19126_s30   ;;  %s11050_s29 = sphi %s11118_s29, %s19125_s29   ;;  %s11046_s28 = sphi %s11116_s28, %s19124_s28   ;;  %s11042_s27 = sphi %s11114_s27, %s19123_s27  }
   0xc   : > { %p10532_p0 = scmp.ge.s32.totalorder %s11054_s30, 1  ;;  %p179_p1 = scmp.eq.s32.totalorder %s11138_s12, 0 }
   0xd   : > { %p202_p2 = scmp.eq.s32.totalorder %s11138_s12, 1  ;;  %p241_p3 = scmp.lt.s32.totalorder %s11054_s30, 3 }
   0xe   : > { %s11056_s14 = smov [#allocation2]   ;;  %s18792_s1 = sld [smem:[#allocation27_spill]] }
   0xf   : > { %p11144_p4 = pnand %p10532_p0, %p241_p3  ;;  %s254_s15 = sshll.u32 %s11056_s14, 4  ;;  %s255_s15 = int_to_ptr.vmem [resolvable:$true] %s254_s15 }
  0x10   : > { %s11057_s19 = smov [#allocation5]   ;;  %s11058_s21 = smov 128  }
  0x11   : > { %s252_s11 = sshll.u32 %s18790_s0, 4  ;;  %p10608_p5 = pneg %p11144_p4  ;;  %s253_s11 = int_to_ptr.hbm [resolvable:$true] %s252_s11 }
  0x12   : > { %s268_s20 = sshll.u32 %s11057_s19, 4  ;;  %s11059_s22 = smov 8   ;;  %s269_s20 = int_to_ptr.vmem [resolvable:$true] %s268_s20 }
  0x13   : > { %p10609_p7 = pnand %p10608_p5, %p179_p1  ;;  %s10531_s23 = sadd.s32 4294967294, %s11054_s30  }
  0x14   : > { %s266_s18 = sshll.u32 %s18792_s1, 4  ;;  %s11158_s24 = sadd.s32 1, %s11054_s30   ;;  %s267_s18 = int_to_ptr.hbm [resolvable:$true] %s266_s18 }
  0x15   : > { %10611 = dma.hbm_to_vmem [thread:$0]  (!%p10609_p7), %s253_s11, 1024, %s255_s15, [#allocation3], %s11058_s21, %s11058_s21, %s11059_s22  }
  0x16   : > { %10614 = dma.hbm_to_vmem [thread:$0]  (!%p10609_p7), %s267_s18, 2048, %s269_s20, [#allocation6], %s11058_s21, %s11058_s21, %s11059_s22  }
  0x17   : > { %s165_s25 = sadd.s32 1, %s11050_s29  ;;  %s162_s26 = ssub.s32 %s11054_s30, %s11158_s24 }
  0x18   : > { %p172_p8 = scmp.ne.s32.totalorder %s11050_s29, %s11046_s28  ;;  %p163_p9 = scmp.eq.s32.totalorder %s162_s26, 0 }
  0x19   : > { %p173_p10 = scmp.eq.s32.totalorder %s11054_s30, 0  ;;  %p178_p11 = scmp.ne.s32.totalorder %s11046_s28, %s11042_s27 }
  0x1a   : > { %p11170_p12 = por %p202_p2, %p172_p8  ;;  %p208_p3 = scmp.eq.s32.totalorder %s10531_s23, 1 }
  0x1b   : > { %s11175_s10 = scalar_select %p163_p9, %s11050_s29, %s165_s25  }
  0x1c   : > { %p11179_p13 = por %p179_p1, %p178_p11  ;;  %p11183_p0 = por %p173_p10, %p172_p8 }
  0x1d   : > { %18794 = sst [smem:[#allocation16_spill]] %s11175_s10  ;;  %p10628_p5 = scmp.lt.s32.totalorder %s11054_s30, 2 }
  0x1e   : > { %s301_s15 = sand.u32 1, %s11050_s29   ;;  %p11189_p7 = por %p208_p3, %p178_p11 }
  0x1f   : > { %s299_s17 = sand.u32 1, %s11054_s30   ;;  %s10536_s18 = sshll.u32 %s301_s15, 4 }
  0x20   : > { %s10590_s19 = sshll.u32 %s11054_s30, 4  ;;  %s303_s26 = scalar_lea.vmem [#allocation7], %s10536_s18 }
  0x21   : > { %s308_s22 = scalar_lea.hbm %s18618_s6, %s10590_s19  ;;  %s312_s0 = sshll.u32 %s303_s26, 4  ;;  %s313_s0 = int_to_ptr.vmem [resolvable:$true] %s312_s0 }
  0x22   : > { %s310_s25 = sshll.u32 %s308_s22, 4  ;;  %p11200_p2 = pnand %p10628_p5, %p11183_p0  ;;  %s311_s25 = int_to_ptr.hbm [resolvable:$true] %s310_s25 }
  0x23   : > { %s300_s1 = scalar_lea.sflag [#allocation3], %s299_s17  ;;  %s10918_s10 = sshra.s32 %s311_s25, 4  ;;  %s10919_s10 = int_to_ptr.hbm [resolvable:$true] %s10918_s10 }
  0x24   : > { %s10920_s15 = scalar_lea.hbm %s10919_s10, 16  ;;  %p10922_p9 = pneg %p11200_p2 }
  0x25   : > { %p10921_p8 = scmp.ne.s32.totalorder %s10919_s10, %s10920_s15  ;;  %s10925_s20 = scalar_lea.hbm %s18618_s6, 32 }
  0x26   : > { %p10926_p0 = scmp.lt.s32.totalorder %s10919_s10, %s18618_s6  ;;  %p10927_p3 = scmp.lt.s32.totalorder %s10925_s20, %s10920_s15 }
  0x27   : > { %p10923_p10 = pnand %p10922_p9, %p10921_p8 }
  0x28   : > { %p10928_p5 = por %p10927_p3, %p10926_p0 }
  0x29   : > { %p10924_p11 = pneg %p10923_p10 }
  0x2b   : > { %p10929_p6 = pnand %p10928_p5, %p10924_p11 }
  0x2d   : > { %10932 = shalt.err (!%p10929_p6)
}
  0x2e   : > { %10618 = dma.hbm_to_vmem [thread:$0]  (!%p11200_p2), %s311_s25, 256, %s313_s0, %s300_s1  }
  0x2f   : > { %321 = sbr.rel (%p11144_p4) target bundleno = 5445 (0x1545), region = 48 }
  0x34   : > { %11021 = dma.done.wait (%p179_p1), [#allocation3], 1024  }
  0x35   : > { %11023 = vsyncadd (%p179_p1), [#allocation3], 4294966272 }
  0x36   : > { %11025 = dma.done.wait (%p179_p1), [#allocation6], 2048  }
  0x37   : > { %11027 = vsyncadd (%p179_p1), [#allocation6], 4294965248  ;;  %s333_s10 = sand.u32 1, %s11138_s12   ;;  %s11226_s0 = sand.u32 1, %s11046_s28  }
  0x38   : > { %s11229_s1 = sshll.u32 %s11226_s0, 4  ;;  %s334_s13 = scalar_lea.sflag [#allocation3], %s333_s10 }
  0x39   : > { %s11232_s17 = scalar_lea.vmem [#allocation7], %s11229_s1 }
  0x3a   : > { %11029 = dma.done.wait (%p11179_p13), %s334_s13, 256  }
  0x3b   : > { %11031 = vsyncadd (%p11179_p13), %s334_s13, 4294967040  ;;  %v11239_v0 = vld [vmem:[%s11232_s17] sm:$0xff]  ;;  %s11060_s22 = smov 112   ;;  %s11061_s25 = smov 111   ;;  %v11248_v1 = vld [vmem:[%s11232_s17 + $0x8] sm:$0xff]  ;;  %v395_v3 = vlaneseq  ;;  %vm488_vm6 = vcmask 588800  }
  0x3c   : > { %464 = vrot.lane.b32.xlu1 %v11239_v0, %s11060_s22  ;;  %476 = vrot.lane.b32.xlu0 %v11239_v0, %s11061_s25  ;;  %s11062_s26 = smov 113   ;;  %s18625_s11 = smov 127   ;;  %v11286_v8 = vld [vmem:[%s18616_s4 + $0x60] sm:$0xff]  ;;  %v11298_v11 = vld [vmem:[%s18616_s4 + $0x70] sm:$0xff]  ;;  %v11323_v24 = vand.u32 4294901760, %v11239_v0 }
  0x3d   : > { %452 = vrot.lane.b32.xlu2 %v11239_v0, %s11062_s26  ;;  %s11064_s23 = smov 1   ;;  %s11065_s15 = smov 15   ;;  %v11278_v4 = vand.u32 127, %v395_v3  ;;  %v11303_v12 = vld [vmem:[%s18616_s4 + $0x80] sm:$0xff]  ;;  %v11337_v27 = vld [vmem:[%s18616_s4 + $0x50] sm:$0xff]  ;;  %v11379_v45 = vld [vmem:[%s18616_s4 + $0x88] sm:$0xff] }
  0x3e   : > { %s18623_s19 = smov 16   ;;  %s18621_s18 = smov 17   ;;  %v11349_v34 = vsub.f32 %v11239_v0, %v11323_v24  ;;  %v11387_v47 = vld [vmem:[%s18616_s4 + $0x30] sm:$0xff]  ;;  %v11392_v48 = vld [vmem:[%s18616_s4 + $0x20] sm:$0xff]  ;;  %v11397_v49 = vld [vmem:[%s18616_s4 + $0x78] sm:$0xff] }
  0x3f   : > { %vm456_vm0 = vcmp.lt.s32.totalorder %v11278_v4, 113  ;;  %vm468_vm1 = vcmp.lt.s32.totalorder %v11278_v4, 112  ;;  %vm480_vm2 = vcmp.lt.s32.totalorder %v11278_v4, 111  ;;  %vm444_vm3 = vcmp.lt.s32.totalorder %v11278_v4, 127  ;;  %v390_v58 = vld [vmem:[#allocation2] sm:$0xff]  ;;  %v11416_v59 = vld [vmem:[%s18616_s4 + $0x68] sm:$0xff] }
  0x40   : > { %v18629_v41 = vand.u32 4294901760, %v11349_v34  ;;  %vm432_vm4 = vcmp.lt.s32.totalorder %v11278_v4, 1  ;;  %vm420_vm5 = vcmp.lt.s32.totalorder %v11278_v4, 15  ;;  %vm408_vm7 = vcmp.lt.s32.totalorder %v11278_v4, 16  ;;  %s18821_s2 = sld [smem:[#allocation28_spill]]  ;;  %p381_p1 = scmp.lt.s32.totalorder %s11138_s12, 1 }
  0x41   : > { %vm397_vm8 = vcmp.lt.s32.totalorder %v11278_v4, 17  ;;  %s18822_s14 = smov 127   ;;  %s18134_s13 = scalar_lea.vmem [#allocation8], %s11229_s1 }
  0x42   : > { %v560_v57 = vsub.f32 %v11349_v34, %v18629_v41  ;;  %s10379_s20 = sshll.u32 %s18134_s13, 4  ;;  %s10380_s20 = int_to_ptr.vmem [resolvable:$true] %s10379_s20 }
  0x44   : > { %466 = vrot.lane.b32.xlu1 %v11248_v1, %s11060_s22  ;;  %478 = vrot.lane.b32.xlu0 %v11248_v1, %s11061_s25 }
  0x45   : > { %454 = vrot.lane.b32.xlu2 %v11248_v1, %s11062_s26 }
  0x4c   : > { %442 = vrot.lane.b32.xlu1 %v11248_v1, %s18625_s11  ;;  %440 = vrot.lane.b32.xlu0 %v11239_v0, %s18625_s11  ;;  %s18823_s11 = smov 16  }
  0x4d   : > { %428 = vrot.lane.b32.xlu2 %v11239_v0, %s11064_s23 }
  0x54   : > { %416 = vrot.lane.b32.xlu1 %v11239_v0, %s11065_s15  ;;  %430 = vrot.lane.b32.xlu0 %v11248_v1, %s11064_s23 }
  0x55   : > { %418 = vrot.lane.b32.xlu2 %v11248_v1, %s11065_s15 }
  0x5c   : > { %406 = vrot.lane.b32.xlu1 %v11248_v1, %s18623_s19  ;;  %404 = vrot.lane.b32.xlu0 %v11239_v0, %s18623_s19  ;;  %s18824_s19 = smov 17  }
  0x5d   : > { %391 = vrot.lane.b32.xlu2 %v11239_v0, %s18621_s18 }
  0x64   : > { %393 = vrot.lane.b32.xlu0 %v11248_v1, %s18621_s18  ;;  %s382_s18 = scalar_select %p381_p1, %s11138_s12, 1 }
  0x66   : > { %s10591_s10 = sshll.u32 %s382_s18, 4 }
  0x67   : > { %s385_s21 = scalar_lea.vmem %s18617_s5, %s10591_s10 }
  0x97   : > { %v11276_v2 = vpop.permute.xlu2 %452 }
  0x9f   : > { %v11281_v5 = vpop.permute.xlu2 %454 }
  0xa0   : > { %v457_v9 = vsel %vm456_vm0, %v11276_v2, %v11281_v5  ;;  %v458_v60 = vsel %vm456_vm0, %v11281_v5, %v11276_v2  ;;  %v11434_v2 = vld [vmem:[%s18616_s4 + $0x58] sm:$0xff] }
  0xa1   : > { %v462_v10 = vmul.f32 %v11286_v8, %v457_v9  ;;  %v490_v9 = vsel %vm488_vm6, %v390_v58, 0  ;;  %v11501_v58 = vld [vmem:[%s18616_s4 + $0x28] sm:$0xff] }
  0xa2   : > { %18801 = vst [vmem:[#allocation19_spill] sm:$0xff] %v11501_v58 }
  0xa3   : > { %v11305_v13 = vand.u32 4294901760, %v462_v10 }
  0xa5   : > { %v11320_v23 = vsub.f32 %v462_v10, %v11305_v13  ;;  %v463_v10 = vmul.f32 %v11416_v59, %v458_v60 }
  0xa7   : > { %v11317_v22 = vpop.permute.xlu2 %428  ;;  %v18631_v32 = vand.u32 4294901760, %v11320_v23 }
  0xa9   : > { %v548_v40 = vsub.f32 %v11320_v23, %v18631_v32 }
  0xab   : > { %v549_v53 = vand.u32 4294901760, %v548_v40  ;;  %v11469_v40 = vand.u32 4294901760, %v463_v10 }
  0xae   : > { %v465_v6 = vpop.permute.xlu1 %464  ;;  %v477_v7 = vpop.permute.xlu0 %476 }
  0xaf   : > { %v11374_v44 = vpop.permute.xlu2 %418 }
  0xb6   : > { %v467_v14 = vpop.permute.xlu1 %466  ;;  %v479_v15 = vpop.permute.xlu0 %478 }
  0xb7   : > { %v469_v16 = vsel %vm468_vm1, %v465_v6, %v467_v14  ;;  %v481_v17 = vsel %vm480_vm2, %v477_v7, %v479_v15  ;;  %v482_v46 = vsel %vm480_vm2, %v479_v15, %v477_v7  ;;  %v470_v50 = vsel %vm468_vm1, %v467_v14, %v465_v6 }
  0xb8   : > { %v474_v18 = vmul.f32 %v11298_v11, %v469_v16  ;;  %v486_v19 = vmul.f32 %v11303_v12, %v481_v17  ;;  %v487_v61 = vmul.f32 %v11379_v45, %v482_v46  ;;  %v475_v0 = vmul.f32 %v11397_v49, %v470_v50 }
  0xb9   : > { %v561_v15 = vand.u32 4294901760, %v560_v57 }
  0xba   : > { %v11313_v20 = vand.u32 4294901760, %v474_v18  ;;  %v11315_v21 = vand.u32 4294901760, %v486_v19  ;;  %v11444_v16 = vand.u32 4294901760, %v487_v61 }
  0xbc   : > { %500 = vmatpush.msra.mxu0 %v11315_v21  ;;  %640 = vmatpush.msra.mxu3 %v11315_v21  ;;  %v11328_v25 = vsub.f32 %v486_v19, %v11315_v21  ;;  %v11332_v26 = vsub.f32 %v474_v18, %v11313_v20  ;;  %v11455_v19 = vand.u32 4294901760, %v475_v0 }
  0xbe   : > { %v443_v28 = vpop.permute.xlu1 %442  ;;  %502 = vmatpush.msra.mxu0 %v11313_v20  ;;  %601 = vmatpush.msra.mxu2 %v11328_v25  ;;  %v441_v29 = vpop.permute.xlu0 %440  ;;  %v18633_v30 = vand.u32 4294901760, %v11328_v25  ;;  %v18632_v31 = vand.u32 4294901760, %v11332_v26 }
  0xbf   : > { %642 = vmatpush.msra.mxu3 %v11313_v20  ;;  %v445_v33 = vsel %vm444_vm3, %v441_v29, %v443_v28  ;;  %v446_v5 = vsel %vm444_vm3, %v443_v28, %v441_v29  ;;  %v11461_v29 = vld [vmem:[%s18616_s4 + $0x10] sm:$0xff] }
  0xc0   : > { %v450_v35 = vmul.f32 %v11337_v27, %v445_v33  ;;  %504 = vmatpush.msra.mxu0 %v11305_v13  ;;  %604 = vmatpush.msra.mxu2 %v11332_v26  ;;  %v536_v36 = vsub.f32 %v11328_v25, %v18633_v30  ;;  %v542_v37 = vsub.f32 %v11332_v26, %v18632_v31  ;;  %v11463_v33 = vand.u32 4294901760, %v490_v9 }
  0xc1   : > { %644 = vmatpush.msra.mxu3 %v11305_v13  ;;  %v451_v28 = vmul.f32 %v11434_v2, %v446_v5  ;;  %18799 = vst [vmem:[#allocation17_spill] sm:$0xff] %v11461_v29 }
  0xc2   : > { %v11361_v38 = vand.u32 4294901760, %v450_v35  ;;  %607 = vmatpush.msra.mxu2 %v11320_v23  ;;  %v537_v39 = vand.u32 4294901760, %v536_v36  ;;  %v543_v42 = vand.u32 4294901760, %v542_v37 }
  0xc3   : > { %v11496_v57 = vand.u32 4294901760, %v451_v28 }
  0xc4   : > { %506 = vmatpush.msra.mxu0 %v11361_v38  ;;  %538 = vmatpush.msra.mxu1 %v537_v39  ;;  %v11370_v43 = vsub.f32 %v450_v35, %v11361_v38 }
  0xc5   : > { %646 = vmatpush.msra.mxu3 %v11361_v38 }
  0xc6   : > { %v417_v51 = vpop.permute.xlu1 %416  ;;  %544 = vmatpush.msra.mxu1 %v543_v42  ;;  %610 = vmatpush.msra.mxu2 %v11370_v43  ;;  %v431_v52 = vpop.permute.xlu0 %430  ;;  %v18630_v54 = vand.u32 4294901760, %v11370_v43  ;;  %v11474_v42 = vld [vmem:[%s18616_s4 + $0x38] sm:$0xff] }
  0xc7   : > { %v434_v55 = vsel %vm432_vm4, %v431_v52, %v11317_v22  ;;  %v422_v56 = vsel %vm420_vm5, %v11374_v44, %v417_v51  ;;  %508 = vmatpush.msra.mxu0 %v11323_v24  ;;  %648 = vmatpush.msra.mxu3 %v11323_v24  ;;  %18800 = vst [vmem:[#allocation18_spill] sm:$0xff] %v11474_v42 }
  0xc8   : > { %v438_v62 = vmul.f32 %v11387_v47, %v434_v55  ;;  %v426_v63 = vmul.f32 %v11392_v48, %v422_v56  ;;  %550 = vmatpush.msra.mxu1 %v549_v53  ;;  %v554_v3 = vsub.f32 %v11370_v43, %v18630_v54  ;;  %613 = vmatpush.msra.mxu2 %v11349_v34  ;;  %v11483_v53 = vand.u32 4294901760, %v11248_v1 }
  0xc9   : > { %v433_v46 = vsel %vm432_vm4, %v11317_v22, %v431_v52  ;;  %v11494_v52 = vsub.f32 %v487_v61, %v11444_v16  ;;  %v421_v60 = vsel %vm420_vm5, %v417_v51, %v11374_v44  ;;  %v11523_v51 = vsub.f32 %v463_v10, %v11469_v40 }
  0xca   : > { %v11438_v6 = vand.u32 4294901760, %v438_v62  ;;  %v11440_v7 = vand.u32 4294901760, %v426_v63  ;;  %v555_v14 = vand.u32 4294901760, %v554_v3  ;;  %v439_v61 = vmul.f32 %v11474_v42, %v433_v46  ;;  %v392_v46 = vpop.permute.xlu2 %391 }
  0xcc   : > { %510 = vmatpush.msra.mxu0 %v11438_v6  ;;  %650 = vmatpush.msra.mxu3 %v11438_v6  ;;  %v11450_v17 = vsub.f32 %v438_v62, %v11438_v6  ;;  %v11453_v18 = vsub.f32 %v426_v63, %v11440_v7  ;;  %v11507_v62 = vsub.f32 %v475_v0, %v11455_v19 }
  0xcd   : > { %556 = vmatpush.msra.mxu1 %v555_v14  ;;  %v11510_v63 = vsub.f32 %v490_v9, %v11463_v33  ;;  %v11527_v0 = vsub.f32 %v11248_v1, %v11483_v53  ;;  %v427_v9 = vmul.f32 %v11501_v58, %v421_v60  ;;  %v11540_v1 = vld [vmem:[%s18616_s4] sm:$0xff]  ;;  %v11555_v60 = vld [vmem:[%s18616_s4 + $0x8] sm:$0xff] }
  0xce   : > { %v407_v35 = vpop.permute.xlu1 %406  ;;  %v405_v36 = vpop.permute.xlu0 %404  ;;  %616 = vmatpush.msra.mxu2 %v11450_v17  ;;  %512 = vmatpush.msra.mxu0 %v11440_v7  ;;  %v18628_v37 = vand.u32 4294901760, %v11450_v17  ;;  %v18627_v39 = vand.u32 4294901760, %v11453_v18  ;;  %18803 = vst [vmem:[#allocation21_spill] sm:$0xff] %v11540_v1  ;;  %v18637_v10 = vand.u32 4294901760, %v11507_v62 }
  0xcf   : > { %v410_v50 = vsel %vm408_vm7, %v407_v35, %v405_v36  ;;  %562 = vmatpush.msra.mxu1 %v561_v15  ;;  %652 = vmatpush.msra.mxu3 %v11440_v7  ;;  %v11518_v15 = vld [vmem:[%s18616_s4 + $0x18] sm:$0xff]  ;;  %v409_v44 = vsel %vm408_vm7, %v405_v36, %v407_v35  ;;  %v18636_v35 = vand.u32 4294901760, %v11494_v52  ;;  %v11544_v36 = vsub.f32 %v451_v28, %v11496_v57 }
  0xd0   : > { %v414_v55 = vmul.f32 %v11461_v29, %v410_v50  ;;  %619 = vmatpush.msra.mxu2 %v11453_v18  ;;  %v566_v56 = vsub.f32 %v11450_v17, %v18628_v37  ;;  %v572_v22 = vsub.f32 %v11453_v18, %v18627_v39  ;;  %18802 = vst [vmem:[#allocation20_spill] sm:$0xff] %v11518_v15  ;;  %v11565_v54 = vand.u32 4294901760, %v427_v9 }
  0xd1   : > { %18804 = vst [vmem:[#allocation22_spill] sm:$0xff] %v11555_v60  ;;  %v786_v31 = vsub.f32 %v11494_v52, %v18636_v35 }
  0xd2   : > { %v11513_v3 = vand.u32 4294901760, %v414_v55  ;;  %v567_v5 = vand.u32 4294901760, %v566_v56  ;;  %v573_v14 = vand.u32 4294901760, %v572_v22  ;;  %v11547_v56 = vand.u32 4294901760, %v11510_v63 }
  0xd3   : > { %v11549_v22 = vand.u32 4294901760, %v439_v61 }
  0xd4   : > { %514 = vmatpush.msra.mxu0 %v11513_v3  ;;  %568 = vmatpush.msra.mxu1 %v567_v5  ;;  %v11533_v50 = vsub.f32 %v414_v55, %v11513_v3  ;;  %v415_v55 = vmul.f32 %v11518_v15, %v409_v44  ;;  %v520_v44 = vsub.f32 %v11510_v63, %v11547_v56 }
  0xd5   : > { %654 = vmatpush.msra.mxu3 %v11513_v3  ;;  %v11586_v15 = vsub.f32 %v439_v61, %v11549_v22  ;;  %v18806_v61 = vand.u32 4294901760, %v11328_v25  ;;  %v18809_v25 = vand.u32 4294901760, %v11332_v26 }
  0xd6   : > { %v394_v5 = vpop.permute.xlu0 %393  ;;  %574 = vmatpush.msra.mxu1 %v573_v14  ;;  %622 = vmatpush.msra.mxu2 %v11533_v50  ;;  %v18634_v39 = vand.u32 4294901760, %v11533_v50  ;;  %v11611_v42 = vand.u32 4294901760, %v520_v44 }
  0xd7   : > { %v398_v28 = vsel %vm397_vm8, %v392_v46, %v394_v5  ;;  %v399_v37 = vsel %vm397_vm8, %v394_v5, %v392_v46  ;;  %v792_v46 = vsub.f32 %v11507_v62, %v18637_v10  ;;  %v18805_v10 = vand.u32 4294901760, %v11523_v51 }
  0xd8   : > { %v402_v32 = vmul.f32 %v11540_v1, %v399_v37  ;;  %v578_v14 = vsub.f32 %v11533_v50, %v18634_v39  ;;  %v403_v30 = vmul.f32 %v11555_v60, %v398_v28  ;;  %v11581_v37 = vand.u32 4294901760, %v415_v55 }
  0xd9   : > { %v787_v28 = vand.u32 4294901760, %v786_v31  ;;  %v798_v5 = vsub.f32 %v11523_v51, %v18805_v10  ;;  %v11594_v60 = vsub.f32 %v427_v9, %v11565_v54  ;;  %v815_v10 = vand.u32 4294901760, %v11586_v15 }
  0xda   : > { %v11583_v41 = vand.u32 4294901760, %v402_v32  ;;  %v579_v39 = vand.u32 4294901760, %v578_v14  ;;  %v11596_v58 = vand.u32 4294901760, %v403_v30  ;;  %v793_v14 = vand.u32 4294901760, %v792_v46 }
  0xdb   : > { %v11609_v29 = vsub.f32 %v415_v55, %v11581_v37  ;;  %v799_v46 = vand.u32 4294901760, %v798_v5 }
  0xdc   : > { %516 = vmatpush.msra.mxu0 %v11583_v41  ;;  %580 = vmatpush.msra.mxu1 %v579_v39  ;;  %v582_v35 = vsub.f32 %v402_v32, %v11583_v41  ;;  %v18807_v39 = vand.u32 4294901760, %v11544_v36  ;;  %v18808_v32 = vand.u32 4294901760, %v11527_v0  ;;  %v11622_v44 = vsub.f32 %v403_v30, %v11596_v58 }
  0xdd   : > { %656 = vmatpush.msra.mxu3 %v11583_v41  ;;  %v827_v5 = vand.u32 4294901760, %v11609_v29  ;;  %522 = vmatmul.f32.vlgmr.msra.gmra.mxu0 %v11611_v42 }
  0xde   : > { %674 = vmatpush.msrb.mxu0 %v18806_v61  ;;  %v804_v31 = vsub.f32 %v11544_v36, %v18807_v39  ;;  %v810_v1 = vsub.f32 %v11527_v0, %v18808_v32  ;;  %625 = vmatpush.msra.mxu2 %v582_v35  ;;  %v583_v9 = vand.u32 4294901760, %v582_v35  ;;  %v821_v39 = vand.u32 4294901760, %v11594_v60 }
  0xdf   : > { %788 = vmatpush.msrb.mxu3 %v787_v28  ;;  %628 = vmatmul.f32.vlgmr.msra.gmra.mxu2 %v11510_v63  ;;  %v18810_v28 = vand.u32 4294901760, %v11320_v23  ;;  %v18811_v23 = vand.u32 4294901760, %v11370_v43 }
  0xe0   : > { %678 = vmatpush.msrb.mxu0 %v18809_v25  ;;  %750 = vmatpush.msrb.mxu2 %v11444_v16  ;;  %v584_v61 = vsub.f32 %v582_v35, %v583_v9  ;;  %v811_v55 = vand.u32 4294901760, %v810_v1  ;;  %v805_v26 = vand.u32 4294901760, %v804_v31  ;;  %v816_v35 = vsub.f32 %v11586_v15, %v815_v10 }
  0xe1   : > { %794 = vmatpush.msrb.mxu3 %v793_v14  ;;  %v822_v30 = vsub.f32 %v11594_v60, %v821_v39  ;;  %v18812_v1 = vand.u32 4294901760, %v11349_v34  ;;  %v833_v14 = vand.u32 4294901760, %v11622_v44  ;;  %v828_v31 = vsub.f32 %v11609_v29, %v827_v5 }
  0xe2   : > { %682 = vmatpush.msrb.mxu0 %v18810_v28  ;;  %752 = vmatpush.msrb.mxu2 %v11455_v19  ;;  %v585_v32 = vand.u32 4294901760, %v584_v61  ;;  %v817_v43 = vand.u32 4294901760, %v816_v35  ;;  %v18813_v25 = vand.u32 4294901760, %v11450_v17  ;;  %v18815_v61 = vand.u32 4294901760, %v11533_v50 }
  0xe3   : > { %800 = vmatpush.msrb.mxu3 %v799_v46  ;;  %v823_v34 = vand.u32 4294901760, %v822_v30  ;;  %v834_v46 = vsub.f32 %v11622_v44, %v833_v14  ;;  %v829_v17 = vand.u32 4294901760, %v828_v31 }
  0xe4   : > { %686 = vmatpush.msrb.mxu0 %v18811_v23  ;;  %754 = vmatpush.msrb.mxu2 %v11469_v40 }
  0xe5   : > { %806 = vmatpush.msrb.mxu3 %v805_v26  ;;  %586 = vmatpush.msra.mxu1 %v585_v32  ;;  %v1069_v26 = vld [vmem:[%s18615_s3 + $0x8] sm:$0xff] }
  0xe6   : > { %690 = vmatpush.msrb.mxu0 %v18812_v1  ;;  %756 = vmatpush.msrb.mxu2 %v11496_v57 }
  0xe7   : > { %720 = vmatpush.msrb.mxu1 %v11315_v21  ;;  %812 = vmatpush.msrb.mxu3 %v811_v55  ;;  %v18814_v21 = vand.u32 4294901760, %v11453_v18 }
  0xe8   : > { %694 = vmatpush.msrb.mxu0 %v18813_v25  ;;  %758 = vmatpush.msrb.mxu2 %v11483_v53 }
  0xe9   : > { %722 = vmatpush.msrb.mxu1 %v11313_v20  ;;  %818 = vmatpush.msrb.mxu3 %v817_v43  ;;  %v18816_v20 = vand.u32 4294901760, %v11494_v52 }
  0xea   : > { %698 = vmatpush.msrb.mxu0 %v18814_v21  ;;  %760 = vmatpush.msrb.mxu2 %v11549_v22 }
  0xeb   : > { %724 = vmatpush.msrb.mxu1 %v11305_v13  ;;  %824 = vmatpush.msrb.mxu3 %v823_v34  ;;  %v835_v13 = vand.u32 4294901760, %v834_v46 }
  0xec   : > { %702 = vmatpush.msrb.mxu0 %v18815_v61  ;;  %762 = vmatpush.msrb.mxu2 %v11565_v54 }
  0xed   : > { %726 = vmatpush.msrb.mxu1 %v11361_v38  ;;  %830 = vmatpush.msrb.mxu3 %v829_v17  ;;  %v18818_v38 = vand.u32 4294901760, %v11523_v51 }
  0xee   : > { %660 = vmatmul.f32.vlgmr.msra.gmra.mxu3 %v11547_v56  ;;  %706 = vmatpush.msrb.mxu0 %v583_v9 }
  0xef   : > { %728 = vmatpush.msrb.mxu1 %v11323_v24  ;;  %764 = vmatpush.msrb.mxu2 %v11581_v37  ;;  %v18817_v24 = vand.u32 4294901760, %v11507_v62 }
  0xf0   : > { %836 = vmatpush.msrb.mxu3 %v835_v13  ;;  %588 = vmatmul.f32.vlgmr.msra.gmra.mxu1 %v11463_v33 }
  0xf1   : > { %851 = vmatpush.msra.mxu0 %v11494_v52  ;;  %730 = vmatpush.msrb.mxu1 %v11438_v6  ;;  %v18819_v6 = vand.u32 4294901760, %v11544_v36 }
  0xf2   : > { %970 = vmatpush.msra.mxu3 %v11444_v16  ;;  %766 = vmatpush.msrb.mxu2 %v11596_v58 }
  0xf3   : > { %854 = vmatpush.msra.mxu0 %v11507_v62  ;;  %732 = vmatpush.msrb.mxu1 %v11440_v7  ;;  %v18820_v7 = vand.u32 4294901760, %v11527_v0 }
  0xf4   : > { %924 = vmatpush.msra.mxu2 %v18816_v20  ;;  %972 = vmatpush.msra.mxu3 %v11455_v19 }
  0xf5   : > { %857 = vmatpush.msra.mxu0 %v11523_v51  ;;  %734 = vmatpush.msrb.mxu1 %v11513_v3 }
  0xf6   : > { %928 = vmatpush.msra.mxu2 %v18817_v24  ;;  %974 = vmatpush.msra.mxu3 %v11469_v40 }
  0xf7   : > { %708 = vmatmul.f32.vlgmr.msrb.gmra.mxu0 %v11463_v33  ;;  %736 = vmatpush.msrb.mxu1 %v11583_v41  ;;  %v994_v41 = vld [vmem:[%s18821_s2] sm:$0xff] }
  0xf8   : > { %932 = vmatpush.msra.mxu2 %v18818_v38  ;;  %860 = vmatpush.msra.mxu0 %v11544_v36  ;;  %v1002_v38 = vld [vmem:[#allocation5] sm:$0xff] }
  0xf9   : > { %976 = vmatpush.msra.mxu3 %v11496_v57  ;;  %738 = vmatmul.f32.vlgmr.msrb.gmra.mxu1 %v11463_v33 }
  0xfa   : > { %936 = vmatpush.msra.mxu2 %v18819_v6  ;;  %863 = vmatpush.msra.mxu0 %v11527_v0 }
  0xfb   : > { %890 = vmatpush.msra.mxu1 %v11444_v16  ;;  %978 = vmatpush.msra.mxu3 %v11483_v53  ;;  %v11068_v16 = vmov 0  }
  0xfc   : > { %866 = vmatpush.msra.mxu0 %v11586_v15  ;;  %940 = vmatpush.msra.mxu2 %v18820_v7 }
  0xfd   : > { %892 = vmatpush.msra.mxu1 %v11455_v19  ;;  %980 = vmatpush.msra.mxu3 %v11549_v22 }
  0xfe   : > { %869 = vmatpush.msra.mxu0 %v11594_v60  ;;  %944 = vmatpush.msra.mxu2 %v815_v10 }
  0xff   : > { %894 = vmatpush.msra.mxu1 %v11469_v40  ;;  %982 = vmatpush.msra.mxu3 %v11565_v54 }
 0x100   : > { %772 = vmatmul.f32.vlgmr.msrb.gmra.mxu2 %v11611_v42  ;;  %838 = vmatmul.f32.vlgmr.msrb.gmra.mxu3 %v11463_v33 }
 0x101   : > { %872 = vmatpush.msra.mxu0 %v11609_v29  ;;  %896 = vmatpush.msra.mxu1 %v11496_v57  ;;  %v386_v57 = vld [vmem:[%s385_s21] sm:$0xff] }
 0x102   : > { %948 = vmatpush.msra.mxu2 %v821_v39  ;;  %984 = vmatpush.msra.mxu3 %v11581_v37  ;;  %v387_v39 = vld [vmem:[%s385_s21 + $0x8] sm:$0xff]  ;;  %s10361_s21 = scalar_lea.sflag [#allocation4], %s11226_s0 }
 0x103   : > { %875 = vmatpush.msra.mxu0 %v11622_v44  ;;  %898 = vmatpush.msra.mxu1 %v11483_v53 }
 0x104   : > { %952 = vmatpush.msra.mxu2 %v827_v5  ;;  %986 = vmatpush.msra.mxu3 %v11596_v58 }
 0x105   : > { %900 = vmatpush.msra.mxu1 %v11549_v22  ;;  %878 = vmatmul.f32.vlgmr.msra.gmra.mxu0 %v11510_v63 }
 0x106   : > { %956 = vmatpush.msra.mxu2 %v833_v14  ;;  %10677 = vset.pattern.permute.xlu1 %v11068_v16 }
 0x107   : > { %902 = vmatpush.msra.mxu1 %v11565_v54  ;;  %997 = vperm.xlu1 %10677, %v994_v41  }
 0x108   : > { %958 = vmatmul.f32.vlgmr.msra.gmra.mxu2 %v11463_v33  ;;  %988 = vmatmul.f32.vlgmr.msra.gmra.mxu3 %v11463_v33 }
 0x109   : > { %904 = vmatpush.msra.mxu1 %v11581_v37  ;;  %10678 = vset.pattern.permute.xlu0 %v11068_v16 }
 0x10a   : > { %10679 = vset.pattern.permute.xlu2 %v11068_v16 }
 0x10b   : > { %906 = vmatpush.msra.mxu1 %v11596_v58 }
 0x10c   : > { %910 = vmatmul.f32.vlgmr.msra.gmra.mxu1 %v11547_v56 }
 0x15a   : > { %v523_v18 = vpop.f32.mrf.mxu0 }
 0x162   : > { %v629_v29 = vpop.f32.mrf.mxu2 }
 0x16d   : > { %v589_v19 = vpop.f32.mrf.mxu1 }
 0x16e   : > { %v590_v40 = vadd.f32 %v589_v19, %v523_v18 }
 0x170   : > { %v630_v54 = vadd.f32 %v629_v29, %v590_v40  ;;  %v1081_v29 = vsel %vm488_vm6, %v1002_v38, 0 }
 0x171   : > { %v661_v42 = vpop.f32.mrf.mxu3 }
 0x172   : > { %v662_v53 = vadd.f32 %v661_v42, %v630_v54 }
 0x174   : > { %v709_v52 = vpop.f32.mrf.mxu0 }
 0x175   : > { %v710_v33 = vadd.f32 %v709_v52, %v662_v53  ;;  %v11814_v52 = vand.u32 4294901760, %v1081_v29 }
 0x176   : > { %v739_v58 = vpop.f32.mrf.mxu1 }
 0x177   : > { %v740_v62 = vadd.f32 %v739_v58, %v710_v33 }
 0x179   : > { %v998_v63 = vpop.permute.xlu1 %997  ;;  %v992_v3 = vadd.f32 %v740_v62, %v386_v57 }
 0x17b   : > { %v11728_v15 = vadd.f32 %v998_v63, %v992_v3 }
 0x17d   : > { %1044 = vrot.lane.b32.xlu0 %v11728_v15, %s11062_s26  ;;  %1052 = vrot.lane.b32.xlu1 %v11728_v15, %s11060_s22  ;;  %v11775_v34 = vand.u32 4294901760, %v11728_v15 }
 0x17e   : > { %1060 = vrot.lane.b32.xlu2 %v11728_v15, %s11061_s25 }
 0x17f   : > { %v11783_v61 = vsub.f32 %v11728_v15, %v11775_v34 }
 0x181   : > { %v1161_v19 = vand.u32 4294901760, %v11783_v61 }
 0x182   : > { %v879_v36 = vpop.f32.mrf.mxu0 }
 0x183   : > { %v773_v51 = vpop.f32.mrf.mxu2  ;;  %v839_v0 = vpop.f32.mrf.mxu3  ;;  %v11823_v57 = vsub.f32 %v11783_v61, %v1161_v19 }
 0x184   : > { %v840_v50 = vadd.f32 %v839_v0, %v773_v51 }
 0x185   : > { %1020 = vrot.lane.b32.xlu0 %v11728_v15, %s11065_s15  ;;  %1028 = vrot.lane.b32.xlu1 %v11728_v15, %s11064_s23 }
 0x186   : > { %1036 = vrot.lane.b32.xlu2 %v11728_v15, %s18822_s14  ;;  %v880_v56 = vadd.f32 %v879_v36, %v840_v50 }
 0x189   : > { %v911_v22 = vpop.f32.mrf.mxu1 }
 0x18a   : > { %v912_v60 = vadd.f32 %v911_v22, %v880_v56  ;;  %v1003_v22 = vld [vmem:[#allocation5 + $0x8] sm:$0xff] }
 0x18b   : > { %v959_v37 = vpop.f32.mrf.mxu2  ;;  %v989_v9 = vpop.f32.mrf.mxu3 }
 0x18c   : > { %v960_v10 = vadd.f32 %v959_v37, %v912_v60 }
 0x18e   : > { %v990_v28 = vadd.f32 %v989_v9, %v960_v10  ;;  %1012 = vrot.lane.b32.xlu2 %v11728_v15, %s18823_s11  ;;  %v11851_v10 = vsub.f32 %v1081_v29, %v11814_v52 }
 0x190   : > { %v993_v55 = vadd.f32 %v990_v28, %v387_v39 }
 0x192   : > { %v11744_v44 = vadd.f32 %v998_v63, %v993_v55 }
 0x194   : > { %1062 = vrot.lane.b32.xlu0 %v11744_v44, %s11061_s25  ;;  %1046 = vrot.lane.b32.xlu1 %v11744_v44, %s11062_s26 }
 0x196   : > { %1054 = vrot.lane.b32.xlu2 %v11744_v44, %s11060_s22 }
 0x19c   : > { %1038 = vrot.lane.b32.xlu0 %v11744_v44, %s18822_s14  ;;  %1022 = vrot.lane.b32.xlu1 %v11744_v44, %s11065_s15 }
 0x19e   : > { %1030 = vrot.lane.b32.xlu2 %v11744_v44, %s11064_s23 }
 0x1a4   : > { %1014 = vrot.lane.b32.xlu0 %v11744_v44, %s18823_s11  ;;  %1004 = vrot.lane.b32.xlu1 %v11728_v15, %s18824_s19 }
 0x1a6   : > { %1006 = vrot.lane.b32.xlu2 %v11744_v44, %s18824_s19 }
 0x1ac   : > { %1077 = vperm.xlu1 %10677, %v1069_v26  }
 0x1d8   : > { %v1061_v32 = vpop.permute.xlu2 %1060 }
 0x1e0   : > { %v1037_v35 = vpop.permute.xlu2 %1036 }
 0x1e8   : > { %v11767_v5 = vpop.permute.xlu2 %1012 }
 0x1ef   : > { %v1045_v23 = vpop.permute.xlu0 %1044  ;;  %v1053_v30 = vpop.permute.xlu1 %1052 }
 0x1f0   : > { %v1055_v1 = vpop.permute.xlu2 %1054 }
 0x1f1   : > { %v1056_v14 = vsel %vm468_vm1, %v1053_v30, %v1055_v1  ;;  %v1057_v21 = vsel %vm468_vm1, %v1055_v1, %v1053_v30  ;;  %v1163_v1 = vand.u32 4294901760, %v11823_v57 }
 0x1f2   : > { %v1058_v25 = vmul.f32 %v11298_v11, %v1056_v14  ;;  %v1059_v13 = vmul.f32 %v11397_v49, %v1057_v21  ;;  %v18825_v21 = vld [vmem:[#allocation18_spill] sm:$0xff] }
 0x1f4   : > { %v11779_v46 = vand.u32 4294901760, %v1058_v25  ;;  %v11801_v40 = vand.u32 4294901760, %v1059_v13 }
 0x1f6   : > { %v11797_v49 = vsub.f32 %v1058_v25, %v11779_v46 }
 0x1f7   : > { %v11771_v43 = vpop.permute.xlu0 %1020  ;;  %v1029_v31 = vpop.permute.xlu1 %1028 }
 0x1f8   : > { %v1031_v17 = vpop.permute.xlu2 %1030 }
 0x1f9   : > { %v1033_v18 = vsel %vm432_vm4, %v1031_v17, %v1029_v31  ;;  %v1032_v0 = vsel %vm432_vm4, %v1029_v31, %v1031_v17  ;;  %v11886_v31 = vand.u32 4294901760, %v11851_v10 }
 0x1fa   : > { %v11890_v17 = vmul.f32 %v18825_v21, %v1032_v0 }
 0x206   : > { %v1063_v20 = vpop.permute.xlu0 %1062  ;;  %v1047_v24 = vpop.permute.xlu1 %1046 }
 0x207   : > { %v1064_v11 = vsel %vm480_vm2, %v1061_v32, %v1063_v20  ;;  %v1065_v6 = vsel %vm480_vm2, %v1063_v20, %v1061_v32  ;;  %v1048_v7 = vsel %vm456_vm0, %v1045_v23, %v1047_v24  ;;  %v1049_v62 = vsel %vm456_vm0, %v1047_v24, %v1045_v23 }
 0x208   : > { %v1066_v41 = vmul.f32 %v11303_v12, %v1064_v11  ;;  %v1050_v16 = vmul.f32 %v11286_v8, %v1048_v7  ;;  %v1067_v54 = vmul.f32 %v11379_v45, %v1065_v6  ;;  %v1034_v8 = vmul.f32 %v11387_v47, %v1033_v18 }
 0x209   : > { %v1143_v45 = vand.u32 4294901760, %v11797_v49  ;;  %v11826_v47 = vsub.f32 %v1059_v13, %v11801_v40  ;;  %v1051_v39 = vmul.f32 %v11416_v59, %v1049_v62  ;;  %v1084_v32 = vsel %vm488_vm6, %v1003_v22, 0  ;;  %v1007_v13 = vpop.permute.xlu2 %1006  ;;  %v18826_v62 = vld [vmem:[#allocation17_spill] sm:$0xff] }
 0x20a   : > { %v11804_v42 = vand.u32 4294901760, %v1066_v41  ;;  %v11806_v53 = vand.u32 4294901760, %v1050_v16  ;;  %v11828_v58 = vand.u32 4294901760, %v1067_v54  ;;  %v11845_v60 = vand.u32 4294901760, %v1034_v8 }
 0x20b   : > { %v18643_v25 = vand.u32 4294901760, %v11826_v47  ;;  %v11892_v20 = vand.u32 4294901760, %v1051_v39  ;;  %v11894_v38 = vand.u32 4294901760, %v1084_v32 }
 0x20c   : > { %v11810_v12 = vsub.f32 %v1066_v41, %v11804_v42  ;;  %1094 = vmatpush.msrb.mxu0 %v11804_v42  ;;  %1251 = vmatpush.msrb.mxu3 %v11804_v42  ;;  %v11817_v33 = vsub.f32 %v1050_v16, %v11806_v53  ;;  %v11864_v55 = vsub.f32 %v1067_v54, %v11828_v58 }
 0x20d   : > { %v11883_v14 = vsub.f32 %v1034_v8, %v11845_v60 }
 0x20e   : > { %v1039_v63 = vpop.permute.xlu0 %1038  ;;  %v1023_v3 = vpop.permute.xlu1 %1022  ;;  %1096 = vmatpush.msrb.mxu0 %v11779_v46  ;;  %1207 = vmatpush.msrb.mxu2 %v11810_v12  ;;  %v1137_v51 = vand.u32 4294901760, %v11810_v12  ;;  %v18644_v18 = vand.u32 4294901760, %v11864_v55 }
 0x20f   : > { %v1040_v50 = vsel %vm444_vm3, %v1037_v35, %v1039_v63  ;;  %v1041_v36 = vsel %vm444_vm3, %v1039_v63, %v1037_v35  ;;  %v1025_v56 = vsel %vm420_vm5, %v1023_v3, %v11771_v43  ;;  %1253 = vmatpush.msrb.mxu3 %v11779_v46  ;;  %v1024_v6 = vsel %vm420_vm5, %v11771_v43, %v1023_v3  ;;  %v18827_v3 = vld [vmem:[#allocation21_spill] sm:$0xff] }
 0x210   : > { %v1042_v37 = vmul.f32 %v11337_v27, %v1040_v50  ;;  %v1026_v9 = vmul.f32 %v11392_v48, %v1025_v56  ;;  %1098 = vmatpush.msrb.mxu0 %v11806_v53  ;;  %1210 = vmatpush.msrb.mxu2 %v11797_v49  ;;  %v1138_v28 = vsub.f32 %v11810_v12, %v1137_v51  ;;  %v1149_v48 = vand.u32 4294901760, %v11817_v33 }
 0x211   : > { %1255 = vmatpush.msrb.mxu3 %v11806_v53  ;;  %v1144_v27 = vsub.f32 %v11797_v49, %v1143_v45  ;;  %v1043_v26 = vmul.f32 %v11434_v2, %v1041_v36  ;;  %v1114_v50 = vsub.f32 %v11851_v10, %v11886_v31  ;;  %v18645_v36 = vand.u32 4294901760, %v11883_v14 }
 0x212   : > { %v11867_v59 = vand.u32 4294901760, %v1042_v37  ;;  %v11870_v35 = vand.u32 4294901760, %v1026_v9  ;;  %1213 = vmatpush.msrb.mxu2 %v11817_v33  ;;  %v1139_v23 = vand.u32 4294901760, %v1138_v28  ;;  %v1150_v30 = vsub.f32 %v11817_v33, %v1149_v48  ;;  %v1068_v28 = vld [vmem:[%s18615_s3] sm:$0xff] }
 0x213   : > { %v1145_v24 = vand.u32 4294901760, %v1144_v27  ;;  %v11896_v11 = vand.u32 4294901760, %v1043_v26  ;;  %v11920_v56 = vsub.f32 %v1051_v39, %v11892_v20  ;;  %v18828_v27 = vld [vmem:[#allocation19_spill] sm:$0xff]  ;;  %1072 = vperm.xlu0 %10678, %v1068_v28  }
 0x214   : > { %1100 = vmatpush.msrb.mxu0 %v11867_v59  ;;  %1257 = vmatpush.msrb.mxu3 %v11867_v59  ;;  %v11880_v2 = vsub.f32 %v1042_v37, %v11867_v59  ;;  %v1151_v8 = vand.u32 4294901760, %v1150_v30  ;;  %v11911_v43 = vsub.f32 %v1026_v9, %v11870_v35  ;;  %v11927_v37 = vsub.f32 %v1084_v32, %v11894_v38 }
 0x215   : > { %1140 = vmatpush.msrb.mxu1 %v1139_v23  ;;  %v11930_v9 = vand.u32 4294901760, %v11744_v44  ;;  %v1027_v39 = vmul.f32 %v18828_v27, %v1024_v6  ;;  %v1419_v32 = vsub.f32 %v11864_v55, %v18644_v18  ;;  %v11946_v21 = vsub.f32 %v1043_v26, %v11896_v11 }
 0x216   : > { %v1015_v7 = vpop.permute.xlu0 %1014  ;;  %v1005_v41 = vpop.permute.xlu1 %1004  ;;  %1102 = vmatpush.msrb.mxu0 %v11775_v34  ;;  %1216 = vmatpush.msrb.mxu2 %v11880_v2  ;;  %v1155_v16 = vand.u32 4294901760, %v11880_v2 }
 0x217   : > { %v1017_v29 = vsel %vm408_vm7, %v1015_v7, %v11767_v5  ;;  %v1009_v54 = vsel %vm397_vm8, %v1007_v13, %v1005_v41  ;;  %1146 = vmatpush.msrb.mxu1 %v1145_v24  ;;  %1259 = vmatpush.msrb.mxu3 %v11775_v34  ;;  %v1016_v24 = vsel %vm408_vm7, %v11767_v5, %v1015_v7 }
 0x218   : > { %v1018_v63 = vmul.f32 %v18826_v62, %v1017_v29  ;;  %v1010_v0 = vmul.f32 %v1009_v54, %v18827_v3  ;;  %1104 = vmatpush.msrb.mxu0 %v11845_v60  ;;  %v1156_v22 = vsub.f32 %v11880_v2, %v1155_v16  ;;  %1219 = vmatpush.msrb.mxu2 %v11783_v61  ;;  %v1173_v29 = vand.u32 4294901760, %v11911_v43 }
 0x219   : > { %1152 = vmatpush.msrb.mxu1 %v1151_v8  ;;  %1261 = vmatpush.msrb.mxu3 %v11845_v60  ;;  %v11954_v54 = vand.u32 4294901760, %v11890_v17  ;;  %v1168_v5 = vsub.f32 %v11883_v14, %v18645_v36  ;;  %v1425_v7 = vsub.f32 %v11826_v47, %v18643_v25  ;;  %v1008_v8 = vsel %vm397_vm8, %v1005_v41, %v1007_v13 }
 0x21a   : > { %v11936_v23 = vand.u32 4294901760, %v1018_v63  ;;  %v11938_v30 = vand.u32 4294901760, %v1010_v0  ;;  %1106 = vmatpush.msrb.mxu0 %v11870_v35  ;;  %v1157_v6 = vand.u32 4294901760, %v1156_v22  ;;  %1222 = vmatpush.msrb.mxu2 %v11883_v14  ;;  %v11970_v62 = vand.u32 4294901760, %v1114_v50  ;;  %v18829_v22 = vld [vmem:[#allocation20_spill] sm:$0xff] }
 0x21b   : > { %1263 = vmatpush.msrb.mxu3 %v11870_v35  ;;  %v1019_v28 = vmul.f32 %v18829_v22, %v1016_v24  ;;  %v11981_v13 = vand.u32 4294901760, %v11927_v37  ;;  %v11985_v41 = vsub.f32 %v11744_v44, %v11930_v9  ;;  %v11987_v50 = vand.u32 4294901760, %v1027_v39  ;;  %v18830_v22 = vld [vmem:[#allocation22_spill] sm:$0xff] }
 0x21c   : > { %v11959_v26 = vsub.f32 %v1018_v63, %v11936_v23  ;;  %1108 = vmatpush.msrb.mxu0 %v11936_v23  ;;  %1158 = vmatpush.msrb.mxu1 %v1157_v6  ;;  %v11973_v3 = vsub.f32 %v1010_v0, %v11938_v30  ;;  %v18647_v63 = vand.u32 4294901760, %v11920_v56  ;;  %v1420_v0 = vand.u32 4294901760, %v1419_v32 }
 0x21d   : > { %1225 = vmatpush.msrb.mxu2 %v11911_v43  ;;  %1265 = vmatpush.msrb.mxu3 %v11936_v23  ;;  %v1174_v24 = vsub.f32 %v11911_v43, %v1173_v29  ;;  %v1436_v6 = vand.u32 4294901760, %v11946_v21  ;;  %v1011_v25 = vmul.f32 %v1008_v8, %v18830_v22  ;;  %v1169_v18 = vand.u32 4294901760, %v1168_v5 }
 0x21e   : > { %v18646_v27 = vand.u32 4294901760, %v11959_v26  ;;  %1110 = vmatpush.msrb.mxu0 %v11938_v30  ;;  %1164 = vmatpush.msrb.mxu1 %v1163_v1  ;;  %v1185_v57 = vand.u32 4294901760, %v11973_v3  ;;  %v12005_v1 = vsub.f32 %v11890_v17, %v11954_v54  ;;  %v1426_v32 = vand.u32 4294901760, %v1425_v7 }
 0x21f   : > { %1228 = vmatpush.msrb.mxu2 %v11959_v26  ;;  %1267 = vmatpush.msrb.mxu3 %v11938_v30  ;;  %v1431_v8 = vsub.f32 %v11920_v56, %v18647_v63  ;;  %v12011_v22 = vand.u32 4294901760, %v1019_v28  ;;  %v1122_v5 = vsub.f32 %v11927_v37, %v11981_v13  ;;  %v1442_v17 = vand.u32 4294901760, %v11985_v41 }
 0x220   : > { %v1180_v36 = vsub.f32 %v11959_v26, %v18646_v27  ;;  %1116 = vmatmul.f32.vlgmr.msrb.gmra.mxu0 %v11970_v62  ;;  %1170 = vmatpush.msrb.mxu1 %v1169_v18  ;;  %v12019_v27 = vsub.f32 %v1027_v39, %v11987_v50  ;;  %v1175_v7 = vand.u32 4294901760, %v1174_v24  ;;  %v1437_v63 = vsub.f32 %v11946_v21, %v1436_v6 }
 0x221   : > { %1421 = vmatpush.msra.mxu3 %v1420_v0  ;;  %1291 = vmatpush.msra.mxu0 %v1137_v51  ;;  %v12025_v12 = vand.u32 4294901760, %v1011_v25  ;;  %v1186_v51 = vsub.f32 %v11973_v3, %v1185_v57  ;;  %v1432_v18 = vand.u32 4294901760, %v1431_v8  ;;  %v12036_v39 = vsub.f32 %v1019_v28, %v12011_v22 }
 0x222   : > { %1231 = vmatpush.msrb.mxu2 %v11973_v3  ;;  %v1181_v0 = vand.u32 4294901760, %v1180_v36  ;;  %1176 = vmatpush.msrb.mxu1 %v1175_v7  ;;  %v1448_v36 = vand.u32 4294901760, %v12005_v1  ;;  %v12041_v49 = vand.u32 4294901760, %v1122_v5  ;;  %v1443_v24 = vsub.f32 %v11985_v41, %v1442_v17 }
 0x223   : > { %1427 = vmatpush.msra.mxu3 %v1426_v32  ;;  %1295 = vmatpush.msra.mxu0 %v1143_v45  ;;  %v1438_v45 = vand.u32 4294901760, %v1437_v63  ;;  %v1454_v32 = vand.u32 4294901760, %v12019_v27  ;;  %v12048_v8 = vsub.f32 %v1011_v25, %v12025_v12  ;;  %v1187_v33 = vand.u32 4294901760, %v1186_v51 }
 0x224   : > { %1375 = vmatpush.msra.mxu2 %v11828_v58  ;;  %1182 = vmatpush.msrb.mxu1 %v1181_v0  ;;  %v1460_v63 = vand.u32 4294901760, %v12036_v39  ;;  %v1444_v2 = vand.u32 4294901760, %v1443_v24  ;;  %v18831_v28 = vand.u32 4294901760, %v11883_v14 }
 0x225   : > { %1234 = vmatmul.f32.vlgmr.msrb.gmra.mxu2 %v11851_v10  ;;  %1299 = vmatpush.msra.mxu0 %v1149_v48  ;;  %v1449_v48 = vsub.f32 %v12005_v1, %v1448_v36  ;;  %v1455_v25 = vsub.f32 %v12019_v27, %v1454_v32 }
 0x226   : > { %1377 = vmatpush.msra.mxu2 %v11801_v40  ;;  %1433 = vmatpush.msra.mxu3 %v1432_v18  ;;  %v1461_v61 = vsub.f32 %v12036_v39, %v1460_v63 }
 0x227   : > { %1271 = vmatmul.f32.vlgmr.msrb.gmra.mxu3 %v11886_v31  ;;  %1303 = vmatpush.msra.mxu0 %v1155_v16  ;;  %v1466_v16 = vand.u32 4294901760, %v12048_v8  ;;  %v1450_v5 = vand.u32 4294901760, %v1449_v48 }
 0x228   : > { %1379 = vmatpush.msra.mxu2 %v11892_v20  ;;  %1439 = vmatpush.msra.mxu3 %v1438_v45  ;;  %v1462_v14 = vand.u32 4294901760, %v1461_v61 }
 0x229   : > { %1188 = vmatpush.msrb.mxu1 %v1187_v33  ;;  %1124 = vmatmul.f32.gmra.mxu0 %v12041_v49  ;;  %v10744_v33 = vld [vmem:[%s11232_s17] sm:$0xff] }
 0x22a   : > { %1190 = vmatmul.f32.vlgmr.msrb.gmra.mxu1 %v11814_v52  ;;  %1307 = vmatpush.msra.mxu0 %v1161_v19  ;;  %v1456_v19 = vand.u32 4294901760, %v1455_v25 }
 0x22b   : > { %1341 = vmatpush.msra.mxu1 %v11804_v42  ;;  %1381 = vmatpush.msra.mxu2 %v11896_v11  ;;  %v1467_v42 = vsub.f32 %v12048_v8, %v1466_v16 }
 0x22c   : > { %1445 = vmatpush.msra.mxu3 %v1444_v2  ;;  %1311 = vmatpush.msra.mxu0 %v18831_v28 }
 0x22d   : > { %1343 = vmatpush.msra.mxu1 %v11779_v46  ;;  %1383 = vmatpush.msra.mxu2 %v11930_v9  ;;  %v18832_v46 = vand.u32 4294901760, %v11959_v26 }
 0x22e   : > { %1451 = vmatpush.msra.mxu3 %v1450_v5  ;;  %1239 = vmatmul.f32.gmra.mxu2 %v11927_v37 }
 0x22f   : > { %1315 = vmatpush.msra.mxu0 %v1173_v29  ;;  %1345 = vmatpush.msra.mxu1 %v11806_v53  ;;  %v1468_v53 = vand.u32 4294901760, %v1467_v42 }
 0x230   : > { %1385 = vmatpush.msra.mxu2 %v11954_v54  ;;  %1457 = vmatpush.msra.mxu3 %v1456_v19 }
 0x231   : > { %1277 = vmatmul.f32.gmra.mxu3 %v11981_v13  ;;  %1319 = vmatpush.msra.mxu0 %v18832_v46 }
 0x232   : > { %1347 = vmatpush.msra.mxu1 %v11867_v59  ;;  %1387 = vmatpush.msra.mxu2 %v11987_v50  ;;  %v18834_v59 = vand.u32 4294901760, %v11826_v47 }
 0x233   : > { %1463 = vmatpush.msra.mxu3 %v1462_v14  ;;  %1194 = vmatmul.f32.gmra.mxu1 %v11894_v38 }
 0x234   : > { %1323 = vmatpush.msra.mxu0 %v1185_v57  ;;  %1349 = vmatpush.msra.mxu1 %v11775_v34  ;;  %v18833_v34 = vand.u32 4294901760, %v11864_v55 }
 0x235   : > { %1389 = vmatpush.msra.mxu2 %v12011_v22  ;;  %1469 = vmatpush.msra.mxu3 %v1468_v53 }
 0x236   : > { %1325 = vmatmul.f32.vlgmr.msra.gmra.mxu0 %v11814_v52  ;;  %1351 = vmatpush.msra.mxu1 %v11845_v60  ;;  %v18835_v60 = vand.u32 4294901760, %v11920_v56 }
 0x237   : > { %1622 = vmatpush.msrb.mxu3 %v11828_v58  ;;  %1488 = vmatpush.msrb.mxu0 %v11864_v55 }
 0x238   : > { %1391 = vmatpush.msra.mxu2 %v12025_v12  ;;  %1353 = vmatpush.msra.mxu1 %v11870_v35 }
 0x239   : > { %1624 = vmatpush.msrb.mxu3 %v11801_v40  ;;  %1397 = vmatmul.f32.vlgmr.msra.gmra.mxu2 %v11970_v62  ;;  %v1078_v62 = vpop.permute.xlu1 %1077 }
 0x23a   : > { %1491 = vmatpush.msrb.mxu0 %v11826_v47  ;;  %1572 = vmatpush.msrb.mxu2 %v18833_v34 }
 0x23b   : > { %1471 = vmatmul.f32.vlgmr.msra.gmra.mxu3 %v11814_v52  ;;  %1355 = vmatpush.msra.mxu1 %v11936_v23 }
 0x23c   : > { %1494 = vmatpush.msrb.mxu0 %v11920_v56  ;;  %1576 = vmatpush.msrb.mxu2 %v18834_v59 }
 0x23d   : > { %1626 = vmatpush.msrb.mxu3 %v11892_v20  ;;  %1357 = vmatpush.msra.mxu1 %v11938_v30 }
 0x23e   : > { %1497 = vmatpush.msrb.mxu0 %v11946_v21  ;;  %1580 = vmatpush.msrb.mxu2 %v18835_v60 }
 0x23f   : > { %1628 = vmatpush.msrb.mxu3 %v11896_v11  ;;  %1329 = vmatmul.f32.gmra.mxu0 %v11894_v38 }
 0x240   : > { %1359 = vmatmul.f32.vlgmr.msra.gmra.mxu1 %v11814_v52  ;;  %1500 = vmatpush.msrb.mxu0 %v11985_v41 }
 0x241   : > { %1532 = vmatpush.msrb.mxu1 %v11828_v58  ;;  %1584 = vmatpush.msrb.mxu2 %v1436_v6 }
 0x242   : > { %1630 = vmatpush.msrb.mxu3 %v11930_v9  ;;  %1405 = vmatmul.f32.gmra.mxu2 %v12041_v49 }
 0x243   : > { %1503 = vmatpush.msrb.mxu0 %v12005_v1  ;;  %1534 = vmatpush.msrb.mxu1 %v11801_v40 }
 0x244   : > { %1588 = vmatpush.msrb.mxu2 %v1442_v17  ;;  %1632 = vmatpush.msrb.mxu3 %v11954_v54 }
 0x245   : > { %1475 = vmatmul.f32.gmra.mxu3 %v11894_v38  ;;  %1506 = vmatpush.msrb.mxu0 %v12019_v27 }
 0x246   : > { %1536 = vmatpush.msrb.mxu1 %v11892_v20  ;;  %1592 = vmatpush.msrb.mxu2 %v1448_v36 }
 0x247   : > { %1634 = vmatpush.msrb.mxu3 %v11987_v50  ;;  %1509 = vmatpush.msrb.mxu0 %v12036_v39 }
 0x248   : > { %1538 = vmatpush.msrb.mxu1 %v11896_v11  ;;  %1596 = vmatpush.msrb.mxu2 %v1454_v32 }
 0x249   : > { %1636 = vmatpush.msrb.mxu3 %v12011_v22  ;;  %1363 = vmatmul.f32.gmra.mxu1 %v11894_v38 }
 0x24a   : > { %1512 = vmatpush.msrb.mxu0 %v12048_v8  ;;  %1540 = vmatpush.msrb.mxu1 %v11930_v9 }
 0x24b   : > { %1600 = vmatpush.msrb.mxu2 %v1460_v63  ;;  %1638 = vmatpush.msrb.mxu3 %v12025_v12 }
 0x24c   : > { %1515 = vmatmul.f32.vlgmr.msrb.gmra.mxu0 %v11851_v10  ;;  %1542 = vmatpush.msrb.mxu1 %v11954_v54 }
 0x24d   : > { %1604 = vmatpush.msrb.mxu2 %v1466_v16  ;;  %1640 = vmatmul.f32.vlgmr.msrb.gmra.mxu3 %v11814_v52 }
 0x24e   : > { %1544 = vmatpush.msrb.mxu1 %v11987_v50  ;;  %1606 = vmatmul.f32.vlgmr.msrb.gmra.mxu2 %v11814_v52 }
 0x250   : > { %1546 = vmatpush.msrb.mxu1 %v12011_v22 }
 0x252   : > { %1548 = vmatpush.msrb.mxu1 %v12025_v12 }
 0x253   : > { %1552 = vmatmul.f32.vlgmr.msrb.gmra.mxu1 %v11886_v31 }
 0x254   : > { %1520 = vmatmul.f32.gmra.mxu0 %v11927_v37 }
 0x255   : > { %1644 = vmatmul.f32.gmra.mxu3 %v11894_v38 }
 0x256   : > { %1610 = vmatmul.f32.gmra.mxu2 %v11894_v38 }
 0x25b   : > { %1558 = vmatmul.f32.gmra.mxu1 %v11981_v13 }
 0x285   : > { %v1073_v47 = vpop.permute.xlu0 %1072 }
 0x29d   : > { %v1117_v40 = vpop.f32.mrf.mxu0 }
 0x29e   : > { %v1118_v55 = vadd.f32 %v1117_v40, %v1073_v47 }
 0x2a6   : > { %v1125_v35 = vpop.f32.mrf.mxu0 }
 0x2a7   : > { %v1191_v58 = vpop.f32.mrf.mxu1  ;;  %v1126_v3 = vadd.f32 %v1125_v35, %v1078_v62 }
 0x2a8   : > { %v1235_v10 = vpop.f32.mrf.mxu2  ;;  %v1192_v20 = vadd.f32 %v1191_v58, %v1118_v55  ;;  %v10745_v58 = vld [vmem:[%s11232_s17 + $0x8] sm:$0xff] }
 0x2aa   : > { %v1272_v52 = vpop.f32.mrf.mxu3  ;;  %v1236_v43 = vadd.f32 %v1235_v10, %v1192_v20 }
 0x2ac   : > { %v1273_v9 = vadd.f32 %v1272_v52, %v1236_v43  ;;  %v10561_v52 = vld [vmem:[%s18821_s2 + $0x8] sm:$0xff] }
 0x2b0   : > { %v1195_v11 = vpop.f32.mrf.mxu1 }
 0x2b1   : > { %v1240_v56 = vpop.f32.mrf.mxu2  ;;  %v1196_v41 = vadd.f32 %v1195_v11, %v1126_v3 }
 0x2b3   : > { %v1326_v37 = vpop.f32.mrf.mxu0  ;;  %v1241_v17 = vadd.f32 %v1240_v56, %v1196_v41 }
 0x2b4   : > { %v1278_v31 = vpop.f32.mrf.mxu3  ;;  %v1327_v23 = vadd.f32 %v1326_v37, %v1273_v9 }
 0x2b5   : > { %v1279_v51 = vadd.f32 %v1278_v31, %v1241_v17  ;;  %v12244_v17 = vld [vmem:[%s18616_s4 + $0x80] sm:$0xff] }
 0x2bc   : > { %v1398_v38 = vpop.f32.mrf.mxu2  ;;  %v1330_v26 = vpop.f32.mrf.mxu0 }
 0x2bd   : > { %v1360_v30 = vpop.f32.mrf.mxu1  ;;  %v1399_v6 = vadd.f32 %v1398_v38, %v1073_v47  ;;  %v1331_v49 = vadd.f32 %v1330_v26, %v1279_v51 }
 0x2be   : > { %v1361_v21 = vadd.f32 %v1360_v30, %v1327_v23  ;;  %v1472_v54 = vpop.f32.mrf.mxu3 }
 0x2bf   : > { %v1473_v0 = vadd.f32 %v1472_v54, %v1399_v6 }
 0x2c0   : > { %v1648_v29 = vmul.f32 0.5, %v1361_v21  ;;  %v12212_v21 = vld [vmem:[%s18616_s4 + $0x60] sm:$0xff] }
 0x2c2   : > { %10680 = vtanh.f32 %v1648_v29 }
 0x2c5   : > { %v1406_v57 = vpop.f32.mrf.mxu2 }
 0x2c6   : > { %v1364_v27 = vpop.f32.mrf.mxu1  ;;  %v1407_v16 = vadd.f32 %v1406_v57, %v1078_v62  ;;  %v12236_v57 = vld [vmem:[%s18616_s4 + $0x70] sm:$0xff] }
 0x2c7   : > { %v1365_v8 = vadd.f32 %v1364_v27, %v1331_v49  ;;  %v12262_v49 = vld [vmem:[%s18616_s4 + $0x88] sm:$0xff] }
 0x2c8   : > { %v10681_v13 = vpop.eup %10680  ;;  %v1476_v1 = vpop.f32.mrf.mxu3 }
 0x2c9   : > { %v1652_v50 = vmul.f32 2.0, %v10681_v13  ;;  %v1516_v7 = vpop.f32.mrf.mxu0  ;;  %v1477_v61 = vadd.f32 %v1476_v1, %v1407_v16 }
 0x2ca   : > { %v1517_v12 = vadd.f32 %v1516_v7, %v1473_v0 }
 0x2cb   : > { %v1654_v22 = vmul.f32 1.442695, %v1652_v50  ;;  %v12230_v50 = vld [vmem:[%s18616_s4 + $0x68] sm:$0xff] }
 0x2cd   : > { %10682 = vpow2.f32 %v1654_v22 }
 0x2d0   : > { %v1553_v18 = vpop.f32.mrf.mxu1  ;;  %v1641_v45 = vpop.f32.mrf.mxu3 }
 0x2d1   : > { %v1554_v36 = vadd.f32 %v1553_v18, %v1517_v12  ;;  %v1607_v39 = vpop.f32.mrf.mxu2  ;;  %v1521_v28 = vpop.f32.mrf.mxu0 }
 0x2d2   : > { %v1522_v46 = vadd.f32 %v1521_v28, %v1477_v61 }
 0x2d3   : > { %v10683_v24 = vpop.eup %10682  ;;  %v1608_v32 = vadd.f32 %v1607_v39, %v1554_v36 }
 0x2d4   : > { %v1658_v48 = vmul.f32 %v10744_v33, %v10683_v24 }
 0x2d5   : > { %v1642_v63 = vadd.f32 %v1641_v45, %v1608_v32  ;;  %v12270_v32 = vld [vmem:[%s18616_s4 + $0x20] sm:$0xff] }
 0x2d6   : > { %v12160_v2 = vadd.f32 %v1658_v48, %v1365_v8  ;;  %v12281_v48 = vld [vmem:[%s18616_s4 + $0x78] sm:$0xff] }
 0x2d7   : > { %v1649_v25 = vmul.f32 0.5, %v1642_v63 }
 0x2d8   : > { %18836 = vst [vmem:[#allocation18_spill] sm:$0xff] %v12160_v2  ;;  %1696 = vrot.lane.b32.xlu0 %v12160_v2, %s18822_s14  ;;  %1704 = vrot.lane.b32.xlu1 %v12160_v2, %s11062_s26  ;;  %v1559_v42 = vpop.f32.mrf.mxu1  ;;  %v1645_v60 = vpop.f32.mrf.mxu3  ;;  %v12207_v30 = vand.u32 4294901760, %v12160_v2 }
 0x2d9   : > { %10684 = vtanh.f32 %v1649_v25  ;;  %1720 = vrot.lane.b32.xlu2 %v12160_v2, %s11061_s25  ;;  %v1560_v53 = vadd.f32 %v1559_v42, %v1522_v46  ;;  %v1611_v34 = vpop.f32.mrf.mxu2 }
 0x2da   : > { %v12219_v26 = vsub.f32 %v12160_v2, %v12207_v30 }
 0x2db   : > { %v1612_v59 = vadd.f32 %v1611_v34, %v1560_v53 }
 0x2dc   : > { %v18648_v12 = vand.u32 4294901760, %v12219_v26 }
 0x2dd   : > { %v1646_v47 = vadd.f32 %v1645_v60, %v1612_v59 }
 0x2df   : > { %v10685_v5 = vpop.eup %10684 }
 0x2e0   : > { %v1653_v19 = vmul.f32 2.0, %v10685_v5  ;;  %1672 = vrot.lane.b32.xlu0 %v12160_v2, %s18823_s11  ;;  %1680 = vrot.lane.b32.xlu1 %v12160_v2, %s11065_s15 }
 0x2e1   : > { %1712 = vrot.lane.b32.xlu2 %v12160_v2, %s11060_s22 }
 0x2e2   : > { %v1656_v14 = vmul.f32 1.442695, %v1653_v19  ;;  %v12294_v19 = vsub.f32 %v12219_v26, %v18648_v12 }
 0x2e4   : > { %10686 = vpow2.f32 %v1656_v14 }
 0x2e9   : > { %1688 = vrot.lane.b32.xlu2 %v12160_v2, %s11064_s23 }
 0x2ea   : > { %v10687_v40 = vpop.eup %10686 }
 0x2eb   : > { %v1659_v10 = vmul.f32 %v10745_v58, %v10687_v40  ;;  %v12317_v40 = vld [vmem:[%s18616_s4 + $0x30] sm:$0xff] }
 0x2ec   : > { %v12323_v58 = vld [vmem:[%s18616_s4 + $0x50] sm:$0xff] }
 0x2ed   : > { %v12177_v55 = vadd.f32 %v1659_v10, %v1646_v47 }
 0x2ef   : > { %18837 = vst [vmem:[#allocation17_spill] sm:$0xff] %v12177_v55  ;;  %1714 = vrot.lane.b32.xlu0 %v12177_v55, %s11060_s22  ;;  %1722 = vrot.lane.b32.xlu1 %v12177_v55, %s11061_s25  ;;  %v12297_v42 = vand.u32 4294901760, %v12177_v55 }
 0x2f1   : > { %1706 = vrot.lane.b32.xlu2 %v12177_v55, %s11062_s26 }
 0x2f7   : > { %1690 = vrot.lane.b32.xlu0 %v12177_v55, %s11064_s23  ;;  %1698 = vrot.lane.b32.xlu1 %v12177_v55, %s18822_s14 }
 0x2f9   : > { %1682 = vrot.lane.b32.xlu2 %v12177_v55, %s11065_s15 }
 0x2ff   : > { %1666 = vrot.lane.b32.xlu0 %v12177_v55, %s18824_s19  ;;  %1674 = vrot.lane.b32.xlu1 %v12177_v55, %s18823_s11 }
 0x301   : > { %1664 = vrot.lane.b32.xlu2 %v12160_v2, %s18824_s19 }
 0x307   : > { %2237 = vperm.xlu1 %10677, %v10561_v52  }
 0x333   : > { %v1721_v35 = vpop.permute.xlu2 %1720 }
 0x33b   : > { %v1713_v20 = vpop.permute.xlu2 %1712 }
 0x343   : > { %v12200_v11 = vpop.permute.xlu2 %1688 }
 0x34a   : > { %v1697_v43 = vpop.permute.xlu0 %1696  ;;  %v1705_v56 = vpop.permute.xlu1 %1704 }
 0x34b   : > { %v1707_v31 = vpop.permute.xlu2 %1706 }
 0x34c   : > { %v1708_v23 = vsel %vm456_vm0, %v1705_v56, %v1707_v31  ;;  %v1709_v29 = vsel %vm456_vm0, %v1707_v31, %v1705_v56 }
 0x34d   : > { %v1710_v38 = vmul.f32 %v12212_v21, %v1708_v23  ;;  %v1711_v6 = vmul.f32 %v12230_v50, %v1709_v29 }
 0x34f   : > { %v12221_v62 = vand.u32 4294901760, %v1710_v38  ;;  %v12265_v24 = vand.u32 4294901760, %v1711_v6 }
 0x351   : > { %v12257_v39 = vsub.f32 %v1710_v38, %v12221_v62  ;;  %v12310_v59 = vsub.f32 %v1711_v6, %v12265_v24  ;;  %v12371_v6 = vsub.f32 %v12177_v55, %v12297_v42 }
 0x352   : > { %v12202_v9 = vpop.permute.xlu0 %1672  ;;  %v1681_v37 = vpop.permute.xlu1 %1680 }
 0x353   : > { %v1683_v54 = vpop.permute.xlu2 %1682  ;;  %v18649_v61 = vand.u32 4294901760, %v12257_v39 }
 0x354   : > { %v1685_v0 = vsel %vm420_vm5, %v1683_v54, %v1681_v37  ;;  %v1684_v52 = vsel %vm420_vm5, %v1681_v37, %v1683_v54  ;;  %v12345_v37 = vld [vmem:[%s18616_s4 + $0x58] sm:$0xff] }
 0x355   : > { %v1686_v8 = vmul.f32 %v12270_v32, %v1685_v0  ;;  %18838 = vst [vmem:[#allocation21_spill] sm:$0xff] %v12345_v37 }
 0x357   : > { %v12312_v60 = vand.u32 4294901760, %v1686_v8 }
 0x361   : > { %v1715_v3 = vpop.permute.xlu0 %1714  ;;  %v1723_v27 = vpop.permute.xlu1 %1722 }
 0x362   : > { %v1716_v13 = vsel %vm468_vm1, %v1713_v20, %v1715_v3  ;;  %v1724_v41 = vsel %vm480_vm2, %v1721_v35, %v1723_v27  ;;  %v1725_v22 = vsel %vm480_vm2, %v1723_v27, %v1721_v35  ;;  %v1717_v51 = vsel %vm468_vm1, %v1715_v3, %v1713_v20 }
 0x363   : > { %v1718_v1 = vmul.f32 %v12236_v57, %v1716_v13  ;;  %v1726_v7 = vmul.f32 %v12244_v17, %v1724_v41  ;;  %v1727_v45 = vmul.f32 %v12262_v49, %v1725_v22  ;;  %v1719_v63 = vmul.f32 %v12281_v48, %v1717_v51  ;;  %v12445_v41 = vld [vmem:[%s18616_s4 + $0x18] sm:$0xff] }
 0x364   : > { %v1787_v3 = vsub.f32 %v12257_v39, %v18649_v61  ;;  %v12366_v13 = vsub.f32 %v1686_v8, %v12312_v60  ;;  %v12388_v8 = vld [vmem:[%s18616_s4 + $0x28] sm:$0xff]  ;;  %v12417_v61 = vld [vmem:[%s18616_s4 + $0x10] sm:$0xff]  ;;  %18843 = vst [vmem:[#allocation24_spill] sm:$0xff] %v12445_v41 }
 0x365   : > { %v12252_v18 = vand.u32 4294901760, %v1718_v1  ;;  %v12254_v36 = vand.u32 4294901760, %v1726_v7  ;;  %v12299_v46 = vand.u32 4294901760, %v1727_v45  ;;  %v12329_v35 = vand.u32 4294901760, %v1719_v63  ;;  %18840 = vst [vmem:[#allocation20_spill] sm:$0xff] %v12388_v8 }
 0x366   : > { %18842 = vst [vmem:[#allocation23_spill] sm:$0xff] %v12417_v61 }
 0x367   : > { %v12274_v33 = vsub.f32 %v1726_v7, %v12254_v36  ;;  %1739 = vmatpush.msra.mxu0 %v12254_v36  ;;  %1879 = vmatpush.msra.mxu3 %v12254_v36  ;;  %v12285_v25 = vsub.f32 %v1718_v1, %v12252_v18  ;;  %v12351_v29 = vsub.f32 %v1727_v45, %v12299_v46  ;;  %v1665_v1 = vpop.permute.xlu2 %1664  ;;  %v12379_v7 = vld [vmem:[%s18616_s4 + $0x38] sm:$0xff] }
 0x368   : > { %v12374_v22 = vsub.f32 %v1719_v63, %v12329_v35  ;;  %18839 = vst [vmem:[#allocation19_spill] sm:$0xff] %v12379_v7  ;;  %v12391_v63 = vmul.f32 %v12388_v8, %v1684_v52  ;;  %v1788_v52 = vand.u32 4294901760, %v1787_v3 }
 0x369   : > { %v1691_v16 = vpop.permute.xlu0 %1690  ;;  %v1699_v28 = vpop.permute.xlu1 %1698  ;;  %1741 = vmatpush.msra.mxu0 %v12252_v18  ;;  %1840 = vmatpush.msra.mxu2 %v12274_v33  ;;  %v18651_v5 = vand.u32 4294901760, %v12274_v33 }
 0x36a   : > { %v1693_v14 = vsel %vm432_vm4, %v1691_v16, %v12200_v11  ;;  %v1700_v53 = vsel %vm444_vm3, %v1697_v43, %v1699_v28  ;;  %v1701_v34 = vsel %vm444_vm3, %v1699_v28, %v1697_v43  ;;  %1881 = vmatpush.msra.mxu3 %v12252_v18  ;;  %v18650_v43 = vand.u32 4294901760, %v12285_v25 }
 0x36b   : > { %v1694_v47 = vmul.f32 %v12317_v40, %v1693_v14  ;;  %v1702_v10 = vmul.f32 %v12323_v58, %v1700_v53  ;;  %1743 = vmatpush.msra.mxu0 %v12221_v62  ;;  %1843 = vmatpush.msra.mxu2 %v12285_v25  ;;  %v1775_v20 = vsub.f32 %v12274_v33, %v18651_v5 }
 0x36c   : > { %1883 = vmatpush.msra.mxu3 %v12221_v62  ;;  %v1692_v56 = vsel %vm432_vm4, %v12200_v11, %v1691_v16  ;;  %v1703_v23 = vmul.f32 %v12345_v37, %v1701_v34  ;;  %v1781_v11 = vsub.f32 %v12285_v25, %v18650_v43 }
 0x36d   : > { %v12340_v31 = vand.u32 4294901760, %v1694_v47  ;;  %v12348_v38 = vand.u32 4294901760, %v1702_v10  ;;  %1846 = vmatpush.msra.mxu2 %v12257_v39  ;;  %v1776_v54 = vand.u32 4294901760, %v1775_v20  ;;  %v1695_v0 = vmul.f32 %v12379_v7, %v1692_v56  ;;  %v1663_v56 = vld [vmem:[#allocation2 + $0x8] sm:$0xff] }
 0x36e   : > { %v1782_v51 = vand.u32 4294901760, %v1781_v11  ;;  %v12393_v16 = vand.u32 4294901760, %v1703_v23  ;;  %v18653_v20 = vand.u32 4294901760, %v12351_v29 }
 0x36f   : > { %1745 = vmatpush.msra.mxu0 %v12348_v38  ;;  %1885 = vmatpush.msra.mxu3 %v12348_v38  ;;  %v12363_v27 = vsub.f32 %v1702_v10, %v12348_v38  ;;  %v12383_v45 = vsub.f32 %v1694_v47, %v12340_v31  ;;  %v12422_v43 = vand.u32 4294901760, %v1695_v0 }
 0x370   : > { %1777 = vmatpush.msra.mxu1 %v1776_v54  ;;  %v12408_v54 = vld [vmem:[%s18616_s4] sm:$0xff]  ;;  %v12431_v5 = vsub.f32 %v1703_v23, %v12393_v16 }
 0x371   : > { %v1667_v28 = vpop.permute.xlu0 %1666  ;;  %v1675_v14 = vpop.permute.xlu1 %1674  ;;  %1747 = vmatpush.msra.mxu0 %v12207_v30  ;;  %1849 = vmatpush.msra.mxu2 %v12363_v27  ;;  %v18652_v53 = vand.u32 4294901760, %v12363_v27  ;;  %18841 = vst [vmem:[#allocation22_spill] sm:$0xff] %v12408_v54 }
 0x372   : > { %v1669_v47 = vsel %vm397_vm8, %v1667_v28, %v1665_v1  ;;  %v1677_v10 = vsel %vm408_vm7, %v1675_v14, %v12202_v9  ;;  %1783 = vmatpush.msra.mxu1 %v1782_v51  ;;  %v1676_v12 = vsel %vm408_vm7, %v12202_v9, %v1675_v14  ;;  %1887 = vmatpush.msra.mxu3 %v12207_v30  ;;  %v12453_v14 = vand.u32 4294901760, %v12391_v63 }
 0x373   : > { %v1670_v11 = vmul.f32 %v12408_v54, %v1669_v47  ;;  %v1678_v3 = vmul.f32 %v12417_v61, %v1677_v10  ;;  %1749 = vmatpush.msra.mxu0 %v12340_v31  ;;  %v1793_v9 = vsub.f32 %v12363_v27, %v18652_v53  ;;  %1852 = vmatpush.msra.mxu2 %v12219_v26  ;;  %v18852_v37 = vand.u32 4294901760, %v12431_v5 }
 0x374   : > { %1789 = vmatpush.msra.mxu1 %v1788_v52  ;;  %1889 = vmatpush.msra.mxu3 %v12340_v31  ;;  %v1729_v52 = vsel %vm488_vm6, %v1663_v56, 0  ;;  %v1668_v53 = vsel %vm397_vm8, %v1665_v1, %v1667_v28  ;;  %v1679_v23 = vmul.f32 %v12445_v41, %v1676_v12  ;;  %v2025_v51 = vsub.f32 %v12351_v29, %v18653_v20 }
 0x375   : > { %v12433_v10 = vand.u32 4294901760, %v1670_v11  ;;  %v12435_v34 = vand.u32 4294901760, %v1678_v3  ;;  %1751 = vmatpush.msra.mxu0 %v12312_v60  ;;  %v1794_v47 = vand.u32 4294901760, %v1793_v9  ;;  %1855 = vmatpush.msra.mxu2 %v12383_v45  ;;  %v18844_v28 = vand.u32 4294901760, %v12383_v45 }
 0x376   : > { %1891 = vmatpush.msra.mxu3 %v12312_v60  ;;  %v18845_v56 = vand.u32 4294901760, %v12366_v13  ;;  %v12467_v20 = vsub.f32 %v1695_v0, %v12422_v43  ;;  %v12476_v41 = vand.u32 4294901760, %v1729_v52  ;;  %v2026_v8 = vand.u32 4294901760, %v2025_v51 }
 0x377   : > { %v12458_v1 = vsub.f32 %v1678_v3, %v12435_v34  ;;  %v1805_v12 = vsub.f32 %v12383_v45, %v18844_v28  ;;  %1753 = vmatpush.msra.mxu0 %v12435_v34  ;;  %1795 = vmatpush.msra.mxu1 %v1794_v47  ;;  %v12471_v55 = vsub.f32 %v1670_v11, %v12433_v10  ;;  %v18846_v3 = vand.u32 4294901760, %v12374_v22  ;;  %v12481_v28 = vld [vmem:[%s18616_s4 + $0x8] sm:$0xff] }
 0x378   : > { %v1811_v9 = vsub.f32 %v12366_v13, %v18845_v56  ;;  %18847 = vst [vmem:[#allocation25_spill] sm:$0xff] %v12481_v28  ;;  %v1671_v0 = vmul.f32 %v12481_v28, %v1668_v53  ;;  %1858 = vmatpush.msra.mxu2 %v12366_v13  ;;  %1893 = vmatpush.msra.mxu3 %v12435_v34  ;;  %v12488_v56 = vand.u32 4294901760, %v1679_v23  ;;  %v18849_v11 = vand.u32 4294901760, %v12310_v59 }
 0x379   : > { %v2031_v2 = vsub.f32 %v12374_v22, %v18846_v3  ;;  %1755 = vmatpush.msra.mxu0 %v12433_v10  ;;  %v18848_v3 = vand.u32 4294901760, %v12294_v19  ;;  %v12497_v28 = vsub.f32 %v12391_v63, %v12453_v14  ;;  %v1806_v47 = vand.u32 4294901760, %v1805_v12 }
 0x37a   : > { %1861 = vmatpush.msra.mxu2 %v12458_v1  ;;  %1895 = vmatpush.msra.mxu3 %v12433_v10  ;;  %v2037_v61 = vsub.f32 %v12310_v59, %v18849_v11  ;;  %v18850_v19 = vand.u32 4294901760, %v12458_v1  ;;  %v1812_v63 = vand.u32 4294901760, %v1811_v9  ;;  %v2054_v54 = vand.u32 4294901760, %v12467_v20 }
 0x37b   : > { %1801 = vmatpush.msra.mxu1 %v18848_v3  ;;  %v18851_v3 = vand.u32 4294901760, %v12274_v33  ;;  %v2032_v53 = vand.u32 4294901760, %v2031_v2  ;;  %v12511_v7 = vsub.f32 %v1729_v52, %v12476_v41  ;;  %v12513_v12 = vand.u32 4294901760, %v1671_v0 }
 0x37c   : > { %v1817_v51 = vsub.f32 %v12458_v1, %v18850_v19  ;;  %2027 = vmatpush.msrb.mxu3 %v2026_v8  ;;  %1864 = vmatpush.msra.mxu2 %v12471_v55  ;;  %v2043_v19 = vsub.f32 %v12431_v5, %v18852_v37  ;;  %v18853_v33 = vand.u32 4294901760, %v12471_v55  ;;  %v12523_v8 = vsub.f32 %v1679_v23, %v12488_v56 }
 0x37d   : > { %1913 = vmatpush.msrb.mxu0 %v18851_v3  ;;  %1807 = vmatpush.msra.mxu1 %v1806_v47  ;;  %v18854_v52 = vand.u32 4294901760, %v12285_v25  ;;  %v2038_v9 = vand.u32 4294901760, %v2037_v61  ;;  %v18855_v47 = vand.u32 4294901760, %v12371_v6  ;;  %v2060_v37 = vand.u32 4294901760, %v12497_v28 }
 0x37e   : > { %v1818_v11 = vand.u32 4294901760, %v1817_v51  ;;  %v1823_v2 = vsub.f32 %v12471_v55, %v18853_v33  ;;  %1989 = vmatpush.msrb.mxu2 %v12299_v46  ;;  %2033 = vmatpush.msrb.mxu3 %v2032_v53  ;;  %v18856_v3 = vand.u32 4294901760, %v12257_v39  ;;  %v12536_v23 = vand.u32 4294901760, %v12511_v7 }
 0x37f   : > { %1917 = vmatpush.msrb.mxu0 %v18854_v52  ;;  %1813 = vmatpush.msra.mxu1 %v1812_v63  ;;  %v2049_v51 = vsub.f32 %v12371_v6, %v18855_v47  ;;  %v12539_v25 = vsub.f32 %v1671_v0, %v12513_v12  ;;  %v2044_v61 = vand.u32 4294901760, %v2043_v19  ;;  %v2055_v63 = vsub.f32 %v12467_v20, %v2054_v54 }
 0x380   : > { %1991 = vmatpush.msrb.mxu2 %v12329_v35  ;;  %2039 = vmatpush.msrb.mxu3 %v2038_v9  ;;  %v1824_v53 = vand.u32 4294901760, %v1823_v2  ;;  %v18857_v33 = vand.u32 4294901760, %v12363_v27  ;;  %v2066_v39 = vand.u32 4294901760, %v12523_v8  ;;  %v2061_v0 = vsub.f32 %v12497_v28, %v2060_v37 }
 0x381   : > { %1921 = vmatpush.msrb.mxu0 %v18856_v3  ;;  %1819 = vmatpush.msra.mxu1 %v1818_v11  ;;  %v2050_v52 = vand.u32 4294901760, %v2049_v51  ;;  %v18858_v11 = vand.u32 4294901760, %v12219_v26  ;;  %v1759_v27 = vsub.f32 %v12511_v7, %v12536_v23  ;;  %v2056_v19 = vand.u32 4294901760, %v2055_v63 }
 0x382   : > { %1993 = vmatpush.msrb.mxu2 %v12265_v24  ;;  %2045 = vmatpush.msrb.mxu3 %v2044_v61  ;;  %v2072_v2 = vand.u32 4294901760, %v12539_v25  ;;  %v18859_v9 = vand.u32 4294901760, %v12383_v45  ;;  %v2067_v26 = vsub.f32 %v12523_v8, %v2066_v39  ;;  %v18860_v47 = vand.u32 4294901760, %v12366_v13  ;;  %v10563_v61 = vld [vmem:[%s18615_s3 + $0x18] sm:$0xff] }
 0x383   : > { %1925 = vmatpush.msrb.mxu0 %v18857_v33  ;;  %1825 = vmatpush.msra.mxu1 %v1824_v53  ;;  %v1760_v51 = vand.u32 4294901760, %v1759_v27  ;;  %v18861_v45 = vand.u32 4294901760, %v12458_v1 }
 0x384   : > { %1995 = vmatpush.msrb.mxu2 %v12393_v16  ;;  %2051 = vmatpush.msrb.mxu3 %v2050_v52  ;;  %v2068_v3 = vand.u32 4294901760, %v2067_v26 }
 0x385   : > { %1929 = vmatpush.msrb.mxu0 %v18858_v11  ;;  %1959 = vmatpush.msrb.mxu1 %v12254_v36  ;;  %v2062_v36 = vand.u32 4294901760, %v2061_v0 }
 0x386   : > { %1997 = vmatpush.msrb.mxu2 %v12297_v42  ;;  %2057 = vmatpush.msrb.mxu3 %v2056_v19 }
 0x387   : > { %1933 = vmatpush.msrb.mxu0 %v18859_v9  ;;  %1961 = vmatpush.msrb.mxu1 %v12252_v18  ;;  %v2073_v18 = vsub.f32 %v12539_v25, %v2072_v2 }
 0x388   : > { %1999 = vmatpush.msrb.mxu2 %v12422_v43  ;;  %2063 = vmatpush.msrb.mxu3 %v2062_v36 }
 0x389   : > { %1937 = vmatpush.msrb.mxu0 %v18860_v47  ;;  %1963 = vmatpush.msrb.mxu1 %v12221_v62  ;;  %v18862_v62 = vand.u32 4294901760, %v12471_v55  ;;  %v2074_v13 = vand.u32 4294901760, %v2073_v18  ;;  %v18863_v55 = vand.u32 4294901760, %v12351_v29 }
 0x38a   : > { %1867 = vmatmul.f32.vlgmr.msra.gmra.mxu2 %v12511_v7  ;;  %2069 = vmatpush.msrb.mxu3 %v2068_v3 }
 0x38b   : > { %1941 = vmatpush.msrb.mxu0 %v18861_v45  ;;  %1965 = vmatpush.msrb.mxu1 %v12348_v38 }
 0x38c   : > { %2001 = vmatpush.msrb.mxu2 %v12453_v14  ;;  %1761 = vmatmul.f32.vlgmr.msra.gmra.mxu0 %v1760_v51 }
 0x38d   : > { %1899 = vmatmul.f32.vlgmr.msra.gmra.mxu3 %v12536_v23  ;;  %1945 = vmatpush.msrb.mxu0 %v18862_v62  ;;  %v2243_v62 = vld [vmem:[#allocation5 + $0x10] sm:$0xff] }
 0x38e   : > { %1967 = vmatpush.msrb.mxu1 %v12207_v30  ;;  %2003 = vmatpush.msrb.mxu2 %v12488_v56  ;;  %v18864_v30 = vand.u32 4294901760, %v12374_v22 }
 0x38f   : > { %2075 = vmatpush.msrb.mxu3 %v2074_v13  ;;  %1827 = vmatmul.f32.vlgmr.msra.gmra.mxu1 %v12476_v41 }
 0x390   : > { %2090 = vmatpush.msra.mxu0 %v12351_v29  ;;  %1969 = vmatpush.msrb.mxu1 %v12340_v31  ;;  %v18865_v31 = vand.u32 4294901760, %v12310_v59 }
 0x391   : > { %2209 = vmatpush.msra.mxu3 %v12299_v46  ;;  %2005 = vmatpush.msrb.mxu2 %v12513_v12 }
 0x392   : > { %2093 = vmatpush.msra.mxu0 %v12374_v22  ;;  %1971 = vmatpush.msrb.mxu1 %v12312_v60  ;;  %v18866_v60 = vand.u32 4294901760, %v12431_v5 }
 0x393   : > { %2163 = vmatpush.msra.mxu2 %v18863_v55  ;;  %2211 = vmatpush.msra.mxu3 %v12329_v35 }
 0x394   : > { %2096 = vmatpush.msra.mxu0 %v12310_v59  ;;  %1973 = vmatpush.msrb.mxu1 %v12435_v34  ;;  %v18867_v59 = vand.u32 4294901760, %v12371_v6 }
 0x395   : > { %2167 = vmatpush.msra.mxu2 %v18864_v30  ;;  %2213 = vmatpush.msra.mxu3 %v12265_v24 }
 0x396   : > { %1947 = vmatmul.f32.vlgmr.msrb.gmra.mxu0 %v12476_v41  ;;  %1975 = vmatpush.msrb.mxu1 %v12433_v10 }
 0x397   : > { %2171 = vmatpush.msra.mxu2 %v18865_v31  ;;  %2099 = vmatpush.msra.mxu0 %v12431_v5 }
 0x398   : > { %2215 = vmatpush.msra.mxu3 %v12393_v16  ;;  %1977 = vmatmul.f32.vlgmr.msrb.gmra.mxu1 %v12476_v41 }
 0x399   : > { %2175 = vmatpush.msra.mxu2 %v18866_v60  ;;  %2102 = vmatpush.msra.mxu0 %v12371_v6 }
 0x39a   : > { %2129 = vmatpush.msra.mxu1 %v12299_v46  ;;  %2217 = vmatpush.msra.mxu3 %v12297_v42 }
 0x39b   : > { %2105 = vmatpush.msra.mxu0 %v12467_v20  ;;  %2179 = vmatpush.msra.mxu2 %v18867_v59 }
 0x39c   : > { %2131 = vmatpush.msra.mxu1 %v12329_v35  ;;  %2219 = vmatpush.msra.mxu3 %v12422_v43 }
 0x39d   : > { %2108 = vmatpush.msra.mxu0 %v12497_v28  ;;  %2183 = vmatpush.msra.mxu2 %v2054_v54 }
 0x39e   : > { %2133 = vmatpush.msra.mxu1 %v12265_v24  ;;  %2221 = vmatpush.msra.mxu3 %v12453_v14 }
 0x39f   : > { %2011 = vmatmul.f32.vlgmr.msrb.gmra.mxu2 %v1760_v51  ;;  %2077 = vmatmul.f32.vlgmr.msrb.gmra.mxu3 %v12476_v41 }
 0x3a0   : > { %2111 = vmatpush.msra.mxu0 %v12523_v8  ;;  %2135 = vmatpush.msra.mxu1 %v12393_v16 }
 0x3a1   : > { %2187 = vmatpush.msra.mxu2 %v2060_v37  ;;  %2223 = vmatpush.msra.mxu3 %v12488_v56 }
 0x3a2   : > { %2114 = vmatpush.msra.mxu0 %v12539_v25  ;;  %2137 = vmatpush.msra.mxu1 %v12297_v42 }
 0x3a3   : > { %2191 = vmatpush.msra.mxu2 %v2066_v39  ;;  %2225 = vmatpush.msra.mxu3 %v12513_v12 }
 0x3a4   : > { %2139 = vmatpush.msra.mxu1 %v12422_v43  ;;  %2117 = vmatmul.f32.vlgmr.msra.gmra.mxu0 %v12511_v7 }
 0x3a5   : > { %2195 = vmatpush.msra.mxu2 %v2072_v2 }
 0x3a6   : > { %2141 = vmatpush.msra.mxu1 %v12453_v14 }
 0x3a7   : > { %2197 = vmatmul.f32.vlgmr.msra.gmra.mxu2 %v12476_v41  ;;  %2227 = vmatmul.f32.vlgmr.msra.gmra.mxu3 %v12476_v41  ;;  %v2238_v41 = vpop.permute.xlu1 %2237 }
 0x3a8   : > { %2143 = vmatpush.msra.mxu1 %v12488_v56 }
 0x3aa   : > { %2145 = vmatpush.msra.mxu1 %v12513_v12 }
 0x3ab   : > { %2149 = vmatmul.f32.vlgmr.msra.gmra.mxu1 %v12536_v23 }
 0x409   : > { %v1762_v24 = vpop.f32.mrf.mxu0 }
 0x40c   : > { %v1828_v5 = vpop.f32.mrf.mxu1 }
 0x40d   : > { %v1829_v42 = vadd.f32 %v1828_v5, %v1762_v24  ;;  %v1868_v46 = vpop.f32.mrf.mxu2  ;;  %v2323_v24 = vsel %vm488_vm6, %v2243_v62, 0 }
 0x40f   : > { %v1869_v35 = vadd.f32 %v1868_v46, %v1829_v42 }
 0x410   : > { %v1900_v43 = vpop.f32.mrf.mxu3 }
 0x411   : > { %v1901_v38 = vadd.f32 %v1900_v43, %v1869_v35  ;;  %v12731_v43 = vand.u32 4294901760, %v2323_v24 }
 0x413   : > { %v1948_v29 = vpop.f32.mrf.mxu0 }
 0x414   : > { %v1949_v6 = vadd.f32 %v1948_v29, %v1901_v38 }
 0x415   : > { %v1978_v22 = vpop.f32.mrf.mxu1 }
 0x416   : > { %v1979_v7 = vadd.f32 %v1978_v22, %v1949_v6 }
 0x418   : > { %v2231_v16 = vadd.f32 %v1979_v7, %v11728_v15 }
 0x41a   : > { %v12641_v34 = vadd.f32 %v2238_v41, %v2231_v16 }
 0x41c   : > { %2285 = vrot.lane.b32.xlu0 %v12641_v34, %s11062_s26  ;;  %2293 = vrot.lane.b32.xlu1 %v12641_v34, %s11060_s22  ;;  %v12692_v9 = vand.u32 4294901760, %v12641_v34 }
 0x41d   : > { %2301 = vrot.lane.b32.xlu2 %v12641_v34, %s11061_s25 }
 0x41e   : > { %v12700_v51 = vsub.f32 %v12641_v34, %v12692_v9 }
 0x420   : > { %v2403_v59 = vand.u32 4294901760, %v12700_v51 }
 0x421   : > { %v2118_v10 = vpop.f32.mrf.mxu0 }
 0x422   : > { %v2012_v20 = vpop.f32.mrf.mxu2  ;;  %v2078_v54 = vpop.f32.mrf.mxu3  ;;  %v12740_v29 = vsub.f32 %v12700_v51, %v2403_v59 }
 0x423   : > { %v2079_v14 = vadd.f32 %v2078_v54, %v2012_v20 }
 0x424   : > { %2261 = vrot.lane.b32.xlu0 %v12641_v34, %s11065_s15  ;;  %2269 = vrot.lane.b32.xlu1 %v12641_v34, %s11064_s23 }
 0x425   : > { %2277 = vrot.lane.b32.xlu2 %v12641_v34, %s18822_s14  ;;  %v2119_v15 = vadd.f32 %v2118_v10, %v2079_v14 }
 0x428   : > { %v2150_v1 = vpop.f32.mrf.mxu1 }
 0x429   : > { %v2151_v28 = vadd.f32 %v2150_v1, %v2119_v15  ;;  %v2244_v15 = vld [vmem:[#allocation5 + $0x18] sm:$0xff] }
 0x42a   : > { %v2198_v56 = vpop.f32.mrf.mxu2  ;;  %v2228_v12 = vpop.f32.mrf.mxu3 }
 0x42b   : > { %v2199_v8 = vadd.f32 %v2198_v56, %v2151_v28 }
 0x42d   : > { %v2229_v37 = vadd.f32 %v2228_v12, %v2199_v8  ;;  %2253 = vrot.lane.b32.xlu2 %v12641_v34, %s18823_s11  ;;  %v12768_v12 = vsub.f32 %v2323_v24, %v12731_v43 }
 0x42f   : > { %v2232_v23 = vadd.f32 %v2229_v37, %v11744_v44  ;;  %v10562_v44 = vld [vmem:[%s18615_s3 + $0x10] sm:$0xff] }
 0x431   : > { %v12658_v25 = vadd.f32 %v2238_v41, %v2232_v23 }
 0x433   : > { %2303 = vrot.lane.b32.xlu0 %v12658_v25, %s11061_s25  ;;  %2287 = vrot.lane.b32.xlu1 %v12658_v25, %s11062_s26 }
 0x435   : > { %2295 = vrot.lane.b32.xlu2 %v12658_v25, %s11060_s22 }
 0x43b   : > { %2279 = vrot.lane.b32.xlu0 %v12658_v25, %s18822_s14  ;;  %2263 = vrot.lane.b32.xlu1 %v12658_v25, %s11065_s15 }
 0x43d   : > { %2271 = vrot.lane.b32.xlu2 %v12658_v25, %s11064_s23 }
 0x443   : > { %2255 = vrot.lane.b32.xlu0 %v12658_v25, %s18823_s11  ;;  %2245 = vrot.lane.b32.xlu1 %v12641_v34, %s18824_s19 }
 0x445   : > { %2247 = vrot.lane.b32.xlu2 %v12658_v25, %s18824_s19 }
 0x44b   : > { %2314 = vperm.xlu0 %10678, %v10562_v44   ;;  %2319 = vperm.xlu1 %10677, %v10563_v61   ;;  %v18868_v44 = vld [vmem:[#allocation21_spill] sm:$0xff] }
 0x477   : > { %v2302_v53 = vpop.permute.xlu2 %2301 }
 0x47f   : > { %v2278_v63 = vpop.permute.xlu2 %2277 }
 0x487   : > { %v12684_v33 = vpop.permute.xlu2 %2253 }
 0x48e   : > { %v2286_v39 = vpop.permute.xlu0 %2285  ;;  %v2294_v52 = vpop.permute.xlu1 %2293 }
 0x48f   : > { %v2296_v0 = vpop.permute.xlu2 %2295 }
 0x490   : > { %v2297_v11 = vsel %vm468_vm1, %v2294_v52, %v2296_v0  ;;  %v2298_v26 = vsel %vm468_vm1, %v2296_v0, %v2294_v52  ;;  %v2405_v0 = vand.u32 4294901760, %v12740_v29 }
 0x491   : > { %v2299_v2 = vmul.f32 %v12236_v57, %v2297_v11  ;;  %v2300_v18 = vmul.f32 %v12281_v48, %v2298_v26 }
 0x493   : > { %v12696_v36 = vand.u32 4294901760, %v2299_v2  ;;  %v12718_v5 = vand.u32 4294901760, %v2300_v18 }
 0x495   : > { %v12714_v48 = vsub.f32 %v2299_v2, %v12696_v36  ;;  %v12803_v2 = vand.u32 4294901760, %v12768_v12 }
 0x496   : > { %v12688_v27 = vpop.permute.xlu0 %2261  ;;  %v2270_v19 = vpop.permute.xlu1 %2269 }
 0x497   : > { %v2272_v47 = vpop.permute.xlu2 %2271 }
 0x498   : > { %v2274_v60 = vsel %vm432_vm4, %v2272_v47, %v2270_v19  ;;  %v2273_v20 = vsel %vm432_vm4, %v2270_v19, %v2272_v47  ;;  %v18869_v47 = vld [vmem:[#allocation19_spill] sm:$0xff] }
 0x4a5   : > { %v2304_v45 = vpop.permute.xlu0 %2303  ;;  %v2288_v3 = vpop.permute.xlu1 %2287 }
 0x4a6   : > { %v2305_v57 = vsel %vm480_vm2, %v2302_v53, %v2304_v45  ;;  %v2306_v13 = vsel %vm480_vm2, %v2304_v45, %v2302_v53  ;;  %v2289_v55 = vsel %vm456_vm0, %v2286_v39, %v2288_v3  ;;  %v2290_v22 = vsel %vm456_vm0, %v2288_v3, %v2286_v39  ;;  %v2248_v45 = vpop.permute.xlu2 %2247 }
 0x4a7   : > { %v2307_v30 = vmul.f32 %v12244_v17, %v2305_v57  ;;  %v2291_v31 = vmul.f32 %v12212_v21, %v2289_v55  ;;  %v2308_v42 = vmul.f32 %v12262_v49, %v2306_v13  ;;  %v2275_v21 = vmul.f32 %v12317_v40, %v2274_v60 }
 0x4a8   : > { %v2385_v49 = vand.u32 4294901760, %v12714_v48  ;;  %v12743_v40 = vsub.f32 %v2300_v18, %v12718_v5  ;;  %v2292_v8 = vmul.f32 %v12230_v50, %v2290_v22  ;;  %v2326_v53 = vsel %vm488_vm6, %v2244_v15, 0 }
 0x4a9   : > { %v12721_v46 = vand.u32 4294901760, %v2307_v30  ;;  %v12723_v35 = vand.u32 4294901760, %v2291_v31  ;;  %v12745_v6 = vand.u32 4294901760, %v2308_v42  ;;  %v12762_v1 = vand.u32 4294901760, %v2275_v21 }
 0x4aa   : > { %v18663_v26 = vand.u32 4294901760, %v12743_v40  ;;  %v12807_v18 = vmul.f32 %v18869_v47, %v2273_v20  ;;  %v12809_v3 = vand.u32 4294901760, %v2292_v8  ;;  %v12811_v57 = vand.u32 4294901760, %v2326_v53  ;;  %v18871_v20 = vld [vmem:[#allocation22_spill] sm:$0xff] }
 0x4ab   : > { %v12727_v17 = vsub.f32 %v2307_v30, %v12721_v46  ;;  %2336 = vmatpush.msrb.mxu0 %v12721_v46  ;;  %2493 = vmatpush.msrb.mxu3 %v12721_v46  ;;  %v12734_v38 = vsub.f32 %v2291_v31, %v12723_v35  ;;  %v12781_v23 = vsub.f32 %v2308_v42, %v12745_v6 }
 0x4ac   : > { %v12800_v19 = vsub.f32 %v2275_v21, %v12762_v1  ;;  %v12837_v15 = vsub.f32 %v2292_v8, %v12809_v3 }
 0x4ad   : > { %v2280_v7 = vpop.permute.xlu0 %2279  ;;  %v2264_v16 = vpop.permute.xlu1 %2263  ;;  %2338 = vmatpush.msrb.mxu0 %v12696_v36  ;;  %2449 = vmatpush.msrb.mxu2 %v12727_v17  ;;  %v2379_v41 = vand.u32 4294901760, %v12727_v17  ;;  %v18664_v24 = vand.u32 4294901760, %v12781_v23 }
 0x4ae   : > { %v2281_v54 = vsel %vm444_vm3, %v2278_v63, %v2280_v7  ;;  %v2282_v14 = vsel %vm444_vm3, %v2280_v7, %v2278_v63  ;;  %v2266_v10 = vsel %vm420_vm5, %v2264_v16, %v12688_v27  ;;  %2495 = vmatpush.msrb.mxu3 %v12696_v36  ;;  %v2265_v55 = vsel %vm420_vm5, %v12688_v27, %v2264_v16  ;;  %v18870_v7 = vld [vmem:[#allocation23_spill] sm:$0xff] }
 0x4af   : > { %v2283_v28 = vmul.f32 %v12323_v58, %v2281_v54  ;;  %v2267_v56 = vmul.f32 %v12270_v32, %v2266_v10  ;;  %2340 = vmatpush.msrb.mxu0 %v12723_v35  ;;  %2452 = vmatpush.msrb.mxu2 %v12714_v48  ;;  %v2380_v37 = vsub.f32 %v12727_v17, %v2379_v41  ;;  %v2391_v32 = vand.u32 4294901760, %v12734_v38 }
 0x4b0   : > { %2497 = vmatpush.msrb.mxu3 %v12723_v35  ;;  %v2386_v58 = vsub.f32 %v12714_v48, %v2385_v49  ;;  %v2284_v61 = vmul.f32 %v18868_v44, %v2282_v14  ;;  %v2356_v14 = vsub.f32 %v12768_v12, %v12803_v2  ;;  %v18665_v10 = vand.u32 4294901760, %v12800_v19 }
 0x4b1   : > { %v12784_v50 = vand.u32 4294901760, %v2283_v28  ;;  %v12787_v63 = vand.u32 4294901760, %v2267_v56  ;;  %2455 = vmatpush.msrb.mxu2 %v12734_v38  ;;  %v2381_v39 = vand.u32 4294901760, %v2380_v37  ;;  %v2392_v52 = vsub.f32 %v12734_v38, %v2391_v32 }
 0x4b2   : > { %v2387_v62 = vand.u32 4294901760, %v2386_v58  ;;  %v12813_v13 = vand.u32 4294901760, %v2284_v61  ;;  %v12847_v37 = vand.u32 4294901760, %v12658_v25  ;;  %v18872_v58 = vld [vmem:[#allocation20_spill] sm:$0xff]  ;;  %v2661_v8 = vsub.f32 %v12781_v23, %v18664_v24 }
 0x4b3   : > { %2342 = vmatpush.msrb.mxu0 %v12784_v50  ;;  %2499 = vmatpush.msrb.mxu3 %v12784_v50  ;;  %v12797_v11 = vsub.f32 %v2283_v28, %v12784_v50  ;;  %v2393_v22 = vand.u32 4294901760, %v2392_v52  ;;  %v12828_v27 = vsub.f32 %v2267_v56, %v12787_v63  ;;  %v12844_v56 = vsub.f32 %v2326_v53, %v12811_v57 }
 0x4b4   : > { %2382 = vmatpush.msrb.mxu1 %v2381_v39  ;;  %v2268_v44 = vmul.f32 %v18872_v58, %v2265_v55  ;;  %v12860_v53 = vsub.f32 %v2284_v61, %v12813_v13  ;;  %v2410_v61 = vsub.f32 %v12800_v19, %v18665_v10 }
 0x4b5   : > { %v2256_v30 = vpop.permute.xlu0 %2255  ;;  %v2246_v31 = vpop.permute.xlu1 %2245  ;;  %2344 = vmatpush.msrb.mxu0 %v12692_v9  ;;  %2458 = vmatpush.msrb.mxu2 %v12797_v11  ;;  %v2397_v60 = vand.u32 4294901760, %v12797_v11  ;;  %v2415_v55 = vand.u32 4294901760, %v12828_v27 }
 0x4b6   : > { %v2258_v42 = vsel %vm408_vm7, %v2256_v30, %v12684_v33  ;;  %v2250_v21 = vsel %vm397_vm8, %v2248_v45, %v2246_v31  ;;  %2388 = vmatpush.msrb.mxu1 %v2387_v62  ;;  %2501 = vmatpush.msrb.mxu3 %v12692_v9  ;;  %v2257_v47 = vsel %vm408_vm7, %v12684_v33, %v2256_v30  ;;  %v2411_v24 = vand.u32 4294901760, %v2410_v61 }
 0x4b7   : > { %v2259_v16 = vmul.f32 %v18870_v7, %v2258_v42  ;;  %v2251_v54 = vmul.f32 %v18871_v20, %v2250_v21  ;;  %2346 = vmatpush.msrb.mxu0 %v12762_v1  ;;  %v2398_v28 = vsub.f32 %v12797_v11, %v2397_v60  ;;  %2461 = vmatpush.msrb.mxu2 %v12700_v51  ;;  %v12868_v42 = vand.u32 4294901760, %v12807_v18  ;;  %v18873_v20 = vld [vmem:[#allocation24_spill] sm:$0xff] }
 0x4b8   : > { %2394 = vmatpush.msrb.mxu1 %v2393_v22  ;;  %2503 = vmatpush.msrb.mxu3 %v12762_v1  ;;  %v2667_v33 = vsub.f32 %v12743_v40, %v18663_v26  ;;  %v2249_v30 = vsel %vm397_vm8, %v2246_v31, %v2248_v45  ;;  %v12884_v22 = vand.u32 4294901760, %v2356_v14  ;;  %v12895_v45 = vand.u32 4294901760, %v12844_v56 }
 0x4b9   : > { %v12850_v39 = vand.u32 4294901760, %v2259_v16  ;;  %v12852_v52 = vand.u32 4294901760, %v2251_v54  ;;  %2348 = vmatpush.msrb.mxu0 %v12787_v63  ;;  %v2399_v62 = vand.u32 4294901760, %v2398_v28  ;;  %2464 = vmatpush.msrb.mxu2 %v12800_v19  ;;  %v2260_v28 = vmul.f32 %v18873_v20, %v2257_v47  ;;  %v18874_v20 = vld [vmem:[#allocation25_spill] sm:$0xff] }
 0x4ba   : > { %2505 = vmatpush.msrb.mxu3 %v12787_v63  ;;  %v12899_v31 = vsub.f32 %v12658_v25, %v12847_v37  ;;  %v12901_v14 = vand.u32 4294901760, %v2268_v44  ;;  %v2416_v47 = vsub.f32 %v12828_v27, %v2415_v55  ;;  %v2252_v26 = vmul.f32 %v18874_v20, %v2249_v30 }
 0x4bb   : > { %v12873_v21 = vsub.f32 %v2259_v16, %v12850_v39  ;;  %2350 = vmatpush.msrb.mxu0 %v12850_v39  ;;  %2400 = vmatpush.msrb.mxu1 %v2399_v62  ;;  %v12887_v7 = vsub.f32 %v2251_v54, %v12852_v52  ;;  %v18667_v16 = vand.u32 4294901760, %v12837_v15  ;;  %v2662_v54 = vand.u32 4294901760, %v2661_v8 }
 0x4bc   : > { %2467 = vmatpush.msrb.mxu2 %v12828_v27  ;;  %2507 = vmatpush.msrb.mxu3 %v12850_v39  ;;  %v2678_v62 = vand.u32 4294901760, %v12860_v53  ;;  %v2668_v8 = vand.u32 4294901760, %v2667_v33  ;;  %v12925_v20 = vand.u32 4294901760, %v2260_v28  ;;  %v2364_v61 = vsub.f32 %v12844_v56, %v12895_v45 }
 0x4bd   : > { %v18666_v58 = vand.u32 4294901760, %v12873_v21  ;;  %2352 = vmatpush.msrb.mxu0 %v12852_v52  ;;  %2406 = vmatpush.msrb.mxu1 %v2405_v0  ;;  %v2427_v29 = vand.u32 4294901760, %v12887_v7  ;;  %v12919_v0 = vsub.f32 %v12807_v18, %v12868_v42  ;;  %v2673_v30 = vsub.f32 %v12837_v15, %v18667_v16 }
 0x4be   : > { %2470 = vmatpush.msrb.mxu2 %v12873_v21  ;;  %2509 = vmatpush.msrb.mxu3 %v12852_v52  ;;  %v2684_v18 = vand.u32 4294901760, %v12899_v31  ;;  %v2417_v33 = vand.u32 4294901760, %v2416_v47  ;;  %v2679_v16 = vsub.f32 %v12860_v53, %v2678_v62  ;;  %v12939_v17 = vand.u32 4294901760, %v2252_v26 }
 0x4bf   : > { %v2422_v10 = vsub.f32 %v12873_v21, %v18666_v58  ;;  %2358 = vmatmul.f32.vlgmr.msrb.gmra.mxu0 %v12884_v22  ;;  %2412 = vmatpush.msrb.mxu1 %v2411_v24  ;;  %v12933_v58 = vsub.f32 %v2268_v44, %v12901_v14  ;;  %v2674_v24 = vand.u32 4294901760, %v2673_v30  ;;  %v12950_v44 = vsub.f32 %v2260_v28, %v12925_v20 }
 0x4c0   : > { %2663 = vmatpush.msra.mxu3 %v2662_v54  ;;  %2533 = vmatpush.msra.mxu0 %v2379_v41  ;;  %v2428_v41 = vsub.f32 %v12887_v7, %v2427_v29  ;;  %v12955_v48 = vand.u32 4294901760, %v2364_v61  ;;  %v2685_v47 = vsub.f32 %v12899_v31, %v2684_v18  ;;  %v12962_v30 = vsub.f32 %v2252_v26, %v12939_v17 }
 0x4c1   : > { %2473 = vmatpush.msrb.mxu2 %v12887_v7  ;;  %v2423_v54 = vand.u32 4294901760, %v2422_v10  ;;  %2418 = vmatpush.msrb.mxu1 %v2417_v33  ;;  %v2690_v10 = vand.u32 4294901760, %v12919_v0  ;;  %v18875_v28 = vand.u32 4294901760, %v12800_v19 }
 0x4c2   : > { %2669 = vmatpush.msra.mxu3 %v2668_v8  ;;  %2537 = vmatpush.msra.mxu0 %v2385_v49  ;;  %v2680_v49 = vand.u32 4294901760, %v2679_v16  ;;  %v2696_v8 = vand.u32 4294901760, %v12933_v58  ;;  %v2429_v38 = vand.u32 4294901760, %v2428_v41  ;;  %v2702_v16 = vand.u32 4294901760, %v12950_v44 }
 0x4c3   : > { %2617 = vmatpush.msra.mxu2 %v12745_v6  ;;  %2424 = vmatpush.msrb.mxu1 %v2423_v54  ;;  %v2686_v11 = vand.u32 4294901760, %v2685_v47 }
 0x4c4   : > { %2476 = vmatmul.f32.vlgmr.msrb.gmra.mxu2 %v12768_v12  ;;  %2541 = vmatpush.msra.mxu0 %v2391_v32  ;;  %v2691_v32 = vsub.f32 %v12919_v0, %v2690_v10  ;;  %v2697_v26 = vsub.f32 %v12933_v58, %v2696_v8  ;;  %v2703_v51 = vsub.f32 %v12950_v44, %v2702_v16 }
 0x4c5   : > { %2619 = vmatpush.msra.mxu2 %v12718_v5  ;;  %2675 = vmatpush.msra.mxu3 %v2674_v24 }
 0x4c6   : > { %2513 = vmatmul.f32.vlgmr.msrb.gmra.mxu3 %v12803_v2  ;;  %2545 = vmatpush.msra.mxu0 %v2397_v60  ;;  %v2708_v60 = vand.u32 4294901760, %v12962_v30  ;;  %v2692_v61 = vand.u32 4294901760, %v2691_v32  ;;  %v2704_v19 = vand.u32 4294901760, %v2703_v51 }
 0x4c7   : > { %2621 = vmatpush.msra.mxu2 %v12809_v3  ;;  %2681 = vmatpush.msra.mxu3 %v2680_v49 }
 0x4c8   : > { %2430 = vmatpush.msrb.mxu1 %v2429_v38  ;;  %2366 = vmatmul.f32.gmra.mxu0 %v12955_v48  ;;  %v18880_v38 = vld [vmem:[#allocation18_spill] sm:$0xff] }
 0x4c9   : > { %2432 = vmatmul.f32.vlgmr.msrb.gmra.mxu1 %v12731_v43  ;;  %2549 = vmatpush.msra.mxu0 %v2403_v59  ;;  %v2698_v59 = vand.u32 4294901760, %v2697_v26 }
 0x4ca   : > { %2583 = vmatpush.msra.mxu1 %v12721_v46  ;;  %2623 = vmatpush.msra.mxu2 %v12813_v13  ;;  %v2709_v46 = vsub.f32 %v12962_v30, %v2708_v60 }
 0x4cb   : > { %2687 = vmatpush.msra.mxu3 %v2686_v11  ;;  %2553 = vmatpush.msra.mxu0 %v18875_v28 }
 0x4cc   : > { %2585 = vmatpush.msra.mxu1 %v12696_v36  ;;  %2625 = vmatpush.msra.mxu2 %v12847_v37  ;;  %v18876_v36 = vand.u32 4294901760, %v12873_v21 }
 0x4cd   : > { %2693 = vmatpush.msra.mxu3 %v2692_v61  ;;  %2481 = vmatmul.f32.gmra.mxu2 %v12844_v56 }
 0x4ce   : > { %2557 = vmatpush.msra.mxu0 %v2415_v55  ;;  %2587 = vmatpush.msra.mxu1 %v12723_v35  ;;  %v2710_v35 = vand.u32 4294901760, %v2709_v46 }
 0x4cf   : > { %2627 = vmatpush.msra.mxu2 %v12868_v42  ;;  %2699 = vmatpush.msra.mxu3 %v2698_v59 }
 0x4d0   : > { %2519 = vmatmul.f32.gmra.mxu3 %v12895_v45  ;;  %2561 = vmatpush.msra.mxu0 %v18876_v36 }
 0x4d1   : > { %2589 = vmatpush.msra.mxu1 %v12784_v50  ;;  %2629 = vmatpush.msra.mxu2 %v12901_v14  ;;  %v18878_v50 = vand.u32 4294901760, %v12743_v40 }
 0x4d2   : > { %2705 = vmatpush.msra.mxu3 %v2704_v19  ;;  %2436 = vmatmul.f32.gmra.mxu1 %v12811_v57 }
 0x4d3   : > { %2565 = vmatpush.msra.mxu0 %v2427_v29  ;;  %2591 = vmatpush.msra.mxu1 %v12692_v9  ;;  %v18877_v9 = vand.u32 4294901760, %v12781_v23 }
 0x4d4   : > { %2631 = vmatpush.msra.mxu2 %v12925_v20  ;;  %2711 = vmatpush.msra.mxu3 %v2710_v35 }
 0x4d5   : > { %2567 = vmatmul.f32.vlgmr.msra.gmra.mxu0 %v12731_v43  ;;  %2593 = vmatpush.msra.mxu1 %v12762_v1  ;;  %v18879_v1 = vand.u32 4294901760, %v12837_v15 }
 0x4d6   : > { %2864 = vmatpush.msrb.mxu3 %v12745_v6  ;;  %2730 = vmatpush.msrb.mxu0 %v12781_v23 }
 0x4d7   : > { %2633 = vmatpush.msra.mxu2 %v12939_v17  ;;  %2595 = vmatpush.msra.mxu1 %v12787_v63 }
 0x4d8   : > { %2866 = vmatpush.msrb.mxu3 %v12718_v5  ;;  %2639 = vmatmul.f32.vlgmr.msra.gmra.mxu2 %v12884_v22  ;;  %v2320_v22 = vpop.permute.xlu1 %2319 }
 0x4d9   : > { %2733 = vmatpush.msrb.mxu0 %v12743_v40  ;;  %2814 = vmatpush.msrb.mxu2 %v18877_v9 }
 0x4da   : > { %2713 = vmatmul.f32.vlgmr.msra.gmra.mxu3 %v12731_v43  ;;  %2597 = vmatpush.msra.mxu1 %v12850_v39 }
 0x4db   : > { %2736 = vmatpush.msrb.mxu0 %v12837_v15  ;;  %2818 = vmatpush.msrb.mxu2 %v18878_v50 }
 0x4dc   : > { %2868 = vmatpush.msrb.mxu3 %v12809_v3  ;;  %2599 = vmatpush.msra.mxu1 %v12852_v52 }
 0x4dd   : > { %2739 = vmatpush.msrb.mxu0 %v12860_v53  ;;  %2822 = vmatpush.msrb.mxu2 %v18879_v1 }
 0x4de   : > { %2870 = vmatpush.msrb.mxu3 %v12813_v13  ;;  %2571 = vmatmul.f32.gmra.mxu0 %v12811_v57 }
 0x4df   : > { %2601 = vmatmul.f32.vlgmr.msra.gmra.mxu1 %v12731_v43  ;;  %2742 = vmatpush.msrb.mxu0 %v12899_v31 }
 0x4e0   : > { %2774 = vmatpush.msrb.mxu1 %v12745_v6  ;;  %2826 = vmatpush.msrb.mxu2 %v2678_v62 }
 0x4e1   : > { %2872 = vmatpush.msrb.mxu3 %v12847_v37  ;;  %2647 = vmatmul.f32.gmra.mxu2 %v12955_v48 }
 0x4e2   : > { %2745 = vmatpush.msrb.mxu0 %v12919_v0  ;;  %2776 = vmatpush.msrb.mxu1 %v12718_v5 }
 0x4e3   : > { %2830 = vmatpush.msrb.mxu2 %v2684_v18  ;;  %2874 = vmatpush.msrb.mxu3 %v12868_v42 }
 0x4e4   : > { %2717 = vmatmul.f32.gmra.mxu3 %v12811_v57  ;;  %2748 = vmatpush.msrb.mxu0 %v12933_v58 }
 0x4e5   : > { %2778 = vmatpush.msrb.mxu1 %v12809_v3  ;;  %2834 = vmatpush.msrb.mxu2 %v2690_v10 }
 0x4e6   : > { %2876 = vmatpush.msrb.mxu3 %v12901_v14  ;;  %2751 = vmatpush.msrb.mxu0 %v12950_v44 }
 0x4e7   : > { %2780 = vmatpush.msrb.mxu1 %v12813_v13  ;;  %2838 = vmatpush.msrb.mxu2 %v2696_v8 }
 0x4e8   : > { %2878 = vmatpush.msrb.mxu3 %v12925_v20  ;;  %2605 = vmatmul.f32.gmra.mxu1 %v12811_v57 }
 0x4e9   : > { %2754 = vmatpush.msrb.mxu0 %v12962_v30  ;;  %2782 = vmatpush.msrb.mxu1 %v12847_v37 }
 0x4ea   : > { %2842 = vmatpush.msrb.mxu2 %v2702_v16  ;;  %2880 = vmatpush.msrb.mxu3 %v12939_v17 }
 0x4eb   : > { %2757 = vmatmul.f32.vlgmr.msrb.gmra.mxu0 %v12768_v12  ;;  %2784 = vmatpush.msrb.mxu1 %v12868_v42 }
 0x4ec   : > { %2846 = vmatpush.msrb.mxu2 %v2708_v60  ;;  %2882 = vmatmul.f32.vlgmr.msrb.gmra.mxu3 %v12731_v43 }
 0x4ed   : > { %2786 = vmatpush.msrb.mxu1 %v12901_v14  ;;  %2848 = vmatmul.f32.vlgmr.msrb.gmra.mxu2 %v12731_v43  ;;  %v2315_v43 = vpop.permute.xlu0 %2314 }
 0x4ef   : > { %2788 = vmatpush.msrb.mxu1 %v12925_v20 }
 0x4f1   : > { %2790 = vmatpush.msrb.mxu1 %v12939_v17 }
 0x4f2   : > { %2794 = vmatmul.f32.vlgmr.msrb.gmra.mxu1 %v12803_v2 }
 0x4f3   : > { %2762 = vmatmul.f32.gmra.mxu0 %v12844_v56 }
 0x4f4   : > { %2886 = vmatmul.f32.gmra.mxu3 %v12811_v57 }
 0x4f5   : > { %2852 = vmatmul.f32.gmra.mxu2 %v12811_v57 }
 0x4fa   : > { %2800 = vmatmul.f32.gmra.mxu1 %v12895_v45 }
 0x53c   : > { %v2359_v5 = vpop.f32.mrf.mxu0 }
 0x53d   : > { %v2360_v63 = vadd.f32 %v2359_v5, %v2315_v43 }
 0x545   : > { %v2367_v23 = vpop.f32.mrf.mxu0 }
 0x546   : > { %v2433_v40 = vpop.f32.mrf.mxu1  ;;  %v2368_v7 = vadd.f32 %v2367_v23, %v2320_v22 }
 0x547   : > { %v2477_v6 = vpop.f32.mrf.mxu2  ;;  %v2434_v3 = vadd.f32 %v2433_v40, %v2360_v63 }
 0x549   : > { %v2514_v12 = vpop.f32.mrf.mxu3  ;;  %v2478_v15 = vadd.f32 %v2477_v6, %v2434_v3  ;;  %v18882_v6 = vld [vmem:[#allocation17_spill] sm:$0xff] }
 0x54b   : > { %v2515_v56 = vadd.f32 %v2514_v12, %v2478_v15 }
 0x54f   : > { %v2437_v13 = vpop.f32.mrf.mxu1 }
 0x550   : > { %v2482_v27 = vpop.f32.mrf.mxu2  ;;  %v2438_v31 = vadd.f32 %v2437_v13, %v2368_v7 }
 0x552   : > { %v2568_v37 = vpop.f32.mrf.mxu0  ;;  %v2483_v18 = vadd.f32 %v2482_v27, %v2438_v31 }
 0x553   : > { %v2520_v2 = vpop.f32.mrf.mxu3  ;;  %v2569_v39 = vadd.f32 %v2568_v37, %v2515_v56 }
 0x554   : > { %v2521_v41 = vadd.f32 %v2520_v2, %v2483_v18 }
 0x55b   : > { %v2640_v57 = vpop.f32.mrf.mxu2  ;;  %v2572_v21 = vpop.f32.mrf.mxu0 }
 0x55c   : > { %v2602_v52 = vpop.f32.mrf.mxu1  ;;  %v2641_v62 = vadd.f32 %v2640_v57, %v2315_v43  ;;  %v2573_v48 = vadd.f32 %v2572_v21, %v2521_v41  ;;  %v10564_v43 = vld [vmem:[%s18821_s2 + $0x10] sm:$0xff] }
 0x55d   : > { %v2603_v53 = vadd.f32 %v2602_v52, %v2569_v39  ;;  %v2714_v42 = vpop.f32.mrf.mxu3  ;;  %v13125_v52 = vld [vmem:[%s18616_s4 + $0x70] sm:$0xff] }
 0x55e   : > { %v2715_v54 = vadd.f32 %v2714_v42, %v2641_v62  ;;  %v13149_v62 = vld [vmem:[%s18616_s4 + $0x78] sm:$0xff]  ;;  %v13172_v41 = vld [vmem:[%s18616_s4 + $0x30] sm:$0xff] }
 0x55f   : > { %v2890_v55 = vmul.f32 0.5, %v2603_v53  ;;  %18884 = vst [vmem:[#allocation23_spill] sm:$0xff] %v13172_v41 }
 0x561   : > { %10688 = vtanh.f32 %v2890_v55 }
 0x564   : > { %v2648_v29 = vpop.f32.mrf.mxu2 }
 0x565   : > { %v2606_v58 = vpop.f32.mrf.mxu1  ;;  %v2649_v60 = vadd.f32 %v2648_v29, %v2320_v22 }
 0x566   : > { %v2607_v30 = vadd.f32 %v2606_v58, %v2573_v48 }
 0x567   : > { %v10689_v45 = vpop.eup %10688  ;;  %v2718_v0 = vpop.f32.mrf.mxu3 }
 0x568   : > { %v2894_v14 = vmul.f32 2.0, %v10689_v45  ;;  %v2758_v33 = vpop.f32.mrf.mxu0  ;;  %v2719_v51 = vadd.f32 %v2718_v0, %v2649_v60 }
 0x569   : > { %v2759_v17 = vadd.f32 %v2758_v33, %v2715_v54  ;;  %v13163_v33 = vld [vmem:[%s18616_s4 + $0x60] sm:$0xff] }
 0x56a   : > { %v2896_v20 = vmul.f32 1.442695, %v2894_v14 }
 0x56c   : > { %10690 = vpow2.f32 %v2896_v20  ;;  %v13157_v20 = vld [vmem:[%s18616_s4 + $0x80] sm:$0xff] }
 0x56f   : > { %v2795_v24 = vpop.f32.mrf.mxu1  ;;  %v2883_v49 = vpop.f32.mrf.mxu3 }
 0x570   : > { %v2796_v10 = vadd.f32 %v2795_v24, %v2759_v17  ;;  %v2849_v44 = vpop.f32.mrf.mxu2  ;;  %v2763_v28 = vpop.f32.mrf.mxu0 }
 0x571   : > { %v2764_v36 = vadd.f32 %v2763_v28, %v2719_v51 }
 0x572   : > { %v10691_v47 = vpop.eup %10690  ;;  %v2850_v8 = vadd.f32 %v2849_v44, %v2796_v10 }
 0x573   : > { %v2900_v32 = vmul.f32 %v10691_v47, %v18880_v38 }
 0x574   : > { %v2884_v16 = vadd.f32 %v2883_v49, %v2850_v8  ;;  %v13183_v49 = vld [vmem:[%s18616_s4 + $0x88] sm:$0xff] }
 0x575   : > { %v13074_v11 = vadd.f32 %v2900_v32, %v2607_v30 }
 0x576   : > { %v2891_v26 = vmul.f32 0.5, %v2884_v16 }
 0x577   : > { %18881 = vst [vmem:[#allocation21_spill] sm:$0xff] %v13074_v11  ;;  %2946 = vrot.lane.b32.xlu0 %v13074_v11, %s11062_s26  ;;  %2954 = vrot.lane.b32.xlu1 %v13074_v11, %s11060_s22  ;;  %v2801_v46 = vpop.f32.mrf.mxu1  ;;  %v2887_v1 = vpop.f32.mrf.mxu3  ;;  %v13129_v57 = vand.u32 4294901760, %v13074_v11 }
 0x578   : > { %10692 = vtanh.f32 %v2891_v26  ;;  %2962 = vrot.lane.b32.xlu2 %v13074_v11, %s11061_s25  ;;  %v2802_v35 = vadd.f32 %v2801_v46, %v2764_v36  ;;  %v2853_v9 = vpop.f32.mrf.mxu2 }
 0x579   : > { %v13137_v58 = vsub.f32 %v13074_v11, %v13129_v57 }
 0x57a   : > { %v2854_v50 = vadd.f32 %v2853_v9, %v2802_v35 }
 0x57b   : > { %v18668_v48 = vand.u32 4294901760, %v13137_v58 }
 0x57c   : > { %v2888_v40 = vadd.f32 %v2887_v1, %v2854_v50  ;;  %v13228_v50 = vld [vmem:[%s18616_s4 + $0x68] sm:$0xff] }
 0x57d   : > { %v13207_v51 = vsub.f32 %v13137_v58, %v18668_v48 }
 0x57e   : > { %v10693_v61 = vpop.eup %10692 }
 0x57f   : > { %v2895_v59 = vmul.f32 2.0, %v10693_v61  ;;  %2922 = vrot.lane.b32.xlu0 %v13074_v11, %s11065_s15  ;;  %2930 = vrot.lane.b32.xlu1 %v13074_v11, %s11064_s23 }
 0x580   : > { %2938 = vrot.lane.b32.xlu2 %v13074_v11, %s18822_s14 }
 0x581   : > { %v2898_v19 = vmul.f32 1.442695, %v2895_v59 }
 0x583   : > { %10694 = vpow2.f32 %v2898_v19 }
 0x588   : > { %2914 = vrot.lane.b32.xlu2 %v13074_v11, %s18823_s11 }
 0x589   : > { %v10695_v5 = vpop.eup %10694 }
 0x58a   : > { %v2901_v12 = vmul.f32 %v10695_v5, %v18882_v6  ;;  %v13234_v5 = vld [vmem:[%s18616_s4 + $0x50] sm:$0xff]  ;;  %v13240_v6 = vld [vmem:[%s18616_s4 + $0x20] sm:$0xff] }
 0x58b   : > { %18885 = vst [vmem:[#allocation22_spill] sm:$0xff] %v13240_v6 }
 0x58c   : > { %v13091_v23 = vadd.f32 %v2901_v12, %v2888_v40 }
 0x58e   : > { %18883 = vst [vmem:[#allocation19_spill] sm:$0xff] %v13091_v23  ;;  %2964 = vrot.lane.b32.xlu0 %v13091_v23, %s11061_s25  ;;  %2948 = vrot.lane.b32.xlu1 %v13091_v23, %s11062_s26  ;;  %v13210_v59 = vand.u32 4294901760, %v13091_v23 }
 0x590   : > { %2956 = vrot.lane.b32.xlu2 %v13091_v23, %s11060_s22 }
 0x596   : > { %2940 = vrot.lane.b32.xlu0 %v13091_v23, %s18822_s14  ;;  %2924 = vrot.lane.b32.xlu1 %v13091_v23, %s11065_s15 }
 0x598   : > { %2932 = vrot.lane.b32.xlu2 %v13091_v23, %s11064_s23 }
 0x59e   : > { %2916 = vrot.lane.b32.xlu0 %v13091_v23, %s18823_s11  ;;  %2906 = vrot.lane.b32.xlu1 %v13074_v11, %s18824_s19 }
 0x5a0   : > { %2908 = vrot.lane.b32.xlu2 %v13091_v23, %s18824_s19 }
 0x5a6   : > { %3479 = vperm.xlu0 %10678, %v10564_v43   ;;  %v13247_v43 = vld [vmem:[%s18616_s4 + $0x58] sm:$0xff] }
 0x5d2   : > { %v2963_v63 = vpop.permute.xlu2 %2962 }
 0x5da   : > { %v2939_v3 = vpop.permute.xlu2 %2938 }
 0x5e2   : > { %v13114_v13 = vpop.permute.xlu2 %2914 }
 0x5e9   : > { %v2947_v27 = vpop.permute.xlu0 %2946  ;;  %v2955_v15 = vpop.permute.xlu1 %2954 }
 0x5ea   : > { %v2957_v2 = vpop.permute.xlu2 %2956 }
 0x5eb   : > { %v2958_v37 = vsel %vm468_vm1, %v2955_v15, %v2957_v2  ;;  %v2959_v42 = vsel %vm468_vm1, %v2957_v2, %v2955_v15 }
 0x5ec   : > { %v2960_v53 = vmul.f32 %v13125_v52, %v2958_v37  ;;  %v2961_v29 = vmul.f32 %v13149_v62, %v2959_v42 }
 0x5ee   : > { %v13133_v21 = vand.u32 4294901760, %v2960_v53  ;;  %v13186_v8 = vand.u32 4294901760, %v2961_v29 }
 0x5f0   : > { %v13167_v17 = vsub.f32 %v2960_v53, %v13133_v21  ;;  %v13223_v9 = vsub.f32 %v2961_v29, %v13186_v8 }
 0x5f1   : > { %v13118_v56 = vpop.permute.xlu0 %2922  ;;  %v13120_v39 = vpop.permute.xlu1 %2930 }
 0x5f2   : > { %v2933_v55 = vpop.permute.xlu2 %2932  ;;  %v18670_v16 = vand.u32 4294901760, %v13167_v17  ;;  %v18674_v29 = vand.u32 4294901760, %v13223_v9 }
 0x5f3   : > { %v2935_v45 = vsel %vm432_vm4, %v2933_v55, %v13120_v39  ;;  %v2934_v2 = vsel %vm432_vm4, %v13120_v39, %v2933_v55  ;;  %v2905_v39 = vld [vmem:[#allocation2 + $0x10] sm:$0xff] }
 0x5f4   : > { %v2936_v24 = vmul.f32 %v13172_v41, %v2935_v45 }
 0x5f6   : > { %v13199_v26 = vand.u32 4294901760, %v2936_v24 }
 0x5f8   : > { %v13267_v42 = vsub.f32 %v2936_v24, %v13199_v26 }
 0x5fa   : > { %v2909_v24 = vpop.permute.xlu2 %2908 }
 0x600   : > { %v2965_v22 = vpop.permute.xlu0 %2964  ;;  %v2949_v7 = vpop.permute.xlu1 %2948 }
 0x601   : > { %v2966_v31 = vsel %vm480_vm2, %v2963_v63, %v2965_v22  ;;  %v2950_v14 = vsel %vm456_vm0, %v2947_v27, %v2949_v7  ;;  %v2967_v0 = vsel %vm480_vm2, %v2965_v22, %v2963_v63  ;;  %v2951_v38 = vsel %vm456_vm0, %v2949_v7, %v2947_v27 }
 0x602   : > { %v2968_v18 = vmul.f32 %v13157_v20, %v2966_v31  ;;  %v2952_v54 = vmul.f32 %v13163_v33, %v2950_v14  ;;  %v2969_v47 = vmul.f32 %v13183_v49, %v2967_v0  ;;  %v2953_v1 = vmul.f32 %v13228_v50, %v2951_v38 }
 0x603   : > { %v3023_v27 = vsub.f32 %v13167_v17, %v18670_v16  ;;  %v13287_v0 = vsub.f32 %v13091_v23, %v13210_v59  ;;  %v13369_v23 = vld [vmem:[%s18616_s4 + $0x18] sm:$0xff] }
 0x604   : > { %v13175_v10 = vand.u32 4294901760, %v2968_v18  ;;  %v13177_v44 = vand.u32 4294901760, %v2952_v54  ;;  %v13212_v46 = vand.u32 4294901760, %v2969_v47  ;;  %v13277_v55 = vand.u32 4294901760, %v2953_v1  ;;  %18889 = vst [vmem:[#allocation18_spill] sm:$0xff] %v13369_v23 }
 0x606   : > { %v13189_v30 = vsub.f32 %v2968_v18, %v13175_v10  ;;  %2981 = vmatpush.msra.mxu0 %v13175_v10  ;;  %3121 = vmatpush.msra.mxu3 %v13175_v10  ;;  %v13196_v32 = vsub.f32 %v2952_v54, %v13177_v44  ;;  %v13270_v22 = vsub.f32 %v2969_v47, %v13212_v46  ;;  %v13292_v18 = vld [vmem:[%s18616_s4 + $0x38] sm:$0xff] }
 0x607   : > { %18886 = vst [vmem:[#allocation20_spill] sm:$0xff] %v13292_v18  ;;  %v2937_v54 = vmul.f32 %v13292_v18, %v2934_v2  ;;  %v2971_v2 = vsel %vm488_vm6, %v2905_v39, 0  ;;  %v13315_v48 = vsub.f32 %v2953_v1, %v13277_v55 }
 0x608   : > { %v2941_v60 = vpop.permute.xlu0 %2940  ;;  %v2925_v28 = vpop.permute.xlu1 %2924  ;;  %2983 = vmatpush.msra.mxu0 %v13133_v21  ;;  %3082 = vmatpush.msra.mxu2 %v13189_v30  ;;  %v18671_v61 = vand.u32 4294901760, %v13189_v30  ;;  %v18669_v15 = vand.u32 4294901760, %v13196_v32 }
 0x609   : > { %v2942_v36 = vsel %vm444_vm3, %v2939_v3, %v2941_v60  ;;  %v2943_v19 = vsel %vm444_vm3, %v2941_v60, %v2939_v3  ;;  %v2927_v35 = vsel %vm420_vm5, %v2925_v28, %v13118_v56  ;;  %3123 = vmatpush.msra.mxu3 %v13133_v21  ;;  %v2926_v38 = vsel %vm420_vm5, %v13118_v56, %v2925_v28 }
 0x60a   : > { %v2944_v40 = vmul.f32 %v13234_v5, %v2942_v36  ;;  %v2928_v12 = vmul.f32 %v13240_v6, %v2927_v35  ;;  %2985 = vmatpush.msra.mxu0 %v13177_v44  ;;  %v2945_v63 = vmul.f32 %v13247_v43, %v2943_v19  ;;  %3085 = vmatpush.msra.mxu2 %v13167_v17  ;;  %v3024_v60 = vand.u32 4294901760, %v3023_v27 }
 0x60b   : > { %3125 = vmatpush.msra.mxu3 %v13177_v44  ;;  %v3017_v3 = vsub.f32 %v13189_v30, %v18671_v61  ;;  %v3029_v45 = vsub.f32 %v13196_v32, %v18669_v15  ;;  %v13326_v15 = vld [vmem:[%s18616_s4 + $0x10] sm:$0xff]  ;;  %v13336_v16 = vand.u32 4294901760, %v2937_v54 }
 0x60c   : > { %v13262_v37 = vand.u32 4294901760, %v2944_v40  ;;  %v13264_v53 = vand.u32 4294901760, %v2928_v12  ;;  %3088 = vmatpush.msra.mxu2 %v13196_v32  ;;  %v13295_v47 = vand.u32 4294901760, %v2945_v63 }
 0x60d   : > { %v3018_v7 = vand.u32 4294901760, %v3017_v3  ;;  %v3030_v27 = vand.u32 4294901760, %v3029_v45  ;;  %v13332_v45 = vld [vmem:[%s18616_s4] sm:$0xff]  ;;  %v13364_v3 = vand.u32 4294901760, %v2971_v2 }
 0x60e   : > { %2987 = vmatpush.msra.mxu0 %v13262_v37  ;;  %3127 = vmatpush.msra.mxu3 %v13262_v37  ;;  %v13282_v14 = vsub.f32 %v2944_v40, %v13262_v37  ;;  %v13304_v40 = vsub.f32 %v2928_v12, %v13264_v53  ;;  %v13320_v12 = vld [vmem:[%s18616_s4 + $0x28] sm:$0xff]  ;;  %18888 = vst [vmem:[#allocation25_spill] sm:$0xff] %v13332_v45 }
 0x60f   : > { %3019 = vmatpush.msra.mxu1 %v3018_v7  ;;  %v18675_v7 = vand.u32 4294901760, %v13270_v22  ;;  %18887 = vst [vmem:[#allocation24_spill] sm:$0xff] %v13320_v12  ;;  %v2929_v39 = vmul.f32 %v13320_v12, %v2926_v38  ;;  %v13339_v38 = vsub.f32 %v2945_v63, %v13295_v47  ;;  %v3273_v63 = vsub.f32 %v13223_v9, %v18674_v29 }
 0x610   : > { %v2917_v36 = vpop.permute.xlu0 %2916  ;;  %v2907_v19 = vpop.permute.xlu1 %2906  ;;  %2989 = vmatpush.msra.mxu0 %v13129_v57  ;;  %3091 = vmatpush.msra.mxu2 %v13282_v14  ;;  %v18672_v35 = vand.u32 4294901760, %v13282_v14 }
 0x611   : > { %v2919_v56 = vsel %vm408_vm7, %v2917_v36, %v13114_v13  ;;  %v2911_v28 = vsel %vm397_vm8, %v2909_v24, %v2907_v19  ;;  %3025 = vmatpush.msra.mxu1 %v3024_v60  ;;  %3129 = vmatpush.msra.mxu3 %v13129_v57  ;;  %v2918_v61 = vsel %vm408_vm7, %v13114_v13, %v2917_v36  ;;  %v13384_v11 = vand.u32 4294901760, %v2929_v39 }
 0x612   : > { %v2920_v60 = vmul.f32 %v13326_v15, %v2919_v56  ;;  %v2912_v1 = vmul.f32 %v13332_v45, %v2911_v28  ;;  %2991 = vmatpush.msra.mxu0 %v13199_v26  ;;  %v3035_v56 = vsub.f32 %v13282_v14, %v18672_v35  ;;  %3094 = vmatpush.msra.mxu2 %v13137_v58  ;;  %v3274_v45 = vand.u32 4294901760, %v3273_v63 }
 0x613   : > { %3031 = vmatpush.msra.mxu1 %v3030_v27  ;;  %3131 = vmatpush.msra.mxu3 %v13199_v26  ;;  %v2910_v36 = vsel %vm397_vm8, %v2907_v19, %v2909_v24  ;;  %v3267_v35 = vsub.f32 %v13270_v22, %v18675_v7  ;;  %v2921_v29 = vmul.f32 %v13369_v23, %v2918_v61  ;;  %v18890_v19 = vand.u32 4294901760, %v13267_v42  ;;  %v13394_v23 = vld [vmem:[%s18616_s4 + $0x8] sm:$0xff] }
 0x614   : > { %v13348_v31 = vand.u32 4294901760, %v2920_v60  ;;  %v13350_v28 = vand.u32 4294901760, %v2912_v1  ;;  %2993 = vmatpush.msra.mxu0 %v13264_v53  ;;  %v3036_v27 = vand.u32 4294901760, %v3035_v56  ;;  %3097 = vmatpush.msra.mxu2 %v13267_v42  ;;  %v13382_v13 = vsub.f32 %v2937_v54, %v13336_v16  ;;  %18891 = vst [vmem:[#allocation17_spill] sm:$0xff] %v13394_v23 }
 0x615   : > { %3133 = vmatpush.msra.mxu3 %v13264_v53  ;;  %v3047_v56 = vsub.f32 %v13267_v42, %v18890_v19  ;;  %v2913_v19 = vmul.f32 %v13394_v23, %v2910_v36  ;;  %v18892_v54 = vand.u32 4294901760, %v13304_v40  ;;  %v3268_v7 = vand.u32 4294901760, %v3267_v35 }
 0x616   : > { %v13375_v24 = vsub.f32 %v2920_v60, %v13348_v31  ;;  %2995 = vmatpush.msra.mxu0 %v13348_v31  ;;  %3037 = vmatpush.msra.mxu1 %v3036_v27  ;;  %v13388_v61 = vsub.f32 %v2912_v1, %v13350_v28  ;;  %v18893_v60 = vand.u32 4294901760, %v13207_v51  ;;  %v13409_v23 = vsub.f32 %v2971_v2, %v13364_v3 }
 0x617   : > { %3100 = vmatpush.msra.mxu2 %v13304_v40  ;;  %3135 = vmatpush.msra.mxu3 %v13348_v31  ;;  %v3053_v27 = vsub.f32 %v13304_v40, %v18892_v54  ;;  %v13411_v12 = vand.u32 4294901760, %v2921_v29  ;;  %v3048_v54 = vand.u32 4294901760, %v3047_v56  ;;  %v18894_v1 = vand.u32 4294901760, %v13315_v48 }
 0x618   : > { %2997 = vmatpush.msra.mxu0 %v13350_v28  ;;  %3043 = vmatpush.msra.mxu1 %v18893_v60  ;;  %v18895_v35 = vand.u32 4294901760, %v13375_v24  ;;  %v13422_v36 = vsub.f32 %v2929_v39, %v13384_v11  ;;  %v18896_v2 = vand.u32 4294901760, %v13189_v30  ;;  %v18897_v18 = vand.u32 4294901760, %v13339_v38 }
 0x619   : > { %3103 = vmatpush.msra.mxu2 %v13375_v24  ;;  %3137 = vmatpush.msra.mxu3 %v13350_v28  ;;  %v3279_v51 = vsub.f32 %v13315_v48, %v18894_v1  ;;  %v3296_v41 = vand.u32 4294901760, %v13382_v13  ;;  %v13430_v6 = vand.u32 4294901760, %v2913_v19  ;;  %v3054_v1 = vand.u32 4294901760, %v3053_v27 }
 0x61a   : > { %v3059_v60 = vsub.f32 %v13375_v24, %v18895_v35  ;;  %3155 = vmatpush.msrb.mxu0 %v18896_v2  ;;  %v3285_v56 = vsub.f32 %v13339_v38, %v18897_v18  ;;  %3049 = vmatpush.msra.mxu1 %v3048_v54  ;;  %v18898_v39 = vand.u32 4294901760, %v13388_v61  ;;  %v13440_v18 = vand.u32 4294901760, %v13409_v23 }
 0x61b   : > { %3269 = vmatpush.msrb.mxu3 %v3268_v7  ;;  %3106 = vmatpush.msra.mxu2 %v13388_v61  ;;  %v18899_v7 = vand.u32 4294901760, %v13167_v17  ;;  %v13443_v63 = vsub.f32 %v2921_v29, %v13411_v12  ;;  %v3280_v54 = vand.u32 4294901760, %v3279_v51  ;;  %v18900_v27 = vand.u32 4294901760, %v13287_v0 }
 0x61c   : > { %v3060_v35 = vand.u32 4294901760, %v3059_v60  ;;  %v3065_v30 = vsub.f32 %v13388_v61, %v18898_v39  ;;  %3055 = vmatpush.msra.mxu1 %v3054_v1  ;;  %v18901_v2 = vand.u32 4294901760, %v13196_v32  ;;  %v3302_v17 = vand.u32 4294901760, %v13422_v36  ;;  %3109 = vmatmul.f32.vlgmr.msra.gmra.mxu2 %v13409_v23 }
 0x61d   : > { %3159 = vmatpush.msrb.mxu0 %v18899_v7  ;;  %3231 = vmatpush.msrb.mxu2 %v13212_v46  ;;  %v3291_v60 = vsub.f32 %v13287_v0, %v18900_v27  ;;  %v13453_v39 = vsub.f32 %v2913_v19, %v13430_v6  ;;  %v3286_v29 = vand.u32 4294901760, %v3285_v56  ;;  %v3297_v51 = vsub.f32 %v13382_v13, %v3296_v41 }
 0x61e   : > { %3275 = vmatpush.msrb.mxu3 %v3274_v45  ;;  %3061 = vmatpush.msra.mxu1 %v3060_v35  ;;  %v3066_v45 = vand.u32 4294901760, %v3065_v30  ;;  %v18902_v1 = vand.u32 4294901760, %v13282_v14  ;;  %v3001_v32 = vsub.f32 %v13409_v23, %v13440_v18  ;;  %v3308_v7 = vand.u32 4294901760, %v13443_v63 }
 0x61f   : > { %3163 = vmatpush.msrb.mxu0 %v18901_v2  ;;  %3233 = vmatpush.msrb.mxu2 %v13186_v8  ;;  %v3292_v19 = vand.u32 4294901760, %v3291_v60  ;;  %v18903_v56 = vand.u32 4294901760, %v13137_v58  ;;  %v3303_v14 = vsub.f32 %v13422_v36, %v3302_v17  ;;  %v3298_v35 = vand.u32 4294901760, %v3297_v51 }
 0x620   : > { %3281 = vmatpush.msrb.mxu3 %v3280_v54  ;;  %3067 = vmatpush.msra.mxu1 %v3066_v45  ;;  %v3314_v30 = vand.u32 4294901760, %v13453_v39  ;;  %v18904_v54 = vand.u32 4294901760, %v13267_v42  ;;  %v3002_v27 = vand.u32 4294901760, %v3001_v32  ;;  %v3309_v58 = vsub.f32 %v13443_v63, %v3308_v7 }
 0x621   : > { %3167 = vmatpush.msrb.mxu0 %v18902_v1  ;;  %3235 = vmatpush.msrb.mxu2 %v13277_v55  ;;  %v3304_v60 = vand.u32 4294901760, %v3303_v14  ;;  %v18906_v42 = vand.u32 4294901760, %v13375_v24 }
 0x622   : > { %3287 = vmatpush.msrb.mxu3 %v3286_v29  ;;  %3201 = vmatpush.msrb.mxu1 %v13175_v10  ;;  %v18905_v10 = vand.u32 4294901760, %v13304_v40  ;;  %v3310_v2 = vand.u32 4294901760, %v3309_v58  ;;  %v18907_v40 = vand.u32 4294901760, %v13388_v61 }
 0x623   : > { %3171 = vmatpush.msrb.mxu0 %v18903_v56  ;;  %3237 = vmatpush.msrb.mxu2 %v13295_v47 }
 0x624   : > { %3293 = vmatpush.msrb.mxu3 %v3292_v19  ;;  %3203 = vmatpush.msrb.mxu1 %v13133_v21  ;;  %v3315_v21 = vsub.f32 %v13453_v39, %v3314_v30 }
 0x625   : > { %3175 = vmatpush.msrb.mxu0 %v18904_v54  ;;  %3239 = vmatpush.msrb.mxu2 %v13210_v59 }
 0x626   : > { %3299 = vmatpush.msrb.mxu3 %v3298_v35  ;;  %3205 = vmatpush.msrb.mxu1 %v13177_v44  ;;  %v3316_v44 = vand.u32 4294901760, %v3315_v21 }
 0x627   : > { %3179 = vmatpush.msrb.mxu0 %v18905_v10  ;;  %3241 = vmatpush.msrb.mxu2 %v13336_v16 }
 0x628   : > { %3305 = vmatpush.msrb.mxu3 %v3304_v60  ;;  %3003 = vmatmul.f32.vlgmr.msra.gmra.mxu0 %v3002_v27 }
 0x629   : > { %3141 = vmatmul.f32.vlgmr.msra.gmra.mxu3 %v13440_v18  ;;  %3183 = vmatpush.msrb.mxu0 %v18906_v42 }
 0x62a   : > { %3207 = vmatpush.msrb.mxu1 %v13262_v37  ;;  %3243 = vmatpush.msrb.mxu2 %v13384_v11  ;;  %v18908_v37 = vand.u32 4294901760, %v13270_v22 }
 0x62b   : > { %3311 = vmatpush.msrb.mxu3 %v3310_v2  ;;  %3069 = vmatmul.f32.vlgmr.msra.gmra.mxu1 %v13364_v3  ;;  %v3485_v2 = vld [vmem:[#allocation5 + $0x20] sm:$0xff] }
 0x62c   : > { %3187 = vmatpush.msrb.mxu0 %v18907_v40  ;;  %3209 = vmatpush.msrb.mxu1 %v13129_v57  ;;  %v18909_v57 = vand.u32 4294901760, %v13223_v9 }
 0x62d   : > { %3245 = vmatpush.msrb.mxu2 %v13411_v12  ;;  %3317 = vmatpush.msrb.mxu3 %v3316_v44 }
 0x62e   : > { %3332 = vmatpush.msra.mxu0 %v13270_v22  ;;  %3211 = vmatpush.msrb.mxu1 %v13199_v26  ;;  %v18910_v26 = vand.u32 4294901760, %v13315_v48 }
 0x62f   : > { %3451 = vmatpush.msra.mxu3 %v13212_v46  ;;  %3247 = vmatpush.msrb.mxu2 %v13430_v6 }
 0x630   : > { %3335 = vmatpush.msra.mxu0 %v13223_v9  ;;  %3213 = vmatpush.msrb.mxu1 %v13264_v53  ;;  %v18911_v53 = vand.u32 4294901760, %v13339_v38 }
 0x631   : > { %3405 = vmatpush.msra.mxu2 %v18908_v37  ;;  %3453 = vmatpush.msra.mxu3 %v13186_v8 }
 0x632   : > { %3189 = vmatmul.f32.vlgmr.msrb.gmra.mxu0 %v13364_v3  ;;  %3215 = vmatpush.msrb.mxu1 %v13348_v31 }
 0x633   : > { %3409 = vmatpush.msra.mxu2 %v18909_v57  ;;  %3338 = vmatpush.msra.mxu0 %v13315_v48  ;;  %v18912_v48 = vand.u32 4294901760, %v13287_v0 }
 0x634   : > { %3455 = vmatpush.msra.mxu3 %v13277_v55  ;;  %3217 = vmatpush.msrb.mxu1 %v13350_v28 }
 0x635   : > { %3413 = vmatpush.msra.mxu2 %v18910_v26  ;;  %3341 = vmatpush.msra.mxu0 %v13339_v38  ;;  %v3565_v26 = vsel %vm488_vm6, %v3485_v2, 0 }
 0x636   : > { %3457 = vmatpush.msra.mxu3 %v13295_v47  ;;  %3219 = vmatmul.f32.vlgmr.msrb.gmra.mxu1 %v13364_v3 }
 0x637   : > { %3417 = vmatpush.msra.mxu2 %v18911_v53  ;;  %3344 = vmatpush.msra.mxu0 %v13287_v0 }
 0x638   : > { %3371 = vmatpush.msra.mxu1 %v13212_v46  ;;  %3459 = vmatpush.msra.mxu3 %v13210_v59 }
 0x639   : > { %3347 = vmatpush.msra.mxu0 %v13382_v13  ;;  %3421 = vmatpush.msra.mxu2 %v18912_v48 }
 0x63a   : > { %3373 = vmatpush.msra.mxu1 %v13186_v8  ;;  %3461 = vmatpush.msra.mxu3 %v13336_v16 }
 0x63b   : > { %3350 = vmatpush.msra.mxu0 %v13422_v36  ;;  %3425 = vmatpush.msra.mxu2 %v3296_v41 }
 0x63c   : > { %3375 = vmatpush.msra.mxu1 %v13277_v55  ;;  %3463 = vmatpush.msra.mxu3 %v13384_v11 }
 0x63d   : > { %3253 = vmatmul.f32.vlgmr.msrb.gmra.mxu2 %v3002_v27  ;;  %3353 = vmatpush.msra.mxu0 %v13443_v63 }
 0x63e   : > { %3377 = vmatpush.msra.mxu1 %v13295_v47  ;;  %3429 = vmatpush.msra.mxu2 %v3302_v17  ;;  %v3480_v47 = vpop.permute.xlu0 %3479 }
 0x63f   : > { %3465 = vmatpush.msra.mxu3 %v13411_v12  ;;  %3356 = vmatpush.msra.mxu0 %v13453_v39 }
 0x640   : > { %3319 = vmatmul.f32.vlgmr.msrb.gmra.mxu3 %v13364_v3  ;;  %3379 = vmatpush.msra.mxu1 %v13210_v59 }
 0x641   : > { %3433 = vmatpush.msra.mxu2 %v3308_v7  ;;  %3467 = vmatpush.msra.mxu3 %v13430_v6 }
 0x642   : > { %3381 = vmatpush.msra.mxu1 %v13336_v16  ;;  %3359 = vmatmul.f32.vlgmr.msra.gmra.mxu0 %v13409_v23 }
 0x643   : > { %3437 = vmatpush.msra.mxu2 %v3314_v30 }
 0x644   : > { %3383 = vmatpush.msra.mxu1 %v13384_v11 }
 0x645   : > { %3439 = vmatmul.f32.vlgmr.msra.gmra.mxu2 %v13364_v3 }
 0x646   : > { %3385 = vmatpush.msra.mxu1 %v13411_v12 }
 0x648   : > { %3469 = vmatmul.f32.vlgmr.msra.gmra.mxu3 %v13364_v3  ;;  %3387 = vmatpush.msra.mxu1 %v13430_v6 }
 0x649   : > { %3391 = vmatmul.f32.vlgmr.msra.gmra.mxu1 %v13440_v18 }
 0x69f   : > { %v3110_v59 = vpop.f32.mrf.mxu2 }
 0x6a5   : > { %v3004_v41 = vpop.f32.mrf.mxu0 }
 0x6a8   : > { %v3070_v8 = vpop.f32.mrf.mxu1 }
 0x6a9   : > { %v3071_v16 = vadd.f32 %v3070_v8, %v3004_v41 }
 0x6ab   : > { %v3111_v23 = vadd.f32 %v3110_v59, %v3071_v16 }
 0x6ac   : > { %v3142_v46 = vpop.f32.mrf.mxu3 }
 0x6ad   : > { %v3143_v9 = vadd.f32 %v3142_v46, %v3111_v23  ;;  %v13645_v46 = vand.u32 4294901760, %v3565_v26 }
 0x6af   : > { %v3190_v22 = vpop.f32.mrf.mxu0 }
 0x6b0   : > { %v3191_v31 = vadd.f32 %v3190_v22, %v3143_v9 }
 0x6b3   : > { %v3220_v11 = vpop.f32.mrf.mxu1 }
 0x6b4   : > { %v3221_v55 = vadd.f32 %v3220_v11, %v3191_v31 }
 0x6b6   : > { %v3473_v0 = vadd.f32 %v3221_v55, %v12641_v34 }
 0x6b8   : > { %v13555_v12 = vadd.f32 %v3480_v47, %v3473_v0 }
 0x6ba   : > { %3527 = vrot.lane.b32.xlu2 %v13555_v12, %s11062_s26  ;;  %3535 = vrot.lane.b32.xlu0 %v13555_v12, %s11060_s22  ;;  %v13613_v27 = vand.u32 4294901760, %v13555_v12 }
 0x6bb   : > { %3543 = vrot.lane.b32.xlu1 %v13555_v12, %s11061_s25 }
 0x6bc   : > { %v13623_v42 = vsub.f32 %v13555_v12, %v13613_v27 }
 0x6be   : > { %v3645_v40 = vand.u32 4294901760, %v13623_v42 }
 0x6bf   : > { %v3360_v38 = vpop.f32.mrf.mxu0 }
 0x6c0   : > { %v3254_v6 = vpop.f32.mrf.mxu2  ;;  %v13643_v23 = vsub.f32 %v13623_v42, %v3645_v40 }
 0x6c2   : > { %3503 = vrot.lane.b32.xlu2 %v13555_v12, %s11065_s15  ;;  %3511 = vrot.lane.b32.xlu0 %v13555_v12, %s11064_s23 }
 0x6c3   : > { %v3320_v3 = vpop.f32.mrf.mxu3  ;;  %3519 = vrot.lane.b32.xlu1 %v13555_v12, %s18822_s14 }
 0x6c4   : > { %v3321_v34 = vadd.f32 %v3320_v3, %v3254_v6 }
 0x6c6   : > { %v3361_v28 = vadd.f32 %v3360_v38, %v3321_v34  ;;  %v3392_v13 = vpop.f32.mrf.mxu1  ;;  %v13674_v38 = vsub.f32 %v3565_v26, %v13645_v46  ;;  %v3486_v34 = vld [vmem:[#allocation5 + $0x28] sm:$0xff] }
 0x6c8   : > { %v3393_v24 = vadd.f32 %v3392_v13, %v3361_v28  ;;  %v3440_v61 = vpop.f32.mrf.mxu2 }
 0x6ca   : > { %v3441_v36 = vadd.f32 %v3440_v61, %v3393_v24 }
 0x6cb   : > { %v3470_v18 = vpop.f32.mrf.mxu3  ;;  %3495 = vrot.lane.b32.xlu1 %v13555_v12, %s18823_s11 }
 0x6cc   : > { %v3471_v63 = vadd.f32 %v3470_v18, %v3441_v36 }
 0x6ce   : > { %v3474_v17 = vadd.f32 %v3471_v63, %v12658_v25  ;;  %v10566_v25 = vld [vmem:[%s18615_s3 + $0x28] sm:$0xff] }
 0x6cf   : > { %v18913_v63 = vld [vmem:[#allocation22_spill] sm:$0xff] }
 0x6d0   : > { %v13572_v39 = vadd.f32 %v3480_v47, %v3474_v17 }
 0x6d2   : > { %3545 = vrot.lane.b32.xlu2 %v13572_v39, %s11061_s25  ;;  %3529 = vrot.lane.b32.xlu0 %v13572_v39, %s11062_s26  ;;  %v13659_v11 = vand.u32 4294901760, %v13572_v39 }
 0x6d3   : > { %3537 = vrot.lane.b32.xlu1 %v13572_v39, %s11060_s22 }
 0x6da   : > { %3521 = vrot.lane.b32.xlu2 %v13572_v39, %s18822_s14  ;;  %3505 = vrot.lane.b32.xlu0 %v13572_v39, %s11065_s15 }
 0x6db   : > { %3513 = vrot.lane.b32.xlu1 %v13572_v39, %s11064_s23 }
 0x6e2   : > { %3497 = vrot.lane.b32.xlu2 %v13572_v39, %s18823_s11  ;;  %3487 = vrot.lane.b32.xlu0 %v13555_v12, %s18824_s19 }
 0x6e3   : > { %3489 = vrot.lane.b32.xlu1 %v13572_v39, %s18824_s19 }
 0x6ea   : > { %3561 = vperm.xlu0 %10678, %v10566_v25  }
 0x714   : > { %v3528_v29 = vpop.permute.xlu2 %3527 }
 0x71c   : > { %v13595_v45 = vpop.permute.xlu2 %3503 }
 0x72c   : > { %v3546_v51 = vpop.permute.xlu2 %3545  ;;  %v3536_v7 = vpop.permute.xlu0 %3535 }
 0x72d   : > { %v3544_v1 = vpop.permute.xlu1 %3543 }
 0x72e   : > { %v3547_v32 = vsel %vm480_vm2, %v3544_v1, %v3546_v51  ;;  %v3548_v37 = vsel %vm480_vm2, %v3546_v51, %v3544_v1  ;;  %v3568_v51 = vsel %vm488_vm6, %v3486_v34, 0 }
 0x72f   : > { %v3549_v19 = vmul.f32 %v13157_v20, %v3547_v32  ;;  %v3550_v16 = vmul.f32 %v13183_v49, %v3548_v37 }
 0x731   : > { %v13600_v56 = vand.u32 4294901760, %v3549_v19  ;;  %v13676_v28 = vand.u32 4294901760, %v3550_v16 }
 0x733   : > { %v13603_v14 = vsub.f32 %v3549_v19, %v13600_v56  ;;  %3578 = vmatpush.msrb.mxu0 %v13600_v56  ;;  %3735 = vmatpush.msrb.mxu3 %v13600_v56 }
 0x734   : > { %v13615_v58 = vpop.permute.xlu0 %3511  ;;  %v3522_v10 = vpop.permute.xlu2 %3521 }
 0x735   : > { %3691 = vmatpush.msrb.mxu2 %v13603_v14  ;;  %v3520_v35 = vpop.permute.xlu1 %3519  ;;  %v3621_v30 = vand.u32 4294901760, %v13603_v14 }
 0x736   : > { %v3523_v21 = vsel %vm444_vm3, %v3520_v35, %v3522_v10  ;;  %v3524_v31 = vsel %vm444_vm3, %v3522_v10, %v3520_v35  ;;  %v13712_v35 = vsub.f32 %v3550_v16, %v13676_v28  ;;  %v18914_v10 = vld [vmem:[#allocation23_spill] sm:$0xff] }
 0x737   : > { %v3622_v54 = vsub.f32 %v13603_v14, %v3621_v30  ;;  %v3525_v44 = vmul.f32 %v13234_v5, %v3523_v21  ;;  %v3526_v13 = vmul.f32 %v13247_v43, %v3524_v31  ;;  %v13692_v43 = vsub.f32 %v13572_v39, %v13659_v11 }
 0x739   : > { %v3623_v20 = vand.u32 4294901760, %v3622_v54  ;;  %v13632_v48 = vand.u32 4294901760, %v3525_v44  ;;  %v13714_v54 = vand.u32 4294901760, %v3526_v13 }
 0x73b   : > { %3624 = vmatpush.msrb.mxu1 %v3623_v20  ;;  %v13669_v6 = vsub.f32 %v3525_v44, %v13632_v48 }
 0x73c   : > { %v13636_v59 = vpop.permute.xlu2 %3497 }
 0x73d   : > { %v13617_v60 = vpop.permute.xlu1 %3495 }
 0x744   : > { %v3530_v57 = vpop.permute.xlu0 %3529 }
 0x745   : > { %v3531_v53 = vsel %vm456_vm0, %v3528_v29, %v3530_v57  ;;  %v3538_v8 = vpop.permute.xlu1 %3537  ;;  %v3532_v55 = vsel %vm456_vm0, %v3530_v57, %v3528_v29  ;;  %v13730_v57 = vand.u32 4294901760, %v3568_v51 }
 0x746   : > { %v3533_v41 = vmul.f32 %v13163_v33, %v3531_v53  ;;  %v3539_v5 = vsel %vm468_vm1, %v3536_v7, %v3538_v8  ;;  %v3500_v33 = vsel %vm408_vm7, %v13636_v59, %v13617_v60  ;;  %v3540_v49 = vsel %vm468_vm1, %v3538_v8, %v3536_v7 }
 0x747   : > { %v3541_v22 = vmul.f32 %v13125_v52, %v3539_v5  ;;  %v3501_v3 = vmul.f32 %v13326_v15, %v3500_v33  ;;  %v3542_v52 = vmul.f32 %v13149_v62, %v3540_v49  ;;  %v3647_v15 = vand.u32 4294901760, %v13643_v23 }
 0x748   : > { %v13651_v9 = vand.u32 4294901760, %v3533_v41  ;;  %v3534_v62 = vmul.f32 %v13228_v50, %v3532_v55  ;;  %v3639_v50 = vand.u32 4294901760, %v13669_v6  ;;  %v13709_v7 = vand.u32 4294901760, %v13674_v38 }
 0x749   : > { %v13663_v0 = vand.u32 4294901760, %v3541_v22  ;;  %v13700_v1 = vand.u32 4294901760, %v3501_v3  ;;  %v13702_v32 = vand.u32 4294901760, %v3542_v52  ;;  %v13755_v49 = vsub.f32 %v3526_v13, %v13714_v54 }
 0x74a   : > { %v13666_v47 = vsub.f32 %v3533_v41, %v13651_v9  ;;  %v13721_v2 = vand.u32 4294901760, %v3534_v62  ;;  %v3640_v41 = vsub.f32 %v13669_v6, %v3639_v50  ;;  %v3598_v33 = vsub.f32 %v13674_v38, %v13709_v7 }
 0x74b   : > { %3580 = vmatpush.msrb.mxu0 %v13663_v0  ;;  %3737 = vmatpush.msrb.mxu3 %v13663_v0  ;;  %v13682_v61 = vsub.f32 %v3541_v22, %v13663_v0  ;;  %v13746_v16 = vsub.f32 %v3542_v52, %v13702_v32  ;;  %v18684_v55 = vand.u32 4294901760, %v13712_v35  ;;  %v18915_v52 = vld [vmem:[#allocation20_spill] sm:$0xff] }
 0x74c   : > { %v3506_v24 = vpop.permute.xlu0 %3505  ;;  %v3633_v18 = vand.u32 4294901760, %v13666_v47 }
 0x74d   : > { %v3508_v36 = vsel %vm420_vm5, %v3506_v24, %v13595_v45  ;;  %3582 = vmatpush.msrb.mxu0 %v13651_v9  ;;  %3694 = vmatpush.msrb.mxu2 %v13682_v61  ;;  %v3514_v25 = vpop.permute.xlu1 %3513  ;;  %v3627_v29 = vand.u32 4294901760, %v13682_v61  ;;  %v3507_v22 = vsel %vm420_vm5, %v13595_v45, %v3506_v24  ;;  %v3499_v24 = vsel %vm408_vm7, %v13617_v60, %v13636_v59 }
 0x74e   : > { %v3509_v17 = vmul.f32 %v18913_v63, %v3508_v36  ;;  %3739 = vmatpush.msrb.mxu3 %v13651_v9  ;;  %v3516_v19 = vsel %vm432_vm4, %v3514_v25, %v13615_v58  ;;  %v3634_v37 = vsub.f32 %v13666_v47, %v3633_v18  ;;  %v3515_v26 = vsel %vm432_vm4, %v13615_v58, %v3514_v25 }
 0x74f   : > { %v3517_v21 = vmul.f32 %v18914_v10, %v3516_v19  ;;  %3584 = vmatpush.msrb.mxu0 %v13632_v48  ;;  %3697 = vmatpush.msrb.mxu2 %v13666_v47  ;;  %v3628_v44 = vsub.f32 %v13682_v61, %v3627_v29  ;;  %v13750_v58 = vsub.f32 %v3501_v3, %v13700_v1  ;;  %v18916_v19 = vld [vmem:[#allocation24_spill] sm:$0xff]  ;;  %v18686_v60 = vand.u32 4294901760, %v13746_v16 }
 0x750   : > { %v13716_v20 = vand.u32 4294901760, %v3509_v17  ;;  %3741 = vmatpush.msrb.mxu3 %v13632_v48  ;;  %v13767_v3 = vsub.f32 %v3534_v62, %v13721_v2  ;;  %v3518_v34 = vmul.f32 %v18915_v52, %v3515_v26  ;;  %v3635_v13 = vand.u32 4294901760, %v3634_v37 }
 0x751   : > { %v13735_v53 = vand.u32 4294901760, %v3517_v21  ;;  %3586 = vmatpush.msrb.mxu0 %v13613_v27  ;;  %3700 = vmatpush.msrb.mxu2 %v13669_v6  ;;  %v3629_v5 = vand.u32 4294901760, %v3628_v44  ;;  %v3641_v62 = vand.u32 4294901760, %v3640_v41  ;;  %v13780_v25 = vsub.f32 %v3568_v51, %v13730_v57  ;;  %v18917_v44 = vld [vmem:[#allocation25_spill] sm:$0xff] }
 0x752   : > { %v13743_v8 = vsub.f32 %v3509_v17, %v13716_v20  ;;  %3743 = vmatpush.msrb.mxu3 %v13613_v27  ;;  %v3510_v10 = vmul.f32 %v18916_v19, %v3507_v22  ;;  %v18687_v59 = vand.u32 4294901760, %v13750_v58  ;;  %v13794_v26 = vand.u32 4294901760, %v3598_v33  ;;  %v18918_v33 = vld [vmem:[#allocation18_spill] sm:$0xff] }
 0x753   : > { %3588 = vmatpush.msrb.mxu0 %v13735_v53  ;;  %3703 = vmatpush.msrb.mxu2 %v13623_v42  ;;  %v13763_v31 = vsub.f32 %v3517_v21, %v13735_v53  ;;  %v3903_v41 = vsub.f32 %v13712_v35, %v18684_v55  ;;  %v3502_v19 = vmul.f32 %v18918_v33, %v3499_v24  ;;  %v13813_v55 = vand.u32 4294901760, %v13780_v25  ;;  %v18919_v33 = vld [vmem:[#allocation17_spill] sm:$0xff] }
 0x754   : > { %3630 = vmatpush.msrb.mxu1 %v3629_v5  ;;  %3745 = vmatpush.msrb.mxu3 %v13735_v53  ;;  %v18685_v45 = vand.u32 4294901760, %v13743_v8  ;;  %v3488_v36 = vpop.permute.xlu0 %3487  ;;  %v13799_v5 = vand.u32 4294901760, %v3518_v34  ;;  %v3664_v24 = vsub.f32 %v13750_v58, %v18687_v59 }
 0x755   : > { %v3490_v63 = vpop.permute.xlu1 %3489  ;;  %3590 = vmatpush.msrb.mxu0 %v13716_v20  ;;  %3706 = vmatpush.msrb.mxu2 %v13763_v31  ;;  %v3651_v17 = vand.u32 4294901760, %v13763_v31 }
 0x756   : > { %3636 = vmatpush.msrb.mxu1 %v3635_v13  ;;  %v3492_v21 = vsel %vm397_vm8, %v3490_v63, %v3488_v36  ;;  %3747 = vmatpush.msrb.mxu3 %v13716_v20  ;;  %v3491_v22 = vsel %vm397_vm8, %v3488_v36, %v3490_v63  ;;  %v3658_v52 = vsub.f32 %v13743_v8, %v18685_v45  ;;  %v3914_v13 = vand.u32 4294901760, %v13767_v3 }
 0x757   : > { %v3493_v37 = vmul.f32 %v18917_v44, %v3492_v21  ;;  %3592 = vmatpush.msrb.mxu0 %v13700_v1  ;;  %3709 = vmatpush.msrb.mxu2 %v13743_v8  ;;  %v3652_v51 = vsub.f32 %v13763_v31, %v3651_v17  ;;  %v13815_v36 = vand.u32 4294901760, %v3510_v10  ;;  %v3909_v63 = vsub.f32 %v13746_v16, %v18686_v60 }
 0x758   : > { %3642 = vmatpush.msrb.mxu1 %v3641_v62  ;;  %3749 = vmatpush.msrb.mxu3 %v13700_v1  ;;  %v3920_v62 = vand.u32 4294901760, %v13755_v49  ;;  %v3904_v45 = vand.u32 4294901760, %v3903_v41  ;;  %v3659_v60 = vand.u32 4294901760, %v3658_v52  ;;  %v3915_v59 = vsub.f32 %v13767_v3, %v3914_v13 }
 0x759   : > { %v13809_v21 = vand.u32 4294901760, %v3493_v37  ;;  %3712 = vmatpush.msrb.mxu2 %v13750_v58  ;;  %v3653_v44 = vand.u32 4294901760, %v3652_v51  ;;  %v3494_v51 = vmul.f32 %v18919_v33, %v3491_v22  ;;  %v13839_v22 = vand.u32 4294901760, %v3502_v19 }
 0x75a   : > { %3648 = vmatpush.msrb.mxu1 %v3647_v15  ;;  %v13833_v15 = vsub.f32 %v3518_v34, %v13799_v5  ;;  %v3606_v34 = vsub.f32 %v13780_v25, %v13813_v55  ;;  %v3926_v41 = vand.u32 4294901760, %v13692_v43  ;;  %v3910_v52 = vand.u32 4294901760, %v3909_v63 }
 0x75b   : > { %3594 = vmatpush.msrb.mxu0 %v13809_v21  ;;  %3751 = vmatpush.msrb.mxu3 %v13809_v21  ;;  %v13830_v23 = vsub.f32 %v3493_v37, %v13809_v21  ;;  %v3665_v33 = vand.u32 4294901760, %v3664_v24  ;;  %v3921_v14 = vsub.f32 %v13755_v49, %v3920_v62  ;;  %v13864_v63 = vsub.f32 %v3502_v19, %v13839_v22 }
 0x75c   : > { %3654 = vmatpush.msrb.mxu1 %v3653_v44  ;;  %3600 = vmatmul.f32.vlgmr.msrb.gmra.mxu0 %v13794_v26  ;;  %v13848_v44 = vsub.f32 %v3510_v10, %v13815_v36  ;;  %v3916_v10 = vand.u32 4294901760, %v3915_v59  ;;  %v3927_v59 = vsub.f32 %v13692_v43, %v3926_v41 }
 0x75d   : > { %3775 = vmatpush.msra.mxu0 %v3621_v30  ;;  %3905 = vmatpush.msra.mxu3 %v3904_v45  ;;  %v3669_v37 = vand.u32 4294901760, %v13830_v23  ;;  %v13854_v30 = vand.u32 4294901760, %v3494_v51  ;;  %v3922_v24 = vand.u32 4294901760, %v3921_v14 }
 0x75e   : > { %3660 = vmatpush.msrb.mxu1 %v3659_v60  ;;  %3715 = vmatpush.msrb.mxu2 %v13830_v23  ;;  %v3932_v60 = vand.u32 4294901760, %v13833_v15 }
 0x75f   : > { %3779 = vmatpush.msra.mxu0 %v3627_v29  ;;  %v3670_v45 = vsub.f32 %v13830_v23, %v3669_v37  ;;  %3911 = vmatpush.msra.mxu3 %v3910_v52  ;;  %v13869_v29 = vand.u32 4294901760, %v3606_v34  ;;  %v3938_v52 = vand.u32 4294901760, %v13848_v44  ;;  %v13877_v19 = vsub.f32 %v3494_v51, %v13854_v30 }
 0x760   : > { %3859 = vmatpush.msra.mxu2 %v13676_v28  ;;  %3666 = vmatpush.msrb.mxu1 %v3665_v33  ;;  %v3933_v47 = vsub.f32 %v13833_v15, %v3932_v60  ;;  %v3928_v51 = vand.u32 4294901760, %v3927_v59 }
 0x761   : > { %3718 = vmatmul.f32.vlgmr.msrb.gmra.mxu2 %v13674_v38  ;;  %3783 = vmatpush.msra.mxu0 %v3633_v18  ;;  %v3671_v61 = vand.u32 4294901760, %v3670_v45  ;;  %v3944_v18 = vand.u32 4294901760, %v13864_v63  ;;  %v3939_v6 = vsub.f32 %v13848_v44, %v3938_v52 }
 0x762   : > { %3861 = vmatpush.msra.mxu2 %v13702_v32  ;;  %3917 = vmatpush.msra.mxu3 %v3916_v10  ;;  %v3934_v34 = vand.u32 4294901760, %v3933_v47 }
 0x763   : > { %3755 = vmatmul.f32.vlgmr.msrb.gmra.mxu3 %v13709_v7  ;;  %3787 = vmatpush.msra.mxu0 %v3639_v50  ;;  %v3950_v50 = vand.u32 4294901760, %v13877_v19  ;;  %v3945_v42 = vsub.f32 %v13864_v63, %v3944_v18 }
 0x764   : > { %3863 = vmatpush.msra.mxu2 %v13721_v2  ;;  %3923 = vmatpush.msra.mxu3 %v3922_v24 }
 0x765   : > { %3672 = vmatpush.msrb.mxu1 %v3671_v61  ;;  %3608 = vmatmul.f32.gmra.mxu0 %v13869_v29  ;;  %v3951_v31 = vsub.f32 %v13877_v19, %v3950_v50 }
 0x766   : > { %3674 = vmatmul.f32.vlgmr.msrb.gmra.mxu1 %v13645_v46  ;;  %3791 = vmatpush.msra.mxu0 %v3645_v40  ;;  %v18920_v40 = vand.u32 4294901760, %v13743_v8 }
 0x767   : > { %3825 = vmatpush.msra.mxu1 %v13600_v56  ;;  %3865 = vmatpush.msra.mxu2 %v13714_v54  ;;  %v3940_v56 = vand.u32 4294901760, %v3939_v6 }
 0x768   : > { %3929 = vmatpush.msra.mxu3 %v3928_v51  ;;  %3795 = vmatpush.msra.mxu0 %v3651_v17  ;;  %v3946_v17 = vand.u32 4294901760, %v3945_v42 }
 0x769   : > { %3827 = vmatpush.msra.mxu1 %v13663_v0  ;;  %3867 = vmatpush.msra.mxu2 %v13659_v11  ;;  %v18921_v0 = vand.u32 4294901760, %v13750_v58 }
 0x76a   : > { %3935 = vmatpush.msra.mxu3 %v3934_v34  ;;  %3723 = vmatmul.f32.gmra.mxu2 %v13780_v25 }
 0x76b   : > { %3799 = vmatpush.msra.mxu0 %v18920_v40  ;;  %3829 = vmatpush.msra.mxu1 %v13651_v9  ;;  %v3952_v9 = vand.u32 4294901760, %v3951_v31 }
 0x76c   : > { %3869 = vmatpush.msra.mxu2 %v13799_v5  ;;  %3941 = vmatpush.msra.mxu3 %v3940_v56 }
 0x76d   : > { %3761 = vmatmul.f32.gmra.mxu3 %v13813_v55  ;;  %3803 = vmatpush.msra.mxu0 %v18921_v0 }
 0x76e   : > { %3831 = vmatpush.msra.mxu1 %v13632_v48  ;;  %3871 = vmatpush.msra.mxu2 %v13815_v36  ;;  %v18923_v48 = vand.u32 4294901760, %v13746_v16 }
 0x76f   : > { %3947 = vmatpush.msra.mxu3 %v3946_v17  ;;  %3678 = vmatmul.f32.gmra.mxu1 %v13730_v57 }
 0x770   : > { %3807 = vmatpush.msra.mxu0 %v3669_v37  ;;  %3833 = vmatpush.msra.mxu1 %v13613_v27  ;;  %v18922_v27 = vand.u32 4294901760, %v13712_v35 }
 0x771   : > { %3873 = vmatpush.msra.mxu2 %v13839_v22  ;;  %3953 = vmatpush.msra.mxu3 %v3952_v9 }
 0x772   : > { %3809 = vmatmul.f32.vlgmr.msra.gmra.mxu0 %v13645_v46  ;;  %3835 = vmatpush.msra.mxu1 %v13735_v53 }
 0x773   : > { %4106 = vmatpush.msrb.mxu3 %v13676_v28  ;;  %3972 = vmatpush.msrb.mxu0 %v13712_v35 }
 0x774   : > { %3875 = vmatpush.msra.mxu2 %v13854_v30  ;;  %3837 = vmatpush.msra.mxu1 %v13716_v20 }
 0x775   : > { %4108 = vmatpush.msrb.mxu3 %v13702_v32  ;;  %3881 = vmatmul.f32.vlgmr.msra.gmra.mxu2 %v13794_v26 }
 0x776   : > { %3975 = vmatpush.msrb.mxu0 %v13746_v16  ;;  %4056 = vmatpush.msrb.mxu2 %v18922_v27 }
 0x777   : > { %3955 = vmatmul.f32.vlgmr.msra.gmra.mxu3 %v13645_v46  ;;  %3839 = vmatpush.msra.mxu1 %v13700_v1 }
 0x778   : > { %3978 = vmatpush.msrb.mxu0 %v13767_v3  ;;  %4060 = vmatpush.msrb.mxu2 %v18923_v48 }
 0x779   : > { %4110 = vmatpush.msrb.mxu3 %v13721_v2  ;;  %3841 = vmatpush.msra.mxu1 %v13809_v21 }
 0x77a   : > { %3981 = vmatpush.msrb.mxu0 %v13755_v49  ;;  %4064 = vmatpush.msrb.mxu2 %v3914_v13 }
 0x77b   : > { %4112 = vmatpush.msrb.mxu3 %v13714_v54  ;;  %3813 = vmatmul.f32.gmra.mxu0 %v13730_v57 }
 0x77c   : > { %3843 = vmatmul.f32.vlgmr.msra.gmra.mxu1 %v13645_v46  ;;  %3984 = vmatpush.msrb.mxu0 %v13692_v43 }
 0x77d   : > { %4016 = vmatpush.msrb.mxu1 %v13676_v28  ;;  %4068 = vmatpush.msrb.mxu2 %v3920_v62  ;;  %v10565_v28 = vld [vmem:[%s18615_s3 + $0x20] sm:$0xff] }
 0x77e   : > { %4114 = vmatpush.msrb.mxu3 %v13659_v11  ;;  %3889 = vmatmul.f32.gmra.mxu2 %v13869_v29 }
 0x77f   : > { %3987 = vmatpush.msrb.mxu0 %v13833_v15  ;;  %4018 = vmatpush.msrb.mxu1 %v13702_v32 }
 0x780   : > { %4072 = vmatpush.msrb.mxu2 %v3926_v41  ;;  %4116 = vmatpush.msrb.mxu3 %v13799_v5 }
 0x781   : > { %3959 = vmatmul.f32.gmra.mxu3 %v13730_v57  ;;  %3990 = vmatpush.msrb.mxu0 %v13848_v44 }
 0x782   : > { %4020 = vmatpush.msrb.mxu1 %v13721_v2  ;;  %4076 = vmatpush.msrb.mxu2 %v3932_v60 }
 0x783   : > { %4118 = vmatpush.msrb.mxu3 %v13815_v36  ;;  %3993 = vmatpush.msrb.mxu0 %v13864_v63 }
 0x784   : > { %4022 = vmatpush.msrb.mxu1 %v13714_v54  ;;  %4080 = vmatpush.msrb.mxu2 %v3938_v52 }
 0x785   : > { %4120 = vmatpush.msrb.mxu3 %v13839_v22  ;;  %3847 = vmatmul.f32.gmra.mxu1 %v13730_v57 }
 0x786   : > { %3996 = vmatpush.msrb.mxu0 %v13877_v19  ;;  %4024 = vmatpush.msrb.mxu1 %v13659_v11  ;;  %v18924_v19 = vld [vmem:[#allocation21_spill] sm:$0xff] }
 0x787   : > { %4084 = vmatpush.msrb.mxu2 %v3944_v18  ;;  %4122 = vmatpush.msrb.mxu3 %v13854_v30 }
 0x788   : > { %3999 = vmatmul.f32.vlgmr.msrb.gmra.mxu0 %v13674_v38  ;;  %4026 = vmatpush.msrb.mxu1 %v13799_v5  ;;  %v3562_v5 = vpop.permute.xlu0 %3561 }
 0x789   : > { %4088 = vmatpush.msrb.mxu2 %v3950_v50  ;;  %4124 = vmatmul.f32.vlgmr.msrb.gmra.mxu3 %v13645_v46 }
 0x78a   : > { %4028 = vmatpush.msrb.mxu1 %v13815_v36  ;;  %4090 = vmatmul.f32.vlgmr.msrb.gmra.mxu2 %v13645_v46 }
 0x78b   : > { %3556 = vperm.xlu2 %10679, %v10565_v28  }
 0x78c   : > { %4030 = vmatpush.msrb.mxu1 %v13839_v22 }
 0x78e   : > { %4032 = vmatpush.msrb.mxu1 %v13854_v30 }
 0x78f   : > { %4036 = vmatmul.f32.vlgmr.msrb.gmra.mxu1 %v13709_v7 }
 0x790   : > { %4004 = vmatmul.f32.gmra.mxu0 %v13780_v25 }
 0x791   : > { %4128 = vmatmul.f32.gmra.mxu3 %v13730_v57 }
 0x792   : > { %4094 = vmatmul.f32.gmra.mxu2 %v13730_v57 }
 0x797   : > { %4042 = vmatmul.f32.gmra.mxu1 %v13813_v55 }
 0x7d9   : > { %v3601_v11 = vpop.f32.mrf.mxu0 }
 0x7e2   : > { %v3609_v35 = vpop.f32.mrf.mxu0 }
 0x7e3   : > { %v3675_v38 = vpop.f32.mrf.mxu1  ;;  %v3610_v13 = vadd.f32 %v3609_v35, %v3562_v5 }
 0x7e4   : > { %v3719_v1 = vpop.f32.mrf.mxu2 }
 0x7e5   : > { %v3557_v43 = vpop.permute.xlu2 %3556 }
 0x7e6   : > { %v3756_v46 = vpop.f32.mrf.mxu3  ;;  %v3602_v32 = vadd.f32 %v3601_v11, %v3557_v43 }
 0x7e8   : > { %v3676_v54 = vadd.f32 %v3675_v38, %v3602_v32  ;;  %v10567_v32 = vld [vmem:[%s18821_s2 + $0x18] sm:$0xff] }
 0x7ea   : > { %v3720_v53 = vadd.f32 %v3719_v1, %v3676_v54 }
 0x7ec   : > { %v3679_v20 = vpop.f32.mrf.mxu1  ;;  %v3757_v16 = vadd.f32 %v3756_v46, %v3720_v53 }
 0x7ed   : > { %v3724_v2 = vpop.f32.mrf.mxu2  ;;  %v3680_v62 = vadd.f32 %v3679_v20, %v3610_v13 }
 0x7ef   : > { %v3810_v8 = vpop.f32.mrf.mxu0  ;;  %v3725_v44 = vadd.f32 %v3724_v2, %v3680_v62 }
 0x7f0   : > { %v3762_v7 = vpop.f32.mrf.mxu3  ;;  %v3811_v58 = vadd.f32 %v3810_v8, %v3757_v16 }
 0x7f1   : > { %v3763_v45 = vadd.f32 %v3762_v7, %v3725_v44  ;;  %v14039_v7 = vld [vmem:[%s18616_s4 + $0x80] sm:$0xff] }
 0x7f8   : > { %v3882_v57 = vpop.f32.mrf.mxu2  ;;  %v3814_v26 = vpop.f32.mrf.mxu0 }
 0x7f9   : > { %v3844_v49 = vpop.f32.mrf.mxu1  ;;  %v3883_v15 = vadd.f32 %v3882_v57, %v3557_v43  ;;  %v3815_v61 = vadd.f32 %v3814_v26, %v3763_v45  ;;  %v18926_v43 = vld [vmem:[#allocation19_spill] sm:$0xff]  ;;  %v14090_v45 = vld [vmem:[%s18616_s4 + $0x60] sm:$0xff] }
 0x7fa   : > { %v3845_v3 = vadd.f32 %v3844_v49, %v3811_v58  ;;  %v3956_v55 = vpop.f32.mrf.mxu3 }
 0x7fb   : > { %v3957_v14 = vadd.f32 %v3956_v55, %v3883_v15 }
 0x7fc   : > { %v4132_v25 = vmul.f32 0.5, %v3845_v3 }
 0x7fe   : > { %10696 = vtanh.f32 %v4132_v25 }
 0x801   : > { %v3890_v22 = vpop.f32.mrf.mxu2 }
 0x802   : > { %v3848_v21 = vpop.f32.mrf.mxu1  ;;  %v3891_v50 = vadd.f32 %v3890_v22, %v3562_v5  ;;  %v14074_v22 = vld [vmem:[%s18616_s4 + $0x50] sm:$0xff] }
 0x803   : > { %v3849_v52 = vadd.f32 %v3848_v21, %v3815_v61 }
 0x804   : > { %v10697_v36 = vpop.eup %10696  ;;  %v3960_v37 = vpop.f32.mrf.mxu3 }
 0x805   : > { %v4136_v23 = vmul.f32 2.0, %v10697_v36  ;;  %v4000_v33 = vpop.f32.mrf.mxu0  ;;  %v3961_v56 = vadd.f32 %v3960_v37, %v3891_v50 }
 0x806   : > { %v4001_v30 = vadd.f32 %v4000_v33, %v3957_v14 }
 0x807   : > { %v4138_v41 = vmul.f32 1.442695, %v4136_v23  ;;  %v14068_v23 = vld [vmem:[%s18616_s4 + $0x88] sm:$0xff] }
 0x809   : > { %10698 = vpow2.f32 %v4138_v41 }
 0x80c   : > { %v4037_v10 = vpop.f32.mrf.mxu1  ;;  %v4125_v29 = vpop.f32.mrf.mxu3 }
 0x80d   : > { %v4038_v60 = vadd.f32 %v4037_v10, %v4001_v30  ;;  %v4091_v63 = vpop.f32.mrf.mxu2  ;;  %v4005_v34 = vpop.f32.mrf.mxu0 }
 0x80e   : > { %v4006_v0 = vadd.f32 %v4005_v34, %v3961_v56 }
 0x80f   : > { %v10699_v24 = vpop.eup %10698  ;;  %v4092_v59 = vadd.f32 %v4091_v63, %v4038_v60 }
 0x810   : > { %v4142_v47 = vmul.f32 %v10699_v24, %v18924_v19 }
 0x811   : > { %v4126_v18 = vadd.f32 %v4125_v29, %v4092_v59 }
 0x812   : > { %v13992_v51 = vadd.f32 %v4142_v47, %v3849_v52  ;;  %v14111_v47 = vld [vmem:[%s18616_s4 + $0x70] sm:$0xff] }
 0x813   : > { %v4133_v6 = vmul.f32 0.5, %v4126_v18 }
 0x814   : > { %18925 = vst [vmem:[#allocation22_spill] sm:$0xff] %v13992_v51  ;;  %4188 = vrot.lane.b32.xlu2 %v13992_v51, %s11062_s26  ;;  %4196 = vrot.lane.b32.xlu0 %v13992_v51, %s11060_s22  ;;  %v4043_v31 = vpop.f32.mrf.mxu1  ;;  %v4129_v28 = vpop.f32.mrf.mxu3  ;;  %v14063_v62 = vand.u32 4294901760, %v13992_v51 }
 0x815   : > { %10700 = vtanh.f32 %v4133_v6  ;;  %4204 = vrot.lane.b32.xlu1 %v13992_v51, %s11061_s25  ;;  %v4044_v9 = vadd.f32 %v4043_v31, %v4006_v0  ;;  %v4095_v27 = vpop.f32.mrf.mxu2  ;;  %v14136_v0 = vld [vmem:[%s18616_s4 + $0x58] sm:$0xff] }
 0x816   : > { %v14079_v41 = vsub.f32 %v13992_v51, %v14063_v62 }
 0x817   : > { %v4096_v48 = vadd.f32 %v4095_v27, %v4044_v9  ;;  %v14142_v9 = vld [vmem:[%s18616_s4 + $0x10] sm:$0xff] }
 0x818   : > { %v18689_v24 = vand.u32 4294901760, %v14079_v41  ;;  %18928 = vst [vmem:[#allocation20_spill] sm:$0xff] %v14142_v9 }
 0x819   : > { %v4130_v38 = vadd.f32 %v4129_v28, %v4096_v48  ;;  %v14153_v28 = vld [vmem:[%s18616_s4 + $0x68] sm:$0xff] }
 0x81a   : > { %v14148_v48 = vsub.f32 %v14079_v41, %v18689_v24 }
 0x81b   : > { %v10701_v42 = vpop.eup %10700 }
 0x81c   : > { %v4137_v40 = vmul.f32 2.0, %v10701_v42  ;;  %4164 = vrot.lane.b32.xlu2 %v13992_v51, %s11065_s15  ;;  %4172 = vrot.lane.b32.xlu0 %v13992_v51, %s11064_s23  ;;  %v14125_v42 = vld [vmem:[%s18616_s4 + $0x78] sm:$0xff] }
 0x81d   : > { %4180 = vrot.lane.b32.xlu1 %v13992_v51, %s18822_s14 }
 0x81e   : > { %v4140_v17 = vmul.f32 1.442695, %v4137_v40 }
 0x820   : > { %10702 = vpow2.f32 %v4140_v17 }
 0x825   : > { %4156 = vrot.lane.b32.xlu1 %v13992_v51, %s18823_s11 }
 0x826   : > { %v10703_v11 = vpop.eup %10702 }
 0x827   : > { %v4143_v1 = vmul.f32 %v10703_v11, %v18926_v43 }
 0x829   : > { %v14009_v46 = vadd.f32 %v4143_v1, %v4130_v38 }
 0x82b   : > { %18927 = vst [vmem:[#allocation23_spill] sm:$0xff] %v14009_v46  ;;  %4206 = vrot.lane.b32.xlu2 %v14009_v46, %s11061_s25  ;;  %4190 = vrot.lane.b32.xlu0 %v14009_v46, %s11062_s26 }
 0x82d   : > { %4198 = vrot.lane.b32.xlu1 %v14009_v46, %s11060_s22 }
 0x833   : > { %4182 = vrot.lane.b32.xlu2 %v14009_v46, %s18822_s14  ;;  %4166 = vrot.lane.b32.xlu0 %v14009_v46, %s11065_s15 }
 0x835   : > { %4174 = vrot.lane.b32.xlu1 %v14009_v46, %s11064_s23 }
 0x83b   : > { %4158 = vrot.lane.b32.xlu2 %v14009_v46, %s18823_s11  ;;  %4148 = vrot.lane.b32.xlu0 %v13992_v51, %s18824_s19 }
 0x83d   : > { %4150 = vrot.lane.b32.xlu1 %v14009_v46, %s18824_s19 }
 0x843   : > { %4721 = vperm.xlu2 %10679, %v10567_v32  }
 0x86e   : > { %v4189_v35 = vpop.permute.xlu2 %4188 }
 0x876   : > { %v14032_v54 = vpop.permute.xlu2 %4164 }
 0x885   : > { %v4207_v20 = vpop.permute.xlu2 %4206 }
 0x886   : > { %v4197_v16 = vpop.permute.xlu0 %4196 }
 0x887   : > { %v4205_v2 = vpop.permute.xlu1 %4204 }
 0x888   : > { %v4208_v53 = vsel %vm480_vm2, %v4205_v2, %v4207_v20  ;;  %v4209_v13 = vsel %vm480_vm2, %v4207_v20, %v4205_v2 }
 0x889   : > { %v4210_v8 = vmul.f32 %v14039_v7, %v4208_v53  ;;  %v4211_v15 = vmul.f32 %v14068_v23, %v4209_v13  ;;  %v14172_v53 = vld [vmem:[%s18616_s4 + $0x20] sm:$0xff] }
 0x88b   : > { %v14042_v58 = vand.u32 4294901760, %v4210_v8  ;;  %v14081_v33 = vand.u32 4294901760, %v4211_v15 }
 0x88d   : > { %v14045_v49 = vsub.f32 %v4210_v8, %v14042_v58  ;;  %4223 = vmatpush.msra.mxu0 %v14042_v58  ;;  %4363 = vmatpush.msra.mxu3 %v14042_v58  ;;  %v4183_v5 = vpop.permute.xlu2 %4182  ;;  %v14115_v6 = vsub.f32 %v4211_v15, %v14081_v33 }
 0x88e   : > { %v14054_v26 = vpop.permute.xlu0 %4172 }
 0x88f   : > { %4324 = vmatpush.msra.mxu2 %v14045_v49  ;;  %v4181_v3 = vpop.permute.xlu1 %4180  ;;  %v18693_v57 = vand.u32 4294901760, %v14045_v49  ;;  %v18688_v20 = vand.u32 4294901760, %v14115_v6 }
 0x890   : > { %v4184_v21 = vsel %vm444_vm3, %v4181_v3, %v4183_v5  ;;  %v4185_v59 = vsel %vm444_vm3, %v4183_v5, %v4181_v3 }
 0x891   : > { %v4259_v25 = vsub.f32 %v14045_v49, %v18693_v57  ;;  %v4186_v37 = vmul.f32 %v14074_v22, %v4184_v21  ;;  %v4187_v17 = vmul.f32 %v14136_v0, %v4185_v59 }
 0x893   : > { %v4260_v55 = vand.u32 4294901760, %v4259_v25  ;;  %v14083_v14 = vand.u32 4294901760, %v4186_v37  ;;  %v14178_v25 = vand.u32 4294901760, %v4187_v17 }
 0x895   : > { %4261 = vmatpush.msra.mxu1 %v4260_v55  ;;  %v14093_v63 = vpop.permute.xlu2 %4158  ;;  %v14120_v34 = vsub.f32 %v4186_v37, %v14083_v14 }
 0x897   : > { %v14060_v36 = vpop.permute.xlu1 %4156 }
 0x898   : > { %v4161_v52 = vsel %vm408_vm7, %v14093_v63, %v14060_v36 }
 0x899   : > { %v4162_v27 = vmul.f32 %v14142_v9, %v4161_v52 }
 0x89b   : > { %v14180_v55 = vand.u32 4294901760, %v4162_v27 }
 0x89d   : > { %v4191_v44 = vpop.permute.xlu0 %4190 }
 0x89e   : > { %v4192_v30 = vsel %vm456_vm0, %v4189_v35, %v4191_v44  ;;  %v4193_v50 = vsel %vm456_vm0, %v4191_v44, %v4189_v35  ;;  %v18690_v35 = vand.u32 4294901760, %v14120_v34  ;;  %v14197_v44 = vld [vmem:[%s18616_s4 + $0x30] sm:$0xff] }
 0x89f   : > { %v4194_v10 = vmul.f32 %v14090_v45, %v4192_v30  ;;  %v4199_v60 = vpop.permute.xlu1 %4198  ;;  %v4195_v11 = vmul.f32 %v14153_v28, %v4193_v50 }
 0x8a0   : > { %v4200_v61 = vsel %vm468_vm1, %v4197_v16, %v4199_v60  ;;  %v4201_v29 = vsel %vm468_vm1, %v4199_v60, %v4197_v16 }
 0x8a1   : > { %v14106_v19 = vand.u32 4294901760, %v4194_v10  ;;  %v4202_v18 = vmul.f32 %v14111_v47, %v4200_v61  ;;  %v4203_v56 = vmul.f32 %v14125_v42, %v4201_v29  ;;  %v14187_v21 = vand.u32 4294901760, %v4195_v11 }
 0x8a2   : > { %v4277_v61 = vsub.f32 %v14120_v34, %v18690_v35  ;;  %v14215_v29 = vsub.f32 %v14115_v6, %v18688_v20 }
 0x8a3   : > { %v14128_v40 = vand.u32 4294901760, %v4202_v18  ;;  %v14131_v31 = vsub.f32 %v4194_v10, %v14106_v19  ;;  %v14167_v2 = vand.u32 4294901760, %v4203_v56  ;;  %v4147_v10 = vld [vmem:[#allocation2 + $0x18] sm:$0xff] }
 0x8a5   : > { %v4167_v38 = vpop.permute.xlu0 %4166  ;;  %4225 = vmatpush.msra.mxu0 %v14128_v40  ;;  %4365 = vmatpush.msra.mxu3 %v14128_v40  ;;  %v14159_v43 = vsub.f32 %v4202_v18, %v14128_v40  ;;  %v18691_v32 = vand.u32 4294901760, %v14131_v31  ;;  %v14218_v59 = vsub.f32 %v4203_v56, %v14167_v2 }
 0x8a6   : > { %v4169_v1 = vsel %vm420_vm5, %v4167_v38, %v14032_v54  ;;  %v4168_v52 = vsel %vm420_vm5, %v14032_v54, %v4167_v38  ;;  %v14238_v54 = vsub.f32 %v4162_v27, %v14180_v55  ;;  %v4213_v38 = vsel %vm488_vm6, %v4147_v10, 0 }
 0x8a7   : > { %v4170_v8 = vmul.f32 %v14172_v53, %v4169_v1  ;;  %4227 = vmatpush.msra.mxu0 %v14106_v19  ;;  %4327 = vmatpush.msra.mxu2 %v14159_v43  ;;  %v4175_v16 = vpop.permute.xlu1 %4174  ;;  %v18692_v3 = vand.u32 4294901760, %v14159_v43  ;;  %v14233_v1 = vld [vmem:[%s18616_s4 + $0x38] sm:$0xff]  ;;  %v4160_v27 = vsel %vm408_vm7, %v14060_v36, %v14093_v63  ;;  %v4278_v36 = vand.u32 4294901760, %v4277_v61 }
 0x8a8   : > { %4367 = vmatpush.msra.mxu3 %v14106_v19  ;;  %v4177_v5 = vsel %vm432_vm4, %v4175_v16, %v14054_v26  ;;  %v4176_v37 = vsel %vm432_vm4, %v14054_v26, %v4175_v16  ;;  %v4271_v26 = vsub.f32 %v14131_v31, %v18691_v32  ;;  %18929 = vst [vmem:[#allocation24_spill] sm:$0xff] %v14233_v1  ;;  %v14271_v32 = vand.u32 4294901760, %v4213_v38  ;;  %v14284_v61 = vld [vmem:[%s18616_s4 + $0x18] sm:$0xff] }
 0x8a9   : > { %v14189_v15 = vand.u32 4294901760, %v4170_v8  ;;  %v4178_v30 = vmul.f32 %v14197_v44, %v4177_v5  ;;  %4229 = vmatpush.msra.mxu0 %v14083_v14  ;;  %4330 = vmatpush.msra.mxu2 %v14131_v31  ;;  %v4265_v60 = vsub.f32 %v14159_v43, %v18692_v3  ;;  %v4179_v56 = vmul.f32 %v14233_v1, %v4176_v37 }
 0x8aa   : > { %4369 = vmatpush.msra.mxu3 %v14083_v14  ;;  %v14242_v5 = vsub.f32 %v4187_v17, %v14178_v25  ;;  %v14262_v17 = vld [vmem:[%s18616_s4 + $0x28] sm:$0xff]  ;;  %18931 = vst [vmem:[#allocation18_spill] sm:$0xff] %v14284_v61  ;;  %v4163_v57 = vmul.f32 %v14284_v61, %v4160_v27 }
 0x8ab   : > { %v14223_v18 = vand.u32 4294901760, %v4178_v30  ;;  %4231 = vmatpush.msra.mxu0 %v14063_v62  ;;  %4333 = vmatpush.msra.mxu2 %v14120_v34  ;;  %v14228_v50 = vsub.f32 %v4170_v8, %v14189_v15  ;;  %v4266_v16 = vand.u32 4294901760, %v4265_v60  ;;  %v14245_v8 = vsub.f32 %v4195_v11, %v14187_v21  ;;  %18930 = vst [vmem:[#allocation25_spill] sm:$0xff] %v14262_v17 }
 0x8ac   : > { %4371 = vmatpush.msra.mxu3 %v14063_v62  ;;  %v14253_v60 = vand.u32 4294901760, %v14009_v46  ;;  %v4171_v11 = vmul.f32 %v14262_v17, %v4168_v52  ;;  %v14273_v52 = vand.u32 4294901760, %v4179_v56 }
 0x8ad   : > { %4233 = vmatpush.msra.mxu0 %v14223_v18  ;;  %4336 = vmatpush.msra.mxu2 %v14079_v41  ;;  %v14250_v37 = vsub.f32 %v4178_v30, %v14223_v18  ;;  %v4272_v30 = vand.u32 4294901760, %v4271_v26  ;;  %v18696_v10 = vand.u32 4294901760, %v14228_v50  ;;  %v4149_v20 = vpop.permute.xlu0 %4148 }
 0x8ae   : > { %4267 = vmatpush.msra.mxu1 %v4266_v16  ;;  %4373 = vmatpush.msra.mxu3 %v14223_v18  ;;  %v14299_v3 = vand.u32 4294901760, %v4171_v11  ;;  %v14308_v35 = vsub.f32 %v14009_v46, %v14253_v60  ;;  %v14323_v61 = vsub.f32 %v4179_v56, %v14273_v52  ;;  %v18935_v46 = vand.u32 4294901760, %v14148_v48 }
 0x8af   : > { %v4151_v24 = vpop.permute.xlu1 %4150  ;;  %4235 = vmatpush.msra.mxu0 %v14189_v15  ;;  %4339 = vmatpush.msra.mxu2 %v14250_v37  ;;  %v18694_v63 = vand.u32 4294901760, %v14250_v37  ;;  %v4295_v27 = vsub.f32 %v14228_v50, %v18696_v10  ;;  %v18934_v10 = vand.u32 4294901760, %v14218_v59 }
 0x8b0   : > { %4273 = vmatpush.msra.mxu1 %v4272_v30  ;;  %v4152_v26 = vsel %vm397_vm8, %v4149_v20, %v4151_v24  ;;  %v4153_v16 = vsel %vm397_vm8, %v4151_v24, %v4149_v20  ;;  %4375 = vmatpush.msra.mxu3 %v14189_v15  ;;  %v14290_v30 = vld [vmem:[%s18616_s4] sm:$0xff]  ;;  %v4532_v1 = vand.u32 4294901760, %v14308_v35 }
 0x8b1   : > { %18932 = vst [vmem:[#allocation17_spill] sm:$0xff] %v14290_v30  ;;  %v4154_v13 = vmul.f32 %v14290_v30, %v4153_v16  ;;  %4237 = vmatpush.msra.mxu0 %v14180_v55  ;;  %4342 = vmatpush.msra.mxu2 %v14228_v50  ;;  %v4289_v24 = vsub.f32 %v14250_v37, %v18694_v63  ;;  %v14313_v63 = vld [vmem:[%s18616_s4 + $0x8] sm:$0xff]  ;;  %v18936_v30 = vand.u32 4294901760, %v14238_v54 }
 0x8b2   : > { %4279 = vmatpush.msra.mxu1 %v4278_v36  ;;  %4377 = vmatpush.msra.mxu3 %v14180_v55  ;;  %18933 = vst [vmem:[#allocation21_spill] sm:$0xff] %v14313_v63  ;;  %v4155_v20 = vmul.f32 %v14313_v63, %v4152_v26  ;;  %v4515_v16 = vsub.f32 %v14218_v59, %v18934_v10  ;;  %v14333_v63 = vand.u32 4294901760, %v4163_v57  ;;  %v4510_v10 = vand.u32 4294901760, %v14215_v29 }
 0x8b3   : > { %v14316_v36 = vand.u32 4294901760, %v4154_v13  ;;  %4345 = vmatpush.msra.mxu2 %v14238_v54  ;;  %v4290_v51 = vand.u32 4294901760, %v4289_v24  ;;  %v4301_v9 = vsub.f32 %v14238_v54, %v18936_v30  ;;  %v14331_v26 = vsub.f32 %v4213_v38, %v14271_v32 }
 0x8b4   : > { %4285 = vmatpush.msra.mxu1 %v18935_v46  ;;  %v18937_v46 = vand.u32 4294901760, %v14245_v8  ;;  %v14345_v30 = vsub.f32 %v4171_v11, %v14299_v3  ;;  %v18938_v38 = vand.u32 4294901760, %v14045_v49  ;;  %v4296_v24 = vand.u32 4294901760, %v4295_v27 }
 0x8b5   : > { %4239 = vmatpush.msra.mxu0 %v14316_v36  ;;  %4379 = vmatpush.msra.mxu3 %v14316_v36  ;;  %v14339_v56 = vsub.f32 %v4154_v13, %v14316_v36  ;;  %v14350_v17 = vand.u32 4294901760, %v4155_v20  ;;  %v4516_v13 = vand.u32 4294901760, %v4515_v16  ;;  %v18939_v29 = vand.u32 4294901760, %v14242_v5 }
 0x8b6   : > { %v4521_v48 = vsub.f32 %v14245_v8, %v18937_v46  ;;  %4291 = vmatpush.msra.mxu1 %v4290_v51  ;;  %v18940_v51 = vand.u32 4294901760, %v14159_v43  ;;  %v4302_v49 = vand.u32 4294901760, %v4301_v9  ;;  %v4538_v27 = vand.u32 4294901760, %v14323_v61 }
 0x8b7   : > { %4397 = vmatpush.msrb.mxu0 %v18938_v38  ;;  %4511 = vmatpush.msrb.mxu3 %v4510_v10  ;;  %v4527_v46 = vsub.f32 %v14242_v5, %v18939_v29  ;;  %v4306_v11 = vand.u32 4294901760, %v14339_v56  ;;  %v14361_v38 = vand.u32 4294901760, %v14331_v26  ;;  %v14364_v10 = vsub.f32 %v4163_v57, %v14333_v63 }
 0x8b8   : > { %4348 = vmatpush.msra.mxu2 %v14339_v56  ;;  %4297 = vmatpush.msra.mxu1 %v4296_v24  ;;  %v4522_v16 = vand.u32 4294901760, %v4521_v48  ;;  %v18941_v24 = vand.u32 4294901760, %v14131_v31  ;;  %v4533_v9 = vsub.f32 %v14308_v35, %v4532_v1  ;;  %v4544_v43 = vand.u32 4294901760, %v14345_v30 }
 0x8b9   : > { %4401 = vmatpush.msrb.mxu0 %v18940_v51  ;;  %4517 = vmatpush.msrb.mxu3 %v4516_v13  ;;  %v4307_v29 = vsub.f32 %v14339_v56, %v4306_v11  ;;  %v14375_v51 = vsub.f32 %v4155_v20, %v14350_v17  ;;  %v4528_v57 = vand.u32 4294901760, %v4527_v46  ;;  %v18942_v56 = vand.u32 4294901760, %v14120_v34 }
 0x8ba   : > { %4473 = vmatpush.msrb.mxu2 %v14081_v33  ;;  %4303 = vmatpush.msra.mxu1 %v4302_v49  ;;  %v4539_v31 = vsub.f32 %v14323_v61, %v4538_v27  ;;  %v4243_v13 = vsub.f32 %v14331_v26, %v14361_v38  ;;  %v4550_v20 = vand.u32 4294901760, %v14364_v10  ;;  %v18943_v46 = vand.u32 4294901760, %v14079_v41 }
 0x8bb   : > { %4405 = vmatpush.msrb.mxu0 %v18941_v24  ;;  %4523 = vmatpush.msrb.mxu3 %v4522_v16  ;;  %v4308_v48 = vand.u32 4294901760, %v4307_v29  ;;  %v4534_v34 = vand.u32 4294901760, %v4533_v9  ;;  %v4545_v49 = vsub.f32 %v14345_v30, %v4544_v43  ;;  %v4556_v16 = vand.u32 4294901760, %v14375_v51 }
 0x8bc   : > { %4475 = vmatpush.msrb.mxu2 %v14167_v2  ;;  %v18944_v29 = vand.u32 4294901760, %v14250_v37  ;;  %v4540_v24 = vand.u32 4294901760, %v4539_v31  ;;  %v4551_v41 = vsub.f32 %v14364_v10, %v4550_v20  ;;  %4383 = vmatmul.f32.vlgmr.msra.gmra.mxu3 %v14361_v38 }
 0x8bd   : > { %4409 = vmatpush.msrb.mxu0 %v18942_v56  ;;  %4351 = vmatmul.f32.vlgmr.msra.gmra.mxu2 %v14331_v26  ;;  %v4546_v9 = vand.u32 4294901760, %v4545_v49  ;;  %v4557_v37 = vsub.f32 %v14375_v51, %v4556_v16 }
 0x8be   : > { %4477 = vmatpush.msrb.mxu2 %v14187_v21  ;;  %4529 = vmatpush.msrb.mxu3 %v4528_v57  ;;  %v4244_v57 = vand.u32 4294901760, %v4243_v13 }
 0x8bf   : > { %4309 = vmatpush.msra.mxu1 %v4308_v48  ;;  %4413 = vmatpush.msrb.mxu0 %v18943_v46  ;;  %v4552_v48 = vand.u32 4294901760, %v4551_v41 }
 0x8c0   : > { %4479 = vmatpush.msrb.mxu2 %v14178_v25  ;;  %4535 = vmatpush.msrb.mxu3 %v4534_v34 }
 0x8c1   : > { %4443 = vmatpush.msrb.mxu1 %v14042_v58  ;;  %4417 = vmatpush.msrb.mxu0 %v18944_v29  ;;  %v18945_v58 = vand.u32 4294901760, %v14228_v50 }
 0x8c2   : > { %4481 = vmatpush.msrb.mxu2 %v14253_v60  ;;  %4541 = vmatpush.msrb.mxu3 %v4540_v24  ;;  %v4727_v24 = vld [vmem:[#allocation5 + $0x30] sm:$0xff] }
 0x8c3   : > { %4445 = vmatpush.msrb.mxu1 %v14128_v40  ;;  %4421 = vmatpush.msrb.mxu0 %v18945_v58  ;;  %v18946_v40 = vand.u32 4294901760, %v14238_v54  ;;  %v4807_v41 = vsel %vm488_vm6, %v4727_v24, 0 }
 0x8c4   : > { %4483 = vmatpush.msrb.mxu2 %v14273_v52  ;;  %4547 = vmatpush.msrb.mxu3 %v4546_v9 }
 0x8c5   : > { %4447 = vmatpush.msrb.mxu1 %v14106_v19  ;;  %4245 = vmatmul.f32.vlgmr.msra.gmra.mxu0 %v4244_v57  ;;  %v4558_v19 = vand.u32 4294901760, %v4557_v37 }
 0x8c6   : > { %4425 = vmatpush.msrb.mxu0 %v18946_v40  ;;  %4485 = vmatpush.msrb.mxu2 %v14299_v3 }
 0x8c7   : > { %4449 = vmatpush.msrb.mxu1 %v14083_v14  ;;  %4553 = vmatpush.msrb.mxu3 %v4552_v48  ;;  %v18947_v14 = vand.u32 4294901760, %v14115_v6 }
 0x8c8   : > { %4311 = vmatmul.f32.vlgmr.msra.gmra.mxu1 %v14271_v32  ;;  %4429 = vmatpush.msrb.mxu0 %v4306_v11 }
 0x8c9   : > { %4451 = vmatpush.msrb.mxu1 %v14063_v62  ;;  %4487 = vmatpush.msrb.mxu2 %v14333_v63  ;;  %v18948_v62 = vand.u32 4294901760, %v14218_v59 }
 0x8ca   : > { %4559 = vmatpush.msrb.mxu3 %v4558_v19  ;;  %4574 = vmatpush.msra.mxu0 %v14115_v6  ;;  %v18950_v6 = vand.u32 4294901760, %v14242_v5 }
 0x8cb   : > { %4453 = vmatpush.msrb.mxu1 %v14223_v18  ;;  %4489 = vmatpush.msrb.mxu2 %v14350_v17  ;;  %v18949_v18 = vand.u32 4294901760, %v14245_v8 }
 0x8cc   : > { %4693 = vmatpush.msra.mxu3 %v14081_v33  ;;  %4577 = vmatpush.msra.mxu0 %v14218_v59 }
 0x8cd   : > { %4647 = vmatpush.msra.mxu2 %v18947_v14  ;;  %4455 = vmatpush.msrb.mxu1 %v14189_v15  ;;  %v14543_v14 = vand.u32 4294901760, %v4807_v41 }
 0x8ce   : > { %4695 = vmatpush.msra.mxu3 %v14167_v2  ;;  %4431 = vmatmul.f32.vlgmr.msrb.gmra.mxu0 %v14271_v32 }
 0x8cf   : > { %4651 = vmatpush.msra.mxu2 %v18948_v62  ;;  %4580 = vmatpush.msra.mxu0 %v14245_v8 }
 0x8d0   : > { %4697 = vmatpush.msra.mxu3 %v14187_v21  ;;  %4457 = vmatpush.msrb.mxu1 %v14180_v55 }
 0x8d1   : > { %4655 = vmatpush.msra.mxu2 %v18949_v18  ;;  %4583 = vmatpush.msra.mxu0 %v14242_v5 }
 0x8d2   : > { %4699 = vmatpush.msra.mxu3 %v14178_v25  ;;  %4459 = vmatpush.msrb.mxu1 %v14316_v36 }
 0x8d3   : > { %4659 = vmatpush.msra.mxu2 %v18950_v6  ;;  %4461 = vmatmul.f32.vlgmr.msrb.gmra.mxu1 %v14271_v32 }
 0x8d4   : > { %4586 = vmatpush.msra.mxu0 %v14308_v35  ;;  %4613 = vmatpush.msra.mxu1 %v14081_v33 }
 0x8d5   : > { %4701 = vmatpush.msra.mxu3 %v14253_v60  ;;  %4663 = vmatpush.msra.mxu2 %v4532_v1 }
 0x8d6   : > { %4589 = vmatpush.msra.mxu0 %v14323_v61  ;;  %4615 = vmatpush.msra.mxu1 %v14167_v2 }
 0x8d7   : > { %4703 = vmatpush.msra.mxu3 %v14273_v52  ;;  %4667 = vmatpush.msra.mxu2 %v4538_v27 }
 0x8d8   : > { %4592 = vmatpush.msra.mxu0 %v14345_v30  ;;  %4617 = vmatpush.msra.mxu1 %v14187_v21 }
 0x8d9   : > { %4705 = vmatpush.msra.mxu3 %v14299_v3  ;;  %4495 = vmatmul.f32.vlgmr.msrb.gmra.mxu2 %v4244_v57 }
 0x8da   : > { %4561 = vmatmul.f32.vlgmr.msrb.gmra.mxu3 %v14271_v32  ;;  %4595 = vmatpush.msra.mxu0 %v14364_v10  ;;  %v10569_v10 = vld [vmem:[%s18615_s3 + $0x38] sm:$0xff] }
 0x8db   : > { %4619 = vmatpush.msra.mxu1 %v14178_v25  ;;  %4671 = vmatpush.msra.mxu2 %v4544_v43 }
 0x8dc   : > { %4707 = vmatpush.msra.mxu3 %v14333_v63  ;;  %4598 = vmatpush.msra.mxu0 %v14375_v51 }
 0x8dd   : > { %4621 = vmatpush.msra.mxu1 %v14253_v60  ;;  %4675 = vmatpush.msra.mxu2 %v4550_v20 }
 0x8de   : > { %4709 = vmatpush.msra.mxu3 %v14350_v17  ;;  %4601 = vmatmul.f32.vlgmr.msra.gmra.mxu0 %v14331_v26 }
 0x8df   : > { %4623 = vmatpush.msra.mxu1 %v14273_v52  ;;  %4679 = vmatpush.msra.mxu2 %v4556_v16 }
 0x8e1   : > { %4625 = vmatpush.msra.mxu1 %v14299_v3  ;;  %4681 = vmatmul.f32.vlgmr.msra.gmra.mxu2 %v14271_v32 }
 0x8e2   : > { %4711 = vmatmul.f32.vlgmr.msra.gmra.mxu3 %v14271_v32  ;;  %v4722_v32 = vpop.permute.xlu2 %4721 }
 0x8e3   : > { %4627 = vmatpush.msra.mxu1 %v14333_v63 }
 0x8e5   : > { %4629 = vmatpush.msra.mxu1 %v14350_v17 }
 0x8e6   : > { %4633 = vmatmul.f32.vlgmr.msra.gmra.mxu1 %v14361_v38 }
 0x93f   : > { %v4384_v21 = vpop.f32.mrf.mxu3 }
 0x940   : > { %v4352_v2 = vpop.f32.mrf.mxu2 }
 0x942   : > { %v4246_v33 = vpop.f32.mrf.mxu0 }
 0x945   : > { %v4312_v35 = vpop.f32.mrf.mxu1 }
 0x946   : > { %v4313_v25 = vadd.f32 %v4312_v35, %v4246_v33 }
 0x948   : > { %v4353_v55 = vadd.f32 %v4352_v2, %v4313_v25 }
 0x94a   : > { %v4385_v15 = vadd.f32 %v4384_v21, %v4353_v55 }
 0x94b   : > { %v4432_v59 = vpop.f32.mrf.mxu0 }
 0x94c   : > { %v4433_v50 = vadd.f32 %v4432_v59, %v4385_v15  ;;  %v14564_v15 = vsub.f32 %v4807_v41, %v14543_v14 }
 0x950   : > { %v4462_v3 = vpop.f32.mrf.mxu1 }
 0x951   : > { %v4463_v1 = vadd.f32 %v4462_v3, %v4433_v50 }
 0x953   : > { %v4715_v54 = vadd.f32 %v4463_v1, %v13555_v12 }
 0x955   : > { %v14476_v5 = vadd.f32 %v4722_v32, %v4715_v54 }
 0x957   : > { %4769 = vrot.lane.b32.xlu1 %v14476_v5, %s11062_s26  ;;  %4777 = vrot.lane.b32.xlu2 %v14476_v5, %s11060_s22  ;;  %v14527_v29 = vand.u32 4294901760, %v14476_v5 }
 0x958   : > { %4785 = vrot.lane.b32.xlu0 %v14476_v5, %s11061_s25 }
 0x959   : > { %v14536_v37 = vsub.f32 %v14476_v5, %v14527_v29 }
 0x95b   : > { %v4602_v8 = vpop.f32.mrf.mxu0 }
 0x95c   : > { %v4496_v60 = vpop.f32.mrf.mxu2 }
 0x95d   : > { %v4562_v17 = vpop.f32.mrf.mxu3 }
 0x95e   : > { %v4563_v63 = vadd.f32 %v4562_v17, %v4496_v60 }
 0x95f   : > { %4745 = vrot.lane.b32.xlu1 %v14476_v5, %s11065_s15  ;;  %4753 = vrot.lane.b32.xlu2 %v14476_v5, %s11064_s23 }
 0x960   : > { %v4603_v52 = vadd.f32 %v4602_v8, %v4563_v63  ;;  %4761 = vrot.lane.b32.xlu0 %v14476_v5, %s18822_s14  ;;  %v14594_v63 = vand.u32 4294901760, %v14564_v15 }
 0x962   : > { %v4840_v24 = vsub.f32 %v14564_v15, %v14594_v63 }
 0x963   : > { %v4634_v12 = vpop.f32.mrf.mxu1 }
 0x964   : > { %v4635_v61 = vadd.f32 %v4634_v12, %v4603_v52  ;;  %v4682_v36 = vpop.f32.mrf.mxu2 }
 0x965   : > { %v4712_v26 = vpop.f32.mrf.mxu3 }
 0x966   : > { %v4683_v30 = vadd.f32 %v4682_v36, %v4635_v61 }
 0x968   : > { %v4713_v11 = vadd.f32 %v4712_v26, %v4683_v30  ;;  %4737 = vrot.lane.b32.xlu0 %v14476_v5, %s18823_s11 }
 0x96a   : > { %v4716_v27 = vadd.f32 %v4713_v11, %v13572_v39  ;;  %v10568_v39 = vld [vmem:[%s18615_s3 + $0x30] sm:$0xff] }
 0x96c   : > { %v14493_v38 = vadd.f32 %v4722_v32, %v4716_v27 }
 0x96e   : > { %4787 = vrot.lane.b32.xlu1 %v14493_v38, %s11061_s25  ;;  %4771 = vrot.lane.b32.xlu2 %v14493_v38, %s11062_s26 }
 0x970   : > { %4779 = vrot.lane.b32.xlu0 %v14493_v38, %s11060_s22 }
 0x976   : > { %4763 = vrot.lane.b32.xlu1 %v14493_v38, %s18822_s14  ;;  %4747 = vrot.lane.b32.xlu2 %v14493_v38, %s11065_s15 }
 0x978   : > { %4755 = vrot.lane.b32.xlu0 %v14493_v38, %s11064_s23 }
 0x97e   : > { %4739 = vrot.lane.b32.xlu1 %v14493_v38, %s18823_s11  ;;  %4729 = vrot.lane.b32.xlu2 %v14476_v5, %s18824_s19 }
 0x980   : > { %4731 = vrot.lane.b32.xlu0 %v14493_v38, %s18824_s19 }
 0x986   : > { %4798 = vperm.xlu1 %10677, %v10568_v39   ;;  %4803 = vperm.xlu2 %10679, %v10569_v10  }
 0x9b1   : > { %v4778_v43 = vpop.permute.xlu2 %4777 }
 0x9b9   : > { %v14519_v56 = vpop.permute.xlu2 %4753 }
 0x9c8   : > { %v4772_v20 = vpop.permute.xlu2 %4771 }
 0x9c9   : > { %v4770_v31 = vpop.permute.xlu1 %4769 }
 0x9ca   : > { %v4786_v51 = vpop.permute.xlu0 %4785  ;;  %v4773_v46 = vsel %vm456_vm0, %v4770_v31, %v4772_v20  ;;  %v4774_v57 = vsel %vm456_vm0, %v4772_v20, %v4770_v31 }
 0x9cb   : > { %v4775_v49 = vmul.f32 %v14090_v45, %v4773_v46  ;;  %v4776_v45 = vmul.f32 %v14153_v28, %v4774_v57  ;;  %v4887_v28 = vand.u32 4294901760, %v14536_v37 }
 0x9cd   : > { %v14532_v58 = vand.u32 4294901760, %v4775_v49  ;;  %v14553_v2 = vand.u32 4294901760, %v4776_v45 }
 0x9cf   : > { %v14550_v35 = vsub.f32 %v4775_v49, %v14532_v58  ;;  %v14585_v8 = vsub.f32 %v4776_v45, %v14553_v2  ;;  %v18951_v45 = vld [vmem:[#allocation25_spill] sm:$0xff] }
 0x9d0   : > { %v4748_v9 = vpop.permute.xlu2 %4747 }
 0x9d1   : > { %v4746_v34 = vpop.permute.xlu1 %4745 }
 0x9d2   : > { %v4762_v13 = vpop.permute.xlu0 %4761  ;;  %v4750_v40 = vsel %vm420_vm5, %v4748_v9, %v4746_v34  ;;  %v4749_v26 = vsel %vm420_vm5, %v4746_v34, %v4748_v9 }
 0x9d3   : > { %v4751_v6 = vmul.f32 %v14172_v53, %v4750_v40  ;;  %v14653_v40 = vmul.f32 %v18951_v45, %v4749_v26  ;;  %v14681_v26 = vand.u32 4294901760, %v4840_v24 }
 0x9d5   : > { %v14571_v50 = vand.u32 4294901760, %v4751_v6 }
 0x9da   : > { %v14524_v16 = vpop.permute.xlu0 %4737 }
 0x9e0   : > { %v4788_v48 = vpop.permute.xlu1 %4787 }
 0x9e1   : > { %v4789_v19 = vsel %vm480_vm2, %v4786_v51, %v4788_v48  ;;  %v4790_v62 = vsel %vm480_vm2, %v4788_v48, %v4786_v51 }
 0x9e2   : > { %v4791_v18 = vmul.f32 %v14039_v7, %v4789_v19  ;;  %v4780_v33 = vpop.permute.xlu0 %4779  ;;  %v4792_v21 = vmul.f32 %v14068_v23, %v4790_v62  ;;  %v4875_v23 = vand.u32 4294901760, %v14550_v35  ;;  %v5156_v62 = vand.u32 4294901760, %v14585_v8 }
 0x9e3   : > { %v4781_v55 = vsel %vm468_vm1, %v4778_v43, %v4780_v33  ;;  %v4782_v7 = vsel %vm468_vm1, %v4780_v33, %v4778_v43 }
 0x9e4   : > { %v14555_v25 = vand.u32 4294901760, %v4791_v18  ;;  %v4783_v53 = vmul.f32 %v14111_v47, %v4781_v55  ;;  %v14579_v47 = vsub.f32 %v14536_v37, %v4887_v28  ;;  %v4784_v1 = vmul.f32 %v14125_v42, %v4782_v7  ;;  %v4728_v42 = vld [vmem:[#allocation5 + $0x38] sm:$0xff] }
 0x9e5   : > { %v14587_v60 = vand.u32 4294901760, %v4792_v21  ;;  %v4876_v11 = vsub.f32 %v14550_v35, %v4875_v23  ;;  %v4810_v51 = vsel %vm488_vm6, %v4728_v42, 0  ;;  %v4730_v42 = vpop.permute.xlu2 %4729 }
 0x9e6   : > { %v14567_v59 = vsub.f32 %v4791_v18, %v14555_v25  ;;  %4820 = vmatpush.msrb.mxu0 %v14555_v25  ;;  %4977 = vmatpush.msrb.mxu3 %v14555_v25  ;;  %v14573_v3 = vand.u32 4294901760, %v4783_v53  ;;  %v4889_v27 = vand.u32 4294901760, %v14579_v47  ;;  %v14616_v39 = vand.u32 4294901760, %v4784_v1 }
 0x9e7   : > { %v14629_v34 = vsub.f32 %v4792_v21, %v14587_v60  ;;  %v14650_v9 = vand.u32 4294901760, %v4810_v51  ;;  %v18952_v21 = vld [vmem:[#allocation24_spill] sm:$0xff] }
 0x9e8   : > { %v4764_v54 = vpop.permute.xlu1 %4763  ;;  %4933 = vmatpush.msrb.mxu2 %v14567_v59  ;;  %v4863_v32 = vand.u32 4294901760, %v14567_v59  ;;  %4822 = vmatpush.msrb.mxu0 %v14573_v3  ;;  %v14600_v61 = vsub.f32 %v4783_v53, %v14573_v3  ;;  %v14656_v48 = vsub.f32 %v4784_v1, %v14616_v39  ;;  %v18953_v53 = vld [vmem:[#allocation20_spill] sm:$0xff] }
 0x9e9   : > { %v4765_v17 = vsel %vm444_vm3, %v4762_v13, %v4764_v54  ;;  %4979 = vmatpush.msrb.mxu3 %v14573_v3  ;;  %v4766_v52 = vsel %vm444_vm3, %v4764_v54, %v4762_v13 }
 0x9ea   : > { %v4767_v12 = vmul.f32 %v14074_v22, %v4765_v17  ;;  %v4864_v36 = vsub.f32 %v14567_v59, %v4863_v32  ;;  %4824 = vmatpush.msrb.mxu0 %v14532_v58  ;;  %v4756_v30 = vpop.permute.xlu0 %4755  ;;  %v14613_v22 = vsub.f32 %v4751_v6, %v14571_v50  ;;  %4936 = vmatpush.msrb.mxu2 %v14600_v61  ;;  %v4869_v46 = vand.u32 4294901760, %v14600_v61 }
 0x9eb   : > { %4981 = vmatpush.msrb.mxu3 %v14532_v58  ;;  %v4758_v43 = vsel %vm432_vm4, %v4756_v30, %v14519_v56  ;;  %v4768_v31 = vmul.f32 %v14136_v0, %v4766_v52  ;;  %v14639_v0 = vand.u32 4294901760, %v14493_v38  ;;  %v18705_v17 = vand.u32 4294901760, %v14629_v34 }
 0x9ec   : > { %v14618_v10 = vand.u32 4294901760, %v4767_v12  ;;  %v4759_v13 = vmul.f32 %v14197_v44, %v4758_v43  ;;  %v4865_v20 = vand.u32 4294901760, %v4864_v36  ;;  %4939 = vmatpush.msrb.mxu2 %v14550_v35  ;;  %v4757_v44 = vsel %vm432_vm4, %v14519_v56, %v4756_v30 }
 0x9ed   : > { %v4870_v41 = vsub.f32 %v14600_v61, %v4869_v46  ;;  %v14662_v18 = vand.u32 4294901760, %v4768_v31  ;;  %v18706_v55 = vand.u32 4294901760, %v14613_v22  ;;  %v4760_v7 = vmul.f32 %v18952_v21, %v4757_v44 }
 0x9ee   : > { %4826 = vmatpush.msrb.mxu0 %v14618_v10  ;;  %v14634_v49 = vsub.f32 %v4767_v12, %v14618_v10  ;;  %v14644_v57 = vand.u32 4294901760, %v4759_v13  ;;  %4866 = vmatpush.msrb.mxu1 %v4865_v20  ;;  %v4877_v52 = vand.u32 4294901760, %v4876_v11  ;;  %v14684_v30 = vsub.f32 %v4810_v51, %v14650_v9  ;;  %v18954_v51 = vld [vmem:[#allocation17_spill] sm:$0xff] }
 0x9ef   : > { %4983 = vmatpush.msrb.mxu3 %v14618_v10  ;;  %v4871_v33 = vand.u32 4294901760, %v4870_v41  ;;  %v18704_v11 = vand.u32 4294901760, %v14656_v48  ;;  %v14697_v24 = vsub.f32 %v4768_v31, %v14662_v18  ;;  %v14702_v45 = vand.u32 4294901760, %v4760_v7 }
 0x9f0   : > { %v4740_v19 = vpop.permute.xlu1 %4739  ;;  %4828 = vmatpush.msrb.mxu0 %v14527_v29  ;;  %4942 = vmatpush.msrb.mxu2 %v14634_v49  ;;  %v4881_v56 = vand.u32 4294901760, %v14634_v49  ;;  %v14674_v54 = vsub.f32 %v4759_v13, %v14644_v57  ;;  %v5145_v31 = vsub.f32 %v14629_v34, %v18705_v17  ;;  %v18956_v17 = vld [vmem:[#allocation21_spill] sm:$0xff] }
 0x9f1   : > { %v4742_v6 = vsel %vm408_vm7, %v4740_v19, %v14524_v16  ;;  %4985 = vmatpush.msrb.mxu3 %v14527_v29  ;;  %4872 = vmatpush.msrb.mxu1 %v4871_v33  ;;  %v4741_v43 = vsel %vm408_vm7, %v14524_v16, %v4740_v19  ;;  %v18955_v33 = vld [vmem:[#allocation18_spill] sm:$0xff] }
 0x9f2   : > { %v4743_v1 = vmul.f32 %v18953_v53, %v4742_v6  ;;  %4830 = vmatpush.msrb.mxu0 %v14644_v57  ;;  %4945 = vmatpush.msrb.mxu2 %v14536_v37  ;;  %v4732_v12 = vpop.permute.xlu0 %4731  ;;  %v4882_v36 = vsub.f32 %v14634_v49, %v4881_v56  ;;  %v18707_v41 = vand.u32 4294901760, %v14674_v54  ;;  %v4900_v6 = vsub.f32 %v14613_v22, %v18706_v55 }
 0x9f3   : > { %4987 = vmatpush.msrb.mxu3 %v14644_v57  ;;  %v4734_v20 = vsel %vm397_vm8, %v4732_v12, %v4730_v42  ;;  %4878 = vmatpush.msrb.mxu1 %v4877_v52  ;;  %v4744_v21 = vmul.f32 %v18955_v33, %v4741_v43  ;;  %v4733_v53 = vsel %vm397_vm8, %v4730_v42, %v4732_v12  ;;  %v14737_v12 = vand.u32 4294901760, %v14653_v40 }
 0x9f4   : > { %v14689_v13 = vand.u32 4294901760, %v4743_v1  ;;  %4832 = vmatpush.msrb.mxu0 %v14571_v50  ;;  %4948 = vmatpush.msrb.mxu2 %v14674_v54  ;;  %v4735_v44 = vmul.f32 %v18954_v51, %v4734_v20  ;;  %v4883_v16 = vand.u32 4294901760, %v4882_v36  ;;  %v5151_v36 = vsub.f32 %v14656_v48, %v18704_v11 }
 0x9f5   : > { %4989 = vmatpush.msrb.mxu3 %v14571_v50  ;;  %v14730_v20 = vand.u32 4294901760, %v14684_v30  ;;  %v14734_v42 = vsub.f32 %v14493_v38, %v14639_v0  ;;  %v5162_v33 = vand.u32 4294901760, %v14697_v24  ;;  %v14747_v11 = vsub.f32 %v4760_v7, %v14702_v45 }
 0x9f6   : > { %4834 = vmatpush.msrb.mxu0 %v14689_v13  ;;  %4951 = vmatpush.msrb.mxu2 %v14613_v22  ;;  %v14707_v19 = vsub.f32 %v4743_v1, %v14689_v13  ;;  %v14718_v52 = vand.u32 4294901760, %v4735_v44  ;;  %v4894_v1 = vsub.f32 %v14674_v54, %v18707_v41  ;;  %v4736_v55 = vmul.f32 %v18956_v17, %v4733_v53 }
 0x9f7   : > { %4884 = vmatpush.msrb.mxu1 %v4883_v16  ;;  %4991 = vmatpush.msrb.mxu3 %v14689_v13  ;;  %v5146_v41 = vand.u32 4294901760, %v5145_v31  ;;  %v5157_v7 = vsub.f32 %v14585_v8, %v5156_v62  ;;  %v5152_v31 = vand.u32 4294901760, %v5151_v36  ;;  %v14769_v59 = vsub.f32 %v14653_v40, %v14737_v12 }
 0x9f8   : > { %4954 = vmatpush.msrb.mxu2 %v14707_v19  ;;  %v4905_v43 = vand.u32 4294901760, %v14707_v19  ;;  %4836 = vmatpush.msrb.mxu0 %v14718_v52  ;;  %v4895_v51 = vand.u32 4294901760, %v4894_v1  ;;  %v14743_v16 = vsub.f32 %v4735_v44, %v14718_v52  ;;  %v4901_v44 = vand.u32 4294901760, %v4900_v6 }
 0x9f9   : > { %4890 = vmatpush.msrb.mxu1 %v4889_v27  ;;  %4993 = vmatpush.msrb.mxu3 %v14718_v52  ;;  %v14755_v27 = vand.u32 4294901760, %v4744_v21  ;;  %v4848_v1 = vsub.f32 %v14684_v30, %v14730_v20  ;;  %v14779_v6 = vand.u32 4294901760, %v4736_v55  ;;  %v5174_v40 = vand.u32 4294901760, %v14747_v11 }
 0x9fa   : > { %4842 = vmatmul.f32.vlgmr.msrb.gmra.mxu0 %v14681_v26  ;;  %v4906_v47 = vsub.f32 %v14707_v19, %v4905_v43  ;;  %v4911_v17 = vand.u32 4294901760, %v14743_v16  ;;  %4957 = vmatpush.msrb.mxu2 %v14743_v16  ;;  %v5158_v61 = vand.u32 4294901760, %v5157_v7 }
 0x9fb   : > { %4896 = vmatpush.msrb.mxu1 %v4895_v51  ;;  %5017 = vmatpush.msra.mxu0 %v4863_v32  ;;  %v5168_v51 = vand.u32 4294901760, %v14734_v42  ;;  %v5163_v32 = vsub.f32 %v14697_v24, %v5162_v33  ;;  %v14784_v36 = vsub.f32 %v4744_v21, %v14755_v27  ;;  %v5180_v21 = vand.u32 4294901760, %v14769_v59 }
 0x9fc   : > { %5147 = vmatpush.msra.mxu3 %v5146_v41  ;;  %v4907_v53 = vand.u32 4294901760, %v4906_v47  ;;  %v4912_v41 = vsub.f32 %v14743_v16, %v4911_v17  ;;  %5101 = vmatpush.msra.mxu2 %v14587_v60  ;;  %v14790_v47 = vand.u32 4294901760, %v4848_v1  ;;  %v5175_v35 = vsub.f32 %v14747_v11, %v5174_v40 }
 0x9fd   : > { %4902 = vmatpush.msrb.mxu1 %v4901_v44  ;;  %5021 = vmatpush.msra.mxu0 %v4869_v46  ;;  %v5169_v44 = vsub.f32 %v14734_v42, %v5168_v51  ;;  %v5181_v49 = vsub.f32 %v14769_v59, %v5180_v21  ;;  %v18957_v1 = vand.u32 4294901760, %v14674_v54 }
 0x9fe   : > { %5153 = vmatpush.msra.mxu3 %v5152_v31  ;;  %4960 = vmatmul.f32.vlgmr.msrb.gmra.mxu2 %v14564_v15  ;;  %v4913_v46 = vand.u32 4294901760, %v4912_v41  ;;  %v5164_v31 = vand.u32 4294901760, %v5163_v32 }
 0x9ff   : > { %4908 = vmatpush.msrb.mxu1 %v4907_v53  ;;  %5025 = vmatpush.msra.mxu0 %v4875_v23  ;;  %v14797_v53 = vsub.f32 %v4736_v55, %v14779_v6  ;;  %v5186_v23 = vand.u32 4294901760, %v14784_v36  ;;  %v5170_v55 = vand.u32 4294901760, %v5169_v44 }
 0xa00   : > { %5103 = vmatpush.msra.mxu2 %v14616_v39  ;;  %5159 = vmatpush.msra.mxu3 %v5158_v61 }
 0xa01   : > { %4914 = vmatpush.msrb.mxu1 %v4913_v46  ;;  %4997 = vmatmul.f32.vlgmr.msrb.gmra.mxu3 %v14594_v63  ;;  %v5192_v7 = vand.u32 4294901760, %v14797_v53  ;;  %v5187_v37 = vsub.f32 %v14784_v36, %v5186_v23 }
 0xa02   : > { %5029 = vmatpush.msra.mxu0 %v4881_v56  ;;  %5105 = vmatpush.msra.mxu2 %v14553_v2  ;;  %v5176_v56 = vand.u32 4294901760, %v5175_v35 }
 0xa03   : > { %5165 = vmatpush.msra.mxu3 %v5164_v31  ;;  %4850 = vmatmul.f32.gmra.mxu0 %v14790_v47  ;;  %v5188_v54 = vand.u32 4294901760, %v5187_v37  ;;  %v18961_v31 = vld [vmem:[#allocation22_spill] sm:$0xff] }
 0xa04   : > { %4916 = vmatmul.f32.vlgmr.msrb.gmra.mxu1 %v14543_v14  ;;  %5033 = vmatpush.msra.mxu0 %v4887_v28  ;;  %v18958_v28 = vand.u32 4294901760, %v14613_v22  ;;  %v18959_v22 = vand.u32 4294901760, %v14629_v34 }
 0xa05   : > { %5067 = vmatpush.msra.mxu1 %v14555_v25  ;;  %5107 = vmatpush.msra.mxu2 %v14662_v18  ;;  %v5182_v25 = vand.u32 4294901760, %v5181_v49 }
 0xa06   : > { %5171 = vmatpush.msra.mxu3 %v5170_v55  ;;  %5037 = vmatpush.msra.mxu0 %v18957_v1 }
 0xa07   : > { %5069 = vmatpush.msra.mxu1 %v14573_v3  ;;  %5109 = vmatpush.msra.mxu2 %v14639_v0  ;;  %v5193_v3 = vsub.f32 %v14797_v53, %v5192_v7 }
 0xa08   : > { %5177 = vmatpush.msra.mxu3 %v5176_v56  ;;  %4965 = vmatmul.f32.gmra.mxu2 %v14684_v30 }
 0xa09   : > { %5041 = vmatpush.msra.mxu0 %v18958_v28  ;;  %5071 = vmatpush.msra.mxu1 %v14532_v58  ;;  %v5194_v58 = vand.u32 4294901760, %v5193_v3 }
 0xa0a   : > { %5111 = vmatpush.msra.mxu2 %v14702_v45  ;;  %5183 = vmatpush.msra.mxu3 %v5182_v25 }
 0xa0b   : > { %5045 = vmatpush.msra.mxu0 %v4905_v43  ;;  %5003 = vmatmul.f32.gmra.mxu3 %v14730_v20 }
 0xa0c   : > { %5073 = vmatpush.msra.mxu1 %v14618_v10  ;;  %5113 = vmatpush.msra.mxu2 %v14737_v12 }
 0xa0d   : > { %5189 = vmatpush.msra.mxu3 %v5188_v54  ;;  %4920 = vmatmul.f32.gmra.mxu1 %v14650_v9 }
 0xa0e   : > { %5049 = vmatpush.msra.mxu0 %v4911_v17  ;;  %5075 = vmatpush.msra.mxu1 %v14527_v29  ;;  %v18960_v29 = vand.u32 4294901760, %v14656_v48 }
 0xa0f   : > { %5115 = vmatpush.msra.mxu2 %v14755_v27  ;;  %5195 = vmatpush.msra.mxu3 %v5194_v58 }
 0xa10   : > { %5051 = vmatmul.f32.vlgmr.msra.gmra.mxu0 %v14543_v14  ;;  %5077 = vmatpush.msra.mxu1 %v14644_v57 }
 0xa11   : > { %5214 = vmatpush.msrb.mxu0 %v14629_v34  ;;  %5348 = vmatpush.msrb.mxu3 %v14587_v60 }
 0xa12   : > { %5117 = vmatpush.msra.mxu2 %v14779_v6  ;;  %5079 = vmatpush.msra.mxu1 %v14571_v50 }
 0xa13   : > { %5123 = vmatmul.f32.vlgmr.msra.gmra.mxu2 %v14681_v26  ;;  %5217 = vmatpush.msrb.mxu0 %v14656_v48 }
 0xa14   : > { %5298 = vmatpush.msrb.mxu2 %v18959_v22  ;;  %5350 = vmatpush.msrb.mxu3 %v14616_v39 }
 0xa15   : > { %5197 = vmatmul.f32.vlgmr.msra.gmra.mxu3 %v14543_v14  ;;  %5220 = vmatpush.msrb.mxu0 %v14585_v8  ;;  %v4799_v8 = vpop.permute.xlu1 %4798 }
 0xa16   : > { %5302 = vmatpush.msrb.mxu2 %v18960_v29  ;;  %5352 = vmatpush.msrb.mxu3 %v14553_v2 }
 0xa17   : > { %5081 = vmatpush.msra.mxu1 %v14689_v13  ;;  %5223 = vmatpush.msrb.mxu0 %v14697_v24 }
 0xa18   : > { %5306 = vmatpush.msrb.mxu2 %v5156_v62  ;;  %5354 = vmatpush.msrb.mxu3 %v14662_v18 }
 0xa19   : > { %5083 = vmatpush.msra.mxu1 %v14718_v52  ;;  %5055 = vmatmul.f32.gmra.mxu0 %v14650_v9 }
 0xa1a   : > { %5085 = vmatmul.f32.vlgmr.msra.gmra.mxu1 %v14543_v14  ;;  %5226 = vmatpush.msrb.mxu0 %v14734_v42 }
 0xa1b   : > { %5258 = vmatpush.msrb.mxu1 %v14587_v60  ;;  %5310 = vmatpush.msrb.mxu2 %v5162_v33 }
 0xa1c   : > { %5356 = vmatpush.msrb.mxu3 %v14639_v0  ;;  %5131 = vmatmul.f32.gmra.mxu2 %v14790_v47 }
 0xa1d   : > { %5229 = vmatpush.msrb.mxu0 %v14747_v11  ;;  %5260 = vmatpush.msrb.mxu1 %v14616_v39 }
 0xa1e   : > { %5314 = vmatpush.msrb.mxu2 %v5168_v51  ;;  %5358 = vmatpush.msrb.mxu3 %v14702_v45 }
 0xa1f   : > { %5232 = vmatpush.msrb.mxu0 %v14769_v59  ;;  %5201 = vmatmul.f32.gmra.mxu3 %v14650_v9 }
 0xa20   : > { %5262 = vmatpush.msrb.mxu1 %v14553_v2  ;;  %5318 = vmatpush.msrb.mxu2 %v5174_v40 }
 0xa21   : > { %5360 = vmatpush.msrb.mxu3 %v14737_v12  ;;  %5235 = vmatpush.msrb.mxu0 %v14784_v36 }
 0xa22   : > { %5264 = vmatpush.msrb.mxu1 %v14662_v18  ;;  %5322 = vmatpush.msrb.mxu2 %v5180_v21 }
 0xa23   : > { %5362 = vmatpush.msrb.mxu3 %v14755_v27  ;;  %5089 = vmatmul.f32.gmra.mxu1 %v14650_v9 }
 0xa24   : > { %5238 = vmatpush.msrb.mxu0 %v14797_v53  ;;  %5266 = vmatpush.msrb.mxu1 %v14639_v0 }
 0xa25   : > { %5326 = vmatpush.msrb.mxu2 %v5186_v23  ;;  %5364 = vmatpush.msrb.mxu3 %v14779_v6 }
 0xa26   : > { %5241 = vmatmul.f32.vlgmr.msrb.gmra.mxu0 %v14564_v15  ;;  %5268 = vmatpush.msrb.mxu1 %v14702_v45  ;;  %v4804_v45 = vpop.permute.xlu2 %4803 }
 0xa27   : > { %5330 = vmatpush.msrb.mxu2 %v5192_v7  ;;  %5366 = vmatmul.f32.vlgmr.msrb.gmra.mxu3 %v14543_v14 }
 0xa28   : > { %5332 = vmatmul.f32.vlgmr.msrb.gmra.mxu2 %v14543_v14  ;;  %5270 = vmatpush.msrb.mxu1 %v14737_v12 }
 0xa2a   : > { %5272 = vmatpush.msrb.mxu1 %v14755_v27 }
 0xa2c   : > { %5274 = vmatpush.msrb.mxu1 %v14779_v6 }
 0xa2d   : > { %5278 = vmatmul.f32.vlgmr.msrb.gmra.mxu1 %v14594_v63 }
 0xa2e   : > { %5246 = vmatmul.f32.gmra.mxu0 %v14684_v30 }
 0xa2f   : > { %5370 = vmatmul.f32.gmra.mxu3 %v14650_v9 }
 0xa30   : > { %5336 = vmatmul.f32.gmra.mxu2 %v14650_v9 }
 0xa35   : > { %5284 = vmatmul.f32.gmra.mxu1 %v14730_v20 }
 0xa77   : > { %v4843_v2 = vpop.f32.mrf.mxu0 }
 0xa78   : > { %v4844_v39 = vadd.f32 %v4843_v2, %v4799_v8 }
 0xa80   : > { %v4851_v60 = vpop.f32.mrf.mxu0 }
 0xa81   : > { %v4917_v15 = vpop.f32.mrf.mxu1  ;;  %v4961_v50 = vpop.f32.mrf.mxu2  ;;  %v4852_v19 = vadd.f32 %v4851_v60, %v4804_v45  ;;  %v10570_v60 = vld [vmem:[%s18821_s2 + $0x20] sm:$0xff] }
 0xa82   : > { %v4918_v10 = vadd.f32 %v4917_v15, %v4844_v39 }
 0xa84   : > { %v4998_v14 = vpop.f32.mrf.mxu3  ;;  %v4962_v0 = vadd.f32 %v4961_v50, %v4918_v10  ;;  %v18963_v50 = vld [vmem:[#allocation23_spill] sm:$0xff] }
 0xa86   : > { %v4999_v63 = vadd.f32 %v4998_v14, %v4962_v0 }
 0xa8a   : > { %v4921_v34 = vpop.f32.mrf.mxu1 }
 0xa8b   : > { %v4966_v57 = vpop.f32.mrf.mxu2  ;;  %v4922_v20 = vadd.f32 %v4921_v34, %v4852_v19 }
 0xa8d   : > { %v5052_v62 = vpop.f32.mrf.mxu0  ;;  %v4967_v17 = vadd.f32 %v4966_v57, %v4922_v20 }
 0xa8e   : > { %v5004_v48 = vpop.f32.mrf.mxu3  ;;  %v5053_v18 = vadd.f32 %v5052_v62, %v4999_v63 }
 0xa8f   : > { %v5005_v32 = vadd.f32 %v5004_v48, %v4967_v17 }
 0xa96   : > { %v5124_v13 = vpop.f32.mrf.mxu2  ;;  %v5056_v24 = vpop.f32.mrf.mxu0 }
 0xa97   : > { %v5086_v26 = vpop.f32.mrf.mxu1  ;;  %v5125_v12 = vadd.f32 %v5124_v13, %v4799_v8  ;;  %v5057_v40 = vadd.f32 %v5056_v24, %v5005_v32 }
 0xa98   : > { %v5087_v30 = vadd.f32 %v5086_v26, %v5053_v18  ;;  %v5198_v11 = vpop.f32.mrf.mxu3  ;;  %v14958_v26 = vld [vmem:[%s18616_s4 + $0x60] sm:$0xff] }
 0xa99   : > { %v5199_v59 = vadd.f32 %v5198_v11, %v5125_v12 }
 0xa9a   : > { %v5374_v9 = vmul.f32 0.5, %v5087_v30 }
 0xa9c   : > { %10704 = vtanh.f32 %v5374_v9 }
 0xa9f   : > { %v5132_v16 = vpop.f32.mrf.mxu2 }
 0xaa0   : > { %v5090_v52 = vpop.f32.mrf.mxu1  ;;  %v5133_v49 = vadd.f32 %v5132_v16, %v4804_v45  ;;  %v14985_v16 = vld [vmem:[%s18616_s4 + $0x88] sm:$0xff] }
 0xaa1   : > { %v5091_v44 = vadd.f32 %v5090_v52, %v5057_v40  ;;  %v15007_v40 = vld [vmem:[%s18616_s4 + $0x20] sm:$0xff] }
 0xaa2   : > { %v10705_v43 = vpop.eup %10704  ;;  %v5202_v27 = vpop.f32.mrf.mxu3 }
 0xaa3   : > { %v5378_v42 = vmul.f32 2.0, %v10705_v43  ;;  %v5242_v51 = vpop.f32.mrf.mxu0  ;;  %v5203_v1 = vadd.f32 %v5202_v27, %v5133_v49 }
 0xaa4   : > { %v5243_v41 = vadd.f32 %v5242_v51, %v5199_v59  ;;  %v14997_v59 = vld [vmem:[%s18616_s4 + $0x70] sm:$0xff] }
 0xaa5   : > { %v5380_v33 = vmul.f32 1.442695, %v5378_v42  ;;  %v14979_v42 = vld [vmem:[%s18616_s4 + $0x80] sm:$0xff] }
 0xaa7   : > { %10706 = vpow2.f32 %v5380_v33 }
 0xaaa   : > { %v5279_v6 = vpop.f32.mrf.mxu1  ;;  %v5367_v47 = vpop.f32.mrf.mxu3 }
 0xaab   : > { %v5280_v36 = vadd.f32 %v5279_v6, %v5243_v41  ;;  %v5333_v61 = vpop.f32.mrf.mxu2  ;;  %v5247_v56 = vpop.f32.mrf.mxu0 }
 0xaac   : > { %v5248_v25 = vadd.f32 %v5247_v56, %v5203_v1 }
 0xaad   : > { %v10707_v46 = vpop.eup %10706  ;;  %v5334_v53 = vadd.f32 %v5333_v61, %v5280_v36 }
 0xaae   : > { %v5384_v21 = vmul.f32 %v10707_v46, %v18961_v31  ;;  %v15015_v46 = vld [vmem:[%s18616_s4 + $0x78] sm:$0xff]  ;;  %v15023_v31 = vld [vmem:[%s18616_s4 + $0x68] sm:$0xff] }
 0xaaf   : > { %v5368_v23 = vadd.f32 %v5367_v47, %v5334_v53 }
 0xab0   : > { %v14909_v35 = vadd.f32 %v5384_v21, %v5091_v44 }
 0xab1   : > { %v5375_v55 = vmul.f32 0.5, %v5368_v23 }
 0xab2   : > { %18962 = vst [vmem:[#allocation19_spill] sm:$0xff] %v14909_v35  ;;  %5430 = vrot.lane.b32.xlu1 %v14909_v35, %s11062_s26  ;;  %5438 = vrot.lane.b32.xlu2 %v14909_v35, %s11060_s22  ;;  %v5285_v28 = vpop.f32.mrf.mxu1  ;;  %v5371_v29 = vpop.f32.mrf.mxu3  ;;  %v14962_v9 = vand.u32 4294901760, %v14909_v35 }
 0xab3   : > { %5446 = vrot.lane.b32.xlu0 %v14909_v35, %s11061_s25  ;;  %10708 = vtanh.f32 %v5375_v55  ;;  %v5286_v54 = vadd.f32 %v5285_v28, %v5248_v25  ;;  %v5337_v58 = vpop.f32.mrf.mxu2 }
 0xab4   : > { %v14968_v11 = vsub.f32 %v14909_v35, %v14962_v9 }
 0xab5   : > { %v5338_v22 = vadd.f32 %v5337_v58, %v5286_v54 }
 0xab6   : > { %v18708_v6 = vand.u32 4294901760, %v14968_v11 }
 0xab7   : > { %v5372_v15 = vadd.f32 %v5371_v29, %v5338_v22 }
 0xab8   : > { %v15040_v56 = vsub.f32 %v14968_v11, %v18708_v6  ;;  %v15164_v6 = vld [vmem:[%s18616_s4 + $0x10] sm:$0xff] }
 0xab9   : > { %v10709_v7 = vpop.eup %10708  ;;  %18967 = vst [vmem:[#allocation17_spill] sm:$0xff] %v15164_v6 }
 0xaba   : > { %5406 = vrot.lane.b32.xlu1 %v14909_v35, %s11065_s15  ;;  %5414 = vrot.lane.b32.xlu2 %v14909_v35, %s11064_s23  ;;  %v5379_v37 = vmul.f32 2.0, %v10709_v7 }
 0xabb   : > { %5422 = vrot.lane.b32.xlu0 %v14909_v35, %s18822_s14 }
 0xabc   : > { %v5382_v3 = vmul.f32 1.442695, %v5379_v37 }
 0xabe   : > { %10710 = vpow2.f32 %v5382_v3 }
 0xac3   : > { %5398 = vrot.lane.b32.xlu0 %v14909_v35, %s18823_s11 }
 0xac4   : > { %v10711_v2 = vpop.eup %10710 }
 0xac5   : > { %v5385_v14 = vmul.f32 %v10711_v2, %v18963_v50  ;;  %v15068_v50 = vld [vmem:[%s18616_s4 + $0x50] sm:$0xff] }
 0xac7   : > { %v14926_v8 = vadd.f32 %v5385_v14, %v5372_v15 }
 0xac9   : > { %18964 = vst [vmem:[#allocation25_spill] sm:$0xff] %v14926_v8  ;;  %5448 = vrot.lane.b32.xlu1 %v14926_v8, %s11061_s25  ;;  %5432 = vrot.lane.b32.xlu2 %v14926_v8, %s11062_s26  ;;  %v15050_v25 = vand.u32 4294901760, %v14926_v8 }
 0xacb   : > { %5440 = vrot.lane.b32.xlu0 %v14926_v8, %s11060_s22 }
 0xad1   : > { %5424 = vrot.lane.b32.xlu1 %v14926_v8, %s18822_s14  ;;  %5408 = vrot.lane.b32.xlu2 %v14926_v8, %s11065_s15 }
 0xad3   : > { %5416 = vrot.lane.b32.xlu0 %v14926_v8, %s11064_s23 }
 0xad9   : > { %5400 = vrot.lane.b32.xlu1 %v14926_v8, %s18823_s11  ;;  %5390 = vrot.lane.b32.xlu2 %v14909_v35, %s18824_s19 }
 0xadb   : > { %5392 = vrot.lane.b32.xlu0 %v14926_v8, %s18824_s19 }
 0xae1   : > { %5963 = vperm.xlu1 %10677, %v10570_v60   ;;  %v15074_v60 = vld [vmem:[%s18616_s4 + $0x58] sm:$0xff] }
 0xb0c   : > { %v5439_v39 = vpop.permute.xlu2 %5438 }
 0xb14   : > { %v14949_v34 = vpop.permute.xlu2 %5414 }
 0xb23   : > { %v5433_v48 = vpop.permute.xlu2 %5432 }
 0xb24   : > { %v5431_v0 = vpop.permute.xlu1 %5430 }
 0xb25   : > { %v5447_v10 = vpop.permute.xlu0 %5446  ;;  %v5434_v62 = vsel %vm456_vm0, %v5431_v0, %v5433_v48  ;;  %v5435_v51 = vsel %vm456_vm0, %v5433_v48, %v5431_v0 }
 0xb26   : > { %v5436_v30 = vmul.f32 %v14958_v26, %v5434_v62  ;;  %v5437_v21 = vmul.f32 %v15023_v31, %v5435_v51 }
 0xb28   : > { %v14964_v13 = vand.u32 4294901760, %v5436_v30  ;;  %v15060_v2 = vand.u32 4294901760, %v5437_v21 }
 0xb2a   : > { %v15001_v41 = vsub.f32 %v5436_v30, %v14964_v13  ;;  %v15100_v30 = vld [vmem:[%s18616_s4 + $0x30] sm:$0xff]  ;;  %v15122_v51 = vsub.f32 %v5437_v21, %v15060_v2  ;;  %v15140_v21 = vsub.f32 %v14926_v8, %v15050_v25 }
 0xb2b   : > { %v5409_v24 = vpop.permute.xlu2 %5408 }
 0xb2c   : > { %v5407_v63 = vpop.permute.xlu1 %5406  ;;  %v18709_v49 = vand.u32 4294901760, %v15001_v41 }
 0xb2d   : > { %v5423_v57 = vpop.permute.xlu0 %5422  ;;  %v5411_v19 = vsel %vm420_vm5, %v5409_v24, %v5407_v63  ;;  %v5410_v7 = vsel %vm420_vm5, %v5407_v63, %v5409_v24 }
 0xb2e   : > { %v5412_v36 = vmul.f32 %v15007_v40, %v5411_v19  ;;  %v5513_v48 = vsub.f32 %v15001_v41, %v18709_v49 }
 0xb30   : > { %v15044_v1 = vand.u32 4294901760, %v5412_v36 }
 0xb35   : > { %v14953_v18 = vpop.permute.xlu0 %5398 }
 0xb3b   : > { %v5449_v45 = vpop.permute.xlu1 %5448 }
 0xb3c   : > { %v5450_v52 = vsel %vm480_vm2, %v5447_v10, %v5449_v45  ;;  %v5451_v43 = vsel %vm480_vm2, %v5449_v45, %v5447_v10  ;;  %v15105_v45 = vsub.f32 %v5412_v36, %v15044_v1 }
 0xb3d   : > { %v5441_v20 = vpop.permute.xlu0 %5440  ;;  %v5452_v12 = vmul.f32 %v14979_v42, %v5450_v52  ;;  %v5453_v33 = vmul.f32 %v14985_v16, %v5451_v43 }
 0xb3e   : > { %v5442_v27 = vsel %vm468_vm1, %v5439_v39, %v5441_v20  ;;  %v5443_v17 = vsel %vm468_vm1, %v5441_v20, %v5439_v39  ;;  %v15194_v20 = vld [vmem:[%s18616_s4] sm:$0xff] }
 0xb3f   : > { %v5444_v32 = vmul.f32 %v14997_v59, %v5442_v27  ;;  %v15010_v61 = vand.u32 4294901760, %v5452_v12  ;;  %v5445_v47 = vmul.f32 %v15015_v46, %v5443_v17  ;;  %v15029_v23 = vand.u32 4294901760, %v5453_v33  ;;  %v5389_v17 = vld [vmem:[#allocation2 + $0x20] sm:$0xff]  ;;  %18969 = vst [vmem:[#allocation21_spill] sm:$0xff] %v15194_v20 }
 0xb41   : > { %v15018_v44 = vand.u32 4294901760, %v5444_v32  ;;  %v15027_v53 = vsub.f32 %v5452_v12, %v15010_v61  ;;  %5465 = vmatpush.msra.mxu0 %v15010_v61  ;;  %5605 = vmatpush.msra.mxu3 %v15010_v61  ;;  %v15052_v3 = vand.u32 4294901760, %v5445_v47  ;;  %v15063_v15 = vsub.f32 %v5453_v33, %v15029_v23 }
 0xb43   : > { %v15034_v55 = vsub.f32 %v5444_v32, %v15018_v44  ;;  %v18712_v37 = vand.u32 4294901760, %v15027_v53  ;;  %v5425_v28 = vpop.permute.xlu1 %5424  ;;  %5566 = vmatpush.msra.mxu2 %v15027_v53  ;;  %5467 = vmatpush.msra.mxu0 %v15018_v44  ;;  %v15108_v19 = vsub.f32 %v5445_v47, %v15052_v3  ;;  %v15127_v32 = vld [vmem:[%s18616_s4 + $0x28] sm:$0xff]  ;;  %v15135_v47 = vld [vmem:[%s18616_s4 + $0x38] sm:$0xff] }
 0xb44   : > { %v5426_v54 = vsel %vm444_vm3, %v5423_v57, %v5425_v28  ;;  %v5427_v58 = vsel %vm444_vm3, %v5425_v28, %v5423_v57  ;;  %5607 = vmatpush.msra.mxu3 %v15018_v44  ;;  %18965 = vst [vmem:[#allocation24_spill] sm:$0xff] %v15127_v32  ;;  %v15130_v36 = vmul.f32 %v15127_v32, %v5410_v7 }
 0xb45   : > { %v5417_v22 = vpop.permute.xlu0 %5416  ;;  %v18710_v29 = vand.u32 4294901760, %v15034_v55  ;;  %v5428_v14 = vmul.f32 %v15068_v50, %v5426_v54  ;;  %v5429_v39 = vmul.f32 %v15074_v60, %v5427_v58  ;;  %5469 = vmatpush.msra.mxu0 %v14964_v13  ;;  %5569 = vmatpush.msra.mxu2 %v15034_v55  ;;  %v5501_v0 = vsub.f32 %v15027_v53, %v18712_v37 }
 0xb46   : > { %5609 = vmatpush.msra.mxu3 %v14964_v13  ;;  %v5419_v10 = vsel %vm432_vm4, %v5417_v22, %v14949_v34  ;;  %v5418_v63 = vsel %vm432_vm4, %v14949_v34, %v5417_v22  ;;  %v18711_v34 = vand.u32 4294901760, %v15063_v15  ;;  %18966 = vst [vmem:[#allocation20_spill] sm:$0xff] %v15135_v47  ;;  %v5514_v58 = vand.u32 4294901760, %v5513_v48 }
 0xb47   : > { %v5507_v57 = vsub.f32 %v15034_v55, %v18710_v29  ;;  %v15092_v62 = vand.u32 4294901760, %v5428_v14  ;;  %v5420_v24 = vmul.f32 %v15100_v30, %v5419_v10  ;;  %5572 = vmatpush.msra.mxu2 %v15001_v41  ;;  %v5502_v52 = vand.u32 4294901760, %v5501_v0 }
 0xb48   : > { %v15112_v12 = vand.u32 4294901760, %v5429_v39  ;;  %v5421_v28 = vmul.f32 %v15135_v47, %v5418_v63  ;;  %v5455_v63 = vsel %vm488_vm6, %v5389_v17, 0  ;;  %v18970_v8 = vand.u32 4294901760, %v15108_v19 }
 0xb49   : > { %v5508_v43 = vand.u32 4294901760, %v5507_v57  ;;  %v15114_v33 = vand.u32 4294901760, %v5420_v24  ;;  %5471 = vmatpush.msra.mxu0 %v15092_v62  ;;  %5611 = vmatpush.msra.mxu3 %v15092_v62  ;;  %v15119_v27 = vsub.f32 %v5428_v14, %v15092_v62  ;;  %v18718_v14 = vand.u32 4294901760, %v15105_v45 }
 0xb4a   : > { %5503 = vmatpush.msra.mxu1 %v5502_v52  ;;  %v15159_v52 = vsub.f32 %v5429_v39, %v15112_v12  ;;  %v15173_v17 = vand.u32 4294901760, %v5421_v28  ;;  %v15178_v39 = vld [vmem:[%s18616_s4 + $0x18] sm:$0xff]  ;;  %v5757_v35 = vsub.f32 %v15108_v19, %v18970_v8 }
 0xb4b   : > { %v5401_v54 = vpop.permute.xlu1 %5400  ;;  %5473 = vmatpush.msra.mxu0 %v14962_v9  ;;  %5575 = vmatpush.msra.mxu2 %v15119_v27  ;;  %v15145_v7 = vsub.f32 %v5420_v24, %v15114_v33  ;;  %v18713_v22 = vand.u32 4294901760, %v15119_v27  ;;  %v5391_v24 = vpop.permute.xlu2 %5390  ;;  %18968 = vst [vmem:[#allocation18_spill] sm:$0xff] %v15178_v39 }
 0xb4c   : > { %v5402_v10 = vsel %vm408_vm7, %v14953_v18, %v5401_v54  ;;  %v5403_v0 = vsel %vm408_vm7, %v5401_v54, %v14953_v18  ;;  %5613 = vmatpush.msra.mxu3 %v14962_v9  ;;  %5509 = vmatpush.msra.mxu1 %v5508_v43  ;;  %v5751_v43 = vsub.f32 %v15063_v15, %v18711_v34 }
 0xb4d   : > { %v5393_v57 = vpop.permute.xlu0 %5392  ;;  %v5404_v49 = vmul.f32 %v15164_v6, %v5403_v0  ;;  %5475 = vmatpush.msra.mxu0 %v15114_v33  ;;  %5578 = vmatpush.msra.mxu2 %v14968_v11  ;;  %v18714_v18 = vand.u32 4294901760, %v15145_v7  ;;  %v5405_v54 = vmul.f32 %v15178_v39, %v5402_v10  ;;  %v5519_v29 = vsub.f32 %v15119_v27, %v18713_v22 }
 0xb4e   : > { %5615 = vmatpush.msra.mxu3 %v15114_v33  ;;  %5515 = vmatpush.msra.mxu1 %v5514_v58  ;;  %v5395_v0 = vsel %vm397_vm8, %v5393_v57, %v5391_v24  ;;  %v5394_v37 = vsel %vm397_vm8, %v5391_v24, %v5393_v57  ;;  %v15203_v22 = vand.u32 4294901760, %v15130_v36  ;;  %v5537_v24 = vsub.f32 %v15105_v45, %v18718_v14  ;;  %v15228_v14 = vld [vmem:[%s18616_s4 + $0x8] sm:$0xff] }
 0xb4f   : > { %v15187_v34 = vand.u32 4294901760, %v5404_v49  ;;  %v5396_v10 = vmul.f32 %v15194_v20, %v5395_v0  ;;  %5477 = vmatpush.msra.mxu0 %v15044_v1  ;;  %5581 = vmatpush.msra.mxu2 %v15145_v7  ;;  %v5531_v58 = vsub.f32 %v15145_v7, %v18714_v18  ;;  %v5520_v57 = vand.u32 4294901760, %v5519_v29  ;;  %18971 = vst [vmem:[#allocation22_spill] sm:$0xff] %v15228_v14 }
 0xb50   : > { %5617 = vmatpush.msra.mxu3 %v15044_v1  ;;  %v15220_v29 = vand.u32 4294901760, %v5455_v63  ;;  %v15223_v39 = vsub.f32 %v5421_v28, %v15173_v17  ;;  %v5397_v0 = vmul.f32 %v15228_v14, %v5394_v37  ;;  %v15233_v20 = vand.u32 4294901760, %v5405_v54 }
 0xb51   : > { %v15210_v48 = vand.u32 4294901760, %v5396_v10  ;;  %5479 = vmatpush.msra.mxu0 %v15187_v34  ;;  %5584 = vmatpush.msra.mxu2 %v15105_v45  ;;  %v15215_v18 = vsub.f32 %v5404_v49, %v15187_v34  ;;  %v5532_v49 = vand.u32 4294901760, %v5531_v58  ;;  %v5752_v8 = vand.u32 4294901760, %v5751_v43 }
 0xb52   : > { %5521 = vmatpush.msra.mxu1 %v5520_v57  ;;  %5619 = vmatpush.msra.mxu3 %v15187_v34  ;;  %v15243_v37 = vsub.f32 %v15130_v36, %v15203_v22  ;;  %v18972_v58 = vand.u32 4294901760, %v15040_v56  ;;  %v18973_v57 = vand.u32 4294901760, %v15122_v51  ;;  %v5774_v43 = vand.u32 4294901760, %v15140_v21 }
 0xb53   : > { %5587 = vmatpush.msra.mxu2 %v15215_v18  ;;  %5481 = vmatpush.msra.mxu0 %v15210_v48  ;;  %v15238_v28 = vsub.f32 %v5396_v10, %v15210_v48  ;;  %v18974_v10 = vand.u32 4294901760, %v15027_v53  ;;  %v5538_v6 = vand.u32 4294901760, %v5537_v24  ;;  %v18975_v14 = vand.u32 4294901760, %v15215_v18 }
 0xb54   : > { %5527 = vmatpush.msra.mxu1 %v18972_v58  ;;  %5621 = vmatpush.msra.mxu3 %v15210_v48  ;;  %v5763_v32 = vsub.f32 %v15122_v51, %v18973_v57  ;;  %v15259_v58 = vsub.f32 %v5455_v63, %v15220_v29  ;;  %v15261_v47 = vand.u32 4294901760, %v5397_v0  ;;  %v5758_v57 = vand.u32 4294901760, %v5757_v35 }
 0xb55   : > { %5639 = vmatpush.msrb.mxu0 %v18974_v10  ;;  %v5543_v36 = vsub.f32 %v15215_v18, %v18975_v14  ;;  %v5548_v56 = vand.u32 4294901760, %v15238_v28  ;;  %5590 = vmatpush.msra.mxu2 %v15238_v28  ;;  %v18976_v53 = vand.u32 4294901760, %v15159_v52  ;;  %v15269_v10 = vsub.f32 %v5405_v54, %v15233_v20 }
 0xb56   : > { %5753 = vmatpush.msrb.mxu3 %v5752_v8  ;;  %5533 = vmatpush.msra.mxu1 %v5532_v49  ;;  %v18977_v14 = vand.u32 4294901760, %v15034_v55  ;;  %v5764_v35 = vand.u32 4294901760, %v5763_v32  ;;  %v5786_v24 = vand.u32 4294901760, %v15243_v37  ;;  %v18978_v54 = vand.u32 4294901760, %v15001_v41 }
 0xb57   : > { %v5769_v8 = vsub.f32 %v15159_v52, %v18976_v53  ;;  %5715 = vmatpush.msrb.mxu2 %v15029_v23  ;;  %v5544_v63 = vand.u32 4294901760, %v5543_v36  ;;  %v5549_v49 = vsub.f32 %v15238_v28, %v5548_v56  ;;  %v5775_v53 = vsub.f32 %v15140_v21, %v5774_v43 }
 0xb58   : > { %5643 = vmatpush.msrb.mxu0 %v18977_v14  ;;  %5539 = vmatpush.msra.mxu1 %v5538_v6  ;;  %v15283_v14 = vand.u32 4294901760, %v15259_v58  ;;  %v15286_v28 = vsub.f32 %v5397_v0, %v15261_v47  ;;  %v18979_v32 = vand.u32 4294901760, %v15223_v39  ;;  %v5792_v41 = vand.u32 4294901760, %v15269_v10 }
 0xb59   : > { %5759 = vmatpush.msrb.mxu3 %v5758_v57  ;;  %5717 = vmatpush.msrb.mxu2 %v15052_v3  ;;  %v5550_v55 = vand.u32 4294901760, %v5549_v49  ;;  %v5770_v6 = vand.u32 4294901760, %v5769_v8  ;;  %v18980_v57 = vand.u32 4294901760, %v15119_v27  ;;  %v5776_v49 = vand.u32 4294901760, %v5775_v53 }
 0xb5a   : > { %5647 = vmatpush.msrb.mxu0 %v18978_v54  ;;  %5545 = vmatpush.msra.mxu1 %v5544_v63  ;;  %v5781_v36 = vsub.f32 %v15223_v39, %v18979_v32  ;;  %v5787_v0 = vsub.f32 %v15243_v37, %v5786_v24  ;;  %v18981_v8 = vand.u32 4294901760, %v14968_v11  ;;  %v5485_v27 = vsub.f32 %v15259_v58, %v15283_v14 }
 0xb5b   : > { %5765 = vmatpush.msrb.mxu3 %v5764_v35  ;;  %5719 = vmatpush.msrb.mxu2 %v15060_v2  ;;  %v5798_v35 = vand.u32 4294901760, %v15286_v28  ;;  %v18982_v53 = vand.u32 4294901760, %v15145_v7  ;;  %v5793_v11 = vsub.f32 %v15269_v10, %v5792_v41  ;;  %v18983_v54 = vand.u32 4294901760, %v15105_v45 }
 0xb5c   : > { %5651 = vmatpush.msrb.mxu0 %v18980_v57  ;;  %5551 = vmatpush.msra.mxu1 %v5550_v55  ;;  %v5782_v63 = vand.u32 4294901760, %v5781_v36  ;;  %v5486_v55 = vand.u32 4294901760, %v5485_v27  ;;  %v18984_v7 = vand.u32 4294901760, %v15215_v18  ;;  %v18987_v45 = vand.u32 4294901760, %v15122_v51 }
 0xb5d   : > { %5771 = vmatpush.msrb.mxu3 %v5770_v6  ;;  %5721 = vmatpush.msrb.mxu2 %v15112_v12  ;;  %v5794_v6 = vand.u32 4294901760, %v5793_v11 }
 0xb5e   : > { %5655 = vmatpush.msrb.mxu0 %v18981_v8  ;;  %5685 = vmatpush.msrb.mxu1 %v15010_v61  ;;  %v5788_v61 = vand.u32 4294901760, %v5787_v0 }
 0xb5f   : > { %5777 = vmatpush.msrb.mxu3 %v5776_v49  ;;  %5723 = vmatpush.msrb.mxu2 %v15050_v25 }
 0xb60   : > { %5659 = vmatpush.msrb.mxu0 %v18982_v53  ;;  %5687 = vmatpush.msrb.mxu1 %v15018_v44  ;;  %v5799_v44 = vsub.f32 %v15286_v28, %v5798_v35 }
 0xb61   : > { %5783 = vmatpush.msrb.mxu3 %v5782_v63  ;;  %5725 = vmatpush.msrb.mxu2 %v15173_v17 }
 0xb62   : > { %5663 = vmatpush.msrb.mxu0 %v18983_v54  ;;  %5689 = vmatpush.msrb.mxu1 %v14964_v13  ;;  %v5800_v13 = vand.u32 4294901760, %v5799_v44 }
 0xb63   : > { %5789 = vmatpush.msrb.mxu3 %v5788_v61  ;;  %5593 = vmatmul.f32.vlgmr.msra.gmra.mxu2 %v15259_v58 }
 0xb64   : > { %5667 = vmatpush.msrb.mxu0 %v18984_v7  ;;  %5691 = vmatpush.msrb.mxu1 %v15092_v62  ;;  %v18985_v62 = vand.u32 4294901760, %v15063_v15 }
 0xb65   : > { %5727 = vmatpush.msrb.mxu2 %v15203_v22  ;;  %5795 = vmatpush.msrb.mxu3 %v5794_v6 }
 0xb66   : > { %5487 = vmatmul.f32.vlgmr.msra.gmra.mxu0 %v5486_v55  ;;  %5625 = vmatmul.f32.vlgmr.msra.gmra.mxu3 %v15283_v14 }
 0xb67   : > { %5671 = vmatpush.msrb.mxu0 %v5548_v56  ;;  %5693 = vmatpush.msrb.mxu1 %v14962_v9  ;;  %v18986_v9 = vand.u32 4294901760, %v15108_v19 }
 0xb68   : > { %5729 = vmatpush.msrb.mxu2 %v15233_v20  ;;  %5801 = vmatpush.msrb.mxu3 %v5800_v13  ;;  %v5969_v13 = vld [vmem:[#allocation5 + $0x40] sm:$0xff] }
 0xb69   : > { %5553 = vmatmul.f32.vlgmr.msra.gmra.mxu1 %v15220_v29  ;;  %5816 = vmatpush.msra.mxu0 %v15063_v15  ;;  %v18989_v15 = vmov %v18979_v32 }
 0xb6a   : > { %5935 = vmatpush.msra.mxu3 %v15029_v23  ;;  %5695 = vmatpush.msrb.mxu1 %v15114_v33 }
 0xb6b   : > { %5731 = vmatpush.msrb.mxu2 %v15261_v47  ;;  %5819 = vmatpush.msra.mxu0 %v15108_v19 }
 0xb6c   : > { %5937 = vmatpush.msra.mxu3 %v15052_v3  ;;  %5697 = vmatpush.msrb.mxu1 %v15044_v1  ;;  %v18988_v1 = vand.u32 4294901760, %v15159_v52 }
 0xb6d   : > { %5889 = vmatpush.msra.mxu2 %v18985_v62  ;;  %5822 = vmatpush.msra.mxu0 %v15122_v51 }
 0xb6e   : > { %5939 = vmatpush.msra.mxu3 %v15060_v2  ;;  %5699 = vmatpush.msrb.mxu1 %v15187_v34 }
 0xb6f   : > { %5893 = vmatpush.msra.mxu2 %v18986_v9  ;;  %5673 = vmatmul.f32.vlgmr.msrb.gmra.mxu0 %v15220_v29 }
 0xb70   : > { %5825 = vmatpush.msra.mxu0 %v15159_v52  ;;  %5941 = vmatpush.msra.mxu3 %v15112_v12  ;;  %v5964_v52 = vpop.permute.xlu1 %5963 }
 0xb71   : > { %5897 = vmatpush.msra.mxu2 %v18987_v45  ;;  %5701 = vmatpush.msrb.mxu1 %v15210_v48 }
 0xb72   : > { %5703 = vmatmul.f32.vlgmr.msrb.gmra.mxu1 %v15220_v29  ;;  %5828 = vmatpush.msra.mxu0 %v15140_v21 }
 0xb73   : > { %5901 = vmatpush.msra.mxu2 %v18988_v1  ;;  %5855 = vmatpush.msra.mxu1 %v15029_v23 }
 0xb74   : > { %5943 = vmatpush.msra.mxu3 %v15050_v25  ;;  %5831 = vmatpush.msra.mxu0 %v15223_v39 }
 0xb75   : > { %5905 = vmatpush.msra.mxu2 %v5774_v43  ;;  %5857 = vmatpush.msra.mxu1 %v15052_v3 }
 0xb76   : > { %5945 = vmatpush.msra.mxu3 %v15173_v17  ;;  %5834 = vmatpush.msra.mxu0 %v15243_v37 }
 0xb77   : > { %5909 = vmatpush.msra.mxu2 %v18989_v15  ;;  %5859 = vmatpush.msra.mxu1 %v15060_v2 }
 0xb78   : > { %5947 = vmatpush.msra.mxu3 %v15203_v22  ;;  %5737 = vmatmul.f32.vlgmr.msrb.gmra.mxu2 %v5486_v55 }
 0xb79   : > { %5803 = vmatmul.f32.vlgmr.msrb.gmra.mxu3 %v15220_v29  ;;  %5837 = vmatpush.msra.mxu0 %v15269_v10 }
 0xb7a   : > { %5861 = vmatpush.msra.mxu1 %v15112_v12  ;;  %5913 = vmatpush.msra.mxu2 %v5786_v24 }
 0xb7b   : > { %5949 = vmatpush.msra.mxu3 %v15233_v20  ;;  %5840 = vmatpush.msra.mxu0 %v15286_v28  ;;  %v10572_v28 = vld [vmem:[%s18615_s3 + $0x48] sm:$0xff] }
 0xb7c   : > { %5863 = vmatpush.msra.mxu1 %v15050_v25  ;;  %5917 = vmatpush.msra.mxu2 %v5792_v41 }
 0xb7d   : > { %5951 = vmatpush.msra.mxu3 %v15261_v47  ;;  %5843 = vmatmul.f32.vlgmr.msra.gmra.mxu0 %v15259_v58 }
 0xb7e   : > { %5865 = vmatpush.msra.mxu1 %v15173_v17  ;;  %5921 = vmatpush.msra.mxu2 %v5798_v35 }
 0xb80   : > { %5867 = vmatpush.msra.mxu1 %v15203_v22  ;;  %5923 = vmatmul.f32.vlgmr.msra.gmra.mxu2 %v15220_v29 }
 0xb81   : > { %5953 = vmatmul.f32.vlgmr.msra.gmra.mxu3 %v15220_v29 }
 0xb82   : > { %5869 = vmatpush.msra.mxu1 %v15233_v20 }
 0xb84   : > { %5871 = vmatpush.msra.mxu1 %v15261_v47 }
 0xb85   : > { %5875 = vmatmul.f32.vlgmr.msra.gmra.mxu1 %v15283_v14 }
 0xbe3   : > { %v5488_v23 = vpop.f32.mrf.mxu0 }
 0xbe6   : > { %v5554_v25 = vpop.f32.mrf.mxu1  ;;  %v5594_v2 = vpop.f32.mrf.mxu2 }
 0xbe7   : > { %v5555_v3 = vadd.f32 %v5554_v25, %v5488_v23  ;;  %v6049_v25 = vsel %vm488_vm6, %v5969_v13, 0 }
 0xbe9   : > { %v5595_v19 = vadd.f32 %v5594_v2, %v5555_v3  ;;  %v5626_v34 = vpop.f32.mrf.mxu3 }
 0xbeb   : > { %v5627_v12 = vadd.f32 %v5626_v34, %v5595_v19 }
 0xbec   : > { %v5674_v33 = vpop.f32.mrf.mxu0 }
 0xbed   : > { %v5675_v51 = vadd.f32 %v5674_v33, %v5627_v12  ;;  %v15476_v12 = vand.u32 4294901760, %v6049_v25 }
 0xbef   : > { %v5704_v21 = vpop.f32.mrf.mxu1 }
 0xbf0   : > { %v5705_v22 = vadd.f32 %v5704_v21, %v5675_v51 }
 0xbf2   : > { %v5957_v48 = vadd.f32 %v5705_v22, %v14476_v5 }
 0xbf4   : > { %v15386_v18 = vadd.f32 %v5964_v52, %v5957_v48 }
 0xbf6   : > { %6011 = vrot.lane.b32.xlu0 %v15386_v18, %s11062_s26  ;;  %6019 = vrot.lane.b32.xlu1 %v15386_v18, %s11060_s22  ;;  %v15437_v53 = vand.u32 4294901760, %v15386_v18 }
 0xbf7   : > { %6027 = vrot.lane.b32.xlu2 %v15386_v18, %s11061_s25 }
 0xbf8   : > { %v15445_v55 = vsub.f32 %v15386_v18, %v15437_v53 }
 0xbfa   : > { %v5844_v39 = vpop.f32.mrf.mxu0  ;;  %v6129_v23 = vand.u32 4294901760, %v15445_v55 }
 0xbfb   : > { %v5738_v20 = vpop.f32.mrf.mxu2 }
 0xbfc   : > { %v5804_v47 = vpop.f32.mrf.mxu3  ;;  %v15485_v51 = vsub.f32 %v15445_v55, %v6129_v23 }
 0xbfd   : > { %v5805_v17 = vadd.f32 %v5804_v47, %v5738_v20 }
 0xbfe   : > { %5987 = vrot.lane.b32.xlu0 %v15386_v18, %s11065_s15  ;;  %5995 = vrot.lane.b32.xlu1 %v15386_v18, %s11064_s23 }
 0xbff   : > { %6003 = vrot.lane.b32.xlu2 %v15386_v18, %s18822_s14  ;;  %v5845_v5 = vadd.f32 %v5844_v39, %v5805_v17 }
 0xc02   : > { %v5876_v29 = vpop.f32.mrf.mxu1 }
 0xc03   : > { %v5877_v37 = vadd.f32 %v5876_v29, %v5845_v5  ;;  %v5924_v43 = vpop.f32.mrf.mxu2  ;;  %v5970_v29 = vld [vmem:[#allocation5 + $0x48] sm:$0xff] }
 0xc04   : > { %v5954_v56 = vpop.f32.mrf.mxu3 }
 0xc05   : > { %v5925_v58 = vadd.f32 %v5924_v43, %v5877_v37 }
 0xc07   : > { %v5955_v24 = vadd.f32 %v5954_v56, %v5925_v58  ;;  %5979 = vrot.lane.b32.xlu2 %v15386_v18, %s18823_s11  ;;  %v15513_v58 = vsub.f32 %v6049_v25, %v15476_v12 }
 0xc09   : > { %v5958_v10 = vadd.f32 %v5955_v24, %v14493_v38  ;;  %v10571_v38 = vld [vmem:[%s18615_s3 + $0x40] sm:$0xff] }
 0xc0b   : > { %v15403_v14 = vadd.f32 %v5964_v52, %v5958_v10 }
 0xc0d   : > { %6029 = vrot.lane.b32.xlu0 %v15403_v14, %s11061_s25  ;;  %6013 = vrot.lane.b32.xlu1 %v15403_v14, %s11062_s26 }
 0xc0f   : > { %6021 = vrot.lane.b32.xlu2 %v15403_v14, %s11060_s22 }
 0xc15   : > { %6005 = vrot.lane.b32.xlu0 %v15403_v14, %s18822_s14  ;;  %5989 = vrot.lane.b32.xlu1 %v15403_v14, %s11065_s15 }
 0xc17   : > { %5997 = vrot.lane.b32.xlu2 %v15403_v14, %s11064_s23 }
 0xc1d   : > { %5981 = vrot.lane.b32.xlu0 %v15403_v14, %s18823_s11  ;;  %5971 = vrot.lane.b32.xlu1 %v15386_v18, %s18824_s19 }
 0xc1f   : > { %5973 = vrot.lane.b32.xlu2 %v15403_v14, %s18824_s19 }
 0xc25   : > { %6040 = vperm.xlu0 %10678, %v10571_v38   ;;  %6045 = vperm.xlu1 %10677, %v10572_v28  }
 0xc51   : > { %v6028_v32 = vpop.permute.xlu2 %6027 }
 0xc59   : > { %v6004_v36 = vpop.permute.xlu2 %6003 }
 0xc61   : > { %v15429_v57 = vpop.permute.xlu2 %5979 }
 0xc68   : > { %v6012_v41 = vpop.permute.xlu0 %6011  ;;  %v6020_v49 = vpop.permute.xlu1 %6019 }
 0xc69   : > { %v6022_v0 = vpop.permute.xlu2 %6021 }
 0xc6a   : > { %v6023_v8 = vsel %vm468_vm1, %v6020_v49, %v6022_v0  ;;  %v6024_v11 = vsel %vm468_vm1, %v6022_v0, %v6020_v49  ;;  %v6131_v0 = vand.u32 4294901760, %v15485_v51 }
 0xc6b   : > { %v6025_v35 = vmul.f32 %v14997_v59, %v6023_v8  ;;  %v6026_v44 = vmul.f32 %v15015_v46, %v6024_v11  ;;  %v18990_v11 = vld [vmem:[#allocation20_spill] sm:$0xff] }
 0xc6d   : > { %v15441_v61 = vand.u32 4294901760, %v6025_v35  ;;  %v15463_v3 = vand.u32 4294901760, %v6026_v44 }
 0xc6f   : > { %v15459_v46 = vsub.f32 %v6025_v35, %v15441_v61 }
 0xc70   : > { %v15433_v27 = vpop.permute.xlu0 %5987  ;;  %v5996_v63 = vpop.permute.xlu1 %5995 }
 0xc71   : > { %v5998_v54 = vpop.permute.xlu2 %5997 }
 0xc72   : > { %v6000_v15 = vsel %vm432_vm4, %v5998_v54, %v5996_v63  ;;  %v5999_v47 = vsel %vm432_vm4, %v5996_v63, %v5998_v54  ;;  %v15548_v63 = vand.u32 4294901760, %v15513_v58 }
 0xc73   : > { %v15552_v54 = vmul.f32 %v18990_v11, %v5999_v47 }
 0xc7f   : > { %v6030_v7 = vpop.permute.xlu0 %6029  ;;  %v6014_v6 = vpop.permute.xlu1 %6013 }
 0xc80   : > { %v6031_v59 = vsel %vm480_vm2, %v6028_v32, %v6030_v7  ;;  %v6032_v62 = vsel %vm480_vm2, %v6030_v7, %v6028_v32  ;;  %v6015_v9 = vsel %vm456_vm0, %v6012_v41, %v6014_v6  ;;  %v6016_v48 = vsel %vm456_vm0, %v6014_v6, %v6012_v41 }
 0xc81   : > { %v6033_v45 = vmul.f32 %v14979_v42, %v6031_v59  ;;  %v6017_v1 = vmul.f32 %v14958_v26, %v6015_v9  ;;  %v6034_v2 = vmul.f32 %v14985_v16, %v6032_v62  ;;  %v6001_v26 = vmul.f32 %v15100_v30, %v6000_v15 }
 0xc82   : > { %v6111_v16 = vand.u32 4294901760, %v15459_v46  ;;  %v15488_v30 = vsub.f32 %v6026_v44, %v15463_v3  ;;  %v6018_v24 = vmul.f32 %v15023_v31, %v6016_v48  ;;  %v6052_v32 = vsel %vm488_vm6, %v5970_v29, 0  ;;  %v5974_v44 = vpop.permute.xlu2 %5973 }
 0xc83   : > { %v15466_v19 = vand.u32 4294901760, %v6033_v45  ;;  %v15468_v34 = vand.u32 4294901760, %v6017_v1  ;;  %v15491_v22 = vand.u32 4294901760, %v6034_v2  ;;  %v15507_v37 = vand.u32 4294901760, %v6001_v26 }
 0xc84   : > { %v18724_v35 = vand.u32 4294901760, %v15488_v30  ;;  %v15554_v7 = vand.u32 4294901760, %v6018_v24  ;;  %v15556_v13 = vand.u32 4294901760, %v6052_v32 }
 0xc85   : > { %v15472_v42 = vsub.f32 %v6033_v45, %v15466_v19  ;;  %6062 = vmatpush.msrb.mxu0 %v15466_v19  ;;  %6219 = vmatpush.msrb.mxu3 %v15466_v19  ;;  %v15479_v33 = vsub.f32 %v6017_v1, %v15468_v34  ;;  %v15526_v38 = vsub.f32 %v6034_v2, %v15491_v22 }
 0xc86   : > { %v15545_v8 = vsub.f32 %v6001_v26, %v15507_v37 }
 0xc87   : > { %v6105_v21 = vand.u32 4294901760, %v15472_v42  ;;  %v6006_v52 = vpop.permute.xlu0 %6005  ;;  %v5990_v20 = vpop.permute.xlu1 %5989  ;;  %6064 = vmatpush.msrb.mxu0 %v15441_v61  ;;  %6175 = vmatpush.msrb.mxu2 %v15472_v42  ;;  %v18725_v59 = vand.u32 4294901760, %v15526_v38 }
 0xc88   : > { %v6007_v17 = vsel %vm444_vm3, %v6004_v36, %v6006_v52  ;;  %v6008_v39 = vsel %vm444_vm3, %v6006_v52, %v6004_v36  ;;  %v5992_v5 = vsel %vm420_vm5, %v5990_v20, %v15433_v27  ;;  %6221 = vmatpush.msrb.mxu3 %v15441_v61  ;;  %v5991_v9 = vsel %vm420_vm5, %v15433_v27, %v5990_v20  ;;  %v18991_v27 = vld [vmem:[#allocation17_spill] sm:$0xff] }
 0xc89   : > { %v6009_v43 = vmul.f32 %v15068_v50, %v6007_v17  ;;  %v5993_v56 = vmul.f32 %v15007_v40, %v5992_v5  ;;  %6066 = vmatpush.msrb.mxu0 %v15468_v34  ;;  %6178 = vmatpush.msrb.mxu2 %v15459_v46  ;;  %v6106_v10 = vsub.f32 %v15472_v42, %v6105_v21  ;;  %v6117_v40 = vand.u32 4294901760, %v15479_v33  ;;  %v18992_v20 = vld [vmem:[#allocation21_spill] sm:$0xff] }
 0xc8a   : > { %6223 = vmatpush.msrb.mxu3 %v15468_v34  ;;  %v6112_v50 = vsub.f32 %v15459_v46, %v6111_v16  ;;  %v6010_v28 = vmul.f32 %v15074_v60, %v6008_v39  ;;  %v6082_v17 = vsub.f32 %v15513_v58, %v15548_v63  ;;  %v18726_v39 = vand.u32 4294901760, %v15545_v8 }
 0xc8b   : > { %v15529_v31 = vand.u32 4294901760, %v6009_v43  ;;  %v15532_v36 = vand.u32 4294901760, %v5993_v56  ;;  %6181 = vmatpush.msrb.mxu2 %v15479_v33  ;;  %v6107_v41 = vand.u32 4294901760, %v6106_v10  ;;  %v6118_v49 = vsub.f32 %v15479_v33, %v6117_v40  ;;  %v18993_v10 = vld [vmem:[#allocation24_spill] sm:$0xff] }
 0xc8c   : > { %v6113_v6 = vand.u32 4294901760, %v6112_v50  ;;  %v15559_v62 = vand.u32 4294901760, %v6010_v28  ;;  %v15582_v5 = vsub.f32 %v6018_v24, %v15554_v7  ;;  %v5994_v50 = vmul.f32 %v18993_v10, %v5991_v9 }
 0xc8d   : > { %6068 = vmatpush.msrb.mxu0 %v15529_v31  ;;  %6225 = vmatpush.msrb.mxu3 %v15529_v31  ;;  %v15542_v60 = vsub.f32 %v6009_v43, %v15529_v31  ;;  %v6119_v26 = vand.u32 4294901760, %v6118_v49  ;;  %v15573_v48 = vsub.f32 %v5993_v56, %v15532_v36  ;;  %v15589_v43 = vsub.f32 %v6052_v32, %v15556_v13 }
 0xc8e   : > { %6108 = vmatpush.msrb.mxu1 %v6107_v41  ;;  %v15592_v56 = vand.u32 4294901760, %v15403_v14  ;;  %v6387_v24 = vsub.f32 %v15526_v38, %v18725_v59  ;;  %v15605_v32 = vsub.f32 %v6010_v28, %v15559_v62  ;;  %v6136_v28 = vsub.f32 %v15545_v8, %v18726_v39 }
 0xc8f   : > { %v5982_v45 = vpop.permute.xlu0 %5981  ;;  %v5972_v1 = vpop.permute.xlu1 %5971  ;;  %6070 = vmatpush.msrb.mxu0 %v15437_v53  ;;  %6184 = vmatpush.msrb.mxu2 %v15542_v60  ;;  %v6123_v15 = vand.u32 4294901760, %v15542_v60  ;;  %v6141_v9 = vand.u32 4294901760, %v15573_v48 }
 0xc90   : > { %v5984_v25 = vsel %vm408_vm7, %v5982_v45, %v15429_v57  ;;  %v5976_v2 = vsel %vm397_vm8, %v5974_v44, %v5972_v1  ;;  %6114 = vmatpush.msrb.mxu1 %v6113_v6  ;;  %6227 = vmatpush.msrb.mxu3 %v15437_v53  ;;  %v5983_v11 = vsel %vm408_vm7, %v15429_v57, %v5982_v45  ;;  %v6137_v59 = vand.u32 4294901760, %v6136_v28 }
 0xc91   : > { %v5985_v52 = vmul.f32 %v18991_v27, %v5984_v25  ;;  %v5977_v47 = vmul.f32 %v18992_v20, %v5976_v2  ;;  %6072 = vmatpush.msrb.mxu0 %v15507_v37  ;;  %v6124_v29 = vsub.f32 %v15542_v60, %v6123_v15  ;;  %6187 = vmatpush.msrb.mxu2 %v15445_v55  ;;  %v15613_v25 = vand.u32 4294901760, %v15552_v54  ;;  %v18994_v20 = vld [vmem:[#allocation18_spill] sm:$0xff] }
 0xc92   : > { %6120 = vmatpush.msrb.mxu1 %v6119_v26  ;;  %6229 = vmatpush.msrb.mxu3 %v15507_v37  ;;  %v6393_v57 = vsub.f32 %v15488_v30, %v18724_v35  ;;  %v5975_v45 = vsel %vm397_vm8, %v5972_v1, %v5974_v44  ;;  %v15629_v26 = vand.u32 4294901760, %v6082_v17  ;;  %v15640_v44 = vand.u32 4294901760, %v15589_v43 }
 0xc93   : > { %v15595_v41 = vand.u32 4294901760, %v5985_v52  ;;  %v15597_v49 = vand.u32 4294901760, %v5977_v47  ;;  %6074 = vmatpush.msrb.mxu0 %v15532_v36  ;;  %v6125_v6 = vand.u32 4294901760, %v6124_v29  ;;  %6190 = vmatpush.msrb.mxu2 %v15545_v8  ;;  %v5986_v29 = vmul.f32 %v18994_v20, %v5983_v11  ;;  %v18995_v20 = vld [vmem:[#allocation22_spill] sm:$0xff] }
 0xc94   : > { %6231 = vmatpush.msrb.mxu3 %v15532_v36  ;;  %v15644_v1 = vsub.f32 %v15403_v14, %v15592_v56  ;;  %v15646_v17 = vand.u32 4294901760, %v5994_v50  ;;  %v6142_v11 = vsub.f32 %v15573_v48, %v6141_v9  ;;  %v5978_v35 = vmul.f32 %v18995_v20, %v5975_v45 }
 0xc95   : > { %v15618_v2 = vsub.f32 %v5985_v52, %v15595_v41  ;;  %6076 = vmatpush.msrb.mxu0 %v15595_v41  ;;  %6126 = vmatpush.msrb.mxu1 %v6125_v6  ;;  %v15632_v27 = vsub.f32 %v5977_v47, %v15597_v49  ;;  %v18728_v52 = vand.u32 4294901760, %v15582_v5  ;;  %v6388_v47 = vand.u32 4294901760, %v6387_v24 }
 0xc96   : > { %6193 = vmatpush.msrb.mxu2 %v15573_v48  ;;  %6233 = vmatpush.msrb.mxu3 %v15595_v41  ;;  %v6404_v6 = vand.u32 4294901760, %v15605_v32  ;;  %v6394_v24 = vand.u32 4294901760, %v6393_v57  ;;  %v15670_v20 = vand.u32 4294901760, %v5986_v29  ;;  %v6090_v28 = vsub.f32 %v15589_v43, %v15640_v44 }
 0xc97   : > { %v18727_v10 = vand.u32 4294901760, %v15618_v2  ;;  %6078 = vmatpush.msrb.mxu0 %v15597_v49  ;;  %6132 = vmatpush.msrb.mxu1 %v6131_v0  ;;  %v6153_v51 = vand.u32 4294901760, %v15632_v27  ;;  %v15664_v0 = vsub.f32 %v15552_v54, %v15613_v25  ;;  %v6399_v45 = vsub.f32 %v15582_v5, %v18728_v52 }
 0xc98   : > { %6196 = vmatpush.msrb.mxu2 %v15618_v2  ;;  %6235 = vmatpush.msrb.mxu3 %v15597_v49  ;;  %v6410_v54 = vand.u32 4294901760, %v15644_v1  ;;  %v6143_v57 = vand.u32 4294901760, %v6142_v11  ;;  %v6405_v52 = vsub.f32 %v15605_v32, %v6404_v6  ;;  %v15684_v42 = vand.u32 4294901760, %v5978_v35 }
 0xc99   : > { %v6148_v39 = vsub.f32 %v15618_v2, %v18727_v10  ;;  %6084 = vmatmul.f32.vlgmr.msrb.gmra.mxu0 %v15629_v26  ;;  %6138 = vmatpush.msrb.mxu1 %v6137_v59  ;;  %v15678_v10 = vsub.f32 %v5994_v50, %v15646_v17  ;;  %v6400_v59 = vand.u32 4294901760, %v6399_v45  ;;  %v15695_v50 = vsub.f32 %v5986_v29, %v15670_v20 }
 0xc9a   : > { %6389 = vmatpush.msra.mxu3 %v6388_v47  ;;  %6259 = vmatpush.msra.mxu0 %v6105_v21  ;;  %v6154_v21 = vsub.f32 %v15632_v27, %v6153_v51  ;;  %v15700_v46 = vand.u32 4294901760, %v6090_v28  ;;  %v6411_v11 = vsub.f32 %v15644_v1, %v6410_v54  ;;  %v15707_v45 = vsub.f32 %v5978_v35, %v15684_v42 }
 0xc9b   : > { %6199 = vmatpush.msrb.mxu2 %v15632_v27  ;;  %v6149_v47 = vand.u32 4294901760, %v6148_v39  ;;  %6144 = vmatpush.msrb.mxu1 %v6143_v57  ;;  %v6416_v39 = vand.u32 4294901760, %v15664_v0  ;;  %v18996_v29 = vand.u32 4294901760, %v15545_v8 }
 0xc9c   : > { %6395 = vmatpush.msra.mxu3 %v6394_v24  ;;  %6263 = vmatpush.msra.mxu0 %v6111_v16  ;;  %v6406_v16 = vand.u32 4294901760, %v6405_v52  ;;  %v6422_v24 = vand.u32 4294901760, %v15678_v10  ;;  %v6155_v33 = vand.u32 4294901760, %v6154_v21  ;;  %v6428_v52 = vand.u32 4294901760, %v15695_v50 }
 0xc9d   : > { %6343 = vmatpush.msra.mxu2 %v15491_v22  ;;  %6150 = vmatpush.msrb.mxu1 %v6149_v47  ;;  %v6412_v60 = vand.u32 4294901760, %v6411_v11 }
 0xc9e   : > { %6202 = vmatmul.f32.vlgmr.msrb.gmra.mxu2 %v15513_v58  ;;  %6267 = vmatpush.msra.mxu0 %v6117_v40  ;;  %v6417_v40 = vsub.f32 %v15664_v0, %v6416_v39  ;;  %v6423_v35 = vsub.f32 %v15678_v10, %v6422_v24  ;;  %v6429_v55 = vsub.f32 %v15695_v50, %v6428_v52 }
 0xc9f   : > { %6345 = vmatpush.msra.mxu2 %v15463_v3  ;;  %6401 = vmatpush.msra.mxu3 %v6400_v59 }
 0xca0   : > { %6239 = vmatmul.f32.vlgmr.msrb.gmra.mxu3 %v15548_v63  ;;  %6271 = vmatpush.msra.mxu0 %v6123_v15  ;;  %v6434_v15 = vand.u32 4294901760, %v15707_v45  ;;  %v6418_v28 = vand.u32 4294901760, %v6417_v40  ;;  %v6430_v8 = vand.u32 4294901760, %v6429_v55 }
 0xca1   : > { %6347 = vmatpush.msra.mxu2 %v15554_v7  ;;  %6407 = vmatpush.msra.mxu3 %v6406_v16 }
 0xca2   : > { %6156 = vmatpush.msrb.mxu1 %v6155_v33  ;;  %6092 = vmatmul.f32.gmra.mxu0 %v15700_v46  ;;  %v19001_v33 = vld [vmem:[#allocation19_spill] sm:$0xff] }
 0xca3   : > { %6158 = vmatmul.f32.vlgmr.msrb.gmra.mxu1 %v15476_v12  ;;  %6275 = vmatpush.msra.mxu0 %v6129_v23  ;;  %v6424_v23 = vand.u32 4294901760, %v6423_v35 }
 0xca4   : > { %6309 = vmatpush.msra.mxu1 %v15466_v19  ;;  %6349 = vmatpush.msra.mxu2 %v15559_v62  ;;  %v6435_v19 = vsub.f32 %v15707_v45, %v6434_v15 }
 0xca5   : > { %6413 = vmatpush.msra.mxu3 %v6412_v60  ;;  %6279 = vmatpush.msra.mxu0 %v18996_v29 }
 0xca6   : > { %6311 = vmatpush.msra.mxu1 %v15441_v61  ;;  %6351 = vmatpush.msra.mxu2 %v15592_v56  ;;  %v18997_v61 = vand.u32 4294901760, %v15618_v2 }
 0xca7   : > { %6419 = vmatpush.msra.mxu3 %v6418_v28  ;;  %6207 = vmatmul.f32.gmra.mxu2 %v15589_v43 }
 0xca8   : > { %6283 = vmatpush.msra.mxu0 %v6141_v9  ;;  %6313 = vmatpush.msra.mxu1 %v15468_v34  ;;  %v6436_v34 = vand.u32 4294901760, %v6435_v19 }
 0xca9   : > { %6353 = vmatpush.msra.mxu2 %v15613_v25  ;;  %6425 = vmatpush.msra.mxu3 %v6424_v23 }
 0xcaa   : > { %6245 = vmatmul.f32.gmra.mxu3 %v15640_v44  ;;  %6287 = vmatpush.msra.mxu0 %v18997_v61 }
 0xcab   : > { %6315 = vmatpush.msra.mxu1 %v15529_v31  ;;  %6355 = vmatpush.msra.mxu2 %v15646_v17  ;;  %v18999_v31 = vand.u32 4294901760, %v15488_v30 }
 0xcac   : > { %6431 = vmatpush.msra.mxu3 %v6430_v8  ;;  %6162 = vmatmul.f32.gmra.mxu1 %v15556_v13 }
 0xcad   : > { %6291 = vmatpush.msra.mxu0 %v6153_v51  ;;  %6317 = vmatpush.msra.mxu1 %v15437_v53  ;;  %v18998_v53 = vand.u32 4294901760, %v15526_v38 }
 0xcae   : > { %6357 = vmatpush.msra.mxu2 %v15670_v20  ;;  %6437 = vmatpush.msra.mxu3 %v6436_v34 }
 0xcaf   : > { %6293 = vmatmul.f32.vlgmr.msra.gmra.mxu0 %v15476_v12  ;;  %6319 = vmatpush.msra.mxu1 %v15507_v37  ;;  %v19000_v37 = vand.u32 4294901760, %v15582_v5 }
 0xcb0   : > { %6590 = vmatpush.msrb.mxu3 %v15491_v22  ;;  %6456 = vmatpush.msrb.mxu0 %v15526_v38 }
 0xcb1   : > { %6359 = vmatpush.msra.mxu2 %v15684_v42  ;;  %6321 = vmatpush.msra.mxu1 %v15532_v36 }
 0xcb2   : > { %6592 = vmatpush.msrb.mxu3 %v15463_v3  ;;  %6365 = vmatmul.f32.vlgmr.msra.gmra.mxu2 %v15629_v26  ;;  %v6046_v26 = vpop.permute.xlu1 %6045 }
 0xcb3   : > { %6459 = vmatpush.msrb.mxu0 %v15488_v30  ;;  %6540 = vmatpush.msrb.mxu2 %v18998_v53 }
 0xcb4   : > { %6439 = vmatmul.f32.vlgmr.msra.gmra.mxu3 %v15476_v12  ;;  %6323 = vmatpush.msra.mxu1 %v15595_v41 }
 0xcb5   : > { %6462 = vmatpush.msrb.mxu0 %v15582_v5  ;;  %6544 = vmatpush.msrb.mxu2 %v18999_v31 }
 0xcb6   : > { %6594 = vmatpush.msrb.mxu3 %v15554_v7  ;;  %6325 = vmatpush.msra.mxu1 %v15597_v49 }
 0xcb7   : > { %6465 = vmatpush.msrb.mxu0 %v15605_v32  ;;  %6548 = vmatpush.msrb.mxu2 %v19000_v37 }
 0xcb8   : > { %6596 = vmatpush.msrb.mxu3 %v15559_v62  ;;  %6297 = vmatmul.f32.gmra.mxu0 %v15556_v13 }
 0xcb9   : > { %6327 = vmatmul.f32.vlgmr.msra.gmra.mxu1 %v15476_v12  ;;  %6468 = vmatpush.msrb.mxu0 %v15644_v1 }
 0xcba   : > { %6500 = vmatpush.msrb.mxu1 %v15491_v22  ;;  %6552 = vmatpush.msrb.mxu2 %v6404_v6 }
 0xcbb   : > { %6598 = vmatpush.msrb.mxu3 %v15592_v56  ;;  %6373 = vmatmul.f32.gmra.mxu2 %v15700_v46 }
 0xcbc   : > { %6471 = vmatpush.msrb.mxu0 %v15664_v0  ;;  %6502 = vmatpush.msrb.mxu1 %v15463_v3 }
 0xcbd   : > { %6556 = vmatpush.msrb.mxu2 %v6410_v54  ;;  %6600 = vmatpush.msrb.mxu3 %v15613_v25 }
 0xcbe   : > { %6443 = vmatmul.f32.gmra.mxu3 %v15556_v13  ;;  %6474 = vmatpush.msrb.mxu0 %v15678_v10 }
 0xcbf   : > { %6504 = vmatpush.msrb.mxu1 %v15554_v7  ;;  %6560 = vmatpush.msrb.mxu2 %v6416_v39 }
 0xcc0   : > { %6602 = vmatpush.msrb.mxu3 %v15646_v17  ;;  %6477 = vmatpush.msrb.mxu0 %v15695_v50 }
 0xcc1   : > { %6506 = vmatpush.msrb.mxu1 %v15559_v62  ;;  %6564 = vmatpush.msrb.mxu2 %v6422_v24 }
 0xcc2   : > { %6604 = vmatpush.msrb.mxu3 %v15670_v20  ;;  %6331 = vmatmul.f32.gmra.mxu1 %v15556_v13 }
 0xcc3   : > { %6480 = vmatpush.msrb.mxu0 %v15707_v45  ;;  %6508 = vmatpush.msrb.mxu1 %v15592_v56 }
 0xcc4   : > { %6568 = vmatpush.msrb.mxu2 %v6428_v52  ;;  %6606 = vmatpush.msrb.mxu3 %v15684_v42 }
 0xcc5   : > { %6483 = vmatmul.f32.vlgmr.msrb.gmra.mxu0 %v15513_v58  ;;  %6510 = vmatpush.msrb.mxu1 %v15613_v25 }
 0xcc6   : > { %6572 = vmatpush.msrb.mxu2 %v6434_v15  ;;  %6608 = vmatmul.f32.vlgmr.msrb.gmra.mxu3 %v15476_v12 }
 0xcc7   : > { %6512 = vmatpush.msrb.mxu1 %v15646_v17  ;;  %6574 = vmatmul.f32.vlgmr.msrb.gmra.mxu2 %v15476_v12  ;;  %v6041_v12 = vpop.permute.xlu0 %6040 }
 0xcc9   : > { %6514 = vmatpush.msrb.mxu1 %v15670_v20 }
 0xccb   : > { %6516 = vmatpush.msrb.mxu1 %v15684_v42 }
 0xccc   : > { %6520 = vmatmul.f32.vlgmr.msrb.gmra.mxu1 %v15548_v63 }
 0xccd   : > { %6488 = vmatmul.f32.gmra.mxu0 %v15589_v43 }
 0xcce   : > { %6612 = vmatmul.f32.gmra.mxu3 %v15556_v13 }
 0xccf   : > { %6578 = vmatmul.f32.gmra.mxu2 %v15556_v13 }
 0xcd4   : > { %6526 = vmatmul.f32.gmra.mxu1 %v15640_v44 }
 0xd16   : > { %v6085_v3 = vpop.f32.mrf.mxu0 }
 0xd17   : > { %v6086_v36 = vadd.f32 %v6085_v3, %v6041_v12 }
 0xd1f   : > { %v6093_v38 = vpop.f32.mrf.mxu0 }
 0xd20   : > { %v6159_v30 = vpop.f32.mrf.mxu1  ;;  %v6094_v27 = vadd.f32 %v6093_v38, %v6046_v26 }
 0xd21   : > { %v6203_v22 = vpop.f32.mrf.mxu2  ;;  %v6160_v7 = vadd.f32 %v6159_v30, %v6086_v36 }
 0xd23   : > { %v6240_v58 = vpop.f32.mrf.mxu3  ;;  %v6204_v5 = vadd.f32 %v6203_v22, %v6160_v7  ;;  %v19003_v22 = vld [vmem:[#allocation25_spill] sm:$0xff] }
 0xd25   : > { %v6241_v43 = vadd.f32 %v6240_v58, %v6204_v5 }
 0xd29   : > { %v6163_v62 = vpop.f32.mrf.mxu1 }
 0xd2a   : > { %v6208_v48 = vpop.f32.mrf.mxu2  ;;  %v6164_v1 = vadd.f32 %v6163_v62, %v6094_v27 }
 0xd2c   : > { %v6294_v56 = vpop.f32.mrf.mxu0  ;;  %v6209_v54 = vadd.f32 %v6208_v48, %v6164_v1 }
 0xd2d   : > { %v6246_v63 = vpop.f32.mrf.mxu3  ;;  %v6295_v41 = vadd.f32 %v6294_v56, %v6241_v43 }
 0xd2e   : > { %v6247_v21 = vadd.f32 %v6246_v63, %v6209_v54 }
 0xd35   : > { %v6366_v13 = vpop.f32.mrf.mxu2  ;;  %v6298_v2 = vpop.f32.mrf.mxu0 }
 0xd36   : > { %v6328_v49 = vpop.f32.mrf.mxu1  ;;  %v6367_v6 = vadd.f32 %v6366_v13, %v6041_v12  ;;  %v6299_v46 = vadd.f32 %v6298_v2, %v6247_v21  ;;  %v10573_v12 = vld [vmem:[%s18821_s2 + $0x28] sm:$0xff]  ;;  %v15917_v21 = vld [vmem:[%s18616_s4 + $0x30] sm:$0xff] }
 0xd37   : > { %v6329_v32 = vadd.f32 %v6328_v49, %v6295_v41  ;;  %v6440_v25 = vpop.f32.mrf.mxu3  ;;  %v15870_v49 = vld [vmem:[%s18616_s4 + $0x70] sm:$0xff]  ;;  %19005 = vst [vmem:[#allocation17_spill] sm:$0xff] %v15917_v21 }
 0xd38   : > { %v6441_v47 = vadd.f32 %v6440_v25, %v6367_v6  ;;  %v15894_v6 = vld [vmem:[%s18616_s4 + $0x78] sm:$0xff] }
 0xd39   : > { %v6616_v9 = vmul.f32 0.5, %v6329_v32 }
 0xd3b   : > { %10712 = vtanh.f32 %v6616_v9 }
 0xd3e   : > { %v6374_v51 = vpop.f32.mrf.mxu2 }
 0xd3f   : > { %v6332_v10 = vpop.f32.mrf.mxu1  ;;  %v6375_v15 = vadd.f32 %v6374_v51, %v6046_v26 }
 0xd40   : > { %v6333_v45 = vadd.f32 %v6332_v10, %v6299_v46 }
 0xd41   : > { %v10713_v44 = vpop.eup %10712  ;;  %v6444_v0 = vpop.f32.mrf.mxu3 }
 0xd42   : > { %v6620_v17 = vmul.f32 2.0, %v10713_v44  ;;  %v6484_v57 = vpop.f32.mrf.mxu0  ;;  %v6445_v55 = vadd.f32 %v6444_v0, %v6375_v15 }
 0xd43   : > { %v6485_v42 = vadd.f32 %v6484_v57, %v6441_v47  ;;  %v15908_v57 = vld [vmem:[%s18616_s4 + $0x60] sm:$0xff] }
 0xd44   : > { %v6622_v20 = vmul.f32 1.442695, %v6620_v17 }
 0xd46   : > { %10714 = vpow2.f32 %v6622_v20  ;;  %v15902_v20 = vld [vmem:[%s18616_s4 + $0x80] sm:$0xff] }
 0xd49   : > { %v6521_v59 = vpop.f32.mrf.mxu1  ;;  %v6609_v16 = vpop.f32.mrf.mxu3 }
 0xd4a   : > { %v6522_v39 = vadd.f32 %v6521_v59, %v6485_v42  ;;  %v6575_v50 = vpop.f32.mrf.mxu2  ;;  %v6489_v29 = vpop.f32.mrf.mxu0 }
 0xd4b   : > { %v6490_v61 = vadd.f32 %v6489_v29, %v6445_v55 }
 0xd4c   : > { %v10715_v11 = vpop.eup %10714  ;;  %v6576_v24 = vadd.f32 %v6575_v50, %v6522_v39 }
 0xd4d   : > { %v6626_v40 = vmul.f32 %v10715_v11, %v19001_v33 }
 0xd4e   : > { %v6610_v52 = vadd.f32 %v6609_v16, %v6576_v24  ;;  %v15928_v16 = vld [vmem:[%s18616_s4 + $0x88] sm:$0xff] }
 0xd4f   : > { %v15819_v60 = vadd.f32 %v6626_v40, %v6333_v45 }
 0xd50   : > { %v6617_v35 = vmul.f32 0.5, %v6610_v52 }
 0xd51   : > { %19002 = vst [vmem:[#allocation23_spill] sm:$0xff] %v15819_v60  ;;  %6672 = vrot.lane.b32.xlu0 %v15819_v60, %s11062_s26  ;;  %6680 = vrot.lane.b32.xlu1 %v15819_v60, %s11060_s22  ;;  %v6527_v19 = vpop.f32.mrf.mxu1  ;;  %v6613_v37 = vpop.f32.mrf.mxu3  ;;  %v15874_v13 = vand.u32 4294901760, %v15819_v60 }
 0xd52   : > { %10716 = vtanh.f32 %v6617_v35  ;;  %6688 = vrot.lane.b32.xlu2 %v15819_v60, %s11061_s25  ;;  %v6528_v34 = vadd.f32 %v6527_v19, %v6490_v61  ;;  %v6579_v53 = vpop.f32.mrf.mxu2 }
 0xd53   : > { %v15882_v10 = vsub.f32 %v15819_v60, %v15874_v13 }
 0xd54   : > { %v6580_v31 = vadd.f32 %v6579_v53, %v6528_v34 }
 0xd55   : > { %v18729_v46 = vand.u32 4294901760, %v15882_v10 }
 0xd56   : > { %v6614_v30 = vadd.f32 %v6613_v37, %v6580_v31  ;;  %v15973_v31 = vld [vmem:[%s18616_s4 + $0x68] sm:$0xff] }
 0xd57   : > { %v15952_v55 = vsub.f32 %v15882_v10, %v18729_v46 }
 0xd58   : > { %v10717_v28 = vpop.eup %10716 }
 0xd59   : > { %v6621_v23 = vmul.f32 2.0, %v10717_v28  ;;  %6648 = vrot.lane.b32.xlu0 %v15819_v60, %s11065_s15  ;;  %6656 = vrot.lane.b32.xlu1 %v15819_v60, %s11064_s23 }
 0xd5a   : > { %6664 = vrot.lane.b32.xlu2 %v15819_v60, %s18822_s14 }
 0xd5b   : > { %v6624_v8 = vmul.f32 1.442695, %v6621_v23 }
 0xd5d   : > { %10718 = vpow2.f32 %v6624_v8 }
 0xd62   : > { %6640 = vrot.lane.b32.xlu2 %v15819_v60, %s18823_s11 }
 0xd63   : > { %v10719_v3 = vpop.eup %10718 }
 0xd64   : > { %v6627_v58 = vmul.f32 %v10719_v3, %v19003_v22  ;;  %v15979_v3 = vld [vmem:[%s18616_s4 + $0x50] sm:$0xff]  ;;  %v15985_v22 = vld [vmem:[%s18616_s4 + $0x20] sm:$0xff] }
 0xd65   : > { %19006 = vst [vmem:[#allocation21_spill] sm:$0xff] %v15985_v22 }
 0xd66   : > { %v15836_v38 = vadd.f32 %v6627_v58, %v6614_v30 }
 0xd68   : > { %19004 = vst [vmem:[#allocation20_spill] sm:$0xff] %v15836_v38  ;;  %6690 = vrot.lane.b32.xlu0 %v15836_v38, %s11061_s25  ;;  %6674 = vrot.lane.b32.xlu1 %v15836_v38, %s11062_s26  ;;  %v15955_v23 = vand.u32 4294901760, %v15836_v38 }
 0xd6a   : > { %6682 = vrot.lane.b32.xlu2 %v15836_v38, %s11060_s22 }
 0xd70   : > { %6666 = vrot.lane.b32.xlu0 %v15836_v38, %s18822_s14  ;;  %6650 = vrot.lane.b32.xlu1 %v15836_v38, %s11065_s15 }
 0xd72   : > { %6658 = vrot.lane.b32.xlu2 %v15836_v38, %s11064_s23 }
 0xd78   : > { %6642 = vrot.lane.b32.xlu0 %v15836_v38, %s18823_s11  ;;  %6632 = vrot.lane.b32.xlu1 %v15819_v60, %s18824_s19 }
 0xd7a   : > { %6634 = vrot.lane.b32.xlu2 %v15836_v38, %s18824_s19 }
 0xd80   : > { %7205 = vperm.xlu0 %10678, %v10573_v12   ;;  %v15992_v12 = vld [vmem:[%s18616_s4 + $0x58] sm:$0xff] }
 0xdac   : > { %v6689_v36 = vpop.permute.xlu2 %6688 }
 0xdb4   : > { %v6665_v7 = vpop.permute.xlu2 %6664 }
 0xdbc   : > { %v15859_v62 = vpop.permute.xlu2 %6640 }
 0xdc3   : > { %v6673_v48 = vpop.permute.xlu0 %6672  ;;  %v6681_v5 = vpop.permute.xlu1 %6680 }
 0xdc4   : > { %v6683_v63 = vpop.permute.xlu2 %6682 }
 0xdc5   : > { %v6684_v56 = vsel %vm468_vm1, %v6681_v5, %v6683_v63  ;;  %v6685_v25 = vsel %vm468_vm1, %v6683_v63, %v6681_v5 }
 0xdc6   : > { %v6686_v32 = vmul.f32 %v15870_v49, %v6684_v56  ;;  %v6687_v51 = vmul.f32 %v15894_v6, %v6685_v25 }
 0xdc8   : > { %v15878_v2 = vand.u32 4294901760, %v6686_v32  ;;  %v15931_v24 = vand.u32 4294901760, %v6687_v51 }
 0xdca   : > { %v15912_v42 = vsub.f32 %v6686_v32, %v15878_v2  ;;  %v15968_v53 = vsub.f32 %v6687_v51, %v15931_v24 }
 0xdcb   : > { %v15863_v43 = vpop.permute.xlu0 %6648  ;;  %v15865_v41 = vpop.permute.xlu1 %6656 }
 0xdcc   : > { %v6659_v9 = vpop.permute.xlu2 %6658  ;;  %v18731_v52 = vand.u32 4294901760, %v15912_v42  ;;  %v18735_v51 = vand.u32 4294901760, %v15968_v53 }
 0xdcd   : > { %v6661_v44 = vsel %vm432_vm4, %v6659_v9, %v15865_v41  ;;  %v6660_v63 = vsel %vm432_vm4, %v15865_v41, %v6659_v9  ;;  %v6631_v41 = vld [vmem:[#allocation2 + $0x28] sm:$0xff] }
 0xdce   : > { %v6662_v59 = vmul.f32 %v15917_v21, %v6661_v44 }
 0xdd0   : > { %v15944_v35 = vand.u32 4294901760, %v6662_v59 }
 0xdd2   : > { %v16012_v25 = vsub.f32 %v6662_v59, %v15944_v35 }
 0xdd4   : > { %v6635_v59 = vpop.permute.xlu2 %6634 }
 0xdda   : > { %v6691_v26 = vpop.permute.xlu0 %6690  ;;  %v6675_v27 = vpop.permute.xlu1 %6674 }
 0xddb   : > { %v6692_v1 = vsel %vm480_vm2, %v6689_v36, %v6691_v26  ;;  %v6676_v17 = vsel %vm456_vm0, %v6673_v48, %v6675_v27  ;;  %v6693_v0 = vsel %vm480_vm2, %v6691_v26, %v6689_v36  ;;  %v6677_v33 = vsel %vm456_vm0, %v6675_v27, %v6673_v48 }
 0xddc   : > { %v6694_v54 = vmul.f32 %v15902_v20, %v6692_v1  ;;  %v6678_v47 = vmul.f32 %v15908_v57, %v6676_v17  ;;  %v6695_v11 = vmul.f32 %v15928_v16, %v6693_v0  ;;  %v6679_v37 = vmul.f32 %v15973_v31, %v6677_v33 }
 0xddd   : > { %v6749_v48 = vsub.f32 %v15912_v42, %v18731_v52  ;;  %v16032_v0 = vsub.f32 %v15836_v38, %v15955_v23  ;;  %v16114_v38 = vld [vmem:[%s18616_s4 + $0x18] sm:$0xff] }
 0xdde   : > { %v15920_v39 = vand.u32 4294901760, %v6694_v54  ;;  %v15922_v50 = vand.u32 4294901760, %v6678_v47  ;;  %v15957_v19 = vand.u32 4294901760, %v6695_v11  ;;  %v16022_v9 = vand.u32 4294901760, %v6679_v37  ;;  %19010 = vst [vmem:[#allocation19_spill] sm:$0xff] %v16114_v38 }
 0xde0   : > { %v15934_v45 = vsub.f32 %v6694_v54, %v15920_v39  ;;  %6707 = vmatpush.msra.mxu0 %v15920_v39  ;;  %6847 = vmatpush.msra.mxu3 %v15920_v39  ;;  %v15941_v40 = vsub.f32 %v6678_v47, %v15922_v50  ;;  %v16015_v26 = vsub.f32 %v6695_v11, %v15957_v19  ;;  %v16037_v54 = vld [vmem:[%s18616_s4 + $0x38] sm:$0xff] }
 0xde1   : > { %19007 = vst [vmem:[#allocation24_spill] sm:$0xff] %v16037_v54  ;;  %v6663_v47 = vmul.f32 %v16037_v54, %v6660_v63  ;;  %v6697_v63 = vsel %vm488_vm6, %v6631_v41, 0 }
 0xde2   : > { %v18732_v15 = vand.u32 4294901760, %v15934_v45  ;;  %v6667_v29 = vpop.permute.xlu0 %6666  ;;  %v6651_v28 = vpop.permute.xlu1 %6650  ;;  %6709 = vmatpush.msra.mxu0 %v15878_v2  ;;  %6808 = vmatpush.msra.mxu2 %v15934_v45  ;;  %v18730_v5 = vand.u32 4294901760, %v15941_v40  ;;  %v18736_v46 = vand.u32 4294901760, %v16015_v26 }
 0xde3   : > { %v6668_v61 = vsel %vm444_vm3, %v6665_v7, %v6667_v29  ;;  %v6669_v8 = vsel %vm444_vm3, %v6667_v29, %v6665_v7  ;;  %v6653_v34 = vsel %vm420_vm5, %v6651_v28, %v15863_v43  ;;  %6849 = vmatpush.msra.mxu3 %v15878_v2  ;;  %v6652_v33 = vsel %vm420_vm5, %v15863_v43, %v6651_v28 }
 0xde4   : > { %v6670_v30 = vmul.f32 %v15979_v3, %v6668_v61  ;;  %v6654_v58 = vmul.f32 %v15985_v22, %v6653_v34  ;;  %6711 = vmatpush.msra.mxu0 %v15922_v50  ;;  %v6671_v36 = vmul.f32 %v15992_v12, %v6669_v8  ;;  %6811 = vmatpush.msra.mxu2 %v15912_v42  ;;  %v6750_v29 = vand.u32 4294901760, %v6749_v48 }
 0xde5   : > { %6851 = vmatpush.msra.mxu3 %v15922_v50  ;;  %v6743_v7 = vsub.f32 %v15934_v45, %v18732_v15  ;;  %v6755_v44 = vsub.f32 %v15941_v40, %v18730_v5  ;;  %v16071_v5 = vld [vmem:[%s18616_s4 + $0x10] sm:$0xff] }
 0xde6   : > { %v16007_v56 = vand.u32 4294901760, %v6670_v30  ;;  %v16009_v32 = vand.u32 4294901760, %v6654_v58  ;;  %6814 = vmatpush.msra.mxu2 %v15941_v40  ;;  %v16040_v11 = vand.u32 4294901760, %v6671_v36 }
 0xde7   : > { %v6744_v27 = vand.u32 4294901760, %v6743_v7  ;;  %v6756_v48 = vand.u32 4294901760, %v6755_v44  ;;  %v16077_v44 = vld [vmem:[%s18616_s4] sm:$0xff]  ;;  %v16109_v7 = vand.u32 4294901760, %v6697_v63 }
 0xde8   : > { %6713 = vmatpush.msra.mxu0 %v16007_v56  ;;  %6853 = vmatpush.msra.mxu3 %v16007_v56  ;;  %v16027_v17 = vsub.f32 %v6670_v30, %v16007_v56  ;;  %v16049_v30 = vsub.f32 %v6654_v58, %v16009_v32  ;;  %v16065_v58 = vld [vmem:[%s18616_s4 + $0x28] sm:$0xff]  ;;  %19009 = vst [vmem:[#allocation22_spill] sm:$0xff] %v16077_v44 }
 0xde9   : > { %6745 = vmatpush.msra.mxu1 %v6744_v27  ;;  %v16060_v27 = vsub.f32 %v6679_v37, %v16022_v9  ;;  %19008 = vst [vmem:[#allocation18_spill] sm:$0xff] %v16065_v58  ;;  %v6655_v41 = vmul.f32 %v16065_v58, %v6652_v33  ;;  %v16084_v33 = vsub.f32 %v6671_v36, %v16040_v11 }
 0xdea   : > { %v6643_v61 = vpop.permute.xlu0 %6642  ;;  %v6633_v8 = vpop.permute.xlu1 %6632  ;;  %6715 = vmatpush.msra.mxu0 %v15874_v13  ;;  %6817 = vmatpush.msra.mxu2 %v16027_v17  ;;  %v18733_v34 = vand.u32 4294901760, %v16027_v17  ;;  %v6999_v36 = vsub.f32 %v15968_v53, %v18735_v51 }
 0xdeb   : > { %v6645_v43 = vsel %vm408_vm7, %v6643_v61, %v15859_v62  ;;  %v6637_v28 = vsel %vm397_vm8, %v6635_v59, %v6633_v8  ;;  %6751 = vmatpush.msra.mxu1 %v6750_v29  ;;  %6855 = vmatpush.msra.mxu3 %v15874_v13  ;;  %v16081_v29 = vand.u32 4294901760, %v6663_v47  ;;  %v6644_v15 = vsel %vm408_vm7, %v15859_v62, %v6643_v61 }
 0xdec   : > { %v6646_v52 = vmul.f32 %v16071_v5, %v6645_v43  ;;  %v6638_v37 = vmul.f32 %v16077_v44, %v6637_v28  ;;  %6717 = vmatpush.msra.mxu0 %v15944_v35  ;;  %v6761_v43 = vsub.f32 %v16027_v17, %v18733_v34  ;;  %6820 = vmatpush.msra.mxu2 %v15882_v10  ;;  %v16129_v60 = vand.u32 4294901760, %v6655_v41 }
 0xded   : > { %6757 = vmatpush.msra.mxu1 %v6756_v48  ;;  %6857 = vmatpush.msra.mxu3 %v15944_v35  ;;  %v6636_v61 = vsel %vm397_vm8, %v6633_v8, %v6635_v59  ;;  %v6993_v34 = vsub.f32 %v16015_v26, %v18736_v46  ;;  %v6647_v51 = vmul.f32 %v16114_v38, %v6644_v15  ;;  %v19011_v8 = vand.u32 4294901760, %v16012_v25  ;;  %v16139_v38 = vld [vmem:[%s18616_s4 + $0x8] sm:$0xff] }
 0xdee   : > { %v16093_v1 = vand.u32 4294901760, %v6646_v52  ;;  %v16095_v28 = vand.u32 4294901760, %v6638_v37  ;;  %6719 = vmatpush.msra.mxu0 %v16009_v32  ;;  %v6762_v48 = vand.u32 4294901760, %v6761_v43  ;;  %6823 = vmatpush.msra.mxu2 %v16012_v25  ;;  %v16127_v62 = vsub.f32 %v6663_v47, %v16081_v29  ;;  %19012 = vst [vmem:[#allocation25_spill] sm:$0xff] %v16139_v38 }
 0xdef   : > { %6859 = vmatpush.msra.mxu3 %v16009_v32  ;;  %v6773_v43 = vsub.f32 %v16012_v25, %v19011_v8  ;;  %v6639_v8 = vmul.f32 %v16139_v38, %v6636_v61  ;;  %v19013_v47 = vand.u32 4294901760, %v16049_v30  ;;  %v6994_v46 = vand.u32 4294901760, %v6993_v34 }
 0xdf0   : > { %v16120_v59 = vsub.f32 %v6646_v52, %v16093_v1  ;;  %6721 = vmatpush.msra.mxu0 %v16093_v1  ;;  %6763 = vmatpush.msra.mxu1 %v6762_v48  ;;  %v16133_v15 = vsub.f32 %v6638_v37, %v16095_v28  ;;  %v19014_v52 = vand.u32 4294901760, %v15952_v55  ;;  %v16154_v38 = vsub.f32 %v6697_v63, %v16109_v7 }
 0xdf1   : > { %6826 = vmatpush.msra.mxu2 %v16049_v30  ;;  %6861 = vmatpush.msra.mxu3 %v16093_v1  ;;  %v6779_v48 = vsub.f32 %v16049_v30, %v19013_v47  ;;  %v16156_v58 = vand.u32 4294901760, %v6647_v51  ;;  %v6774_v47 = vand.u32 4294901760, %v6773_v43  ;;  %v19015_v37 = vand.u32 4294901760, %v16060_v27 }
 0xdf2   : > { %6723 = vmatpush.msra.mxu0 %v16095_v28  ;;  %6769 = vmatpush.msra.mxu1 %v19014_v52  ;;  %v19016_v34 = vand.u32 4294901760, %v16120_v59  ;;  %v16167_v61 = vsub.f32 %v6655_v41, %v16129_v60  ;;  %v19017_v63 = vand.u32 4294901760, %v15934_v45  ;;  %v7000_v44 = vand.u32 4294901760, %v6999_v36 }
 0xdf3   : > { %6829 = vmatpush.msra.mxu2 %v16120_v59  ;;  %6863 = vmatpush.msra.mxu3 %v16095_v28  ;;  %v7005_v55 = vsub.f32 %v16060_v27, %v19015_v37  ;;  %v19018_v54 = vand.u32 4294901760, %v16084_v33  ;;  %v7022_v21 = vand.u32 4294901760, %v16127_v62  ;;  %v16175_v22 = vand.u32 4294901760, %v6639_v8 }
 0xdf4   : > { %v6785_v52 = vsub.f32 %v16120_v59, %v19016_v34  ;;  %6881 = vmatpush.msrb.mxu0 %v19017_v63  ;;  %6775 = vmatpush.msra.mxu1 %v6774_v47  ;;  %v6780_v37 = vand.u32 4294901760, %v6779_v48  ;;  %v19019_v41 = vand.u32 4294901760, %v16133_v15  ;;  %v16188_v36 = vsub.f32 %v6647_v51, %v16156_v58 }
 0xdf5   : > { %6995 = vmatpush.msrb.mxu3 %v6994_v46  ;;  %v7011_v43 = vsub.f32 %v16084_v33, %v19018_v54  ;;  %6832 = vmatpush.msra.mxu2 %v16133_v15  ;;  %v19020_v46 = vand.u32 4294901760, %v15912_v42  ;;  %v16185_v54 = vand.u32 4294901760, %v16154_v38  ;;  %v7006_v47 = vand.u32 4294901760, %v7005_v55 }
 0xdf6   : > { %v6786_v34 = vand.u32 4294901760, %v6785_v52  ;;  %v6791_v45 = vsub.f32 %v16133_v15, %v19019_v41  ;;  %6781 = vmatpush.msra.mxu1 %v6780_v37  ;;  %v19021_v48 = vand.u32 4294901760, %v16032_v0  ;;  %v19022_v63 = vand.u32 4294901760, %v15941_v40  ;;  %6835 = vmatmul.f32.vlgmr.msra.gmra.mxu2 %v16154_v38 }
 0xdf7   : > { %6885 = vmatpush.msrb.mxu0 %v19020_v46  ;;  %6957 = vmatpush.msrb.mxu2 %v15957_v19  ;;  %v7028_v42 = vand.u32 4294901760, %v16167_v61  ;;  %v16198_v41 = vsub.f32 %v6639_v8, %v16175_v22  ;;  %v7012_v51 = vand.u32 4294901760, %v7011_v43  ;;  %v7023_v55 = vsub.f32 %v16127_v62, %v7022_v21 }
 0xdf8   : > { %7001 = vmatpush.msrb.mxu3 %v7000_v44  ;;  %v7017_v52 = vsub.f32 %v16032_v0, %v19021_v48  ;;  %6787 = vmatpush.msra.mxu1 %v6786_v34  ;;  %v6792_v44 = vand.u32 4294901760, %v6791_v45  ;;  %v19023_v37 = vand.u32 4294901760, %v16027_v17  ;;  %v6727_v40 = vsub.f32 %v16154_v38, %v16185_v54 }
 0xdf9   : > { %6889 = vmatpush.msrb.mxu0 %v19022_v63  ;;  %6959 = vmatpush.msrb.mxu2 %v15931_v24  ;;  %v7034_v46 = vand.u32 4294901760, %v16188_v36  ;;  %v19024_v43 = vand.u32 4294901760, %v15882_v10  ;;  %v7029_v17 = vsub.f32 %v16167_v61, %v7028_v42  ;;  %v7024_v34 = vand.u32 4294901760, %v7023_v55 }
 0xdfa   : > { %7007 = vmatpush.msrb.mxu3 %v7006_v47  ;;  %6793 = vmatpush.msra.mxu1 %v6792_v44  ;;  %v7018_v8 = vand.u32 4294901760, %v7017_v52  ;;  %v7040_v45 = vand.u32 4294901760, %v16198_v41  ;;  %v19025_v47 = vand.u32 4294901760, %v16012_v25  ;;  %v6728_v48 = vand.u32 4294901760, %v6727_v40 }
 0xdfb   : > { %6893 = vmatpush.msrb.mxu0 %v19023_v37  ;;  %6961 = vmatpush.msrb.mxu2 %v16022_v9  ;;  %v7035_v10 = vsub.f32 %v16188_v36, %v7034_v46  ;;  %v7030_v52 = vand.u32 4294901760, %v7029_v17  ;;  %v19027_v25 = vand.u32 4294901760, %v16120_v59 }
 0xdfc   : > { %7013 = vmatpush.msrb.mxu3 %v7012_v51  ;;  %6927 = vmatpush.msrb.mxu1 %v15920_v39  ;;  %v19026_v39 = vand.u32 4294901760, %v16049_v30  ;;  %v19028_v30 = vand.u32 4294901760, %v16133_v15  ;;  %v10575_v51 = vld [vmem:[%s18615_s3 + $0x58] sm:$0xff] }
 0xdfd   : > { %6897 = vmatpush.msrb.mxu0 %v19024_v43  ;;  %6963 = vmatpush.msrb.mxu2 %v16040_v11  ;;  %v7036_v63 = vand.u32 4294901760, %v7035_v10 }
 0xdfe   : > { %7019 = vmatpush.msrb.mxu3 %v7018_v8  ;;  %6929 = vmatpush.msrb.mxu1 %v15878_v2  ;;  %v7041_v2 = vsub.f32 %v16198_v41, %v7040_v45 }
 0xdff   : > { %6901 = vmatpush.msrb.mxu0 %v19025_v47  ;;  %6965 = vmatpush.msrb.mxu2 %v15955_v23 }
 0xe00   : > { %7025 = vmatpush.msrb.mxu3 %v7024_v34  ;;  %6931 = vmatpush.msrb.mxu1 %v15922_v50  ;;  %v7042_v50 = vand.u32 4294901760, %v7041_v2 }
 0xe01   : > { %6905 = vmatpush.msrb.mxu0 %v19026_v39  ;;  %6967 = vmatpush.msrb.mxu2 %v16081_v29 }
 0xe02   : > { %7031 = vmatpush.msrb.mxu3 %v7030_v52  ;;  %6729 = vmatmul.f32.vlgmr.msra.gmra.mxu0 %v6728_v48 }
 0xe03   : > { %6867 = vmatmul.f32.vlgmr.msra.gmra.mxu3 %v16185_v54  ;;  %6909 = vmatpush.msrb.mxu0 %v19027_v25 }
 0xe04   : > { %6933 = vmatpush.msrb.mxu1 %v16007_v56  ;;  %6969 = vmatpush.msrb.mxu2 %v16129_v60  ;;  %v19029_v56 = vand.u32 4294901760, %v16015_v26 }
 0xe05   : > { %7037 = vmatpush.msrb.mxu3 %v7036_v63  ;;  %6795 = vmatmul.f32.vlgmr.msra.gmra.mxu1 %v16109_v7 }
 0xe06   : > { %6913 = vmatpush.msrb.mxu0 %v19028_v30  ;;  %6935 = vmatpush.msrb.mxu1 %v15874_v13  ;;  %v19030_v13 = vand.u32 4294901760, %v15968_v53 }
 0xe07   : > { %6971 = vmatpush.msrb.mxu2 %v16156_v58  ;;  %7043 = vmatpush.msrb.mxu3 %v7042_v50  ;;  %v7211_v50 = vld [vmem:[#allocation5 + $0x50] sm:$0xff] }
 0xe08   : > { %7058 = vmatpush.msra.mxu0 %v16015_v26  ;;  %6937 = vmatpush.msrb.mxu1 %v15944_v35  ;;  %v19031_v35 = vand.u32 4294901760, %v16060_v27 }
 0xe09   : > { %7177 = vmatpush.msra.mxu3 %v15957_v19  ;;  %6973 = vmatpush.msrb.mxu2 %v16175_v22 }
 0xe0a   : > { %7061 = vmatpush.msra.mxu0 %v15968_v53  ;;  %6939 = vmatpush.msrb.mxu1 %v16009_v32  ;;  %v19032_v32 = vand.u32 4294901760, %v16084_v33  ;;  %v19033_v53 = vand.u32 4294901760, %v16032_v0 }
 0xe0b   : > { %7131 = vmatpush.msra.mxu2 %v19029_v56  ;;  %7179 = vmatpush.msra.mxu3 %v15931_v24 }
 0xe0c   : > { %6915 = vmatmul.f32.vlgmr.msrb.gmra.mxu0 %v16109_v7  ;;  %6941 = vmatpush.msrb.mxu1 %v16093_v1 }
 0xe0d   : > { %7135 = vmatpush.msra.mxu2 %v19030_v13  ;;  %7064 = vmatpush.msra.mxu0 %v16060_v27 }
 0xe0e   : > { %7181 = vmatpush.msra.mxu3 %v16022_v9  ;;  %6943 = vmatpush.msrb.mxu1 %v16095_v28 }
 0xe0f   : > { %7139 = vmatpush.msra.mxu2 %v19031_v35  ;;  %7067 = vmatpush.msra.mxu0 %v16084_v33 }
 0xe10   : > { %7183 = vmatpush.msra.mxu3 %v16040_v11  ;;  %6945 = vmatmul.f32.vlgmr.msrb.gmra.mxu1 %v16109_v7 }
 0xe11   : > { %7143 = vmatpush.msra.mxu2 %v19032_v32  ;;  %7070 = vmatpush.msra.mxu0 %v16032_v0  ;;  %v7291_v32 = vsel %vm488_vm6, %v7211_v50, 0 }
 0xe12   : > { %7097 = vmatpush.msra.mxu1 %v15957_v19  ;;  %7185 = vmatpush.msra.mxu3 %v15955_v23 }
 0xe13   : > { %7073 = vmatpush.msra.mxu0 %v16127_v62  ;;  %7147 = vmatpush.msra.mxu2 %v19033_v53 }
 0xe14   : > { %7099 = vmatpush.msra.mxu1 %v15931_v24  ;;  %7187 = vmatpush.msra.mxu3 %v16081_v29 }
 0xe15   : > { %7076 = vmatpush.msra.mxu0 %v16167_v61  ;;  %7151 = vmatpush.msra.mxu2 %v7022_v21 }
 0xe16   : > { %7101 = vmatpush.msra.mxu1 %v16022_v9  ;;  %7189 = vmatpush.msra.mxu3 %v16129_v60 }
 0xe17   : > { %6979 = vmatmul.f32.vlgmr.msrb.gmra.mxu2 %v6728_v48  ;;  %7079 = vmatpush.msra.mxu0 %v16188_v36 }
 0xe18   : > { %7103 = vmatpush.msra.mxu1 %v16040_v11  ;;  %7155 = vmatpush.msra.mxu2 %v7028_v42 }
 0xe19   : > { %7191 = vmatpush.msra.mxu3 %v16156_v58  ;;  %7082 = vmatpush.msra.mxu0 %v16198_v41 }
 0xe1a   : > { %7045 = vmatmul.f32.vlgmr.msrb.gmra.mxu3 %v16109_v7  ;;  %7105 = vmatpush.msra.mxu1 %v15955_v23 }
 0xe1b   : > { %7159 = vmatpush.msra.mxu2 %v7034_v46  ;;  %7193 = vmatpush.msra.mxu3 %v16175_v22 }
 0xe1c   : > { %7107 = vmatpush.msra.mxu1 %v16081_v29  ;;  %7085 = vmatmul.f32.vlgmr.msra.gmra.mxu0 %v16154_v38 }
 0xe1d   : > { %7163 = vmatpush.msra.mxu2 %v7040_v45 }
 0xe1e   : > { %7109 = vmatpush.msra.mxu1 %v16129_v60 }
 0xe1f   : > { %7165 = vmatmul.f32.vlgmr.msra.gmra.mxu2 %v16109_v7 }
 0xe20   : > { %7111 = vmatpush.msra.mxu1 %v16156_v58  ;;  %v7206_v58 = vpop.permute.xlu0 %7205 }
 0xe22   : > { %7195 = vmatmul.f32.vlgmr.msra.gmra.mxu3 %v16109_v7  ;;  %7113 = vmatpush.msra.mxu1 %v16175_v22 }
 0xe23   : > { %7117 = vmatmul.f32.vlgmr.msra.gmra.mxu1 %v16185_v54 }
 0xe79   : > { %v6836_v19 = vpop.f32.mrf.mxu2 }
 0xe7f   : > { %v6730_v21 = vpop.f32.mrf.mxu0 }
 0xe82   : > { %v6796_v24 = vpop.f32.mrf.mxu1 }
 0xe83   : > { %v6797_v23 = vadd.f32 %v6796_v24, %v6730_v21 }
 0xe85   : > { %v6837_v38 = vadd.f32 %v6836_v19, %v6797_v23 }
 0xe86   : > { %v6868_v26 = vpop.f32.mrf.mxu3 }
 0xe87   : > { %v6869_v1 = vadd.f32 %v6868_v26, %v6837_v38 }
 0xe89   : > { %v6916_v9 = vpop.f32.mrf.mxu0 }
 0xe8a   : > { %v6917_v0 = vadd.f32 %v6916_v9, %v6869_v1  ;;  %v16393_v1 = vand.u32 4294901760, %v7291_v32 }
 0xe8d   : > { %v6946_v60 = vpop.f32.mrf.mxu1 }
 0xe8e   : > { %v6947_v11 = vadd.f32 %v6946_v60, %v6917_v0 }
 0xe90   : > { %v7199_v27 = vadd.f32 %v6947_v11, %v15386_v18 }
 0xe92   : > { %v16300_v29 = vadd.f32 %v7206_v58, %v7199_v27 }
 0xe94   : > { %7253 = vrot.lane.b32.xlu2 %v16300_v29, %s11062_s26  ;;  %7261 = vrot.lane.b32.xlu0 %v16300_v29, %s11060_s22  ;;  %v16361_v10 = vand.u32 4294901760, %v16300_v29 }
 0xe95   : > { %7269 = vrot.lane.b32.xlu1 %v16300_v29, %s11061_s25 }
 0xe96   : > { %v16371_v63 = vsub.f32 %v16300_v29, %v16361_v10 }
 0xe98   : > { %v7371_v56 = vand.u32 4294901760, %v16371_v63 }
 0xe99   : > { %v7086_v33 = vpop.f32.mrf.mxu0 }
 0xe9a   : > { %v6980_v22 = vpop.f32.mrf.mxu2  ;;  %v16391_v26 = vsub.f32 %v16371_v63, %v7371_v56 }
 0xe9c   : > { %7229 = vrot.lane.b32.xlu2 %v16300_v29, %s11065_s15  ;;  %7237 = vrot.lane.b32.xlu0 %v16300_v29, %s11064_s23 }
 0xe9d   : > { %v7046_v7 = vpop.f32.mrf.mxu3  ;;  %7245 = vrot.lane.b32.xlu1 %v16300_v29, %s18822_s14 }
 0xe9e   : > { %v7047_v18 = vadd.f32 %v7046_v7, %v6980_v22 }
 0xea0   : > { %v7087_v28 = vadd.f32 %v7086_v33, %v7047_v18  ;;  %v7118_v62 = vpop.f32.mrf.mxu1  ;;  %v16422_v18 = vsub.f32 %v7291_v32, %v16393_v1 }
 0xea2   : > { %v7119_v59 = vadd.f32 %v7118_v62, %v7087_v28  ;;  %v7166_v15 = vpop.f32.mrf.mxu2  ;;  %v7212_v28 = vld [vmem:[#allocation5 + $0x58] sm:$0xff] }
 0xea4   : > { %v7167_v61 = vadd.f32 %v7166_v15, %v7119_v59 }
 0xea5   : > { %v7196_v54 = vpop.f32.mrf.mxu3  ;;  %7221 = vrot.lane.b32.xlu1 %v16300_v29, %s18823_s11 }
 0xea6   : > { %v7197_v36 = vadd.f32 %v7196_v54, %v7167_v61 }
 0xea8   : > { %v7200_v42 = vadd.f32 %v7197_v36, %v15403_v14  ;;  %v10574_v14 = vld [vmem:[%s18615_s3 + $0x50] sm:$0xff] }
 0xeaa   : > { %v16317_v41 = vadd.f32 %v7206_v58, %v7200_v42  ;;  %v19034_v42 = vld [vmem:[#allocation21_spill] sm:$0xff] }
 0xeac   : > { %7271 = vrot.lane.b32.xlu2 %v16317_v41, %s11061_s25  ;;  %7255 = vrot.lane.b32.xlu0 %v16317_v41, %s11062_s26  ;;  %v16407_v11 = vand.u32 4294901760, %v16317_v41 }
 0xead   : > { %7263 = vrot.lane.b32.xlu1 %v16317_v41, %s11060_s22 }
 0xeb4   : > { %7247 = vrot.lane.b32.xlu2 %v16317_v41, %s18822_s14  ;;  %7231 = vrot.lane.b32.xlu0 %v16317_v41, %s11065_s15 }
 0xeb5   : > { %7239 = vrot.lane.b32.xlu1 %v16317_v41, %s11064_s23 }
 0xebc   : > { %7223 = vrot.lane.b32.xlu2 %v16317_v41, %s18823_s11  ;;  %7213 = vrot.lane.b32.xlu0 %v16300_v29, %s18824_s19 }
 0xebd   : > { %7215 = vrot.lane.b32.xlu1 %v16317_v41, %s18824_s19 }
 0xec4   : > { %7282 = vperm.xlu2 %10679, %v10574_v14   ;;  %7287 = vperm.xlu0 %10678, %v10575_v51  }
 0xeee   : > { %v7254_v44 = vpop.permute.xlu2 %7253 }
 0xef6   : > { %v16343_v55 = vpop.permute.xlu2 %7229 }
 0xf06   : > { %v7272_v37 = vpop.permute.xlu2 %7271  ;;  %v7262_v43 = vpop.permute.xlu0 %7261 }
 0xf07   : > { %v7270_v40 = vpop.permute.xlu1 %7269 }
 0xf08   : > { %v7273_v8 = vsel %vm480_vm2, %v7270_v40, %v7272_v37  ;;  %v7274_v13 = vsel %vm480_vm2, %v7272_v37, %v7270_v40  ;;  %v7294_v37 = vsel %vm488_vm6, %v7212_v28, 0 }
 0xf09   : > { %v7275_v46 = vmul.f32 %v15902_v20, %v7273_v8  ;;  %v7276_v19 = vmul.f32 %v15928_v16, %v7274_v13 }
 0xf0b   : > { %v16348_v17 = vand.u32 4294901760, %v7275_v46  ;;  %v16424_v62 = vand.u32 4294901760, %v7276_v19 }
 0xf0d   : > { %v16351_v34 = vsub.f32 %v7275_v46, %v16348_v17  ;;  %7304 = vmatpush.msrb.mxu0 %v16348_v17  ;;  %7461 = vmatpush.msrb.mxu3 %v16348_v17 }
 0xf0e   : > { %v16363_v39 = vpop.permute.xlu0 %7237  ;;  %v7248_v52 = vpop.permute.xlu2 %7247 }
 0xf0f   : > { %v7347_v45 = vand.u32 4294901760, %v16351_v34  ;;  %7417 = vmatpush.msrb.mxu2 %v16351_v34  ;;  %v7246_v47 = vpop.permute.xlu1 %7245 }
 0xf10   : > { %v7249_v25 = vsel %vm444_vm3, %v7246_v47, %v7248_v52  ;;  %v7250_v60 = vsel %vm444_vm3, %v7248_v52, %v7246_v47  ;;  %v16460_v47 = vsub.f32 %v7276_v19, %v16424_v62  ;;  %v19035_v52 = vld [vmem:[#allocation17_spill] sm:$0xff] }
 0xf11   : > { %v7348_v48 = vsub.f32 %v16351_v34, %v7347_v45  ;;  %v7251_v30 = vmul.f32 %v15979_v3, %v7249_v25  ;;  %v7252_v59 = vmul.f32 %v15992_v12, %v7250_v60  ;;  %v16440_v12 = vsub.f32 %v16317_v41, %v16407_v11 }
 0xf13   : > { %v7349_v20 = vand.u32 4294901760, %v7348_v48  ;;  %v16380_v21 = vand.u32 4294901760, %v7251_v30  ;;  %v16462_v48 = vand.u32 4294901760, %v7252_v59 }
 0xf15   : > { %7350 = vmatpush.msrb.mxu1 %v7349_v20  ;;  %v16417_v7 = vsub.f32 %v7251_v30, %v16380_v21 }
 0xf16   : > { %v16384_v38 = vpop.permute.xlu2 %7223 }
 0xf17   : > { %v16365_v2 = vpop.permute.xlu1 %7221 }
 0xf1e   : > { %v7256_v35 = vpop.permute.xlu0 %7255 }
 0xf1f   : > { %v7257_v53 = vsel %vm456_vm0, %v7254_v44, %v7256_v35  ;;  %v7264_v23 = vpop.permute.xlu1 %7263  ;;  %v7258_v27 = vsel %vm456_vm0, %v7256_v35, %v7254_v44  ;;  %v16478_v35 = vand.u32 4294901760, %v7294_v37 }
 0xf20   : > { %v7259_v24 = vmul.f32 %v15908_v57, %v7257_v53  ;;  %v7265_v3 = vsel %vm468_vm1, %v7262_v43, %v7264_v23  ;;  %v7226_v57 = vsel %vm408_vm7, %v16384_v38, %v16365_v2  ;;  %v7266_v16 = vsel %vm468_vm1, %v7264_v23, %v7262_v43 }
 0xf21   : > { %v7267_v0 = vmul.f32 %v15870_v49, %v7265_v3  ;;  %v7227_v33 = vmul.f32 %v16071_v5, %v7226_v57  ;;  %v7268_v49 = vmul.f32 %v15894_v6, %v7266_v16  ;;  %v7373_v5 = vand.u32 4294901760, %v16391_v26 }
 0xf22   : > { %v16399_v9 = vand.u32 4294901760, %v7259_v24  ;;  %v7260_v6 = vmul.f32 %v15973_v31, %v7258_v27  ;;  %v7365_v31 = vand.u32 4294901760, %v16417_v7  ;;  %v16457_v43 = vand.u32 4294901760, %v16422_v18 }
 0xf23   : > { %v16411_v58 = vand.u32 4294901760, %v7267_v0  ;;  %v16448_v40 = vand.u32 4294901760, %v7227_v33  ;;  %v16450_v8 = vand.u32 4294901760, %v7268_v49  ;;  %v18745_v16 = vand.u32 4294901760, %v16460_v47 }
 0xf24   : > { %v16414_v22 = vsub.f32 %v7259_v24, %v16399_v9  ;;  %v16469_v50 = vand.u32 4294901760, %v7260_v6  ;;  %v7366_v24 = vsub.f32 %v16417_v7, %v7365_v31  ;;  %v7324_v57 = vsub.f32 %v16422_v18, %v16457_v43 }
 0xf25   : > { %7306 = vmatpush.msrb.mxu0 %v16411_v58  ;;  %7463 = vmatpush.msrb.mxu3 %v16411_v58  ;;  %v16430_v61 = vsub.f32 %v7267_v0, %v16411_v58  ;;  %v16494_v19 = vsub.f32 %v7268_v49, %v16450_v8  ;;  %v16504_v0 = vsub.f32 %v7252_v59, %v16462_v48  ;;  %v19036_v49 = vld [vmem:[#allocation24_spill] sm:$0xff] }
 0xf26   : > { %v7232_v15 = vpop.permute.xlu0 %7231  ;;  %v7359_v36 = vand.u32 4294901760, %v16414_v22 }
 0xf27   : > { %v7234_v54 = vsel %vm420_vm5, %v7232_v15, %v16343_v55  ;;  %7308 = vmatpush.msrb.mxu0 %v16399_v9  ;;  %7420 = vmatpush.msrb.mxu2 %v16430_v61  ;;  %v7240_v51 = vpop.permute.xlu1 %7239  ;;  %v7353_v44 = vand.u32 4294901760, %v16430_v61  ;;  %v7233_v60 = vsel %vm420_vm5, %v16343_v55, %v7232_v15  ;;  %v7225_v55 = vsel %vm408_vm7, %v16365_v2, %v16384_v38 }
 0xf28   : > { %v7235_v14 = vmul.f32 %v19034_v42, %v7234_v54  ;;  %7465 = vmatpush.msrb.mxu3 %v16399_v9  ;;  %v7242_v46 = vsel %vm432_vm4, %v7240_v51, %v16363_v39  ;;  %v7360_v13 = vsub.f32 %v16414_v22, %v7359_v36  ;;  %v7241_v32 = vsel %vm432_vm4, %v16363_v39, %v7240_v51 }
 0xf29   : > { %v7243_v25 = vmul.f32 %v19035_v52, %v7242_v46  ;;  %7310 = vmatpush.msrb.mxu0 %v16380_v21  ;;  %7423 = vmatpush.msrb.mxu2 %v16414_v22  ;;  %v7354_v30 = vsub.f32 %v16430_v61, %v7353_v44  ;;  %v16498_v39 = vsub.f32 %v7227_v33, %v16448_v40  ;;  %v19037_v46 = vld [vmem:[#allocation18_spill] sm:$0xff]  ;;  %v18747_v2 = vand.u32 4294901760, %v16494_v19 }
 0xf2a   : > { %v16464_v20 = vand.u32 4294901760, %v7235_v14  ;;  %7467 = vmatpush.msrb.mxu3 %v16380_v21  ;;  %v16515_v33 = vsub.f32 %v7260_v6, %v16469_v50  ;;  %v7244_v28 = vmul.f32 %v19036_v49, %v7241_v32  ;;  %v7361_v59 = vand.u32 4294901760, %v7360_v13 }
 0xf2b   : > { %v16483_v53 = vand.u32 4294901760, %v7243_v25  ;;  %7312 = vmatpush.msrb.mxu0 %v16361_v10  ;;  %7426 = vmatpush.msrb.mxu2 %v16417_v7  ;;  %v7355_v3 = vand.u32 4294901760, %v7354_v30  ;;  %v7367_v6 = vand.u32 4294901760, %v7366_v24  ;;  %v16528_v51 = vsub.f32 %v7294_v37, %v16478_v35  ;;  %v19038_v30 = vld [vmem:[#allocation22_spill] sm:$0xff] }
 0xf2c   : > { %v16491_v23 = vsub.f32 %v7235_v14, %v16464_v20  ;;  %7469 = vmatpush.msrb.mxu3 %v16361_v10  ;;  %v7236_v52 = vmul.f32 %v19037_v46, %v7233_v60  ;;  %v18748_v38 = vand.u32 4294901760, %v16498_v39  ;;  %v16542_v32 = vand.u32 4294901760, %v7324_v57  ;;  %v19039_v57 = vld [vmem:[#allocation19_spill] sm:$0xff] }
 0xf2d   : > { %7314 = vmatpush.msrb.mxu0 %v16483_v53  ;;  %7429 = vmatpush.msrb.mxu2 %v16371_v63  ;;  %v16512_v27 = vsub.f32 %v7243_v25, %v16483_v53  ;;  %v7629_v24 = vsub.f32 %v16460_v47, %v18745_v16  ;;  %v7228_v46 = vmul.f32 %v19039_v57, %v7225_v55  ;;  %v16561_v16 = vand.u32 4294901760, %v16528_v51  ;;  %v19040_v57 = vld [vmem:[#allocation25_spill] sm:$0xff] }
 0xf2e   : > { %7356 = vmatpush.msrb.mxu1 %v7355_v3  ;;  %7471 = vmatpush.msrb.mxu3 %v16483_v53  ;;  %v18746_v54 = vand.u32 4294901760, %v16491_v23  ;;  %v7214_v15 = vpop.permute.xlu0 %7213  ;;  %v16547_v3 = vand.u32 4294901760, %v7244_v28  ;;  %v7390_v55 = vsub.f32 %v16498_v39, %v18748_v38 }
 0xf2f   : > { %v7216_v42 = vpop.permute.xlu1 %7215  ;;  %7316 = vmatpush.msrb.mxu0 %v16464_v20  ;;  %7432 = vmatpush.msrb.mxu2 %v16512_v27  ;;  %v7377_v14 = vand.u32 4294901760, %v16512_v27 }
 0xf30   : > { %7362 = vmatpush.msrb.mxu1 %v7361_v59  ;;  %v7218_v25 = vsel %vm397_vm8, %v7216_v42, %v7214_v15  ;;  %7473 = vmatpush.msrb.mxu3 %v16464_v20  ;;  %v7217_v60 = vsel %vm397_vm8, %v7214_v15, %v7216_v42  ;;  %v7384_v49 = vsub.f32 %v16491_v23, %v18746_v54  ;;  %v7640_v59 = vand.u32 4294901760, %v16515_v33 }
 0xf31   : > { %v7219_v13 = vmul.f32 %v19038_v30, %v7218_v25  ;;  %7318 = vmatpush.msrb.mxu0 %v16448_v40  ;;  %7435 = vmatpush.msrb.mxu2 %v16491_v23  ;;  %v7378_v37 = vsub.f32 %v16512_v27, %v7377_v14  ;;  %v16563_v15 = vand.u32 4294901760, %v7236_v52  ;;  %v7635_v42 = vsub.f32 %v16494_v19, %v18747_v2 }
 0xf32   : > { %7368 = vmatpush.msrb.mxu1 %v7367_v6  ;;  %7475 = vmatpush.msrb.mxu3 %v16448_v40  ;;  %v7646_v6 = vand.u32 4294901760, %v16504_v0  ;;  %v7630_v54 = vand.u32 4294901760, %v7629_v24  ;;  %v7385_v2 = vand.u32 4294901760, %v7384_v49  ;;  %v7641_v38 = vsub.f32 %v16515_v33, %v7640_v59 }
 0xf33   : > { %v16557_v25 = vand.u32 4294901760, %v7219_v13  ;;  %7438 = vmatpush.msrb.mxu2 %v16498_v39  ;;  %v7379_v30 = vand.u32 4294901760, %v7378_v37  ;;  %v7220_v37 = vmul.f32 %v19040_v57, %v7217_v60  ;;  %v16587_v60 = vand.u32 4294901760, %v7228_v46 }
 0xf34   : > { %7374 = vmatpush.msrb.mxu1 %v7373_v5  ;;  %v16581_v5 = vsub.f32 %v7244_v28, %v16547_v3  ;;  %v7332_v28 = vsub.f32 %v16528_v51, %v16561_v16  ;;  %v7652_v24 = vand.u32 4294901760, %v16440_v12  ;;  %v7636_v49 = vand.u32 4294901760, %v7635_v42 }
 0xf35   : > { %7320 = vmatpush.msrb.mxu0 %v16557_v25  ;;  %7477 = vmatpush.msrb.mxu3 %v16557_v25  ;;  %v16578_v26 = vsub.f32 %v7219_v13, %v16557_v25  ;;  %v7391_v57 = vand.u32 4294901760, %v7390_v55  ;;  %v7647_v34 = vsub.f32 %v16504_v0, %v7646_v6  ;;  %v16612_v42 = vsub.f32 %v7228_v46, %v16587_v60 }
 0xf36   : > { %7380 = vmatpush.msrb.mxu1 %v7379_v30  ;;  %7326 = vmatmul.f32.vlgmr.msrb.gmra.mxu0 %v16542_v32  ;;  %v16596_v30 = vsub.f32 %v7236_v52, %v16563_v15  ;;  %v7642_v52 = vand.u32 4294901760, %v7641_v38  ;;  %v7653_v38 = vsub.f32 %v16440_v12, %v7652_v24 }
 0xf37   : > { %7501 = vmatpush.msra.mxu0 %v7347_v45  ;;  %7631 = vmatpush.msra.mxu3 %v7630_v54  ;;  %v7395_v13 = vand.u32 4294901760, %v16578_v26  ;;  %v16602_v45 = vand.u32 4294901760, %v7220_v37  ;;  %v7648_v55 = vand.u32 4294901760, %v7647_v34 }
 0xf38   : > { %7386 = vmatpush.msrb.mxu1 %v7385_v2  ;;  %7441 = vmatpush.msrb.mxu2 %v16578_v26  ;;  %v7658_v2 = vand.u32 4294901760, %v16581_v5 }
 0xf39   : > { %7505 = vmatpush.msra.mxu0 %v7353_v44  ;;  %v7396_v54 = vsub.f32 %v16578_v26, %v7395_v13  ;;  %7637 = vmatpush.msra.mxu3 %v7636_v49  ;;  %v16617_v44 = vand.u32 4294901760, %v7332_v28  ;;  %v7664_v49 = vand.u32 4294901760, %v16596_v30  ;;  %v16625_v46 = vsub.f32 %v7220_v37, %v16602_v45 }
 0xf3a   : > { %7585 = vmatpush.msra.mxu2 %v16424_v62  ;;  %7392 = vmatpush.msrb.mxu1 %v7391_v57  ;;  %v7659_v22 = vsub.f32 %v16581_v5, %v7658_v2  ;;  %v7654_v37 = vand.u32 4294901760, %v7653_v38 }
 0xf3b   : > { %7444 = vmatmul.f32.vlgmr.msrb.gmra.mxu2 %v16422_v18  ;;  %7509 = vmatpush.msra.mxu0 %v7359_v36  ;;  %v7397_v61 = vand.u32 4294901760, %v7396_v54  ;;  %v7670_v36 = vand.u32 4294901760, %v16612_v42  ;;  %v7665_v7 = vsub.f32 %v16596_v30, %v7664_v49 }
 0xf3c   : > { %7587 = vmatpush.msra.mxu2 %v16450_v8  ;;  %7643 = vmatpush.msra.mxu3 %v7642_v52  ;;  %v7660_v28 = vand.u32 4294901760, %v7659_v22 }
 0xf3d   : > { %7481 = vmatmul.f32.vlgmr.msrb.gmra.mxu3 %v16457_v43  ;;  %7513 = vmatpush.msra.mxu0 %v7365_v31  ;;  %v7676_v31 = vand.u32 4294901760, %v16625_v46  ;;  %v7671_v63 = vsub.f32 %v16612_v42, %v7670_v36 }
 0xf3e   : > { %7589 = vmatpush.msra.mxu2 %v16469_v50  ;;  %7649 = vmatpush.msra.mxu3 %v7648_v55 }
 0xf3f   : > { %7398 = vmatpush.msrb.mxu1 %v7397_v61  ;;  %7334 = vmatmul.f32.gmra.mxu0 %v16617_v44  ;;  %v7677_v27 = vsub.f32 %v16625_v46, %v7676_v31 }
 0xf40   : > { %7400 = vmatmul.f32.vlgmr.msrb.gmra.mxu1 %v16393_v1  ;;  %7517 = vmatpush.msra.mxu0 %v7371_v56  ;;  %v19041_v56 = vand.u32 4294901760, %v16491_v23 }
 0xf41   : > { %7551 = vmatpush.msra.mxu1 %v16348_v17  ;;  %7591 = vmatpush.msra.mxu2 %v16462_v48  ;;  %v7666_v17 = vand.u32 4294901760, %v7665_v7 }
 0xf42   : > { %7655 = vmatpush.msra.mxu3 %v7654_v37  ;;  %7521 = vmatpush.msra.mxu0 %v7377_v14  ;;  %v7672_v14 = vand.u32 4294901760, %v7671_v63 }
 0xf43   : > { %7553 = vmatpush.msra.mxu1 %v16411_v58  ;;  %7593 = vmatpush.msra.mxu2 %v16407_v11  ;;  %v19042_v58 = vand.u32 4294901760, %v16498_v39 }
 0xf44   : > { %7661 = vmatpush.msra.mxu3 %v7660_v28  ;;  %7449 = vmatmul.f32.gmra.mxu2 %v16528_v51 }
 0xf45   : > { %7525 = vmatpush.msra.mxu0 %v19041_v56  ;;  %7555 = vmatpush.msra.mxu1 %v16399_v9  ;;  %v7678_v9 = vand.u32 4294901760, %v7677_v27 }
 0xf46   : > { %7595 = vmatpush.msra.mxu2 %v16547_v3  ;;  %7667 = vmatpush.msra.mxu3 %v7666_v17 }
 0xf47   : > { %7487 = vmatmul.f32.gmra.mxu3 %v16561_v16  ;;  %7529 = vmatpush.msra.mxu0 %v19042_v58 }
 0xf48   : > { %7557 = vmatpush.msra.mxu1 %v16380_v21  ;;  %7597 = vmatpush.msra.mxu2 %v16563_v15  ;;  %v19044_v21 = vand.u32 4294901760, %v16494_v19 }
 0xf49   : > { %7673 = vmatpush.msra.mxu3 %v7672_v14  ;;  %7404 = vmatmul.f32.gmra.mxu1 %v16478_v35 }
 0xf4a   : > { %7533 = vmatpush.msra.mxu0 %v7395_v13  ;;  %7559 = vmatpush.msra.mxu1 %v16361_v10  ;;  %v19043_v10 = vand.u32 4294901760, %v16460_v47 }
 0xf4b   : > { %7599 = vmatpush.msra.mxu2 %v16587_v60  ;;  %7679 = vmatpush.msra.mxu3 %v7678_v9 }
 0xf4c   : > { %7535 = vmatmul.f32.vlgmr.msra.gmra.mxu0 %v16393_v1  ;;  %7561 = vmatpush.msra.mxu1 %v16483_v53 }
 0xf4d   : > { %7832 = vmatpush.msrb.mxu3 %v16424_v62  ;;  %7698 = vmatpush.msrb.mxu0 %v16460_v47 }
 0xf4e   : > { %7601 = vmatpush.msra.mxu2 %v16602_v45  ;;  %7563 = vmatpush.msra.mxu1 %v16464_v20 }
 0xf4f   : > { %7834 = vmatpush.msrb.mxu3 %v16450_v8  ;;  %7607 = vmatmul.f32.vlgmr.msra.gmra.mxu2 %v16542_v32  ;;  %v7288_v32 = vpop.permute.xlu0 %7287 }
 0xf50   : > { %7701 = vmatpush.msrb.mxu0 %v16494_v19  ;;  %7782 = vmatpush.msrb.mxu2 %v19043_v10 }
 0xf51   : > { %7681 = vmatmul.f32.vlgmr.msra.gmra.mxu3 %v16393_v1  ;;  %7565 = vmatpush.msra.mxu1 %v16448_v40 }
 0xf52   : > { %7704 = vmatpush.msrb.mxu0 %v16515_v33  ;;  %7786 = vmatpush.msrb.mxu2 %v19044_v21 }
 0xf53   : > { %7836 = vmatpush.msrb.mxu3 %v16469_v50  ;;  %7567 = vmatpush.msra.mxu1 %v16557_v25 }
 0xf54   : > { %7707 = vmatpush.msrb.mxu0 %v16504_v0  ;;  %7790 = vmatpush.msrb.mxu2 %v7640_v59 }
 0xf55   : > { %7838 = vmatpush.msrb.mxu3 %v16462_v48  ;;  %7539 = vmatmul.f32.gmra.mxu0 %v16478_v35 }
 0xf56   : > { %7569 = vmatmul.f32.vlgmr.msra.gmra.mxu1 %v16393_v1  ;;  %7710 = vmatpush.msrb.mxu0 %v16440_v12 }
 0xf57   : > { %7742 = vmatpush.msrb.mxu1 %v16424_v62  ;;  %7794 = vmatpush.msrb.mxu2 %v7646_v6 }
 0xf58   : > { %7840 = vmatpush.msrb.mxu3 %v16407_v11  ;;  %7615 = vmatmul.f32.gmra.mxu2 %v16617_v44 }
 0xf59   : > { %7713 = vmatpush.msrb.mxu0 %v16581_v5  ;;  %7744 = vmatpush.msrb.mxu1 %v16450_v8 }
 0xf5a   : > { %7798 = vmatpush.msrb.mxu2 %v7652_v24  ;;  %7842 = vmatpush.msrb.mxu3 %v16547_v3 }
 0xf5b   : > { %7685 = vmatmul.f32.gmra.mxu3 %v16478_v35  ;;  %7716 = vmatpush.msrb.mxu0 %v16596_v30 }
 0xf5c   : > { %7746 = vmatpush.msrb.mxu1 %v16469_v50  ;;  %7802 = vmatpush.msrb.mxu2 %v7658_v2 }
 0xf5d   : > { %7844 = vmatpush.msrb.mxu3 %v16563_v15  ;;  %7719 = vmatpush.msrb.mxu0 %v16612_v42 }
 0xf5e   : > { %7748 = vmatpush.msrb.mxu1 %v16462_v48  ;;  %7806 = vmatpush.msrb.mxu2 %v7664_v49  ;;  %v19045_v49 = vld [vmem:[#allocation23_spill] sm:$0xff] }
 0xf5f   : > { %7846 = vmatpush.msrb.mxu3 %v16587_v60  ;;  %7573 = vmatmul.f32.gmra.mxu1 %v16478_v35 }
 0xf60   : > { %7722 = vmatpush.msrb.mxu0 %v16625_v46  ;;  %7750 = vmatpush.msrb.mxu1 %v16407_v11 }
 0xf61   : > { %7810 = vmatpush.msrb.mxu2 %v7670_v36  ;;  %7848 = vmatpush.msrb.mxu3 %v16602_v45 }
 0xf62   : > { %7725 = vmatmul.f32.vlgmr.msrb.gmra.mxu0 %v16422_v18  ;;  %7752 = vmatpush.msrb.mxu1 %v16547_v3 }
 0xf63   : > { %7814 = vmatpush.msrb.mxu2 %v7676_v31  ;;  %7850 = vmatmul.f32.vlgmr.msrb.gmra.mxu3 %v16393_v1 }
 0xf64   : > { %7754 = vmatpush.msrb.mxu1 %v16563_v15  ;;  %7816 = vmatmul.f32.vlgmr.msrb.gmra.mxu2 %v16393_v1  ;;  %v7283_v1 = vpop.permute.xlu2 %7282 }
 0xf66   : > { %7756 = vmatpush.msrb.mxu1 %v16587_v60 }
 0xf68   : > { %7758 = vmatpush.msrb.mxu1 %v16602_v45 }
 0xf69   : > { %7762 = vmatmul.f32.vlgmr.msrb.gmra.mxu1 %v16457_v43 }
 0xf6a   : > { %7730 = vmatmul.f32.gmra.mxu0 %v16528_v51 }
 0xf6b   : > { %7854 = vmatmul.f32.gmra.mxu3 %v16478_v35 }
 0xf6c   : > { %7820 = vmatmul.f32.gmra.mxu2 %v16478_v35 }
 0xf71   : > { %7768 = vmatmul.f32.gmra.mxu1 %v16561_v16 }
 0xfb3   : > { %v7327_v11 = vpop.f32.mrf.mxu0 }
 0xfb4   : > { %v7328_v8 = vadd.f32 %v7327_v11, %v7283_v1 }
 0xfbc   : > { %v7335_v40 = vpop.f32.mrf.mxu0 }
 0xfbd   : > { %v7401_v18 = vpop.f32.mrf.mxu1  ;;  %v7336_v3 = vadd.f32 %v7335_v40, %v7288_v32 }
 0xfbe   : > { %v7445_v62 = vpop.f32.mrf.mxu2  ;;  %v7402_v47 = vadd.f32 %v7401_v18, %v7328_v8 }
 0xfc0   : > { %v7482_v12 = vpop.f32.mrf.mxu3  ;;  %v7446_v50 = vadd.f32 %v7445_v62, %v7402_v47  ;;  %v19047_v62 = vld [vmem:[#allocation20_spill] sm:$0xff] }
 0xfc2   : > { %v7483_v23 = vadd.f32 %v7482_v12, %v7446_v50 }
 0xfc6   : > { %v7405_v48 = vpop.f32.mrf.mxu1 }
 0xfc7   : > { %v7450_v20 = vpop.f32.mrf.mxu2  ;;  %v7406_v15 = vadd.f32 %v7405_v48, %v7336_v3 }
 0xfc9   : > { %v7536_v53 = vpop.f32.mrf.mxu0  ;;  %v7451_v24 = vadd.f32 %v7450_v20, %v7406_v15 }
 0xfca   : > { %v7488_v43 = vpop.f32.mrf.mxu3  ;;  %v7537_v19 = vadd.f32 %v7536_v53, %v7483_v23 }
 0xfcb   : > { %v7489_v45 = vadd.f32 %v7488_v43, %v7451_v24  ;;  %v16784_v43 = vld [vmem:[%s18616_s4 + $0x80] sm:$0xff] }
 0xfd2   : > { %v7608_v35 = vpop.f32.mrf.mxu2  ;;  %v7540_v51 = vpop.f32.mrf.mxu0 }
 0xfd3   : > { %v7570_v39 = vpop.f32.mrf.mxu1  ;;  %v7609_v26 = vadd.f32 %v7608_v35, %v7283_v1  ;;  %v7541_v42 = vadd.f32 %v7540_v51, %v7489_v45  ;;  %v10576_v1 = vld [vmem:[%s18821_s2 + $0x30] sm:$0xff]  ;;  %v16835_v45 = vld [vmem:[%s18616_s4 + $0x60] sm:$0xff] }
 0xfd4   : > { %v7571_v0 = vadd.f32 %v7570_v39, %v7537_v19  ;;  %v7682_v16 = vpop.f32.mrf.mxu3 }
 0xfd5   : > { %v7683_v57 = vadd.f32 %v7682_v16, %v7609_v26 }
 0xfd6   : > { %v7858_v33 = vmul.f32 0.5, %v7571_v0 }
 0xfd8   : > { %10720 = vtanh.f32 %v7858_v33 }
 0xfdb   : > { %v7616_v5 = vpop.f32.mrf.mxu2 }
 0xfdc   : > { %v7574_v59 = vpop.f32.mrf.mxu1  ;;  %v7617_v7 = vadd.f32 %v7616_v5, %v7288_v32  ;;  %v16819_v5 = vld [vmem:[%s18616_s4 + $0x50] sm:$0xff] }
 0xfdd   : > { %v7575_v38 = vadd.f32 %v7574_v59, %v7541_v42 }
 0xfde   : > { %v10721_v25 = vpop.eup %10720  ;;  %v7686_v60 = vpop.f32.mrf.mxu3 }
 0xfdf   : > { %v7862_v6 = vmul.f32 2.0, %v10721_v25  ;;  %v7726_v30 = vpop.f32.mrf.mxu0  ;;  %v7687_v63 = vadd.f32 %v7686_v60, %v7617_v7 }
 0xfe0   : > { %v7727_v34 = vadd.f32 %v7726_v30, %v7683_v57 }
 0xfe1   : > { %v7864_v13 = vmul.f32 1.442695, %v7862_v6  ;;  %v16813_v6 = vld [vmem:[%s18616_s4 + $0x88] sm:$0xff] }
 0xfe3   : > { %10722 = vpow2.f32 %v7864_v13 }
 0xfe6   : > { %v7763_v54 = vpop.f32.mrf.mxu1  ;;  %v7851_v61 = vpop.f32.mrf.mxu3 }
 0xfe7   : > { %v7764_v52 = vadd.f32 %v7763_v54, %v7727_v34  ;;  %v7817_v2 = vpop.f32.mrf.mxu2  ;;  %v7731_v31 = vpop.f32.mrf.mxu0 }
 0xfe8   : > { %v7732_v27 = vadd.f32 %v7731_v31, %v7687_v63 }
 0xfe9   : > { %v10723_v44 = vpop.eup %10722  ;;  %v7818_v55 = vadd.f32 %v7817_v2, %v7764_v52 }
 0xfea   : > { %v7868_v46 = vmul.f32 %v10723_v44, %v19045_v49 }
 0xfeb   : > { %v7852_v22 = vadd.f32 %v7851_v61, %v7818_v55 }
 0xfec   : > { %v16737_v36 = vadd.f32 %v7868_v46, %v7575_v38  ;;  %v16856_v46 = vld [vmem:[%s18616_s4 + $0x70] sm:$0xff] }
 0xfed   : > { %v7859_v37 = vmul.f32 0.5, %v7852_v22 }
 0xfee   : > { %19046 = vst [vmem:[#allocation21_spill] sm:$0xff] %v16737_v36  ;;  %7914 = vrot.lane.b32.xlu2 %v16737_v36, %s11062_s26  ;;  %7922 = vrot.lane.b32.xlu0 %v16737_v36, %s11060_s22  ;;  %v7769_v56 = vpop.f32.mrf.mxu1  ;;  %v7855_v21 = vpop.f32.mrf.mxu3  ;;  %v16808_v15 = vand.u32 4294901760, %v16737_v36 }
 0xfef   : > { %10724 = vtanh.f32 %v7859_v37  ;;  %7930 = vrot.lane.b32.xlu1 %v16737_v36, %s11061_s25  ;;  %v7770_v14 = vadd.f32 %v7769_v56, %v7732_v27  ;;  %v7821_v9 = vpop.f32.mrf.mxu2  ;;  %v16881_v27 = vld [vmem:[%s18616_s4 + $0x58] sm:$0xff] }
 0xff0   : > { %v16824_v13 = vsub.f32 %v16737_v36, %v16808_v15 }
 0xff1   : > { %v7822_v10 = vadd.f32 %v7821_v9, %v7770_v14  ;;  %v16887_v14 = vld [vmem:[%s18616_s4 + $0x10] sm:$0xff] }
 0xff2   : > { %v18750_v44 = vand.u32 4294901760, %v16824_v13  ;;  %19049 = vst [vmem:[#allocation24_spill] sm:$0xff] %v16887_v14 }
 0xff3   : > { %v7856_v18 = vadd.f32 %v7855_v21, %v7822_v10  ;;  %v16898_v21 = vld [vmem:[%s18616_s4 + $0x68] sm:$0xff] }
 0xff4   : > { %v16893_v10 = vsub.f32 %v16824_v13, %v18750_v44 }
 0xff5   : > { %v10725_v28 = vpop.eup %10724 }
 0xff6   : > { %v7863_v17 = vmul.f32 2.0, %v10725_v28  ;;  %7890 = vrot.lane.b32.xlu2 %v16737_v36, %s11065_s15  ;;  %7898 = vrot.lane.b32.xlu0 %v16737_v36, %s11064_s23  ;;  %v16870_v28 = vld [vmem:[%s18616_s4 + $0x78] sm:$0xff] }
 0xff7   : > { %7906 = vrot.lane.b32.xlu1 %v16737_v36, %s18822_s14 }
 0xff8   : > { %v7866_v58 = vmul.f32 1.442695, %v7863_v17 }
 0xffa   : > { %10726 = vpow2.f32 %v7866_v58 }
 0xfff   : > { %7882 = vrot.lane.b32.xlu1 %v16737_v36, %s18823_s11 }
0x1000   : > { %v10727_v11 = vpop.eup %10726 }
0x1001   : > { %v7869_v12 = vmul.f32 %v10727_v11, %v19047_v62 }
0x1003   : > { %v16754_v40 = vadd.f32 %v7869_v12, %v7856_v18 }
0x1005   : > { %19048 = vst [vmem:[#allocation17_spill] sm:$0xff] %v16754_v40  ;;  %7932 = vrot.lane.b32.xlu2 %v16754_v40, %s11061_s25  ;;  %7916 = vrot.lane.b32.xlu0 %v16754_v40, %s11062_s26 }
0x1007   : > { %7924 = vrot.lane.b32.xlu1 %v16754_v40, %s11060_s22 }
0x100d   : > { %7908 = vrot.lane.b32.xlu2 %v16754_v40, %s18822_s14  ;;  %7892 = vrot.lane.b32.xlu0 %v16754_v40, %s11065_s15 }
0x100f   : > { %7900 = vrot.lane.b32.xlu1 %v16754_v40, %s11064_s23 }
0x1015   : > { %7884 = vrot.lane.b32.xlu2 %v16754_v40, %s18823_s11  ;;  %7874 = vrot.lane.b32.xlu0 %v16737_v36, %s18824_s19 }
0x1017   : > { %7876 = vrot.lane.b32.xlu1 %v16754_v40, %s18824_s19 }
0x101d   : > { %8447 = vperm.xlu2 %10679, %v10576_v1  }
0x1048   : > { %v7915_v8 = vpop.permute.xlu2 %7914 }
0x1050   : > { %v16777_v47 = vpop.permute.xlu2 %7890 }
0x105f   : > { %v7933_v48 = vpop.permute.xlu2 %7932 }
0x1060   : > { %v7923_v23 = vpop.permute.xlu0 %7922 }
0x1061   : > { %v7931_v20 = vpop.permute.xlu1 %7930 }
0x1062   : > { %v7934_v50 = vsel %vm480_vm2, %v7931_v20, %v7933_v48  ;;  %v7935_v3 = vsel %vm480_vm2, %v7933_v48, %v7931_v20 }
0x1063   : > { %v7936_v53 = vmul.f32 %v16784_v43, %v7934_v50  ;;  %v7937_v26 = vmul.f32 %v16813_v6, %v7935_v3  ;;  %v16917_v50 = vld [vmem:[%s18616_s4 + $0x20] sm:$0xff] }
0x1065   : > { %v16787_v19 = vand.u32 4294901760, %v7936_v53  ;;  %v16826_v30 = vand.u32 4294901760, %v7937_v26 }
0x1067   : > { %v16790_v39 = vsub.f32 %v7936_v53, %v16787_v19  ;;  %7949 = vmatpush.msra.mxu0 %v16787_v19  ;;  %8089 = vmatpush.msra.mxu3 %v16787_v19  ;;  %v7909_v32 = vpop.permute.xlu2 %7908  ;;  %v16860_v37 = vsub.f32 %v7937_v26, %v16826_v30 }
0x1068   : > { %v16799_v51 = vpop.permute.xlu0 %7898 }
0x1069   : > { %v18754_v0 = vand.u32 4294901760, %v16790_v39  ;;  %8050 = vmatpush.msra.mxu2 %v16790_v39  ;;  %v7907_v35 = vpop.permute.xlu1 %7906  ;;  %v18749_v12 = vand.u32 4294901760, %v16860_v37 }
0x106a   : > { %v7910_v59 = vsel %vm444_vm3, %v7907_v35, %v7909_v32  ;;  %v7911_v55 = vsel %vm444_vm3, %v7909_v32, %v7907_v35 }
0x106b   : > { %v7985_v33 = vsub.f32 %v16790_v39, %v18754_v0  ;;  %v7912_v60 = vmul.f32 %v16819_v5, %v7910_v59  ;;  %v7913_v58 = vmul.f32 %v16881_v27, %v7911_v55 }
0x106d   : > { %v7986_v16 = vand.u32 4294901760, %v7985_v33  ;;  %v16828_v57 = vand.u32 4294901760, %v7912_v60  ;;  %v16923_v33 = vand.u32 4294901760, %v7913_v58 }
0x106f   : > { %7987 = vmatpush.msra.mxu1 %v7986_v16  ;;  %v16838_v2 = vpop.permute.xlu2 %7884  ;;  %v16865_v31 = vsub.f32 %v7912_v60, %v16828_v57 }
0x1071   : > { %v16805_v25 = vpop.permute.xlu1 %7882  ;;  %v18751_v48 = vand.u32 4294901760, %v16865_v31 }
0x1072   : > { %v7887_v38 = vsel %vm408_vm7, %v16838_v2, %v16805_v25 }
0x1073   : > { %v7888_v9 = vmul.f32 %v16887_v14, %v7887_v38 }
0x1075   : > { %v16925_v16 = vand.u32 4294901760, %v7888_v9 }
0x1077   : > { %v7917_v24 = vpop.permute.xlu0 %7916 }
0x1078   : > { %v7918_v34 = vsel %vm456_vm0, %v7915_v8, %v7917_v24  ;;  %v7919_v7 = vsel %vm456_vm0, %v7917_v24, %v7915_v8  ;;  %v16942_v24 = vld [vmem:[%s18616_s4 + $0x30] sm:$0xff] }
0x1079   : > { %v7920_v54 = vmul.f32 %v16835_v45, %v7918_v34  ;;  %v7925_v52 = vpop.permute.xlu1 %7924  ;;  %v7921_v11 = vmul.f32 %v16898_v21, %v7919_v7 }
0x107a   : > { %v7926_v42 = vsel %vm468_vm1, %v7923_v23, %v7925_v52  ;;  %v7927_v61 = vsel %vm468_vm1, %v7925_v52, %v7923_v23 }
0x107b   : > { %v16851_v49 = vand.u32 4294901760, %v7920_v54  ;;  %v7928_v22 = vmul.f32 %v16856_v46, %v7926_v42  ;;  %v7929_v63 = vmul.f32 %v16870_v28, %v7927_v61  ;;  %v16932_v59 = vand.u32 4294901760, %v7921_v11 }
0x107c   : > { %v8003_v42 = vsub.f32 %v16865_v31, %v18751_v48  ;;  %v16960_v61 = vsub.f32 %v16860_v37, %v18749_v12 }
0x107d   : > { %v16873_v17 = vand.u32 4294901760, %v7928_v22  ;;  %v16876_v56 = vsub.f32 %v7920_v54, %v16851_v49  ;;  %v16912_v20 = vand.u32 4294901760, %v7929_v63  ;;  %v7873_v54 = vld [vmem:[#allocation2 + $0x30] sm:$0xff] }
0x107f   : > { %v7893_v18 = vpop.permute.xlu0 %7892  ;;  %7951 = vmatpush.msra.mxu0 %v16873_v17  ;;  %8091 = vmatpush.msra.mxu3 %v16873_v17  ;;  %v16904_v62 = vsub.f32 %v7928_v22, %v16873_v17  ;;  %v18752_v8 = vand.u32 4294901760, %v16876_v56  ;;  %v16963_v55 = vsub.f32 %v7929_v63, %v16912_v20 }
0x1080   : > { %v7895_v1 = vsel %vm420_vm5, %v7893_v18, %v16777_v47  ;;  %v7894_v38 = vsel %vm420_vm5, %v16777_v47, %v7893_v18  ;;  %v16983_v47 = vsub.f32 %v7888_v9, %v16925_v16  ;;  %v7939_v18 = vsel %vm488_vm6, %v7873_v54, 0 }
0x1081   : > { %v7896_v53 = vmul.f32 %v16917_v50, %v7895_v1  ;;  %7953 = vmatpush.msra.mxu0 %v16851_v49  ;;  %8053 = vmatpush.msra.mxu2 %v16904_v62  ;;  %v7901_v23 = vpop.permute.xlu1 %7900  ;;  %v18753_v35 = vand.u32 4294901760, %v16904_v62  ;;  %v16978_v1 = vld [vmem:[%s18616_s4 + $0x38] sm:$0xff]  ;;  %v7886_v9 = vsel %vm408_vm7, %v16805_v25, %v16838_v2  ;;  %v8004_v25 = vand.u32 4294901760, %v8003_v42 }
0x1082   : > { %8093 = vmatpush.msra.mxu3 %v16851_v49  ;;  %v7903_v32 = vsel %vm432_vm4, %v7901_v23, %v16799_v51  ;;  %v7902_v60 = vsel %vm432_vm4, %v16799_v51, %v7901_v23  ;;  %v7997_v51 = vsub.f32 %v16876_v56, %v18752_v8  ;;  %19050 = vst [vmem:[#allocation18_spill] sm:$0xff] %v16978_v1  ;;  %v17016_v8 = vand.u32 4294901760, %v7939_v18  ;;  %v17029_v42 = vld [vmem:[%s18616_s4 + $0x18] sm:$0xff] }
0x1083   : > { %v16934_v26 = vand.u32 4294901760, %v7896_v53  ;;  %v7904_v34 = vmul.f32 %v16942_v24, %v7903_v32  ;;  %7955 = vmatpush.msra.mxu0 %v16828_v57  ;;  %8056 = vmatpush.msra.mxu2 %v16876_v56  ;;  %v7991_v52 = vsub.f32 %v16904_v62, %v18753_v35  ;;  %v7905_v63 = vmul.f32 %v16978_v1, %v7902_v60 }
0x1084   : > { %8095 = vmatpush.msra.mxu3 %v16828_v57  ;;  %v16987_v32 = vsub.f32 %v7913_v58, %v16923_v33  ;;  %v17007_v58 = vld [vmem:[%s18616_s4 + $0x28] sm:$0xff]  ;;  %19052 = vst [vmem:[#allocation19_spill] sm:$0xff] %v17029_v42  ;;  %v7889_v0 = vmul.f32 %v17029_v42, %v7886_v9 }
0x1085   : > { %v16968_v22 = vand.u32 4294901760, %v7904_v34  ;;  %7957 = vmatpush.msra.mxu0 %v16808_v15  ;;  %8059 = vmatpush.msra.mxu2 %v16865_v31  ;;  %v16973_v7 = vsub.f32 %v7896_v53, %v16934_v26  ;;  %v7992_v23 = vand.u32 4294901760, %v7991_v52  ;;  %v16990_v53 = vsub.f32 %v7921_v11, %v16932_v59  ;;  %19051 = vst [vmem:[#allocation22_spill] sm:$0xff] %v17007_v58 }
0x1086   : > { %8097 = vmatpush.msra.mxu3 %v16808_v15  ;;  %v16998_v52 = vand.u32 4294901760, %v16754_v40  ;;  %v7897_v11 = vmul.f32 %v17007_v58, %v7894_v38  ;;  %v17018_v38 = vand.u32 4294901760, %v7905_v63 }
0x1087   : > { %7959 = vmatpush.msra.mxu0 %v16968_v22  ;;  %8062 = vmatpush.msra.mxu2 %v16824_v13  ;;  %v16995_v60 = vsub.f32 %v7904_v34, %v16968_v22  ;;  %v7998_v34 = vand.u32 4294901760, %v7997_v51  ;;  %v18757_v54 = vand.u32 4294901760, %v16973_v7  ;;  %v7875_v12 = vpop.permute.xlu0 %7874 }
0x1088   : > { %7993 = vmatpush.msra.mxu1 %v7992_v23  ;;  %8099 = vmatpush.msra.mxu3 %v16968_v22  ;;  %v17044_v35 = vand.u32 4294901760, %v7897_v11  ;;  %v17053_v48 = vsub.f32 %v16754_v40, %v16998_v52  ;;  %v17068_v42 = vsub.f32 %v7905_v63, %v17018_v38  ;;  %v19056_v40 = vand.u32 4294901760, %v16893_v10 }
0x1089   : > { %v7877_v44 = vpop.permute.xlu1 %7876  ;;  %7961 = vmatpush.msra.mxu0 %v16934_v26  ;;  %8065 = vmatpush.msra.mxu2 %v16995_v60  ;;  %v18755_v2 = vand.u32 4294901760, %v16995_v60  ;;  %v8021_v9 = vsub.f32 %v16973_v7, %v18757_v54  ;;  %v19055_v54 = vand.u32 4294901760, %v16963_v55 }
0x108a   : > { %7999 = vmatpush.msra.mxu1 %v7998_v34  ;;  %v7878_v51 = vsel %vm397_vm8, %v7875_v12, %v7877_v44  ;;  %v7879_v23 = vsel %vm397_vm8, %v7877_v44, %v7875_v12  ;;  %8101 = vmatpush.msra.mxu3 %v16934_v26  ;;  %v17035_v34 = vld [vmem:[%s18616_s4] sm:$0xff]  ;;  %v8258_v1 = vand.u32 4294901760, %v17053_v48 }
0x108b   : > { %19053 = vst [vmem:[#allocation25_spill] sm:$0xff] %v17035_v34  ;;  %v7880_v3 = vmul.f32 %v17035_v34, %v7879_v23  ;;  %7963 = vmatpush.msra.mxu0 %v16925_v16  ;;  %8068 = vmatpush.msra.mxu2 %v16973_v7  ;;  %v8015_v44 = vsub.f32 %v16995_v60, %v18755_v2  ;;  %v17058_v2 = vld [vmem:[%s18616_s4 + $0x8] sm:$0xff]  ;;  %v19057_v34 = vand.u32 4294901760, %v16983_v47 }
0x108c   : > { %8005 = vmatpush.msra.mxu1 %v8004_v25  ;;  %8103 = vmatpush.msra.mxu3 %v16925_v16  ;;  %19054 = vst [vmem:[#allocation23_spill] sm:$0xff] %v17058_v2  ;;  %v7881_v12 = vmul.f32 %v17058_v2, %v7878_v51  ;;  %v8241_v23 = vsub.f32 %v16963_v55, %v19055_v54  ;;  %v17078_v2 = vand.u32 4294901760, %v7889_v0  ;;  %v8236_v54 = vand.u32 4294901760, %v16960_v61 }
0x108d   : > { %v17061_v25 = vand.u32 4294901760, %v7880_v3  ;;  %8071 = vmatpush.msra.mxu2 %v16983_v47  ;;  %v8016_v36 = vand.u32 4294901760, %v8015_v44  ;;  %v8027_v14 = vsub.f32 %v16983_v47, %v19057_v34  ;;  %v17076_v51 = vsub.f32 %v7939_v18, %v17016_v8 }
0x108e   : > { %8011 = vmatpush.msra.mxu1 %v19056_v40  ;;  %v19058_v40 = vand.u32 4294901760, %v16990_v53  ;;  %v17090_v34 = vsub.f32 %v7897_v11, %v17044_v35  ;;  %v19059_v18 = vand.u32 4294901760, %v16790_v39  ;;  %v8022_v44 = vand.u32 4294901760, %v8021_v9 }
0x108f   : > { %7965 = vmatpush.msra.mxu0 %v17061_v25  ;;  %8105 = vmatpush.msra.mxu3 %v17061_v25  ;;  %v17084_v63 = vsub.f32 %v7880_v3, %v17061_v25  ;;  %v17095_v58 = vand.u32 4294901760, %v7881_v12  ;;  %v8242_v3 = vand.u32 4294901760, %v8241_v23  ;;  %v19060_v61 = vand.u32 4294901760, %v16987_v32 }
0x1090   : > { %v8247_v10 = vsub.f32 %v16990_v53, %v19058_v40  ;;  %8017 = vmatpush.msra.mxu1 %v8016_v36  ;;  %v19061_v36 = vand.u32 4294901760, %v16904_v62  ;;  %v8028_v39 = vand.u32 4294901760, %v8027_v14  ;;  %v8264_v9 = vand.u32 4294901760, %v17068_v42 }
0x1091   : > { %8123 = vmatpush.msrb.mxu0 %v19059_v18  ;;  %8237 = vmatpush.msrb.mxu3 %v8236_v54  ;;  %v8253_v40 = vsub.f32 %v16987_v32, %v19060_v61  ;;  %v8032_v11 = vand.u32 4294901760, %v17084_v63  ;;  %v17106_v18 = vand.u32 4294901760, %v17076_v51  ;;  %v17109_v54 = vsub.f32 %v7889_v0, %v17078_v2 }
0x1092   : > { %8074 = vmatpush.msra.mxu2 %v17084_v63  ;;  %8023 = vmatpush.msra.mxu1 %v8022_v44  ;;  %v8248_v23 = vand.u32 4294901760, %v8247_v10  ;;  %v19062_v44 = vand.u32 4294901760, %v16876_v56  ;;  %v8259_v14 = vsub.f32 %v17053_v48, %v8258_v1  ;;  %v8270_v62 = vand.u32 4294901760, %v17090_v34 }
0x1093   : > { %8127 = vmatpush.msrb.mxu0 %v19061_v36  ;;  %8243 = vmatpush.msrb.mxu3 %v8242_v3  ;;  %v8033_v61 = vsub.f32 %v17084_v63, %v8032_v11  ;;  %v17120_v36 = vsub.f32 %v7881_v12, %v17095_v58  ;;  %v8254_v0 = vand.u32 4294901760, %v8253_v40  ;;  %v19063_v63 = vand.u32 4294901760, %v16865_v31 }
0x1094   : > { %8199 = vmatpush.msrb.mxu2 %v16826_v30  ;;  %8029 = vmatpush.msra.mxu1 %v8028_v39  ;;  %v8265_v56 = vsub.f32 %v17068_v42, %v8264_v9  ;;  %v7969_v3 = vsub.f32 %v17076_v51, %v17106_v18  ;;  %v8276_v12 = vand.u32 4294901760, %v17109_v54  ;;  %v19064_v40 = vand.u32 4294901760, %v16824_v13 }
0x1095   : > { %8131 = vmatpush.msrb.mxu0 %v19062_v44  ;;  %8249 = vmatpush.msrb.mxu3 %v8248_v23  ;;  %v8034_v10 = vand.u32 4294901760, %v8033_v61  ;;  %v8260_v31 = vand.u32 4294901760, %v8259_v14  ;;  %v8271_v39 = vsub.f32 %v17090_v34, %v8270_v62  ;;  %v8282_v23 = vand.u32 4294901760, %v17120_v36 }
0x1096   : > { %8201 = vmatpush.msrb.mxu2 %v16912_v20  ;;  %v19065_v61 = vand.u32 4294901760, %v16995_v60  ;;  %v8266_v44 = vand.u32 4294901760, %v8265_v56  ;;  %v8277_v13 = vsub.f32 %v17109_v54, %v8276_v12  ;;  %8109 = vmatmul.f32.vlgmr.msra.gmra.mxu3 %v17106_v18 }
0x1097   : > { %8135 = vmatpush.msrb.mxu0 %v19063_v63  ;;  %8077 = vmatmul.f32.vlgmr.msra.gmra.mxu2 %v17076_v51  ;;  %v8272_v14 = vand.u32 4294901760, %v8271_v39  ;;  %v8283_v60 = vsub.f32 %v17120_v36, %v8282_v23 }
0x1098   : > { %8203 = vmatpush.msrb.mxu2 %v16932_v59  ;;  %8255 = vmatpush.msrb.mxu3 %v8254_v0  ;;  %v7970_v0 = vand.u32 4294901760, %v7969_v3 }
0x1099   : > { %8035 = vmatpush.msra.mxu1 %v8034_v10  ;;  %8139 = vmatpush.msrb.mxu0 %v19064_v40  ;;  %v8278_v10 = vand.u32 4294901760, %v8277_v13 }
0x109a   : > { %8205 = vmatpush.msrb.mxu2 %v16923_v33  ;;  %8261 = vmatpush.msrb.mxu3 %v8260_v31 }
0x109b   : > { %8169 = vmatpush.msrb.mxu1 %v16787_v19  ;;  %8143 = vmatpush.msrb.mxu0 %v19065_v61  ;;  %v19066_v19 = vand.u32 4294901760, %v16973_v7 }
0x109c   : > { %8207 = vmatpush.msrb.mxu2 %v16998_v52  ;;  %8267 = vmatpush.msrb.mxu3 %v8266_v44  ;;  %v8453_v44 = vld [vmem:[#allocation5 + $0x60] sm:$0xff] }
0x109d   : > { %8171 = vmatpush.msrb.mxu1 %v16873_v17  ;;  %8147 = vmatpush.msrb.mxu0 %v19066_v19  ;;  %v19067_v17 = vand.u32 4294901760, %v16983_v47  ;;  %v8533_v13 = vsel %vm488_vm6, %v8453_v44, 0 }
0x109e   : > { %8209 = vmatpush.msrb.mxu2 %v17018_v38  ;;  %8273 = vmatpush.msrb.mxu3 %v8272_v14 }
0x109f   : > { %8173 = vmatpush.msrb.mxu1 %v16851_v49  ;;  %7971 = vmatmul.f32.vlgmr.msra.gmra.mxu0 %v7970_v0  ;;  %v8284_v49 = vand.u32 4294901760, %v8283_v60 }
0x10a0   : > { %8151 = vmatpush.msrb.mxu0 %v19067_v17  ;;  %8211 = vmatpush.msrb.mxu2 %v17044_v35 }
0x10a1   : > { %8175 = vmatpush.msrb.mxu1 %v16828_v57  ;;  %8279 = vmatpush.msrb.mxu3 %v8278_v10  ;;  %v19068_v57 = vand.u32 4294901760, %v16860_v37 }
0x10a2   : > { %8037 = vmatmul.f32.vlgmr.msra.gmra.mxu1 %v17016_v8  ;;  %8155 = vmatpush.msrb.mxu0 %v8032_v11 }
0x10a3   : > { %8177 = vmatpush.msrb.mxu1 %v16808_v15  ;;  %8213 = vmatpush.msrb.mxu2 %v17078_v2  ;;  %v19069_v15 = vand.u32 4294901760, %v16963_v55 }
0x10a4   : > { %8285 = vmatpush.msrb.mxu3 %v8284_v49  ;;  %8300 = vmatpush.msra.mxu0 %v16860_v37  ;;  %v19071_v37 = vand.u32 4294901760, %v16987_v32 }
0x10a5   : > { %8179 = vmatpush.msrb.mxu1 %v16968_v22  ;;  %8215 = vmatpush.msrb.mxu2 %v17095_v58  ;;  %v19070_v22 = vand.u32 4294901760, %v16990_v53 }
0x10a6   : > { %8419 = vmatpush.msra.mxu3 %v16826_v30  ;;  %8303 = vmatpush.msra.mxu0 %v16963_v55 }
0x10a7   : > { %8373 = vmatpush.msra.mxu2 %v19068_v57  ;;  %8181 = vmatpush.msrb.mxu1 %v16934_v26  ;;  %v17288_v57 = vand.u32 4294901760, %v8533_v13 }
0x10a8   : > { %8421 = vmatpush.msra.mxu3 %v16912_v20  ;;  %8157 = vmatmul.f32.vlgmr.msrb.gmra.mxu0 %v17016_v8 }
0x10a9   : > { %8377 = vmatpush.msra.mxu2 %v19069_v15  ;;  %8306 = vmatpush.msra.mxu0 %v16990_v53 }
0x10aa   : > { %8423 = vmatpush.msra.mxu3 %v16932_v59  ;;  %8183 = vmatpush.msrb.mxu1 %v16925_v16 }
0x10ab   : > { %8381 = vmatpush.msra.mxu2 %v19070_v22  ;;  %8309 = vmatpush.msra.mxu0 %v16987_v32 }
0x10ac   : > { %8425 = vmatpush.msra.mxu3 %v16923_v33  ;;  %8185 = vmatpush.msrb.mxu1 %v17061_v25 }
0x10ad   : > { %8385 = vmatpush.msra.mxu2 %v19071_v37  ;;  %8187 = vmatmul.f32.vlgmr.msrb.gmra.mxu1 %v17016_v8 }
0x10ae   : > { %8312 = vmatpush.msra.mxu0 %v17053_v48  ;;  %8339 = vmatpush.msra.mxu1 %v16826_v30 }
0x10af   : > { %8427 = vmatpush.msra.mxu3 %v16998_v52  ;;  %8389 = vmatpush.msra.mxu2 %v8258_v1 }
0x10b0   : > { %8315 = vmatpush.msra.mxu0 %v17068_v42  ;;  %8341 = vmatpush.msra.mxu1 %v16912_v20 }
0x10b1   : > { %8429 = vmatpush.msra.mxu3 %v17018_v38  ;;  %8393 = vmatpush.msra.mxu2 %v8264_v9 }
0x10b2   : > { %8318 = vmatpush.msra.mxu0 %v17090_v34  ;;  %8343 = vmatpush.msra.mxu1 %v16932_v59 }
0x10b3   : > { %8431 = vmatpush.msra.mxu3 %v17044_v35  ;;  %8221 = vmatmul.f32.vlgmr.msrb.gmra.mxu2 %v7970_v0 }
0x10b4   : > { %8287 = vmatmul.f32.vlgmr.msrb.gmra.mxu3 %v17016_v8  ;;  %8321 = vmatpush.msra.mxu0 %v17109_v54  ;;  %v10578_v54 = vld [vmem:[%s18615_s3 + $0x68] sm:$0xff] }
0x10b5   : > { %8345 = vmatpush.msra.mxu1 %v16923_v33  ;;  %8397 = vmatpush.msra.mxu2 %v8270_v62 }
0x10b6   : > { %8433 = vmatpush.msra.mxu3 %v17078_v2  ;;  %8324 = vmatpush.msra.mxu0 %v17120_v36 }
0x10b7   : > { %8347 = vmatpush.msra.mxu1 %v16998_v52  ;;  %8401 = vmatpush.msra.mxu2 %v8276_v12 }
0x10b8   : > { %8435 = vmatpush.msra.mxu3 %v17095_v58  ;;  %8327 = vmatmul.f32.vlgmr.msra.gmra.mxu0 %v17076_v51 }
0x10b9   : > { %8349 = vmatpush.msra.mxu1 %v17018_v38  ;;  %8405 = vmatpush.msra.mxu2 %v8282_v23 }
0x10bb   : > { %8351 = vmatpush.msra.mxu1 %v17044_v35  ;;  %8407 = vmatmul.f32.vlgmr.msra.gmra.mxu2 %v17016_v8 }
0x10bc   : > { %8437 = vmatmul.f32.vlgmr.msra.gmra.mxu3 %v17016_v8  ;;  %v8448_v8 = vpop.permute.xlu2 %8447 }
0x10bd   : > { %8353 = vmatpush.msra.mxu1 %v17078_v2 }
0x10bf   : > { %8355 = vmatpush.msra.mxu1 %v17095_v58 }
0x10c0   : > { %8359 = vmatmul.f32.vlgmr.msra.gmra.mxu1 %v17106_v18 }
0x1119   : > { %v8110_v59 = vpop.f32.mrf.mxu3 }
0x111a   : > { %v8078_v20 = vpop.f32.mrf.mxu2 }
0x111c   : > { %v7972_v30 = vpop.f32.mrf.mxu0 }
0x111f   : > { %v8038_v48 = vpop.f32.mrf.mxu1 }
0x1120   : > { %v8039_v33 = vadd.f32 %v8038_v48, %v7972_v30 }
0x1122   : > { %v8079_v16 = vadd.f32 %v8078_v20, %v8039_v33 }
0x1124   : > { %v8111_v26 = vadd.f32 %v8110_v59, %v8079_v16 }
0x1125   : > { %v8158_v55 = vpop.f32.mrf.mxu0 }
0x1126   : > { %v8159_v7 = vadd.f32 %v8158_v55, %v8111_v26  ;;  %v17309_v26 = vsub.f32 %v8533_v13, %v17288_v57 }
0x112a   : > { %v8188_v35 = vpop.f32.mrf.mxu1 }
0x112b   : > { %v8189_v1 = vadd.f32 %v8188_v35, %v8159_v7 }
0x112d   : > { %v8441_v47 = vadd.f32 %v8189_v1, %v16300_v29 }
0x112f   : > { %v17221_v32 = vadd.f32 %v8448_v8, %v8441_v47 }
0x1131   : > { %8495 = vrot.lane.b32.xlu1 %v17221_v32, %s11062_s26  ;;  %8503 = vrot.lane.b32.xlu2 %v17221_v32, %s11060_s22  ;;  %v17272_v61 = vand.u32 4294901760, %v17221_v32 }
0x1132   : > { %8511 = vrot.lane.b32.xlu0 %v17221_v32, %s11061_s25 }
0x1133   : > { %v17281_v60 = vsub.f32 %v17221_v32, %v17272_v61 }
0x1135   : > { %v8328_v53 = vpop.f32.mrf.mxu0 }
0x1136   : > { %v8222_v52 = vpop.f32.mrf.mxu2 }
0x1137   : > { %v8288_v58 = vpop.f32.mrf.mxu3 }
0x1138   : > { %v8289_v2 = vadd.f32 %v8288_v58, %v8222_v52 }
0x1139   : > { %8471 = vrot.lane.b32.xlu1 %v17221_v32, %s11065_s15  ;;  %8479 = vrot.lane.b32.xlu2 %v17221_v32, %s11064_s23 }
0x113a   : > { %v8329_v38 = vadd.f32 %v8328_v53, %v8289_v2  ;;  %8487 = vrot.lane.b32.xlu0 %v17221_v32, %s18822_s14  ;;  %v17339_v2 = vand.u32 4294901760, %v17309_v26 }
0x113c   : > { %v8566_v44 = vsub.f32 %v17309_v26, %v17339_v2 }
0x113d   : > { %v8360_v29 = vpop.f32.mrf.mxu1 }
0x113e   : > { %v8361_v42 = vadd.f32 %v8360_v29, %v8329_v38  ;;  %v8408_v25 = vpop.f32.mrf.mxu2  ;;  %v8454_v38 = vld [vmem:[#allocation5 + $0x68] sm:$0xff] }
0x113f   : > { %v8438_v51 = vpop.f32.mrf.mxu3 }
0x1140   : > { %v8409_v34 = vadd.f32 %v8408_v25, %v8361_v42 }
0x1142   : > { %v8439_v11 = vadd.f32 %v8438_v51, %v8409_v34  ;;  %8463 = vrot.lane.b32.xlu0 %v17221_v32, %s18823_s11 }
0x1144   : > { %v8442_v9 = vadd.f32 %v8439_v11, %v16317_v41  ;;  %v10577_v41 = vld [vmem:[%s18615_s3 + $0x60] sm:$0xff] }
0x1146   : > { %v17238_v18 = vadd.f32 %v8448_v8, %v8442_v9 }
0x1148   : > { %8513 = vrot.lane.b32.xlu1 %v17238_v18, %s11061_s25  ;;  %8497 = vrot.lane.b32.xlu2 %v17238_v18, %s11062_s26 }
0x114a   : > { %8505 = vrot.lane.b32.xlu0 %v17238_v18, %s11060_s22 }
0x1150   : > { %8489 = vrot.lane.b32.xlu1 %v17238_v18, %s18822_s14  ;;  %8473 = vrot.lane.b32.xlu2 %v17238_v18, %s11065_s15 }
0x1152   : > { %8481 = vrot.lane.b32.xlu0 %v17238_v18, %s11064_s23 }
0x1158   : > { %8465 = vrot.lane.b32.xlu1 %v17238_v18, %s18823_s11  ;;  %8455 = vrot.lane.b32.xlu2 %v17221_v32, %s18824_s19 }
0x115a   : > { %8457 = vrot.lane.b32.xlu0 %v17238_v18, %s18824_s19 }
0x1160   : > { %8524 = vperm.xlu1 %10677, %v10577_v41   ;;  %8529 = vperm.xlu2 %10679, %v10578_v54  }
0x118b   : > { %v8504_v62 = vpop.permute.xlu2 %8503 }
0x1193   : > { %v17264_v63 = vpop.permute.xlu2 %8479 }
0x11a2   : > { %v8498_v12 = vpop.permute.xlu2 %8497 }
0x11a3   : > { %v8496_v56 = vpop.permute.xlu1 %8495 }
0x11a4   : > { %v8512_v36 = vpop.permute.xlu0 %8511  ;;  %v8499_v40 = vsel %vm456_vm0, %v8496_v56, %v8498_v12  ;;  %v8500_v0 = vsel %vm456_vm0, %v8498_v12, %v8496_v56 }
0x11a5   : > { %v8501_v39 = vmul.f32 %v16835_v45, %v8499_v40  ;;  %v8502_v45 = vmul.f32 %v16898_v21, %v8500_v0  ;;  %v8613_v21 = vand.u32 4294901760, %v17281_v60 }
0x11a7   : > { %v17277_v19 = vand.u32 4294901760, %v8501_v39  ;;  %v17298_v20 = vand.u32 4294901760, %v8502_v45 }
0x11a9   : > { %v17295_v48 = vsub.f32 %v8501_v39, %v17277_v19  ;;  %v17330_v53 = vsub.f32 %v8502_v45, %v17298_v20  ;;  %v19072_v45 = vld [vmem:[#allocation22_spill] sm:$0xff] }
0x11aa   : > { %v8474_v14 = vpop.permute.xlu2 %8473 }
0x11ab   : > { %v8472_v31 = vpop.permute.xlu1 %8471 }
0x11ac   : > { %v8488_v3 = vpop.permute.xlu0 %8487  ;;  %v8476_v17 = vsel %vm420_vm5, %v8474_v14, %v8472_v31  ;;  %v8475_v51 = vsel %vm420_vm5, %v8472_v31, %v8474_v14 }
0x11ad   : > { %v8477_v37 = vmul.f32 %v16917_v50, %v8476_v17  ;;  %v17398_v17 = vmul.f32 %v19072_v45, %v8475_v51  ;;  %v17426_v51 = vand.u32 4294901760, %v8566_v44 }
0x11af   : > { %v17316_v7 = vand.u32 4294901760, %v8477_v37 }
0x11b4   : > { %v17269_v23 = vpop.permute.xlu0 %8463 }
0x11ba   : > { %v8514_v10 = vpop.permute.xlu1 %8513 }
0x11bb   : > { %v8515_v49 = vsel %vm480_vm2, %v8512_v36, %v8514_v10  ;;  %v8516_v15 = vsel %vm480_vm2, %v8514_v10, %v8512_v36  ;;  %v8536_v36 = vsel %vm488_vm6, %v8454_v38, 0  ;;  %v8456_v38 = vpop.permute.xlu2 %8455 }
0x11bc   : > { %v8517_v22 = vmul.f32 %v16784_v43, %v8515_v49  ;;  %v8506_v30 = vpop.permute.xlu0 %8505  ;;  %v8518_v59 = vmul.f32 %v16813_v6, %v8516_v15  ;;  %v8601_v6 = vand.u32 4294901760, %v17295_v48  ;;  %v17395_v14 = vand.u32 4294901760, %v8536_v36 }
0x11bd   : > { %v8507_v16 = vsel %vm468_vm1, %v8504_v62, %v8506_v30  ;;  %v8508_v43 = vsel %vm468_vm1, %v8506_v30, %v8504_v62  ;;  %v8882_v15 = vand.u32 4294901760, %v17330_v53 }
0x11be   : > { %v17300_v33 = vand.u32 4294901760, %v8517_v22  ;;  %v8509_v50 = vmul.f32 %v16856_v46, %v8507_v16  ;;  %v17324_v46 = vsub.f32 %v17281_v60, %v8613_v21  ;;  %v8510_v47 = vmul.f32 %v16870_v28, %v8508_v43  ;;  %v19073_v43 = vld [vmem:[#allocation18_spill] sm:$0xff] }
0x11bf   : > { %v17332_v52 = vand.u32 4294901760, %v8518_v59  ;;  %v8602_v11 = vsub.f32 %v17295_v48, %v8601_v6 }
0x11c0   : > { %v17312_v55 = vsub.f32 %v8517_v22, %v17300_v33  ;;  %8546 = vmatpush.msrb.mxu0 %v17300_v33  ;;  %8703 = vmatpush.msrb.mxu3 %v17300_v33  ;;  %v17318_v35 = vand.u32 4294901760, %v8509_v50  ;;  %v8615_v9 = vand.u32 4294901760, %v17324_v46  ;;  %v17361_v41 = vand.u32 4294901760, %v8510_v47 }
0x11c1   : > { %v17374_v31 = vsub.f32 %v8518_v59, %v17332_v52 }
0x11c2   : > { %v8589_v1 = vand.u32 4294901760, %v17312_v55  ;;  %v8490_v8 = vpop.permute.xlu1 %8489  ;;  %8659 = vmatpush.msrb.mxu2 %v17312_v55  ;;  %8548 = vmatpush.msrb.mxu0 %v17318_v35  ;;  %v17345_v42 = vsub.f32 %v8509_v50, %v17318_v35  ;;  %v17401_v10 = vsub.f32 %v8510_v47, %v17361_v41  ;;  %v19074_v47 = vld [vmem:[#allocation24_spill] sm:$0xff] }
0x11c3   : > { %v8491_v58 = vsel %vm444_vm3, %v8488_v3, %v8490_v8  ;;  %8705 = vmatpush.msrb.mxu3 %v17318_v35  ;;  %v8492_v28 = vsel %vm444_vm3, %v8490_v8, %v8488_v3  ;;  %v18766_v59 = vand.u32 4294901760, %v17374_v31 }
0x11c4   : > { %v8493_v29 = vmul.f32 %v16819_v5, %v8491_v58  ;;  %v8590_v25 = vsub.f32 %v17312_v55, %v8589_v1  ;;  %8550 = vmatpush.msrb.mxu0 %v17277_v19  ;;  %v8482_v34 = vpop.permute.xlu0 %8481  ;;  %v17358_v5 = vsub.f32 %v8477_v37, %v17316_v7  ;;  %8662 = vmatpush.msrb.mxu2 %v17345_v42  ;;  %v8595_v40 = vand.u32 4294901760, %v17345_v42 }
0x11c5   : > { %8707 = vmatpush.msrb.mxu3 %v17277_v19  ;;  %v8484_v62 = vsel %vm432_vm4, %v8482_v34, %v17264_v63  ;;  %v8494_v56 = vmul.f32 %v16881_v27, %v8492_v28  ;;  %v17384_v27 = vand.u32 4294901760, %v17238_v18  ;;  %v8603_v28 = vand.u32 4294901760, %v8602_v11 }
0x11c6   : > { %v17363_v54 = vand.u32 4294901760, %v8493_v29  ;;  %v8485_v3 = vmul.f32 %v16942_v24, %v8484_v62  ;;  %v8591_v12 = vand.u32 4294901760, %v8590_v25  ;;  %8665 = vmatpush.msrb.mxu2 %v17295_v48  ;;  %v8483_v24 = vsel %vm432_vm4, %v17264_v63, %v8482_v34 }
0x11c7   : > { %v8596_v13 = vsub.f32 %v17345_v42, %v8595_v40  ;;  %v17407_v22 = vand.u32 4294901760, %v8494_v56  ;;  %v18767_v16 = vand.u32 4294901760, %v17358_v5  ;;  %v8486_v50 = vmul.f32 %v19073_v43, %v8483_v24 }
0x11c8   : > { %8552 = vmatpush.msrb.mxu0 %v17363_v54  ;;  %v17379_v39 = vsub.f32 %v8493_v29, %v17363_v54  ;;  %v17389_v0 = vand.u32 4294901760, %v8485_v3  ;;  %8592 = vmatpush.msrb.mxu1 %v8591_v12  ;;  %v17429_v34 = vsub.f32 %v8536_v36, %v17395_v14  ;;  %v18765_v11 = vand.u32 4294901760, %v17401_v10  ;;  %v19075_v36 = vld [vmem:[#allocation25_spill] sm:$0xff] }
0x11c9   : > { %8709 = vmatpush.msrb.mxu3 %v17363_v54  ;;  %v8597_v30 = vand.u32 4294901760, %v8596_v13  ;;  %v17442_v44 = vsub.f32 %v8494_v56, %v17407_v22  ;;  %v17447_v45 = vand.u32 4294901760, %v8486_v50  ;;  %v8871_v56 = vsub.f32 %v17374_v31, %v18766_v59  ;;  %v19077_v59 = vld [vmem:[#allocation23_spill] sm:$0xff] }
0x11ca   : > { %v8466_v49 = vpop.permute.xlu1 %8465  ;;  %8554 = vmatpush.msrb.mxu0 %v17272_v61  ;;  %8668 = vmatpush.msrb.mxu2 %v17379_v39  ;;  %v8607_v63 = vand.u32 4294901760, %v17379_v39  ;;  %v17420_v58 = vsub.f32 %v8485_v3, %v17389_v0 }
0x11cb   : > { %v8468_v37 = vsel %vm408_vm7, %v8466_v49, %v17269_v23  ;;  %8711 = vmatpush.msrb.mxu3 %v17272_v61  ;;  %8598 = vmatpush.msrb.mxu1 %v8597_v30  ;;  %v8467_v62 = vsel %vm408_vm7, %v17269_v23, %v8466_v49  ;;  %v19076_v30 = vld [vmem:[#allocation19_spill] sm:$0xff] }
0x11cc   : > { %v8469_v8 = vmul.f32 %v19074_v47, %v8468_v37  ;;  %8556 = vmatpush.msrb.mxu0 %v17389_v0  ;;  %8671 = vmatpush.msrb.mxu2 %v17281_v60  ;;  %v8458_v29 = vpop.permute.xlu0 %8457  ;;  %v8608_v25 = vsub.f32 %v17379_v39, %v8607_v63  ;;  %v18768_v13 = vand.u32 4294901760, %v17420_v58  ;;  %v8626_v37 = vsub.f32 %v17358_v5, %v18767_v16 }
0x11cd   : > { %8713 = vmatpush.msrb.mxu3 %v17389_v0  ;;  %v8460_v12 = vsel %vm397_vm8, %v8458_v29, %v8456_v38  ;;  %8604 = vmatpush.msrb.mxu1 %v8603_v28  ;;  %v8470_v43 = vmul.f32 %v19076_v30, %v8467_v62  ;;  %v8459_v47 = vsel %vm397_vm8, %v8456_v38, %v8458_v29  ;;  %v17482_v29 = vand.u32 4294901760, %v17398_v17 }
0x11ce   : > { %v17434_v3 = vand.u32 4294901760, %v8469_v8  ;;  %8558 = vmatpush.msrb.mxu0 %v17316_v7  ;;  %8674 = vmatpush.msrb.mxu2 %v17420_v58  ;;  %v8461_v24 = vmul.f32 %v19075_v36, %v8460_v12  ;;  %v8609_v23 = vand.u32 4294901760, %v8608_v25  ;;  %v8877_v25 = vsub.f32 %v17401_v10, %v18765_v11 }
0x11cf   : > { %8715 = vmatpush.msrb.mxu3 %v17316_v7  ;;  %v17475_v12 = vand.u32 4294901760, %v17429_v34  ;;  %v17479_v38 = vsub.f32 %v17238_v18, %v17384_v27  ;;  %v8888_v30 = vand.u32 4294901760, %v17442_v44  ;;  %v17492_v11 = vsub.f32 %v8486_v50, %v17447_v45 }
0x11d0   : > { %8560 = vmatpush.msrb.mxu0 %v17434_v3  ;;  %8677 = vmatpush.msrb.mxu2 %v17358_v5  ;;  %v17452_v49 = vsub.f32 %v8469_v8, %v17434_v3  ;;  %v17463_v28 = vand.u32 4294901760, %v8461_v24  ;;  %v8620_v8 = vsub.f32 %v17420_v58, %v18768_v13  ;;  %v8462_v16 = vmul.f32 %v19077_v59, %v8459_v47 }
0x11d1   : > { %8610 = vmatpush.msrb.mxu1 %v8609_v23  ;;  %8717 = vmatpush.msrb.mxu3 %v17434_v3  ;;  %v8872_v13 = vand.u32 4294901760, %v8871_v56  ;;  %v8883_v59 = vsub.f32 %v17330_v53, %v8882_v15  ;;  %v8878_v56 = vand.u32 4294901760, %v8877_v25  ;;  %v17514_v55 = vsub.f32 %v17398_v17, %v17482_v29 }
0x11d2   : > { %8680 = vmatpush.msrb.mxu2 %v17452_v49  ;;  %v8631_v62 = vand.u32 4294901760, %v17452_v49  ;;  %8562 = vmatpush.msrb.mxu0 %v17463_v28  ;;  %v8621_v36 = vand.u32 4294901760, %v8620_v8  ;;  %v17488_v23 = vsub.f32 %v8461_v24, %v17463_v28  ;;  %v8627_v24 = vand.u32 4294901760, %v8626_v37 }
0x11d3   : > { %8616 = vmatpush.msrb.mxu1 %v8615_v9  ;;  %8719 = vmatpush.msrb.mxu3 %v17463_v28  ;;  %v17500_v9 = vand.u32 4294901760, %v8470_v43  ;;  %v8574_v8 = vsub.f32 %v17429_v34, %v17475_v12  ;;  %v17524_v37 = vand.u32 4294901760, %v8462_v16  ;;  %v8900_v17 = vand.u32 4294901760, %v17492_v11 }
0x11d4   : > { %8568 = vmatmul.f32.vlgmr.msrb.gmra.mxu0 %v17426_v51  ;;  %v8632_v46 = vsub.f32 %v17452_v49, %v8631_v62  ;;  %v8637_v50 = vand.u32 4294901760, %v17488_v23  ;;  %8683 = vmatpush.msrb.mxu2 %v17488_v23  ;;  %v8884_v42 = vand.u32 4294901760, %v8883_v59 }
0x11d5   : > { %8622 = vmatpush.msrb.mxu1 %v8621_v36  ;;  %8743 = vmatpush.msra.mxu0 %v8589_v1  ;;  %v8894_v36 = vand.u32 4294901760, %v17479_v38  ;;  %v8889_v1 = vsub.f32 %v17442_v44, %v8888_v30  ;;  %v17529_v25 = vsub.f32 %v8470_v43, %v17500_v9  ;;  %v8906_v43 = vand.u32 4294901760, %v17514_v55 }
0x11d6   : > { %8873 = vmatpush.msra.mxu3 %v8872_v13  ;;  %v8633_v47 = vand.u32 4294901760, %v8632_v46  ;;  %v8638_v13 = vsub.f32 %v17488_v23, %v8637_v50  ;;  %8827 = vmatpush.msra.mxu2 %v17332_v52  ;;  %v17535_v46 = vand.u32 4294901760, %v8574_v8  ;;  %v8901_v48 = vsub.f32 %v17492_v11, %v8900_v17 }
0x11d7   : > { %8628 = vmatpush.msrb.mxu1 %v8627_v24  ;;  %8747 = vmatpush.msra.mxu0 %v8595_v40  ;;  %v8895_v24 = vsub.f32 %v17479_v38, %v8894_v36  ;;  %v8907_v39 = vsub.f32 %v17514_v55, %v8906_v43  ;;  %v19078_v8 = vand.u32 4294901760, %v17420_v58 }
0x11d8   : > { %8879 = vmatpush.msra.mxu3 %v8878_v56  ;;  %8686 = vmatmul.f32.vlgmr.msrb.gmra.mxu2 %v17309_v26  ;;  %v8639_v40 = vand.u32 4294901760, %v8638_v13  ;;  %v8890_v56 = vand.u32 4294901760, %v8889_v1 }
0x11d9   : > { %8634 = vmatpush.msrb.mxu1 %v8633_v47  ;;  %8751 = vmatpush.msra.mxu0 %v8601_v6  ;;  %v17542_v47 = vsub.f32 %v8462_v16, %v17524_v37  ;;  %v8912_v6 = vand.u32 4294901760, %v17529_v25  ;;  %v8896_v16 = vand.u32 4294901760, %v8895_v24 }
0x11da   : > { %8829 = vmatpush.msra.mxu2 %v17361_v41  ;;  %8885 = vmatpush.msra.mxu3 %v8884_v42 }
0x11db   : > { %8640 = vmatpush.msrb.mxu1 %v8639_v40  ;;  %8723 = vmatmul.f32.vlgmr.msrb.gmra.mxu3 %v17339_v2  ;;  %v8918_v59 = vand.u32 4294901760, %v17542_v47  ;;  %v8913_v60 = vsub.f32 %v17529_v25, %v8912_v6 }
0x11dc   : > { %8755 = vmatpush.msra.mxu0 %v8607_v63  ;;  %8831 = vmatpush.msra.mxu2 %v17298_v20  ;;  %v8902_v63 = vand.u32 4294901760, %v8901_v48 }
0x11dd   : > { %8891 = vmatpush.msra.mxu3 %v8890_v56  ;;  %8576 = vmatmul.f32.gmra.mxu0 %v17535_v46  ;;  %v8914_v58 = vand.u32 4294901760, %v8913_v60  ;;  %v19082_v56 = vld [vmem:[#allocation21_spill] sm:$0xff] }
0x11de   : > { %8642 = vmatmul.f32.vlgmr.msrb.gmra.mxu1 %v17288_v57  ;;  %8759 = vmatpush.msra.mxu0 %v8613_v21  ;;  %v19079_v21 = vand.u32 4294901760, %v17358_v5  ;;  %v19080_v5 = vand.u32 4294901760, %v17374_v31 }
0x11df   : > { %8793 = vmatpush.msra.mxu1 %v17300_v33  ;;  %8833 = vmatpush.msra.mxu2 %v17407_v22  ;;  %v8908_v33 = vand.u32 4294901760, %v8907_v39 }
0x11e0   : > { %8897 = vmatpush.msra.mxu3 %v8896_v16  ;;  %8763 = vmatpush.msra.mxu0 %v19078_v8 }
0x11e1   : > { %8795 = vmatpush.msra.mxu1 %v17318_v35  ;;  %8835 = vmatpush.msra.mxu2 %v17384_v27  ;;  %v8919_v35 = vsub.f32 %v17542_v47, %v8918_v59 }
0x11e2   : > { %8903 = vmatpush.msra.mxu3 %v8902_v63  ;;  %8691 = vmatmul.f32.gmra.mxu2 %v17429_v34 }
0x11e3   : > { %8767 = vmatpush.msra.mxu0 %v19079_v21  ;;  %8797 = vmatpush.msra.mxu1 %v17277_v19  ;;  %v8920_v19 = vand.u32 4294901760, %v8919_v35 }
0x11e4   : > { %8837 = vmatpush.msra.mxu2 %v17447_v45  ;;  %8909 = vmatpush.msra.mxu3 %v8908_v33 }
0x11e5   : > { %8771 = vmatpush.msra.mxu0 %v8631_v62  ;;  %8729 = vmatmul.f32.gmra.mxu3 %v17475_v12 }
0x11e6   : > { %8799 = vmatpush.msra.mxu1 %v17363_v54  ;;  %8839 = vmatpush.msra.mxu2 %v17482_v29 }
0x11e7   : > { %8915 = vmatpush.msra.mxu3 %v8914_v58  ;;  %8646 = vmatmul.f32.gmra.mxu1 %v17395_v14 }
0x11e8   : > { %8775 = vmatpush.msra.mxu0 %v8637_v50  ;;  %8801 = vmatpush.msra.mxu1 %v17272_v61  ;;  %v19081_v61 = vand.u32 4294901760, %v17401_v10 }
0x11e9   : > { %8841 = vmatpush.msra.mxu2 %v17500_v9  ;;  %8921 = vmatpush.msra.mxu3 %v8920_v19 }
0x11ea   : > { %8777 = vmatmul.f32.vlgmr.msra.gmra.mxu0 %v17288_v57  ;;  %8803 = vmatpush.msra.mxu1 %v17389_v0 }
0x11eb   : > { %8940 = vmatpush.msrb.mxu0 %v17374_v31  ;;  %9074 = vmatpush.msrb.mxu3 %v17332_v52 }
0x11ec   : > { %8843 = vmatpush.msra.mxu2 %v17524_v37  ;;  %8805 = vmatpush.msra.mxu1 %v17316_v7 }
0x11ed   : > { %8849 = vmatmul.f32.vlgmr.msra.gmra.mxu2 %v17426_v51  ;;  %8943 = vmatpush.msrb.mxu0 %v17401_v10 }
0x11ee   : > { %9024 = vmatpush.msrb.mxu2 %v19080_v5  ;;  %9076 = vmatpush.msrb.mxu3 %v17361_v41 }
0x11ef   : > { %8923 = vmatmul.f32.vlgmr.msra.gmra.mxu3 %v17288_v57  ;;  %8946 = vmatpush.msrb.mxu0 %v17330_v53  ;;  %v8525_v53 = vpop.permute.xlu1 %8524 }
0x11f0   : > { %9028 = vmatpush.msrb.mxu2 %v19081_v61  ;;  %9078 = vmatpush.msrb.mxu3 %v17298_v20 }
0x11f1   : > { %8807 = vmatpush.msra.mxu1 %v17434_v3  ;;  %8949 = vmatpush.msrb.mxu0 %v17442_v44 }
0x11f2   : > { %9032 = vmatpush.msrb.mxu2 %v8882_v15  ;;  %9080 = vmatpush.msrb.mxu3 %v17407_v22 }
0x11f3   : > { %8809 = vmatpush.msra.mxu1 %v17463_v28  ;;  %8781 = vmatmul.f32.gmra.mxu0 %v17395_v14 }
0x11f4   : > { %8811 = vmatmul.f32.vlgmr.msra.gmra.mxu1 %v17288_v57  ;;  %8952 = vmatpush.msrb.mxu0 %v17479_v38 }
0x11f5   : > { %8984 = vmatpush.msrb.mxu1 %v17332_v52  ;;  %9036 = vmatpush.msrb.mxu2 %v8888_v30 }
0x11f6   : > { %9082 = vmatpush.msrb.mxu3 %v17384_v27  ;;  %8857 = vmatmul.f32.gmra.mxu2 %v17535_v46 }
0x11f7   : > { %8955 = vmatpush.msrb.mxu0 %v17492_v11  ;;  %8986 = vmatpush.msrb.mxu1 %v17361_v41 }
0x11f8   : > { %9040 = vmatpush.msrb.mxu2 %v8894_v36  ;;  %9084 = vmatpush.msrb.mxu3 %v17447_v45 }
0x11f9   : > { %8958 = vmatpush.msrb.mxu0 %v17514_v55  ;;  %8927 = vmatmul.f32.gmra.mxu3 %v17395_v14 }
0x11fa   : > { %8988 = vmatpush.msrb.mxu1 %v17298_v20  ;;  %9044 = vmatpush.msrb.mxu2 %v8900_v17 }
0x11fb   : > { %9086 = vmatpush.msrb.mxu3 %v17482_v29  ;;  %8961 = vmatpush.msrb.mxu0 %v17529_v25 }
0x11fc   : > { %8990 = vmatpush.msrb.mxu1 %v17407_v22  ;;  %9048 = vmatpush.msrb.mxu2 %v8906_v43 }
0x11fd   : > { %9088 = vmatpush.msrb.mxu3 %v17500_v9  ;;  %8815 = vmatmul.f32.gmra.mxu1 %v17395_v14 }
0x11fe   : > { %8964 = vmatpush.msrb.mxu0 %v17542_v47  ;;  %8992 = vmatpush.msrb.mxu1 %v17384_v27 }
0x11ff   : > { %9052 = vmatpush.msrb.mxu2 %v8912_v6  ;;  %9090 = vmatpush.msrb.mxu3 %v17524_v37 }
0x1200   : > { %8967 = vmatmul.f32.vlgmr.msrb.gmra.mxu0 %v17309_v26  ;;  %8994 = vmatpush.msrb.mxu1 %v17447_v45  ;;  %v8530_v45 = vpop.permute.xlu2 %8529 }
0x1201   : > { %9056 = vmatpush.msrb.mxu2 %v8918_v59  ;;  %9092 = vmatmul.f32.vlgmr.msrb.gmra.mxu3 %v17288_v57 }
0x1202   : > { %9058 = vmatmul.f32.vlgmr.msrb.gmra.mxu2 %v17288_v57  ;;  %8996 = vmatpush.msrb.mxu1 %v17482_v29 }
0x1204   : > { %8998 = vmatpush.msrb.mxu1 %v17500_v9 }
0x1206   : > { %9000 = vmatpush.msrb.mxu1 %v17524_v37 }
0x1207   : > { %9004 = vmatmul.f32.vlgmr.msrb.gmra.mxu1 %v17339_v2 }
0x1208   : > { %8972 = vmatmul.f32.gmra.mxu0 %v17429_v34 }
0x1209   : > { %9096 = vmatmul.f32.gmra.mxu3 %v17395_v14 }
0x120a   : > { %9062 = vmatmul.f32.gmra.mxu2 %v17395_v14 }
0x120f   : > { %9010 = vmatmul.f32.gmra.mxu1 %v17475_v12 }
0x1251   : > { %v8569_v20 = vpop.f32.mrf.mxu0 }
0x1252   : > { %v8570_v41 = vadd.f32 %v8569_v20, %v8525_v53 }
0x125a   : > { %v8577_v52 = vpop.f32.mrf.mxu0 }
0x125b   : > { %v8643_v26 = vpop.f32.mrf.mxu1  ;;  %v8687_v7 = vpop.f32.mrf.mxu2  ;;  %v8578_v49 = vadd.f32 %v8577_v52, %v8530_v45  ;;  %v10579_v52 = vld [vmem:[%s18821_s2 + $0x38] sm:$0xff] }
0x125c   : > { %v8644_v54 = vadd.f32 %v8643_v26, %v8570_v41 }
0x125e   : > { %v8724_v57 = vpop.f32.mrf.mxu3  ;;  %v8688_v27 = vadd.f32 %v8687_v7, %v8644_v54  ;;  %v19084_v7 = vld [vmem:[#allocation17_spill] sm:$0xff] }
0x1260   : > { %v8725_v2 = vadd.f32 %v8724_v57, %v8688_v27 }
0x1264   : > { %v8647_v31 = vpop.f32.mrf.mxu1 }
0x1265   : > { %v8692_v0 = vpop.f32.mrf.mxu2  ;;  %v8648_v12 = vadd.f32 %v8647_v31, %v8578_v49 }
0x1267   : > { %v8778_v15 = vpop.f32.mrf.mxu0  ;;  %v8693_v50 = vadd.f32 %v8692_v0, %v8648_v12 }
0x1268   : > { %v8730_v10 = vpop.f32.mrf.mxu3  ;;  %v8779_v22 = vadd.f32 %v8778_v15, %v8725_v2 }
0x1269   : > { %v8731_v1 = vadd.f32 %v8730_v10, %v8693_v50 }
0x1270   : > { %v8850_v3 = vpop.f32.mrf.mxu2  ;;  %v8782_v44 = vpop.f32.mrf.mxu0 }
0x1271   : > { %v8812_v51 = vpop.f32.mrf.mxu1  ;;  %v8851_v29 = vadd.f32 %v8850_v3, %v8525_v53  ;;  %v8783_v17 = vadd.f32 %v8782_v44, %v8731_v1 }
0x1272   : > { %v8813_v34 = vadd.f32 %v8812_v51, %v8779_v22  ;;  %v8924_v11 = vpop.f32.mrf.mxu3  ;;  %v17703_v51 = vld [vmem:[%s18616_s4 + $0x60] sm:$0xff] }
0x1273   : > { %v8925_v55 = vadd.f32 %v8924_v11, %v8851_v29 }
0x1274   : > { %v9100_v14 = vmul.f32 0.5, %v8813_v34 }
0x1276   : > { %10728 = vtanh.f32 %v9100_v14 }
0x1279   : > { %v8858_v23 = vpop.f32.mrf.mxu2 }
0x127a   : > { %v8816_v28 = vpop.f32.mrf.mxu1  ;;  %v8859_v39 = vadd.f32 %v8858_v23, %v8530_v45  ;;  %v17730_v23 = vld [vmem:[%s18616_s4 + $0x88] sm:$0xff] }
0x127b   : > { %v8817_v24 = vadd.f32 %v8816_v28, %v8783_v17  ;;  %v17752_v17 = vld [vmem:[%s18616_s4 + $0x20] sm:$0xff] }
0x127c   : > { %v10729_v62 = vpop.eup %10728  ;;  %v8928_v9 = vpop.f32.mrf.mxu3 }
0x127d   : > { %v9104_v38 = vmul.f32 2.0, %v10729_v62  ;;  %v8968_v36 = vpop.f32.mrf.mxu0  ;;  %v8929_v8 = vadd.f32 %v8928_v9, %v8859_v39 }
0x127e   : > { %v8969_v13 = vadd.f32 %v8968_v36, %v8925_v55  ;;  %v17742_v55 = vld [vmem:[%s18616_s4 + $0x70] sm:$0xff] }
0x127f   : > { %v9106_v30 = vmul.f32 1.442695, %v9104_v38  ;;  %v17724_v38 = vld [vmem:[%s18616_s4 + $0x80] sm:$0xff] }
0x1281   : > { %10730 = vpow2.f32 %v9106_v30 }
0x1284   : > { %v9005_v37 = vpop.f32.mrf.mxu1  ;;  %v9093_v46 = vpop.f32.mrf.mxu3 }
0x1285   : > { %v9006_v25 = vadd.f32 %v9005_v37, %v8969_v13  ;;  %v9059_v42 = vpop.f32.mrf.mxu2  ;;  %v8973_v63 = vpop.f32.mrf.mxu0 }
0x1286   : > { %v8974_v33 = vadd.f32 %v8973_v63, %v8929_v8 }
0x1287   : > { %v10731_v40 = vpop.eup %10730  ;;  %v9060_v47 = vadd.f32 %v9059_v42, %v9006_v25 }
0x1288   : > { %v9110_v43 = vmul.f32 %v10731_v40, %v19082_v56  ;;  %v17760_v40 = vld [vmem:[%s18616_s4 + $0x78] sm:$0xff]  ;;  %v17768_v56 = vld [vmem:[%s18616_s4 + $0x68] sm:$0xff] }
0x1289   : > { %v9094_v6 = vadd.f32 %v9093_v46, %v9060_v47 }
0x128a   : > { %v17654_v48 = vadd.f32 %v9110_v43, %v8817_v24 }
0x128b   : > { %v9101_v16 = vmul.f32 0.5, %v9094_v6 }
0x128c   : > { %19083 = vst [vmem:[#allocation20_spill] sm:$0xff] %v17654_v48  ;;  %9156 = vrot.lane.b32.xlu1 %v17654_v48, %s11062_s26  ;;  %9164 = vrot.lane.b32.xlu2 %v17654_v48, %s11060_s22  ;;  %v9011_v21 = vpop.f32.mrf.mxu1  ;;  %v9097_v61 = vpop.f32.mrf.mxu3  ;;  %v17707_v14 = vand.u32 4294901760, %v17654_v48 }
0x128d   : > { %9172 = vrot.lane.b32.xlu0 %v17654_v48, %s11061_s25  ;;  %10732 = vtanh.f32 %v9101_v16  ;;  %v9012_v58 = vadd.f32 %v9011_v21, %v8974_v33  ;;  %v9063_v19 = vpop.f32.mrf.mxu2 }
0x128e   : > { %v17713_v11 = vsub.f32 %v17654_v48, %v17707_v14 }
0x128f   : > { %v9064_v5 = vadd.f32 %v9063_v19, %v9012_v58 }
0x1290   : > { %v18769_v37 = vand.u32 4294901760, %v17713_v11 }
0x1291   : > { %v9098_v26 = vadd.f32 %v9097_v61, %v9064_v5 }
0x1292   : > { %v17785_v63 = vsub.f32 %v17713_v11, %v18769_v37  ;;  %v17909_v37 = vld [vmem:[%s18616_s4 + $0x10] sm:$0xff] }
0x1293   : > { %v10733_v59 = vpop.eup %10732  ;;  %19088 = vst [vmem:[#allocation25_spill] sm:$0xff] %v17909_v37 }
0x1294   : > { %9132 = vrot.lane.b32.xlu1 %v17654_v48, %s11065_s15  ;;  %9140 = vrot.lane.b32.xlu2 %v17654_v48, %s11064_s23  ;;  %v9105_v60 = vmul.f32 2.0, %v10733_v59 }
0x1295   : > { %9148 = vrot.lane.b32.xlu0 %v17654_v48, %s18822_s14 }
0x1296   : > { %v9108_v35 = vmul.f32 1.442695, %v9105_v60 }
0x1298   : > { %10734 = vpow2.f32 %v9108_v35 }
0x129d   : > { %9124 = vrot.lane.b32.xlu0 %v17654_v48, %s18823_s11 }
0x129e   : > { %v10735_v20 = vpop.eup %10734 }
0x129f   : > { %v9111_v57 = vmul.f32 %v10735_v20, %v19084_v7  ;;  %v17813_v7 = vld [vmem:[%s18616_s4 + $0x50] sm:$0xff] }
0x12a1   : > { %v17671_v53 = vadd.f32 %v9111_v57, %v9098_v26 }
0x12a3   : > { %19085 = vst [vmem:[#allocation22_spill] sm:$0xff] %v17671_v53  ;;  %9174 = vrot.lane.b32.xlu1 %v17671_v53, %s11061_s25  ;;  %9158 = vrot.lane.b32.xlu2 %v17671_v53, %s11062_s26  ;;  %v17795_v33 = vand.u32 4294901760, %v17671_v53 }
0x12a5   : > { %9166 = vrot.lane.b32.xlu0 %v17671_v53, %s11060_s22 }
0x12ab   : > { %9150 = vrot.lane.b32.xlu1 %v17671_v53, %s18822_s14  ;;  %9134 = vrot.lane.b32.xlu2 %v17671_v53, %s11065_s15 }
0x12ad   : > { %9142 = vrot.lane.b32.xlu0 %v17671_v53, %s11064_s23 }
0x12b3   : > { %9126 = vrot.lane.b32.xlu1 %v17671_v53, %s18823_s11  ;;  %9116 = vrot.lane.b32.xlu2 %v17654_v48, %s18824_s19 }
0x12b5   : > { %9118 = vrot.lane.b32.xlu0 %v17671_v53, %s18824_s19 }
0x12bb   : > { %9689 = vperm.xlu1 %10677, %v10579_v52   ;;  %v17819_v52 = vld [vmem:[%s18616_s4 + $0x58] sm:$0xff] }
0x12e6   : > { %v9165_v41 = vpop.permute.xlu2 %9164 }
0x12ee   : > { %v17694_v31 = vpop.permute.xlu2 %9140 }
0x12fd   : > { %v9159_v10 = vpop.permute.xlu2 %9158 }
0x12fe   : > { %v9157_v27 = vpop.permute.xlu1 %9156 }
0x12ff   : > { %v9173_v54 = vpop.permute.xlu0 %9172  ;;  %v9160_v15 = vsel %vm456_vm0, %v9157_v27, %v9159_v10  ;;  %v9161_v36 = vsel %vm456_vm0, %v9159_v10, %v9157_v27 }
0x1300   : > { %v9162_v34 = vmul.f32 %v17703_v51, %v9160_v15  ;;  %v9163_v43 = vmul.f32 %v17768_v56, %v9161_v36 }
0x1302   : > { %v17709_v3 = vand.u32 4294901760, %v9162_v34  ;;  %v17805_v20 = vand.u32 4294901760, %v9163_v43 }
0x1304   : > { %v17746_v13 = vsub.f32 %v9162_v34, %v17709_v3  ;;  %v17845_v34 = vld [vmem:[%s18616_s4 + $0x30] sm:$0xff]  ;;  %v17867_v36 = vsub.f32 %v9163_v43, %v17805_v20  ;;  %v17885_v43 = vsub.f32 %v17671_v53, %v17795_v33 }
0x1305   : > { %v9135_v44 = vpop.permute.xlu2 %9134 }
0x1306   : > { %v9133_v2 = vpop.permute.xlu1 %9132  ;;  %v18770_v39 = vand.u32 4294901760, %v17746_v13 }
0x1307   : > { %v9149_v0 = vpop.permute.xlu0 %9148  ;;  %v9137_v49 = vsel %vm420_vm5, %v9135_v44, %v9133_v2  ;;  %v9136_v59 = vsel %vm420_vm5, %v9133_v2, %v9135_v44 }
0x1308   : > { %v9138_v25 = vmul.f32 %v17752_v17, %v9137_v49  ;;  %v9239_v10 = vsub.f32 %v17746_v13, %v18770_v39 }
0x130a   : > { %v17789_v8 = vand.u32 4294901760, %v9138_v25 }
0x130f   : > { %v17698_v22 = vpop.permute.xlu0 %9124 }
0x1315   : > { %v9175_v45 = vpop.permute.xlu1 %9174 }
0x1316   : > { %v9176_v28 = vsel %vm480_vm2, %v9173_v54, %v9175_v45  ;;  %v9177_v62 = vsel %vm480_vm2, %v9175_v45, %v9173_v54  ;;  %v17850_v45 = vsub.f32 %v9138_v25, %v17789_v8 }
0x1317   : > { %v9167_v12 = vpop.permute.xlu0 %9166  ;;  %v9178_v29 = vmul.f32 %v17724_v38, %v9176_v28  ;;  %v9179_v30 = vmul.f32 %v17730_v23, %v9177_v62 }
0x1318   : > { %v9168_v9 = vsel %vm468_vm1, %v9165_v41, %v9167_v12  ;;  %v9169_v50 = vsel %vm468_vm1, %v9167_v12, %v9165_v41  ;;  %v17939_v12 = vld [vmem:[%s18616_s4] sm:$0xff] }
0x1319   : > { %v9170_v1 = vmul.f32 %v17742_v55, %v9168_v9  ;;  %v17755_v42 = vand.u32 4294901760, %v9178_v29  ;;  %v9171_v46 = vmul.f32 %v17760_v40, %v9169_v50  ;;  %v17774_v6 = vand.u32 4294901760, %v9179_v30  ;;  %v9115_v50 = vld [vmem:[#allocation2 + $0x38] sm:$0xff]  ;;  %19090 = vst [vmem:[#allocation23_spill] sm:$0xff] %v17939_v12 }
0x131b   : > { %v17763_v24 = vand.u32 4294901760, %v9170_v1  ;;  %v17772_v47 = vsub.f32 %v9178_v29, %v17755_v42  ;;  %9191 = vmatpush.msra.mxu0 %v17755_v42  ;;  %9331 = vmatpush.msra.mxu3 %v17755_v42  ;;  %v17797_v35 = vand.u32 4294901760, %v9171_v46  ;;  %v17808_v26 = vsub.f32 %v9179_v30, %v17774_v6 }
0x131d   : > { %v17779_v16 = vsub.f32 %v9170_v1, %v17763_v24  ;;  %v18773_v60 = vand.u32 4294901760, %v17772_v47  ;;  %v9151_v21 = vpop.permute.xlu1 %9150  ;;  %9292 = vmatpush.msra.mxu2 %v17772_v47  ;;  %9193 = vmatpush.msra.mxu0 %v17763_v24  ;;  %v17853_v49 = vsub.f32 %v9171_v46, %v17797_v35  ;;  %v17872_v1 = vld [vmem:[%s18616_s4 + $0x28] sm:$0xff]  ;;  %v17880_v46 = vld [vmem:[%s18616_s4 + $0x38] sm:$0xff] }
0x131e   : > { %v9152_v58 = vsel %vm444_vm3, %v9149_v0, %v9151_v21  ;;  %v9153_v19 = vsel %vm444_vm3, %v9151_v21, %v9149_v0  ;;  %9333 = vmatpush.msra.mxu3 %v17763_v24  ;;  %19086 = vst [vmem:[#allocation18_spill] sm:$0xff] %v17872_v1  ;;  %v17875_v25 = vmul.f32 %v17872_v1, %v9136_v59 }
0x131f   : > { %v9143_v5 = vpop.permute.xlu0 %9142  ;;  %v18771_v61 = vand.u32 4294901760, %v17779_v16  ;;  %v9154_v57 = vmul.f32 %v17813_v7, %v9152_v58  ;;  %v9155_v41 = vmul.f32 %v17819_v52, %v9153_v19  ;;  %9195 = vmatpush.msra.mxu0 %v17709_v3  ;;  %9295 = vmatpush.msra.mxu2 %v17779_v16  ;;  %v9227_v27 = vsub.f32 %v17772_v47, %v18773_v60 }
0x1320   : > { %9335 = vmatpush.msra.mxu3 %v17709_v3  ;;  %v9145_v54 = vsel %vm432_vm4, %v9143_v5, %v17694_v31  ;;  %v9144_v2 = vsel %vm432_vm4, %v17694_v31, %v9143_v5  ;;  %v18772_v31 = vand.u32 4294901760, %v17808_v26  ;;  %19087 = vst [vmem:[#allocation24_spill] sm:$0xff] %v17880_v46  ;;  %v9240_v19 = vand.u32 4294901760, %v9239_v10 }
0x1321   : > { %v9233_v0 = vsub.f32 %v17779_v16, %v18771_v61  ;;  %v17837_v15 = vand.u32 4294901760, %v9154_v57  ;;  %v9146_v44 = vmul.f32 %v17845_v34, %v9145_v54  ;;  %9298 = vmatpush.msra.mxu2 %v17746_v13  ;;  %v9228_v28 = vand.u32 4294901760, %v9227_v27 }
0x1322   : > { %v17857_v29 = vand.u32 4294901760, %v9155_v41  ;;  %v9147_v21 = vmul.f32 %v17880_v46, %v9144_v2  ;;  %v9181_v2 = vsel %vm488_vm6, %v9115_v50, 0  ;;  %v19091_v53 = vand.u32 4294901760, %v17853_v49 }
0x1323   : > { %v9234_v62 = vand.u32 4294901760, %v9233_v0  ;;  %v17859_v30 = vand.u32 4294901760, %v9146_v44  ;;  %9197 = vmatpush.msra.mxu0 %v17837_v15  ;;  %9337 = vmatpush.msra.mxu3 %v17837_v15  ;;  %v17864_v9 = vsub.f32 %v9154_v57, %v17837_v15  ;;  %v18779_v57 = vand.u32 4294901760, %v17850_v45 }
0x1324   : > { %9229 = vmatpush.msra.mxu1 %v9228_v28  ;;  %v17904_v28 = vsub.f32 %v9155_v41, %v17857_v29  ;;  %v17918_v50 = vand.u32 4294901760, %v9147_v21  ;;  %v17923_v41 = vld [vmem:[%s18616_s4 + $0x18] sm:$0xff]  ;;  %v9483_v48 = vsub.f32 %v17853_v49, %v19091_v53 }
0x1325   : > { %v9127_v58 = vpop.permute.xlu1 %9126  ;;  %9199 = vmatpush.msra.mxu0 %v17707_v14  ;;  %9301 = vmatpush.msra.mxu2 %v17864_v9  ;;  %v17890_v59 = vsub.f32 %v9146_v44, %v17859_v30  ;;  %v18774_v5 = vand.u32 4294901760, %v17864_v9  ;;  %v9117_v44 = vpop.permute.xlu2 %9116  ;;  %19089 = vst [vmem:[#allocation19_spill] sm:$0xff] %v17923_v41 }
0x1326   : > { %v9128_v54 = vsel %vm408_vm7, %v17698_v22, %v9127_v58  ;;  %v9129_v27 = vsel %vm408_vm7, %v9127_v58, %v17698_v22  ;;  %9339 = vmatpush.msra.mxu3 %v17707_v14  ;;  %9235 = vmatpush.msra.mxu1 %v9234_v62  ;;  %v9477_v62 = vsub.f32 %v17808_v26, %v18772_v31 }
0x1327   : > { %v9119_v0 = vpop.permute.xlu0 %9118  ;;  %v9130_v39 = vmul.f32 %v17909_v37, %v9129_v27  ;;  %9201 = vmatpush.msra.mxu0 %v17859_v30  ;;  %9304 = vmatpush.msra.mxu2 %v17713_v11  ;;  %v18775_v22 = vand.u32 4294901760, %v17890_v59  ;;  %v9131_v58 = vmul.f32 %v17923_v41, %v9128_v54  ;;  %v9245_v61 = vsub.f32 %v17864_v9, %v18774_v5 }
0x1328   : > { %9341 = vmatpush.msra.mxu3 %v17859_v30  ;;  %9241 = vmatpush.msra.mxu1 %v9240_v19  ;;  %v9121_v27 = vsel %vm397_vm8, %v9119_v0, %v9117_v44  ;;  %v9120_v60 = vsel %vm397_vm8, %v9117_v44, %v9119_v0  ;;  %v17948_v5 = vand.u32 4294901760, %v17875_v25  ;;  %v9263_v44 = vsub.f32 %v17850_v45, %v18779_v57  ;;  %v17973_v57 = vld [vmem:[%s18616_s4 + $0x8] sm:$0xff] }
0x1329   : > { %v17932_v31 = vand.u32 4294901760, %v9130_v39  ;;  %v9122_v54 = vmul.f32 %v17939_v12, %v9121_v27  ;;  %9203 = vmatpush.msra.mxu0 %v17789_v8  ;;  %9307 = vmatpush.msra.mxu2 %v17890_v59  ;;  %v9257_v19 = vsub.f32 %v17890_v59, %v18775_v22  ;;  %v9246_v0 = vand.u32 4294901760, %v9245_v61  ;;  %19092 = vst [vmem:[#allocation21_spill] sm:$0xff] %v17973_v57 }
0x132a   : > { %9343 = vmatpush.msra.mxu3 %v17789_v8  ;;  %v17965_v61 = vand.u32 4294901760, %v9181_v2  ;;  %v17968_v41 = vsub.f32 %v9147_v21, %v17918_v50  ;;  %v9123_v27 = vmul.f32 %v17973_v57, %v9120_v60  ;;  %v17978_v12 = vand.u32 4294901760, %v9131_v58 }
0x132b   : > { %v17955_v10 = vand.u32 4294901760, %v9122_v54  ;;  %9205 = vmatpush.msra.mxu0 %v17932_v31  ;;  %9310 = vmatpush.msra.mxu2 %v17850_v45  ;;  %v17960_v22 = vsub.f32 %v9130_v39, %v17932_v31  ;;  %v9258_v39 = vand.u32 4294901760, %v9257_v19  ;;  %v9478_v53 = vand.u32 4294901760, %v9477_v62 }
0x132c   : > { %9247 = vmatpush.msra.mxu1 %v9246_v0  ;;  %9345 = vmatpush.msra.mxu3 %v17932_v31  ;;  %v17988_v60 = vsub.f32 %v17875_v25, %v17948_v5  ;;  %v19093_v19 = vand.u32 4294901760, %v17785_v63  ;;  %v19094_v0 = vand.u32 4294901760, %v17867_v36  ;;  %v9500_v62 = vand.u32 4294901760, %v17885_v43 }
0x132d   : > { %9313 = vmatpush.msra.mxu2 %v17960_v22  ;;  %9207 = vmatpush.msra.mxu0 %v17955_v10  ;;  %v17983_v21 = vsub.f32 %v9122_v54, %v17955_v10  ;;  %v19095_v54 = vand.u32 4294901760, %v17772_v47  ;;  %v9264_v37 = vand.u32 4294901760, %v9263_v44  ;;  %v19096_v57 = vand.u32 4294901760, %v17960_v22 }
0x132e   : > { %9253 = vmatpush.msra.mxu1 %v19093_v19  ;;  %9347 = vmatpush.msra.mxu3 %v17955_v10  ;;  %v9489_v1 = vsub.f32 %v17867_v36, %v19094_v0  ;;  %v18004_v19 = vsub.f32 %v9181_v2, %v17965_v61  ;;  %v18006_v46 = vand.u32 4294901760, %v9123_v27  ;;  %v9484_v0 = vand.u32 4294901760, %v9483_v48 }
0x132f   : > { %9365 = vmatpush.msrb.mxu0 %v19095_v54  ;;  %v9269_v25 = vsub.f32 %v17960_v22, %v19096_v57  ;;  %v9274_v63 = vand.u32 4294901760, %v17983_v21  ;;  %9316 = vmatpush.msra.mxu2 %v17983_v21  ;;  %v19097_v47 = vand.u32 4294901760, %v17904_v28  ;;  %v18014_v54 = vsub.f32 %v9131_v58, %v17978_v12 }
0x1330   : > { %9479 = vmatpush.msrb.mxu3 %v9478_v53  ;;  %9259 = vmatpush.msra.mxu1 %v9258_v39  ;;  %v19098_v57 = vand.u32 4294901760, %v17779_v16  ;;  %v9490_v48 = vand.u32 4294901760, %v9489_v1  ;;  %v9512_v44 = vand.u32 4294901760, %v17988_v60  ;;  %v19099_v58 = vand.u32 4294901760, %v17746_v13 }
0x1331   : > { %v9495_v53 = vsub.f32 %v17904_v28, %v19097_v47  ;;  %9441 = vmatpush.msrb.mxu2 %v17774_v6  ;;  %v9270_v2 = vand.u32 4294901760, %v9269_v25  ;;  %v9275_v39 = vsub.f32 %v17983_v21, %v9274_v63  ;;  %v9501_v47 = vsub.f32 %v17885_v43, %v9500_v62 }
0x1332   : > { %9369 = vmatpush.msrb.mxu0 %v19098_v57  ;;  %9265 = vmatpush.msra.mxu1 %v9264_v37  ;;  %v18028_v57 = vand.u32 4294901760, %v18004_v19  ;;  %v18031_v21 = vsub.f32 %v9123_v27, %v18006_v46  ;;  %v19100_v1 = vand.u32 4294901760, %v17968_v41  ;;  %v9518_v13 = vand.u32 4294901760, %v18014_v54 }
0x1333   : > { %9485 = vmatpush.msrb.mxu3 %v9484_v0  ;;  %9443 = vmatpush.msrb.mxu2 %v17797_v35  ;;  %v9276_v16 = vand.u32 4294901760, %v9275_v39  ;;  %v9496_v37 = vand.u32 4294901760, %v9495_v53  ;;  %v19101_v0 = vand.u32 4294901760, %v17864_v9  ;;  %v9502_v39 = vand.u32 4294901760, %v9501_v47 }
0x1334   : > { %9373 = vmatpush.msrb.mxu0 %v19099_v58  ;;  %9271 = vmatpush.msra.mxu1 %v9270_v2  ;;  %v9507_v25 = vsub.f32 %v17968_v41, %v19100_v1  ;;  %v9513_v27 = vsub.f32 %v17988_v60, %v9512_v44  ;;  %v19102_v53 = vand.u32 4294901760, %v17713_v11  ;;  %v9211_v9 = vsub.f32 %v18004_v19, %v18028_v57 }
0x1335   : > { %9491 = vmatpush.msrb.mxu3 %v9490_v48  ;;  %9445 = vmatpush.msrb.mxu2 %v17805_v20  ;;  %v9524_v48 = vand.u32 4294901760, %v18031_v21  ;;  %v19103_v47 = vand.u32 4294901760, %v17890_v59  ;;  %v9519_v11 = vsub.f32 %v18014_v54, %v9518_v13  ;;  %v19104_v58 = vand.u32 4294901760, %v17850_v45 }
0x1336   : > { %9377 = vmatpush.msrb.mxu0 %v19101_v0  ;;  %9277 = vmatpush.msra.mxu1 %v9276_v16  ;;  %v9508_v2 = vand.u32 4294901760, %v9507_v25  ;;  %v9212_v16 = vand.u32 4294901760, %v9211_v9  ;;  %v19105_v59 = vand.u32 4294901760, %v17960_v22  ;;  %v19108_v45 = vand.u32 4294901760, %v17867_v36 }
0x1337   : > { %9497 = vmatpush.msrb.mxu3 %v9496_v37  ;;  %9447 = vmatpush.msrb.mxu2 %v17857_v29  ;;  %v9520_v37 = vand.u32 4294901760, %v9519_v11 }
0x1338   : > { %9381 = vmatpush.msrb.mxu0 %v19102_v53  ;;  %9411 = vmatpush.msrb.mxu1 %v17755_v42  ;;  %v9514_v42 = vand.u32 4294901760, %v9513_v27 }
0x1339   : > { %9503 = vmatpush.msrb.mxu3 %v9502_v39  ;;  %9449 = vmatpush.msrb.mxu2 %v17795_v33 }
0x133a   : > { %9385 = vmatpush.msrb.mxu0 %v19103_v47  ;;  %9413 = vmatpush.msrb.mxu1 %v17763_v24  ;;  %v9525_v24 = vsub.f32 %v18031_v21, %v9524_v48 }
0x133b   : > { %9509 = vmatpush.msrb.mxu3 %v9508_v2  ;;  %9451 = vmatpush.msrb.mxu2 %v17918_v50 }
0x133c   : > { %9389 = vmatpush.msrb.mxu0 %v19104_v58  ;;  %9415 = vmatpush.msrb.mxu1 %v17709_v3  ;;  %v9526_v3 = vand.u32 4294901760, %v9525_v24 }
0x133d   : > { %9515 = vmatpush.msrb.mxu3 %v9514_v42  ;;  %9319 = vmatmul.f32.vlgmr.msra.gmra.mxu2 %v18004_v19 }
0x133e   : > { %9393 = vmatpush.msrb.mxu0 %v19105_v59  ;;  %9417 = vmatpush.msrb.mxu1 %v17837_v15  ;;  %v19106_v15 = vand.u32 4294901760, %v17808_v26 }
0x133f   : > { %9453 = vmatpush.msrb.mxu2 %v17948_v5  ;;  %9521 = vmatpush.msrb.mxu3 %v9520_v37 }
0x1340   : > { %9213 = vmatmul.f32.vlgmr.msra.gmra.mxu0 %v9212_v16  ;;  %9351 = vmatmul.f32.vlgmr.msra.gmra.mxu3 %v18028_v57 }
0x1341   : > { %9397 = vmatpush.msrb.mxu0 %v9274_v63  ;;  %9419 = vmatpush.msrb.mxu1 %v17707_v14  ;;  %v19107_v14 = vand.u32 4294901760, %v17853_v49 }
0x1342   : > { %9455 = vmatpush.msrb.mxu2 %v17978_v12  ;;  %9527 = vmatpush.msrb.mxu3 %v9526_v3  ;;  %v9695_v3 = vld [vmem:[#allocation5 + $0x70] sm:$0xff] }
0x1343   : > { %9279 = vmatmul.f32.vlgmr.msra.gmra.mxu1 %v17965_v61  ;;  %9542 = vmatpush.msra.mxu0 %v17808_v26  ;;  %v19110_v26 = vmov %v19100_v1 }
0x1344   : > { %9661 = vmatpush.msra.mxu3 %v17774_v6  ;;  %9421 = vmatpush.msrb.mxu1 %v17859_v30 }
0x1345   : > { %9457 = vmatpush.msrb.mxu2 %v18006_v46  ;;  %9545 = vmatpush.msra.mxu0 %v17853_v49 }
0x1346   : > { %9663 = vmatpush.msra.mxu3 %v17797_v35  ;;  %9423 = vmatpush.msrb.mxu1 %v17789_v8  ;;  %v19109_v8 = vand.u32 4294901760, %v17904_v28 }
0x1347   : > { %9615 = vmatpush.msra.mxu2 %v19106_v15  ;;  %9548 = vmatpush.msra.mxu0 %v17867_v36 }
0x1348   : > { %9665 = vmatpush.msra.mxu3 %v17805_v20  ;;  %9425 = vmatpush.msrb.mxu1 %v17932_v31 }
0x1349   : > { %9619 = vmatpush.msra.mxu2 %v19107_v14  ;;  %9399 = vmatmul.f32.vlgmr.msrb.gmra.mxu0 %v17965_v61 }
0x134a   : > { %9551 = vmatpush.msra.mxu0 %v17904_v28  ;;  %9667 = vmatpush.msra.mxu3 %v17857_v29  ;;  %v9690_v28 = vpop.permute.xlu1 %9689 }
0x134b   : > { %9623 = vmatpush.msra.mxu2 %v19108_v45  ;;  %9427 = vmatpush.msrb.mxu1 %v17955_v10 }
0x134c   : > { %9429 = vmatmul.f32.vlgmr.msrb.gmra.mxu1 %v17965_v61  ;;  %9554 = vmatpush.msra.mxu0 %v17885_v43 }
0x134d   : > { %9627 = vmatpush.msra.mxu2 %v19109_v8  ;;  %9581 = vmatpush.msra.mxu1 %v17774_v6 }
0x134e   : > { %9669 = vmatpush.msra.mxu3 %v17795_v33  ;;  %9557 = vmatpush.msra.mxu0 %v17968_v41 }
0x134f   : > { %9631 = vmatpush.msra.mxu2 %v9500_v62  ;;  %9583 = vmatpush.msra.mxu1 %v17797_v35 }
0x1350   : > { %9671 = vmatpush.msra.mxu3 %v17918_v50  ;;  %9560 = vmatpush.msra.mxu0 %v17988_v60 }
0x1351   : > { %9635 = vmatpush.msra.mxu2 %v19110_v26  ;;  %9585 = vmatpush.msra.mxu1 %v17805_v20 }
0x1352   : > { %9673 = vmatpush.msra.mxu3 %v17948_v5  ;;  %9463 = vmatmul.f32.vlgmr.msrb.gmra.mxu2 %v9212_v16 }
0x1353   : > { %9529 = vmatmul.f32.vlgmr.msrb.gmra.mxu3 %v17965_v61  ;;  %9563 = vmatpush.msra.mxu0 %v18014_v54 }
0x1354   : > { %9587 = vmatpush.msra.mxu1 %v17857_v29  ;;  %9639 = vmatpush.msra.mxu2 %v9512_v44 }
0x1355   : > { %9675 = vmatpush.msra.mxu3 %v17978_v12  ;;  %9566 = vmatpush.msra.mxu0 %v18031_v21  ;;  %v10581_v21 = vld [vmem:[%s18615_s3 + $0x78] sm:$0xff] }
0x1356   : > { %9589 = vmatpush.msra.mxu1 %v17795_v33  ;;  %9643 = vmatpush.msra.mxu2 %v9518_v13 }
0x1357   : > { %9677 = vmatpush.msra.mxu3 %v18006_v46  ;;  %9569 = vmatmul.f32.vlgmr.msra.gmra.mxu0 %v18004_v19 }
0x1358   : > { %9591 = vmatpush.msra.mxu1 %v17918_v50  ;;  %9647 = vmatpush.msra.mxu2 %v9524_v48 }
0x135a   : > { %9593 = vmatpush.msra.mxu1 %v17948_v5  ;;  %9649 = vmatmul.f32.vlgmr.msra.gmra.mxu2 %v17965_v61 }
0x135b   : > { %9679 = vmatmul.f32.vlgmr.msra.gmra.mxu3 %v17965_v61 }
0x135c   : > { %9595 = vmatpush.msra.mxu1 %v17978_v12 }
0x135e   : > { %9597 = vmatpush.msra.mxu1 %v18006_v46 }
0x135f   : > { %9601 = vmatmul.f32.vlgmr.msra.gmra.mxu1 %v18028_v57 }
0x13bd   : > { %v9214_v6 = vpop.f32.mrf.mxu0 }
0x13c0   : > { %v9280_v33 = vpop.f32.mrf.mxu1  ;;  %v9320_v20 = vpop.f32.mrf.mxu2 }
0x13c1   : > { %v9281_v35 = vadd.f32 %v9280_v33, %v9214_v6  ;;  %v9775_v33 = vsel %vm488_vm6, %v9695_v3, 0 }
0x13c3   : > { %v9321_v49 = vadd.f32 %v9320_v20, %v9281_v35  ;;  %v9352_v31 = vpop.f32.mrf.mxu3 }
0x13c5   : > { %v9353_v29 = vadd.f32 %v9352_v31, %v9321_v49 }
0x13c6   : > { %v9400_v30 = vpop.f32.mrf.mxu0 }
0x13c7   : > { %v9401_v36 = vadd.f32 %v9400_v30, %v9353_v29  ;;  %v18215_v29 = vand.u32 4294901760, %v9775_v33 }
0x13c9   : > { %v9430_v43 = vpop.f32.mrf.mxu1 }
0x13ca   : > { %v9431_v5 = vadd.f32 %v9430_v43, %v9401_v36 }
0x13cc   : > { %v9683_v10 = vadd.f32 %v9431_v5, %v17221_v32 }
0x13ce   : > { %v9692_v12 = vadd.f32 %v9690_v28, %v9683_v10 }
0x13d0   : > { %9737 = vrot.lane.b32.xlu0 %v9692_v12, %s11062_s26  ;;  %9745 = vrot.lane.b32.xlu1 %v9692_v12, %s11060_s22  ;;  %10356 = vst [vmem:[%s18134_s13] sm:$0xff] %v9692_v12  ;;  %v18177_v47 = vand.u32 4294901760, %v9692_v12 }
0x13d1   : > { %9753 = vrot.lane.b32.xlu2 %v9692_v12, %s11061_s25 }
0x13d2   : > { %v18184_v16 = vsub.f32 %v9692_v12, %v18177_v47 }
0x13d4   : > { %v9570_v41 = vpop.f32.mrf.mxu0  ;;  %v9855_v6 = vand.u32 4294901760, %v18184_v16 }
0x13d5   : > { %v9464_v46 = vpop.f32.mrf.mxu2 }
0x13d6   : > { %v9530_v22 = vpop.f32.mrf.mxu3  ;;  %v18224_v36 = vsub.f32 %v18184_v16, %v9855_v6 }
0x13d7   : > { %v9531_v50 = vadd.f32 %v9530_v22, %v9464_v46 }
0x13d8   : > { %9713 = vrot.lane.b32.xlu0 %v9692_v12, %s11065_s15  ;;  %9721 = vrot.lane.b32.xlu1 %v9692_v12, %s11064_s23 }
0x13d9   : > { %9729 = vrot.lane.b32.xlu2 %v9692_v12, %s18822_s14  ;;  %v9571_v32 = vadd.f32 %v9570_v41, %v9531_v50 }
0x13dc   : > { %v9602_v61 = vpop.f32.mrf.mxu1 }
0x13dd   : > { %v9603_v60 = vadd.f32 %v9602_v61, %v9571_v32  ;;  %v9650_v62 = vpop.f32.mrf.mxu2  ;;  %v9696_v32 = vld [vmem:[#allocation5 + $0x78] sm:$0xff] }
0x13de   : > { %v9680_v63 = vpop.f32.mrf.mxu3 }
0x13df   : > { %v9651_v19 = vadd.f32 %v9650_v62, %v9603_v60 }
0x13e1   : > { %v9681_v44 = vadd.f32 %v9680_v63, %v9651_v19  ;;  %9705 = vrot.lane.b32.xlu2 %v9692_v12, %s18823_s11  ;;  %v18252_v63 = vsub.f32 %v9775_v33, %v18215_v29 }
0x13e3   : > { %v9684_v54 = vadd.f32 %v9681_v44, %v17238_v18  ;;  %v10580_v18 = vld [vmem:[%s18615_s3 + $0x70] sm:$0xff] }
0x13e5   : > { %v18143_v57 = vadd.f32 %v9690_v28, %v9684_v54 }
0x13e7   : > { %9755 = vrot.lane.b32.xlu0 %v18143_v57, %s11061_s25  ;;  %9739 = vrot.lane.b32.xlu1 %v18143_v57, %s11062_s26  ;;  %10357 = vst [vmem:[%s18134_s13 + $0x8] sm:$0xff] %v18143_v57 }
0x13e9   : > { %9747 = vrot.lane.b32.xlu2 %v18143_v57, %s11060_s22  ;;  %s10968_s22 = scalar_lea.hbm %s18619_s7, 32 }
0x13ef   : > { %9731 = vrot.lane.b32.xlu0 %v18143_v57, %s18822_s14  ;;  %9715 = vrot.lane.b32.xlu1 %v18143_v57, %s11065_s15 }
0x13f1   : > { %9723 = vrot.lane.b32.xlu2 %v18143_v57, %s11064_s23  ;;  %s10592_s23 = sshll.u32 %s11138_s12, 4 }
0x13f7   : > { %9707 = vrot.lane.b32.xlu0 %v18143_v57, %s18823_s11  ;;  %9697 = vrot.lane.b32.xlu1 %v9692_v12, %s18824_s19 }
0x13f9   : > { %9699 = vrot.lane.b32.xlu2 %v18143_v57, %s18824_s19  ;;  %s10377_s19 = scalar_lea.hbm %s18619_s7, %s10592_s23 }
0x13fa   : > { %s10381_s17 = sshll.u32 %s10377_s19, 4  ;;  %s10382_s17 = int_to_ptr.hbm [resolvable:$true] %s10381_s17 }
0x13fb   : > { %s10962_s18 = sshra.s32 %s10382_s17, 4  ;;  %s10963_s18 = int_to_ptr.hbm [resolvable:$true] %s10962_s18 }
0x13fc   : > { %s10964_s10 = scalar_lea.hbm %s10963_s18, 16  ;;  %p10969_p2 = scmp.lt.s32.totalorder %s10963_s18, %s18619_s7 }
0x13fd   : > { %p10965_p4 = scmp.ne.s32.totalorder %s10963_s18, %s10964_s10  ;;  %p10970_p8 = scmp.lt.s32.totalorder %s10968_s22, %s10964_s10 }
0x13ff   : > { %9766 = vperm.xlu0 %10678, %v10580_v18   ;;  %9771 = vperm.xlu1 %10677, %v10581_v21   ;;  %v9778_v21 = vsel %vm488_vm6, %v9696_v32, 0  ;;  %p10966_p6 = pnand %p10965_p4, %p11170_p12  ;;  %p10971_p9 = por %p10970_p8, %p10969_p2 }
0x1401   : > { %p10967_p13 = pneg %p10966_p6 }
0x1403   : > { %p10972_p10 = pnand %p10971_p9, %p10967_p13 }
0x142b   : > { %v9754_v1 = vpop.permute.xlu2 %9753 }
0x1433   : > { %v9730_v25 = vpop.permute.xlu2 %9729 }
0x143b   : > { %v18170_v0 = vpop.permute.xlu2 %9705 }
0x1442   : > { %v9738_v13 = vpop.permute.xlu0 %9737  ;;  %v9746_v39 = vpop.permute.xlu1 %9745 }
0x1443   : > { %v9748_v27 = vpop.permute.xlu2 %9747 }
0x1444   : > { %v9749_v53 = vsel %vm468_vm1, %v9746_v39, %v9748_v27  ;;  %v9750_v11 = vsel %vm468_vm1, %v9748_v27, %v9746_v39  ;;  %v9857_v39 = vand.u32 4294901760, %v18224_v36 }
0x1445   : > { %v9751_v48 = vmul.f32 %v17742_v55, %v9749_v53  ;;  %v9752_v24 = vmul.f32 %v17760_v40, %v9750_v11  ;;  %v18287_v53 = vand.u32 4294901760, %v18252_v63 }
0x1447   : > { %v18181_v42 = vand.u32 4294901760, %v9751_v48  ;;  %v18202_v35 = vand.u32 4294901760, %v9752_v24 }
0x1449   : > { %v18198_v40 = vsub.f32 %v9751_v48, %v18181_v42  ;;  %v19111_v48 = vld [vmem:[#allocation24_spill] sm:$0xff] }
0x144a   : > { %v18174_v9 = vpop.permute.xlu0 %9713  ;;  %v9722_v2 = vpop.permute.xlu1 %9721 }
0x144b   : > { %v9724_v58 = vpop.permute.xlu2 %9723 }
0x144c   : > { %v9726_v26 = vsel %vm432_vm4, %v9724_v58, %v9722_v2  ;;  %v9725_v46 = vsel %vm432_vm4, %v9722_v2, %v9724_v58 }
0x144d   : > { %v18291_v11 = vmul.f32 %v19111_v48, %v9725_v46  ;;  %v9808_v46 = vsub.f32 %v18252_v63, %v18287_v53 }
0x1453   : > { %v9700_v58 = vpop.permute.xlu2 %9699 }
0x1459   : > { %v9756_v59 = vpop.permute.xlu0 %9755  ;;  %v9740_v37 = vpop.permute.xlu1 %9739 }
0x145a   : > { %v9757_v15 = vsel %vm480_vm2, %v9754_v1, %v9756_v59  ;;  %v9758_v55 = vsel %vm480_vm2, %v9756_v59, %v9754_v1  ;;  %v9741_v14 = vsel %vm456_vm0, %v9738_v13, %v9740_v37  ;;  %v9742_v10 = vsel %vm456_vm0, %v9740_v37, %v9738_v13 }
0x145b   : > { %v9759_v45 = vmul.f32 %v17724_v38, %v9757_v15  ;;  %v9743_v8 = vmul.f32 %v17703_v51, %v9741_v14  ;;  %v9760_v20 = vmul.f32 %v17730_v23, %v9758_v55  ;;  %v9727_v51 = vmul.f32 %v17845_v34, %v9726_v26 }
0x145c   : > { %v9837_v23 = vand.u32 4294901760, %v18198_v40  ;;  %v18227_v34 = vsub.f32 %v9752_v24, %v18202_v35  ;;  %v9744_v19 = vmul.f32 %v17768_v56, %v9742_v10  ;;  %v18295_v37 = vand.u32 4294901760, %v9778_v21 }
0x145d   : > { %v18205_v49 = vand.u32 4294901760, %v9759_v45  ;;  %v18207_v31 = vand.u32 4294901760, %v9743_v8  ;;  %v18230_v5 = vand.u32 4294901760, %v9760_v20  ;;  %v18246_v61 = vand.u32 4294901760, %v9727_v51 }
0x145e   : > { %v18785_v2 = vand.u32 4294901760, %v18227_v34  ;;  %v18293_v24 = vand.u32 4294901760, %v9744_v19  ;;  %v18328_v32 = vsub.f32 %v9778_v21, %v18295_v37 }
0x145f   : > { %v18211_v38 = vsub.f32 %v9759_v45, %v18205_v49  ;;  %9788 = vmatpush.msrb.mxu0 %v18205_v49  ;;  %9945 = vmatpush.msrb.mxu3 %v18205_v49  ;;  %v18218_v30 = vsub.f32 %v9743_v8, %v18207_v31  ;;  %v18265_v54 = vsub.f32 %v9760_v20, %v18230_v5 }
0x1460   : > { %v18284_v27 = vsub.f32 %v9727_v51, %v18246_v61  ;;  %v18379_v4 = vand.u32 4294901760, %v18328_v32 }
0x1461   : > { %v9831_v43 = vand.u32 4294901760, %v18211_v38  ;;  %v9732_v28 = vpop.permute.xlu0 %9731  ;;  %v9716_v12 = vpop.permute.xlu1 %9715  ;;  %9790 = vmatpush.msrb.mxu0 %v18181_v42  ;;  %9901 = vmatpush.msrb.mxu2 %v18211_v38  ;;  %v10112_v3 = vand.u32 4294901760, %v18265_v54 }
0x1462   : > { %v9733_v22 = vsel %vm444_vm3, %v9730_v25, %v9732_v28  ;;  %v9734_v50 = vsel %vm444_vm3, %v9732_v28, %v9730_v25  ;;  %v9718_v41 = vsel %vm420_vm5, %v9716_v12, %v18174_v9  ;;  %9947 = vmatpush.msrb.mxu3 %v18181_v42  ;;  %v9717_v55 = vsel %vm420_vm5, %v18174_v9, %v9716_v12  ;;  %v19112_v9 = vld [vmem:[#allocation25_spill] sm:$0xff]  ;;  %v19113_v28 = vld [vmem:[#allocation23_spill] sm:$0xff] }
0x1463   : > { %v9735_v60 = vmul.f32 %v17813_v7, %v9733_v22  ;;  %v9719_v62 = vmul.f32 %v17752_v17, %v9718_v41  ;;  %9792 = vmatpush.msrb.mxu0 %v18207_v31  ;;  %9904 = vmatpush.msrb.mxu2 %v18198_v40  ;;  %v9832_v44 = vsub.f32 %v18211_v38, %v9831_v43  ;;  %v9843_v17 = vand.u32 4294901760, %v18218_v30 }
0x1464   : > { %9949 = vmatpush.msrb.mxu3 %v18207_v31  ;;  %v9838_v7 = vsub.f32 %v18198_v40, %v9837_v23  ;;  %v9736_v18 = vmul.f32 %v17819_v52, %v9734_v50  ;;  %v9861_v22 = vand.u32 4294901760, %v18284_v27  ;;  %v18321_v50 = vsub.f32 %v9744_v19, %v18293_v24 }
0x1465   : > { %v18268_v56 = vand.u32 4294901760, %v9735_v60  ;;  %v18271_v1 = vand.u32 4294901760, %v9719_v62  ;;  %9907 = vmatpush.msrb.mxu2 %v18218_v30  ;;  %v9833_v25 = vand.u32 4294901760, %v9832_v44  ;;  %v9844_v13 = vsub.f32 %v18218_v30, %v9843_v17 }
0x1466   : > { %v9839_v59 = vand.u32 4294901760, %v9838_v7  ;;  %v18298_v15 = vand.u32 4294901760, %v9736_v18  ;;  %v10113_v19 = vsub.f32 %v18265_v54, %v10112_v3 }
0x1467   : > { %9794 = vmatpush.msrb.mxu0 %v18268_v56  ;;  %9951 = vmatpush.msrb.mxu3 %v18268_v56  ;;  %v18281_v52 = vsub.f32 %v9735_v60, %v18268_v56  ;;  %v9845_v20 = vand.u32 4294901760, %v9844_v13  ;;  %v18312_v51 = vsub.f32 %v9719_v62, %v18271_v1  ;;  %v18331_v60 = vand.u32 4294901760, %v18143_v57  ;;  %v19114_v62 = vld [vmem:[#allocation18_spill] sm:$0xff] }
0x1468   : > { %9834 = vmatpush.msrb.mxu1 %v9833_v25  ;;  %v9720_v44 = vmul.f32 %v19114_v62, %v9717_v55  ;;  %v18344_v21 = vsub.f32 %v9736_v18, %v18298_v15  ;;  %v18352_v55 = vand.u32 4294901760, %v18291_v11  ;;  %v9862_v18 = vsub.f32 %v18284_v27, %v9861_v22 }
0x1469   : > { %v9708_v14 = vpop.permute.xlu0 %9707  ;;  %v9698_v45 = vpop.permute.xlu1 %9697  ;;  %9796 = vmatpush.msrb.mxu0 %v18177_v47  ;;  %9910 = vmatpush.msrb.mxu2 %v18281_v52  ;;  %v9849_v8 = vand.u32 4294901760, %v18281_v52 }
0x146a   : > { %v9710_v26 = vsel %vm408_vm7, %v9708_v14, %v18170_v0  ;;  %v9702_v33 = vsel %vm397_vm8, %v9700_v58, %v9698_v45  ;;  %9840 = vmatpush.msrb.mxu1 %v9839_v59  ;;  %9953 = vmatpush.msrb.mxu3 %v18177_v47  ;;  %v9709_v13 = vsel %vm408_vm7, %v18170_v0, %v9708_v14  ;;  %v9867_v59 = vand.u32 4294901760, %v18312_v51 }
0x146b   : > { %v9711_v10 = vmul.f32 %v19112_v9, %v9710_v26  ;;  %v9703_v12 = vmul.f32 %v19113_v28, %v9702_v33  ;;  %9798 = vmatpush.msrb.mxu0 %v18246_v61  ;;  %v9850_v41 = vsub.f32 %v18281_v52, %v9849_v8  ;;  %9913 = vmatpush.msrb.mxu2 %v18184_v16  ;;  %v18368_v33 = vand.u32 4294901760, %v9808_v46 }
0x146c   : > { %9846 = vmatpush.msrb.mxu1 %v9845_v20  ;;  %9955 = vmatpush.msrb.mxu3 %v18246_v61  ;;  %v10119_v0 = vsub.f32 %v18227_v34, %v18785_v2  ;;  %v9701_v14 = vsel %vm397_vm8, %v9698_v45, %v9700_v58  ;;  %v18786_v9 = vand.u32 4294901760, %v18321_v50  ;;  %v18383_v58 = vsub.f32 %v18143_v57, %v18331_v60 }
0x146d   : > { %v18334_v7 = vand.u32 4294901760, %v9711_v10  ;;  %v18336_v25 = vand.u32 4294901760, %v9703_v12  ;;  %9800 = vmatpush.msrb.mxu0 %v18271_v1  ;;  %v9851_v48 = vand.u32 4294901760, %v9850_v41  ;;  %9916 = vmatpush.msrb.mxu2 %v18284_v27  ;;  %v18385_v45 = vand.u32 4294901760, %v9720_v44 }
0x146e   : > { %9957 = vmatpush.msrb.mxu3 %v18271_v1  ;;  %v9868_v46 = vsub.f32 %v18312_v51, %v9867_v59  ;;  %v10130_v62 = vand.u32 4294901760, %v18344_v21  ;;  %v9863_v57 = vand.u32 4294901760, %v9862_v18  ;;  %v9816_v18 = vsub.f32 %v18328_v32, %v18379_v4 }
0x146f   : > { %v18357_v26 = vsub.f32 %v9711_v10, %v18334_v7  ;;  %9802 = vmatpush.msrb.mxu0 %v18334_v7  ;;  %9852 = vmatpush.msrb.mxu1 %v9851_v48  ;;  %v18371_v20 = vsub.f32 %v9703_v12, %v18336_v25  ;;  %v19115_v10 = vld [vmem:[#allocation19_spill] sm:$0xff]  ;;  %v10114_v12 = vand.u32 4294901760, %v10113_v19  ;;  %v10120_v19 = vand.u32 4294901760, %v10119_v0 }
0x1470   : > { %v9712_v28 = vmul.f32 %v19115_v10, %v9709_v13  ;;  %9919 = vmatpush.msrb.mxu2 %v18312_v51  ;;  %9959 = vmatpush.msrb.mxu3 %v18334_v7  ;;  %v19116_v13 = vld [vmem:[#allocation21_spill] sm:$0xff]  ;;  %v18417_v2 = vsub.f32 %v9720_v44, %v18385_v45  ;;  %v9869_v0 = vand.u32 4294901760, %v9868_v46  ;;  %v18439_v40 = vand.u32 4294901760, %v9816_v18 }
0x1471   : > { %v9873_v41 = vand.u32 4294901760, %v18357_v26  ;;  %9804 = vmatpush.msrb.mxu0 %v18336_v25  ;;  %9858 = vmatpush.msrb.mxu1 %v9857_v39  ;;  %v9704_v48 = vmul.f32 %v19116_v13, %v9701_v14  ;;  %v9879_v36 = vand.u32 4294901760, %v18371_v20  ;;  %v18403_v39 = vsub.f32 %v18291_v11, %v18352_v55 }
0x1472   : > { %9922 = vmatpush.msrb.mxu2 %v18357_v26  ;;  %9961 = vmatpush.msrb.mxu3 %v18336_v25  ;;  %v10125_v14 = vsub.f32 %v18321_v50, %v18786_v9  ;;  %v18409_v13 = vand.u32 4294901760, %v9712_v28  ;;  %v10136_v11 = vand.u32 4294901760, %v18383_v58  ;;  %v10131_v9 = vsub.f32 %v18344_v21, %v10130_v62 }
0x1473   : > { %v9874_v10 = vsub.f32 %v18357_v26, %v9873_v41  ;;  %9810 = vmatmul.f32.vlgmr.msrb.gmra.mxu0 %v18368_v33  ;;  %9864 = vmatpush.msrb.mxu1 %v9863_v57  ;;  %v18423_v38 = vand.u32 4294901760, %v9704_v48  ;;  %v10142_v46 = vand.u32 4294901760, %v18403_v39 }
0x1474   : > { %10115 = vmatpush.msra.mxu3 %v10114_v12  ;;  %9985 = vmatpush.msra.mxu0 %v9831_v43  ;;  %v9880_v43 = vsub.f32 %v18371_v20, %v9879_v36  ;;  %v10126_v44 = vand.u32 4294901760, %v10125_v14  ;;  %v18434_v57 = vsub.f32 %v9712_v28, %v18409_v13 }
0x1475   : > { %9925 = vmatpush.msrb.mxu2 %v18371_v20  ;;  %v9875_v12 = vand.u32 4294901760, %v9874_v10  ;;  %9870 = vmatpush.msrb.mxu1 %v9869_v0  ;;  %v10137_v10 = vsub.f32 %v18383_v58, %v10136_v11  ;;  %v18446_v14 = vsub.f32 %v9704_v48, %v18423_v38 }
0x1476   : > { %10121 = vmatpush.msra.mxu3 %v10120_v19  ;;  %9989 = vmatpush.msra.mxu0 %v9837_v23  ;;  %v10132_v23 = vand.u32 4294901760, %v10131_v9  ;;  %v10148_v19 = vand.u32 4294901760, %v18417_v2  ;;  %v9881_v30 = vand.u32 4294901760, %v9880_v43  ;;  %v10154_v9 = vand.u32 4294901760, %v18434_v57 }
0x1477   : > { %10069 = vmatpush.msra.mxu2 %v18230_v5  ;;  %9876 = vmatpush.msrb.mxu1 %v9875_v12  ;;  %v10138_v52 = vand.u32 4294901760, %v10137_v10  ;;  %v10160_v28 = vand.u32 4294901760, %v18446_v14 }
0x1478   : > { %9928 = vmatmul.f32.vlgmr.msrb.gmra.mxu2 %v18252_v63  ;;  %9993 = vmatpush.msra.mxu0 %v9843_v17  ;;  %v10143_v17 = vsub.f32 %v18403_v39, %v10142_v46  ;;  %v10155_v16 = vsub.f32 %v18434_v57, %v10154_v9 }
0x1479   : > { %10071 = vmatpush.msra.mxu2 %v18202_v35  ;;  %10127 = vmatpush.msra.mxu3 %v10126_v44 }
0x147a   : > { %9965 = vmatmul.f32.vlgmr.msrb.gmra.mxu3 %v18287_v53  ;;  %9997 = vmatpush.msra.mxu0 %v9849_v8  ;;  %v10149_v8 = vsub.f32 %v18417_v2, %v10148_v19  ;;  %v10144_v48 = vand.u32 4294901760, %v10143_v17 }
0x147b   : > { %10073 = vmatpush.msra.mxu2 %v18293_v24  ;;  %10133 = vmatpush.msra.mxu3 %v10132_v23 }
0x147c   : > { %9882 = vmatpush.msrb.mxu1 %v9881_v30  ;;  %9818 = vmatmul.f32.gmra.mxu0 %v18439_v40 }
0x147d   : > { %9884 = vmatmul.f32.vlgmr.msrb.gmra.mxu1 %v18215_v29  ;;  %10001 = vmatpush.msra.mxu0 %v9855_v6  ;;  %v10150_v6 = vand.u32 4294901760, %v10149_v8 }
0x147e   : > { %10035 = vmatpush.msra.mxu1 %v18205_v49  ;;  %10075 = vmatpush.msra.mxu2 %v18298_v15  ;;  %v10161_v49 = vsub.f32 %v18446_v14, %v10160_v28 }
0x147f   : > { %10139 = vmatpush.msra.mxu3 %v10138_v52  ;;  %10005 = vmatpush.msra.mxu0 %v9861_v22 }
0x1480   : > { %10037 = vmatpush.msra.mxu1 %v18181_v42  ;;  %10077 = vmatpush.msra.mxu2 %v18331_v60  ;;  %v10156_v42 = vand.u32 4294901760, %v10155_v16 }
0x1481   : > { %10145 = vmatpush.msra.mxu3 %v10144_v48  ;;  %9933 = vmatmul.f32.gmra.mxu2 %v18328_v32 }
0x1482   : > { %10009 = vmatpush.msra.mxu0 %v9867_v59  ;;  %10039 = vmatpush.msra.mxu1 %v18207_v31  ;;  %v10162_v31 = vand.u32 4294901760, %v10161_v49 }
0x1483   : > { %10079 = vmatpush.msra.mxu2 %v18352_v55  ;;  %10151 = vmatpush.msra.mxu3 %v10150_v6 }
0x1484   : > { %9971 = vmatmul.f32.gmra.mxu3 %v18379_v4  ;;  %10013 = vmatpush.msra.mxu0 %v9873_v41 }
0x1485   : > { %10041 = vmatpush.msra.mxu1 %v18268_v56  ;;  %10081 = vmatpush.msra.mxu2 %v18385_v45 }
0x1486   : > { %10157 = vmatpush.msra.mxu3 %v10156_v42  ;;  %9888 = vmatmul.f32.gmra.mxu1 %v18295_v37 }
0x1487   : > { %10017 = vmatpush.msra.mxu0 %v9879_v36  ;;  %10043 = vmatpush.msra.mxu1 %v18177_v47  ;;  %v19117_v47 = vand.u32 4294901760, %v18227_v34 }
0x1488   : > { %10083 = vmatpush.msra.mxu2 %v18409_v13  ;;  %10163 = vmatpush.msra.mxu3 %v10162_v31 }
0x1489   : > { %10019 = vmatmul.f32.vlgmr.msra.gmra.mxu0 %v18215_v29  ;;  %10045 = vmatpush.msra.mxu1 %v18246_v61  ;;  %v19118_v61 = vand.u32 4294901760, %v18321_v50 }
0x148a   : > { %10316 = vmatpush.msrb.mxu3 %v18230_v5  ;;  %10182 = vmatpush.msrb.mxu0 %v18265_v54 }
0x148b   : > { %10085 = vmatpush.msra.mxu2 %v18423_v38  ;;  %10047 = vmatpush.msra.mxu1 %v18271_v1 }
0x148c   : > { %10318 = vmatpush.msrb.mxu3 %v18202_v35  ;;  %10091 = vmatmul.f32.vlgmr.msra.gmra.mxu2 %v18368_v33 }
0x148d   : > { %10185 = vmatpush.msrb.mxu0 %v18227_v34  ;;  %10266 = vmatpush.msrb.mxu2 %v10112_v3 }
0x148e   : > { %10165 = vmatmul.f32.vlgmr.msra.gmra.mxu3 %v18215_v29  ;;  %10049 = vmatpush.msra.mxu1 %v18334_v7 }
0x148f   : > { %10188 = vmatpush.msrb.mxu0 %v18321_v50  ;;  %10270 = vmatpush.msrb.mxu2 %v19117_v47 }
0x1490   : > { %10320 = vmatpush.msrb.mxu3 %v18293_v24  ;;  %10051 = vmatpush.msra.mxu1 %v18336_v25 }
0x1491   : > { %10191 = vmatpush.msrb.mxu0 %v18344_v21  ;;  %10274 = vmatpush.msrb.mxu2 %v19118_v61 }
0x1492   : > { %10322 = vmatpush.msrb.mxu3 %v18298_v15  ;;  %10023 = vmatmul.f32.gmra.mxu0 %v18295_v37 }
0x1493   : > { %10053 = vmatmul.f32.vlgmr.msra.gmra.mxu1 %v18215_v29  ;;  %10194 = vmatpush.msrb.mxu0 %v18383_v58 }
0x1494   : > { %10226 = vmatpush.msrb.mxu1 %v18230_v5  ;;  %10278 = vmatpush.msrb.mxu2 %v10130_v62 }
0x1495   : > { %10324 = vmatpush.msrb.mxu3 %v18331_v60  ;;  %10099 = vmatmul.f32.gmra.mxu2 %v18439_v40 }
0x1496   : > { %10197 = vmatpush.msrb.mxu0 %v18403_v39  ;;  %10228 = vmatpush.msrb.mxu1 %v18202_v35 }
0x1497   : > { %10282 = vmatpush.msrb.mxu2 %v10136_v11  ;;  %10326 = vmatpush.msrb.mxu3 %v18352_v55 }
0x1498   : > { %10169 = vmatmul.f32.gmra.mxu3 %v18295_v37  ;;  %10200 = vmatpush.msrb.mxu0 %v18417_v2 }
0x1499   : > { %10230 = vmatpush.msrb.mxu1 %v18293_v24  ;;  %10286 = vmatpush.msrb.mxu2 %v10142_v46 }
0x149a   : > { %10328 = vmatpush.msrb.mxu3 %v18385_v45  ;;  %10203 = vmatpush.msrb.mxu0 %v18434_v57 }
0x149b   : > { %10232 = vmatpush.msrb.mxu1 %v18298_v15  ;;  %10290 = vmatpush.msrb.mxu2 %v10148_v19 }
0x149c   : > { %10330 = vmatpush.msrb.mxu3 %v18409_v13  ;;  %10057 = vmatmul.f32.gmra.mxu1 %v18295_v37 }
0x149d   : > { %10206 = vmatpush.msrb.mxu0 %v18446_v14  ;;  %10234 = vmatpush.msrb.mxu1 %v18331_v60 }
0x149e   : > { %10294 = vmatpush.msrb.mxu2 %v10154_v9  ;;  %10332 = vmatpush.msrb.mxu3 %v18423_v38 }
0x149f   : > { %10209 = vmatmul.f32.vlgmr.msrb.gmra.mxu0 %v18252_v63  ;;  %10236 = vmatpush.msrb.mxu1 %v18352_v55 }
0x14a0   : > { %10298 = vmatpush.msrb.mxu2 %v10160_v28  ;;  %10334 = vmatmul.f32.vlgmr.msrb.gmra.mxu3 %v18215_v29 }
0x14a1   : > { %10238 = vmatpush.msrb.mxu1 %v18385_v45  ;;  %10300 = vmatmul.f32.vlgmr.msrb.gmra.mxu2 %v18215_v29 }
0x14a3   : > { %10240 = vmatpush.msrb.mxu1 %v18409_v13 }
0x14a5   : > { %10242 = vmatpush.msrb.mxu1 %v18423_v38 }
0x14a6   : > { %10246 = vmatmul.f32.vlgmr.msrb.gmra.mxu1 %v18287_v53 }
0x14a7   : > { %10214 = vmatmul.f32.gmra.mxu0 %v18328_v32 }
0x14a8   : > { %10338 = vmatmul.f32.gmra.mxu3 %v18295_v37 }
0x14a9   : > { %10304 = vmatmul.f32.gmra.mxu2 %v18295_v37 }
0x14ae   : > { %10252 = vmatmul.f32.gmra.mxu1 %v18379_v4 }
0x14af   : > { %10975 = shalt.err (!%p10972_p10)
}
0x14b0   : > { %10604 = dma.vmem_to_hbm [thread:$0]  (%p11170_p12), %s10380_s20, 256, %s10382_s17, %s10361_s21   ;;  %v9767_v54 = vpop.permute.xlu0 %9766  ;;  %v9772_v25 = vpop.permute.xlu1 %9771  ;;  %v19119_v57 = vld [vmem:[#allocation20_spill] sm:$0xff]  ;;  %v19120_v61 = vld [vmem:[#allocation22_spill] sm:$0xff] }
0x14b1   : > { %s380_s2 = scalar_lea.vmem [#allocation9], %s11229_s1  ;;  %s10392_s1 = scalar_lea.hbm %s18620_s8, %s10592_s23 }
0x14b2   : > { %s10394_s11 = sshll.u32 %s380_s2, 4  ;;  %s10396_s19 = sshll.u32 %s10392_s1, 4  ;;  %s10395_s11 = int_to_ptr.vmem [resolvable:$true] %s10394_s11  ;;  %s10397_s19 = int_to_ptr.hbm [resolvable:$true] %s10396_s19 }
0x14b3   : > { %s10366_s20 = scalar_lea.sflag [#allocation10], %s11226_s0  ;;  %s10990_s17 = sshra.s32 %s10397_s19, 4  ;;  %s10991_s17 = int_to_ptr.hbm [resolvable:$true] %s10990_s17 }
0x14b4   : > { %s10992_s12 = scalar_lea.hbm %s10991_s17, 16  ;;  %s10996_s18 = scalar_lea.hbm %s18620_s8, 32 }
0x14b5   : > { %p10993_p11 = scmp.ne.s32.totalorder %s10991_s17, %s10992_s12  ;;  %p10997_p5 = scmp.lt.s32.totalorder %s10991_s17, %s18620_s8 }
0x14b6   : > { %p10998_p1 = scmp.lt.s32.totalorder %s10996_s18, %s10992_s12 }
0x14b7   : > { %p10994_p0 = pnand %p10993_p11, %p11170_p12 }
0x14b8   : > { %p10999_p4 = por %p10998_p1, %p10997_p5 }
0x14b9   : > { %p10995_p3 = pneg %p10994_p0 }
0x14bb   : > { %p11000_p6 = pnand %p10999_p4, %p10995_p3 }
0x14f0   : > { %v9811_v35 = vpop.f32.mrf.mxu0 }
0x14f1   : > { %v9812_v56 = vadd.f32 %v9811_v35, %v9767_v54 }
0x14f9   : > { %v9819_v63 = vpop.f32.mrf.mxu0 }
0x14fa   : > { %v9885_v29 = vpop.f32.mrf.mxu1  ;;  %v9820_v21 = vadd.f32 %v9819_v63, %v9772_v25 }
0x14fb   : > { %v9929_v34 = vpop.f32.mrf.mxu2  ;;  %v9886_v1 = vadd.f32 %v9885_v29, %v9812_v56 }
0x14fd   : > { %v9966_v5 = vpop.f32.mrf.mxu3  ;;  %v9930_v2 = vadd.f32 %v9929_v34, %v9886_v1 }
0x14ff   : > { %v9967_v3 = vadd.f32 %v9966_v5, %v9930_v2 }
0x1503   : > { %v9889_v27 = vpop.f32.mrf.mxu1 }
0x1504   : > { %v9934_v53 = vpop.f32.mrf.mxu2  ;;  %v9890_v26 = vadd.f32 %v9889_v27, %v9820_v21 }
0x1506   : > { %v10020_v37 = vpop.f32.mrf.mxu0  ;;  %v9935_v45 = vadd.f32 %v9934_v53, %v9890_v26 }
0x1507   : > { %v9972_v24 = vpop.f32.mrf.mxu3  ;;  %v10021_v15 = vadd.f32 %v10020_v37, %v9967_v3 }
0x1508   : > { %v9973_v13 = vadd.f32 %v9972_v24, %v9935_v45 }
0x150f   : > { %v10092_v50 = vpop.f32.mrf.mxu2  ;;  %v10024_v7 = vpop.f32.mrf.mxu0 }
0x1510   : > { %v10054_v51 = vpop.f32.mrf.mxu1  ;;  %v10093_v20 = vadd.f32 %v10092_v50, %v9767_v54  ;;  %v10025_v12 = vadd.f32 %v10024_v7, %v9973_v13 }
0x1511   : > { %v10055_v22 = vadd.f32 %v10054_v51, %v10021_v15  ;;  %v10166_v60 = vpop.f32.mrf.mxu3 }
0x1512   : > { %v10167_v36 = vadd.f32 %v10166_v60, %v10093_v20 }
0x1513   : > { %v10342_v32 = vmul.f32 0.5, %v10055_v22 }
0x1515   : > { %10736 = vtanh.f32 %v10342_v32 }
0x1518   : > { %v10100_v41 = vpop.f32.mrf.mxu2 }
0x1519   : > { %v10058_v59 = vpop.f32.mrf.mxu1  ;;  %v10101_v14 = vadd.f32 %v10100_v41, %v9772_v25 }
0x151a   : > { %v10059_v46 = vadd.f32 %v10058_v59, %v10025_v12 }
0x151b   : > { %v10737_v55 = vpop.eup %10736  ;;  %v10170_v4 = vpop.f32.mrf.mxu3 }
0x151c   : > { %v10346_v33 = vmul.f32 2.0, %v10737_v55  ;;  %v10210_v62 = vpop.f32.mrf.mxu0  ;;  %v10171_v9 = vadd.f32 %v10170_v4, %v10101_v14 }
0x151d   : > { %v10211_v39 = vadd.f32 %v10210_v62, %v10167_v36 }
0x151e   : > { %v10348_v58 = vmul.f32 1.442695, %v10346_v33 }
0x1520   : > { %10738 = vpow2.f32 %v10348_v58 }
0x1523   : > { %v10247_v18 = vpop.f32.mrf.mxu1  ;;  %v10335_v38 = vpop.f32.mrf.mxu3 }
0x1524   : > { %v10248_v11 = vadd.f32 %v10247_v18, %v10211_v39  ;;  %v10301_v0 = vpop.f32.mrf.mxu2  ;;  %v10215_v30 = vpop.f32.mrf.mxu0 }
0x1525   : > { %v10216_v28 = vadd.f32 %v10215_v30, %v10171_v9 }
0x1526   : > { %v10739_v43 = vpop.eup %10738  ;;  %v10302_v44 = vadd.f32 %v10301_v0, %v10248_v11 }
0x1527   : > { %v10352_v40 = vmul.f32 %v10739_v43, %v19119_v57 }
0x1528   : > { %v10336_v23 = vadd.f32 %v10335_v38, %v10302_v44 }
0x1529   : > { %v10354_v10 = vadd.f32 %v10352_v40, %v10059_v46 }
0x152a   : > { %v10343_v19 = vmul.f32 0.5, %v10336_v23 }
0x152b   : > { %10358 = vst [vmem:[%s380_s2] sm:$0xff] %v10354_v10  ;;  %v10253_v8 = vpop.f32.mrf.mxu1  ;;  %v10339_v42 = vpop.f32.mrf.mxu3 }
0x152c   : > { %10740 = vtanh.f32 %v10343_v19  ;;  %v10254_v16 = vadd.f32 %v10253_v8, %v10216_v28  ;;  %v10305_v6 = vpop.f32.mrf.mxu2 }
0x152e   : > { %v10306_v49 = vadd.f32 %v10305_v6, %v10254_v16 }
0x1530   : > { %v10340_v47 = vadd.f32 %v10339_v42, %v10306_v49 }
0x1532   : > { %v10741_v17 = vpop.eup %10740 }
0x1533   : > { %v10347_v52 = vmul.f32 2.0, %v10741_v17 }
0x1535   : > { %v10350_v48 = vmul.f32 1.442695, %v10347_v52 }
0x1537   : > { %10742 = vpow2.f32 %v10350_v48 }
0x153d   : > { %v10743_v31 = vpop.eup %10742 }
0x153e   : > { %v10353_v35 = vmul.f32 %v10743_v31, %v19120_v61 }
0x1540   : > { %v10355_v29 = vadd.f32 %v10353_v35, %v10340_v47 }
0x1542   : > { %10359 = vst [vmem:[%s380_s2 + $0x8] sm:$0xff] %v10355_v29 }
0x1543   : > { %11003 = shalt.err (!%p11000_p6)
}
0x1544   : > { %10605 = dma.vmem_to_hbm [thread:$0]  (%p11170_p12), %s10395_s11, 256, %s10397_s19, %s10366_s20  }
0x1545 PF: > { %s10408_s0 = sand.u32 1, %s11042_s27   ;;  %p19121_p13 = scmp.ge.s32.totalorder %s11054_s30, 2 }
0x1546   : > { %s10409_s26 = scalar_lea.sflag [#allocation4], %s10408_s0 }
0x1547   : > { %p10620_p2 = pnand %p19121_p13, %p11189_p7 }
0x1549   : > { %p10621_p8 = pneg %p10620_p2 }
0x154b   : > { %11033 = dma.done.wait (%p10621_p8), %s10409_s26, 256  }
0x154c   : > { %11035 = vsyncadd (%p10621_p8), %s10409_s26, 4294967040  ;;  %s10419_s22 = scalar_lea.sflag [#allocation10], %s10408_s0 }
0x154d   : > { %11037 = dma.done.wait (%p10621_p8), %s10419_s22, 256  }
0x154e   : > { %11039 = vsyncadd (%p10621_p8), %s10419_s22, 4294967040  ;;  %s19122_s9 = sld [smem:[#allocation16_spill]]  ;;  %p24_p12 = scmp.ge.s32.totalorder %s11158_s24, 4  }
0x154f   : > { %s19123_s27 = smov %s11046_s28  ;;  %s19124_s28 = smov %s11050_s29 }
0x1550   : > { %s19126_s30 = smov %s11158_s24  ;;  %26 = sbr.rel (!%p24_p12) target bundleno = 11 (0xb), region = 155 }
0x1554   : > { %s19125_s29 = smov %s19122_s9 }
0x1555   :  { %10425 = vsyncpa [#allocation3], 1 }
0x1556   :  { %10427 = vsyncpa [#allocation3 + $0x1], 1 }
0x1557   :  { %10428 = vsyncpa [#allocation6], 1 }
0x1558   :  { %10429 = vsyncpa [#allocation4], 1 }
0x1559   :  { %10431 = vsyncpa [#allocation4 + $0x1], 1 }
0x155a   :  { %10432 = vsyncpa [#allocation10], 1 }
0x155b   :  { %10434 = vsyncpa [#allocation10 + $0x1], 1 }

</bundles_post_ra>
